<compile_context>
chip_gen: v6e
topology: v6e:2x2x1
jax: 0.10.0
libtpu: 0.0.40
codegen_flags: <defaults>
</compile_context>

<pallas_src>
import jax
import jax.numpy as jnp
from jax.experimental import pallas as pl
from jax.experimental.pallas import tpu as pltpu

# ---------------- config (small synthetic shapes) ----------------
B        = 2              # graphs in batch
N        = 8              # dense PPGN node dim per graph (nmax)
NN_NODES = B * N          # total nodes for subgraph GNN
IN_DIM   = 4
RW_DIM   = 5              # random_walk_dim; walk_feats has RW_DIM + 1 cols
H1       = 16             # hidden1_dim
H2       = 8              # hidden2_dim
NNEURON  = 40             # PPGN nneuron (torch default)
PPGN_H2  = 32             # PPGN hidden2 (torch default)
NINP     = 3              # PPGN input channels
F_SUB    = IN_DIM + RW_DIM + 1   # subgraph MLP input dim
R_PPGN   = B * N * N             # flattened spatial rows = 128
NHOPS    = 4                     # hop0 (identity) .. hop3


# ========================= single fused kernel =========================
def fused_model_kernel(x2f_ref, mf_ref, sel_ref,
                       w1s_ref, w2s_ref, w3as_ref, w3bs_ref,
                       h1was_ref, h1wbs_ref, h1b_ref,
                       xcat_ref, hops_ref, onehot_ref,
                       wa_ref, ba_ref, wb_ref, bb_ref, colmask_ref,
                       out_ref):
    f32 = jnp.float32
    R = R_PPGN

    # ---------------- PPGN branch ----------------
    m2 = mf_ref[...]                                   # (R, 2) channels-last masks
    M = m2[:, 0:1] + m2[:, 1:2]                        # (R, 1)  = sum(data.M, 1)
    # hoisted lane-broadcast of the mask (reused by every block)
    Mb = jnp.broadcast_to(M, (R, NNEURON))             # (R, 40)

    sel0 = sel_ref[0]                                  # (B, R)  mask-0 graph selector
    sel1 = sel_ref[1]                                  # (B, R)  mask-1 graph selector
    h1b = h1b_ref[...]                                 # (1, 32)

    x = x2f_ref[...]                                   # (R, 40); chans >= NINP are 0
    acc = jnp.zeros((B, PPGN_H2), f32)                 # running h1 projection

    for l in range(5):                                 # 5 PPGN blocks, static unroll
        w1 = w1s_ref[l]                                # (40, 40)
        w2 = w2s_ref[l]                                # (40, 40)
        w3a = w3as_ref[l]                              # (40, 40)  (x1x2 half of mlp*_3)
        w3b = w3bs_ref[l]                              # (40, 40)  (x     half of mlp*_3)

        x1 = jnp.maximum(jnp.dot(x, w1, preferred_element_type=f32) * Mb, 0.0)
        x2 = jnp.maximum(jnp.dot(x, w2, preferred_element_type=f32) * Mb, 0.0)

        # per-channel NxN matmul per graph: x1x2[b,i,j,c] = sum_k x1[b,i,k,c]*x2[b,k,j,c]
        x1g = x1.reshape(B, N, N, NNEURON)             # layout-trivial reshapes
        x2g = x2.reshape(B, N, N, NNEURON)
        prod = x1g[:, :, 0:1, :] * x2g[:, 0:1, :, :]
        for k in range(1, N):                          # N=8, static unroll (VPU)
            prod = prod + x1g[:, :, k:k + 1, :] * x2g[:, k:k + 1, :, :]
        x1x2 = prod.reshape(R, NNEURON) * Mb

        # conv3 on cat([x1x2, x]) done as two GEMMs -> no in-kernel lane concat
        xnew = jnp.maximum(
            (jnp.dot(x1x2, w3a, preferred_element_type=f32)
             + jnp.dot(x, w3b, preferred_element_type=f32)) * Mb, 0.0)

        # masked per-graph sums as selector matmuls, folded straight into h1
        s0 = jnp.dot(sel0, xnew, preferred_element_type=f32)   # (B, 40)  sum(x*M0)
        s1 = jnp.dot(sel1, xnew, preferred_element_type=f32)   # (B, 40)  sum(x*M1)
        acc = (acc
               + jnp.dot(s0, h1was_ref[l], preferred_element_type=f32)
               + jnp.dot(s1, h1wbs_ref[l], preferred_element_type=f32))
        x = xnew

    ppgn_out = jnp.maximum(acc + h1b, 0.0)             # (B, 32) = relu(h1(cat(xo)))

    # ---------------- Subgraph-GNN branch ----------------
    X = xcat_ref[...]                                   # (Nn, F_SUB)
    # [I; hop1; hop2; hop3] @ X  in a single dot
    HX = jnp.dot(hops_ref[...], X, preferred_element_type=f32)       # (4*Nn, F_SUB)
    # wide first layer: all 4 layer weights concatenated along columns
    Hw = jnp.dot(HX, wa_ref[...], preferred_element_type=f32)        # (4*Nn, 4*H1)
    # keep only the matching (row-block l, col-block l) pieces via column masks
    Hd = jnp.zeros((NN_NODES, NHOPS * H1), f32)
    for l in range(NHOPS):
        Hd = Hd + Hw[l * NN_NODES:(l + 1) * NN_NODES, :] * colmask_ref[l:l + 1, :]
    hcat = jnp.maximum(Hd + ba_ref[...], 0.0)                         # (Nn, 4*H1)
    y = jnp.dot(hcat, wb_ref[...], preferred_element_type=f32) + bb_ref[...]  # (Nn, H2)
    # scatter_sum(y, batch) == onehot(batch) @ y
    sub_out = jnp.dot(onehot_ref[...], y, preferred_element_type=f32)          # (B, H2)

    # final torch.cat((ppgn_out, subgraph_out), dim=1) written in one store
    out_ref[...] = jnp.concatenate([ppgn_out, sub_out], axis=1)       # (B, 32 + H2)


# ============================ wrapper ============================
def pack_params(p):
    """Pad/stack per-block weights once, outside the hot path."""
    w1s, w2s, w3as, w3bs = [], [], [], []
    cin = NINP
    for (w1, w2, w3) in p["ppgn"]:
        pad = NNEURON - cin
        w1s.append(jnp.pad(w1, ((0, pad), (0, 0))))          # (40, 40)
        w2s.append(jnp.pad(w2, ((0, pad), (0, 0))))
        w3as.append(w3[:NNEURON])                            # x1x2 rows   (40, 40)
        w3bs.append(jnp.pad(w3[NNEURON:], ((0, pad), (0, 0))))  # x rows   (40, 40)
        cin = NNEURON
    h1w, h1b = p["h1"]                                       # (400, 32), (32,)
    h1w_blocks = h1w.reshape(5, 2 * NNEURON, PPGN_H2)
    wa_cat = jnp.concatenate([wa for (wa, _, _, _) in p["sub"]], axis=1)  # (F, 4*H1)
    ba_cat = jnp.concatenate([ba for (_, ba, _, _) in p["sub"]], axis=1)  # (1, 4*H1)
    wb_cat = jnp.concatenate([wb for (_, _, wb, _) in p["sub"]], axis=0)  # (4*H1, H2)
    bb_sum = sum(bb for (_, _, _, bb) in p["sub"])                         # (1, H2)
    return dict(
        w1s=jnp.stack(w1s), w2s=jnp.stack(w2s),
        w3as=jnp.stack(w3as), w3bs=jnp.stack(w3bs),
        h1was=h1w_blocks[:, :NNEURON, :], h1wbs=h1w_blocks[:, NNEURON:, :],
        h1b=h1b.reshape(1, PPGN_H2),
        wa_cat=wa_cat, ba_cat=ba_cat, wb_cat=wb_cat, bb_sum=bb_sum)


@jax.jit
def model_forward(packed, x, walk_feats, hop1, hop2, hop3, X2, Mmask, batch_idx):
    R = R_PPGN
    # PPGN dense data NCHW -> channels-last flattened (B*N*N, C), pad chans to 40
    x2f = jnp.transpose(X2, (0, 2, 3, 1)).reshape(R, NINP)
    x2f = jnp.pad(x2f, ((0, 0), (0, NNEURON - NINP)))                 # (R, 40)
    m_nhwc = jnp.transpose(Mmask, (0, 2, 3, 1))                       # (B, N, N, 2)
    m_f = m_nhwc.reshape(R, 2)
    # per-(mask-channel, graph) row selectors: sel[c, b, r] = M[b,c,...] on graph b's rows
    m_cb = jnp.transpose(m_nhwc.reshape(B, N * N, 2), (2, 0, 1))      # (2, B, 64)
    eye_b = jnp.eye(B, dtype=jnp.float32)
    sel = (m_cb[:, :, None, :] * eye_b[None, :, :, None]).reshape(2, B, R)

    # Subgraph inputs
    Xcat = jnp.concatenate([x, walk_feats], axis=1)                   # (Nn, F_SUB)
    hops = jnp.concatenate(
        [jnp.eye(NN_NODES, dtype=jnp.float32), hop1, hop2, hop3], axis=0)  # (4Nn, Nn)
    onehot = (batch_idx[None, :] == jnp.arange(B)[:, None]).astype(jnp.float32)
    colmask = (jnp.arange(NHOPS * H1)[None, :] // H1
               == jnp.arange(NHOPS)[:, None]).astype(jnp.float32)     # (4, 4*H1)

    vmem = pl.BlockSpec(memory_space=pltpu.MemorySpace.VMEM)
    return pl.pallas_call(
        fused_model_kernel,
        out_shape=jax.ShapeDtypeStruct((B, PPGN_H2 + H2), jnp.float32),
        in_specs=[vmem] * 18,
        out_specs=vmem,
    )(x2f, m_f, sel,
      packed["w1s"], packed["w2s"], packed["w3as"], packed["w3bs"],
      packed["h1was"], packed["h1wbs"], packed["h1b"],
      Xcat, hops, onehot,
      packed["wa_cat"], packed["ba_cat"], packed["wb_cat"], packed["bb_sum"],
      colmask)


# ============================ param init ============================
def init_params(key):
    keys = iter(jax.random.split(key, 40))
    nrm = lambda shape: jax.random.normal(next(keys), shape, jnp.float32) * 0.1

    ppgn = []
    cin = NINP
    for _ in range(5):
        w1 = nrm((cin, NNEURON))                 # 1x1 conv (bias=False) == matmul
        w2 = nrm((cin, NNEURON))
        w3 = nrm((NNEURON + cin, NNEURON))
        ppgn.append((w1, w2, w3))
        cin = NNEURON
    h1w = nrm((2 * 5 * NNEURON, PPGN_H2))
    h1b = nrm((PPGN_H2,))

    sub = []
    for _ in range(NHOPS):
        sub.append((nrm((F_SUB, H1)), nrm((1, H1)), nrm((H1, H2)), nrm((1, H2))))

    return {"ppgn": ppgn, "h1": (h1w, h1b), "sub": sub}


# ======================== pure-JAX reference ========================
def reference_forward(params, x, walk_feats, hop1, hop2, hop3, X2, Mmask, batch_idx):
    M = jnp.sum(Mmask, axis=1, keepdims=True)
    xc = X2
    xos = []
    for (w1, w2, w3) in params["ppgn"]:
        x1 = jax.nn.relu(jnp.einsum('co,bcij->boij', w1, xc) * M)
        x2 = jax.nn.relu(jnp.einsum('co,bcij->boij', w2, xc) * M)
        x1x2 = jnp.einsum('bcik,bckj->bcij', x1, x2) * M
        cat = jnp.concatenate([x1x2, xc], axis=1)
        xc = jax.nn.relu(jnp.einsum('co,bcij->boij', w3, cat) * M)
        xo = jnp.concatenate([
            jnp.sum(xc * Mmask[:, 0:1], axis=(2, 3)),
            jnp.sum(xc * Mmask[:, 1:2], axis=(2, 3))], axis=1)
        xos.append(xo)
    h1w, h1b = params["h1"]
    ppgn_out = jax.nn.relu(jnp.concatenate(xos, axis=1) @ h1w + h1b)

    X = jnp.concatenate([x, walk_feats], axis=1)
    outs = 0.0
    hops = [jnp.eye(NN_NODES, dtype=jnp.float32), hop1, hop2, hop3]
    for (A, (wa, ba, wb, bb)) in zip(hops, params["sub"]):
        h = jax.nn.relu((A @ X) @ wa + ba)
        outs = outs + h @ wb + bb
    onehot = (batch_idx[None, :] == jnp.arange(B)[:, None]).astype(jnp.float32)
    sub_out = onehot @ outs
    return jnp.concatenate([ppgn_out, sub_out], axis=1)


# TODO(synk): the GNN (GCN/SAGE/GIN) branch is unused because use_base_gnn=False
#             in the Model defaults; it is intentionally not implemented.
#             PPGN.h2 is also unused by PPGN.forward and is omitted.

if __name__ == "__main__":
    key = jax.random.PRNGKey(0)
    k_p, k_x, k_w, k_a, k_x2 = jax.random.split(key, 5)
    params = init_params(k_p)
    packed = pack_params(params)          # one-time weight packing (not in hot path)

    # node features and random-walk features (per-node)
    x          = jax.random.normal(k_x, (NN_NODES, IN_DIM), jnp.float32)
    walk_feats = jax.random.normal(k_w, (NN_NODES, RW_DIM + 1), jnp.float32)

    # k-hop adjacency operators (dense synthetic)
    adj = (jax.random.uniform(k_a, (NN_NODES, NN_NODES)) < 0.3).astype(jnp.float32)
    adj = jnp.maximum(adj, adj.T)
    hop1 = adj
    hop2 = jnp.minimum(adj @ adj, 1.0)
    hop3 = jnp.minimum(hop2 @ adj, 1.0)

    # PPGN dense data: data.X2 (B,3,N,N), data.M (B,2,N,N), data.batch (Nn,)
    X2 = jax.random.normal(k_x2, (B, NINP, N, N), jnp.float32)
    diag = jnp.eye(N, dtype=jnp.float32)
    adj_g = (jax.random.uniform(jax.random.PRNGKey(7), (B, N, N)) < 0.4).astype(jnp.float32)
    adj_g = jnp.maximum(adj_g, jnp.transpose(adj_g, (0, 2, 1))) * (1.0 - diag)
    Mmask = jnp.stack([jnp.broadcast_to(diag, (B, N, N)), adj_g], axis=1)  # (B,2,N,N)
    batch_idx = jnp.repeat(jnp.arange(B, dtype=jnp.int32), N)              # (Nn,)

    out = model_forward(packed, x, walk_feats, hop1, hop2, hop3, X2, Mmask, batch_idx)
    out = jax.block_until_ready(out)
    assert out.shape == (B, PPGN_H2 + H2) and out.dtype == jnp.float32

    ref = reference_forward(params, x, walk_feats, hop1, hop2, hop3, X2, Mmask, batch_idx)
    err = float(jnp.max(jnp.abs(out - ref)) / (jnp.max(jnp.abs(ref)) + 1e-6))
    assert err < 0.05, f"kernel/reference mismatch, normalized max err={err}"
    print("KERNEL_OK")
</pallas_src>

<mosaic_0001>
module attributes {stable_mosaic.version = 11 : i64} {
  func.func @fused_model_kernel(%arg0: memref<128x40xf32, #tpu.memory_space<vmem>>, %arg1: memref<128x2xf32, #tpu.memory_space<vmem>>, %arg2: memref<2x2x128xf32, #tpu.memory_space<vmem>>, %arg3: memref<5x40x40xf32, #tpu.memory_space<vmem>>, %arg4: memref<5x40x40xf32, #tpu.memory_space<vmem>>, %arg5: memref<5x40x40xf32, #tpu.memory_space<vmem>>, %arg6: memref<5x40x40xf32, #tpu.memory_space<vmem>>, %arg7: memref<5x40x32xf32, #tpu.memory_space<vmem>>, %arg8: memref<5x40x32xf32, #tpu.memory_space<vmem>>, %arg9: memref<1x32xf32, #tpu.memory_space<vmem>>, %arg10: memref<16x10xf32, #tpu.memory_space<vmem>>, %arg11: memref<64x16xf32, #tpu.memory_space<vmem>>, %arg12: memref<2x16xf32, #tpu.memory_space<vmem>>, %arg13: memref<10x64xf32, #tpu.memory_space<vmem>>, %arg14: memref<1x64xf32, #tpu.memory_space<vmem>>, %arg15: memref<64x8xf32, #tpu.memory_space<vmem>>, %arg16: memref<1x8xf32, #tpu.memory_space<vmem>>, %arg17: memref<4x64xf32, #tpu.memory_space<vmem>>, %arg18: memref<2x40xf32, #tpu.memory_space<vmem>>) attributes {dimension_semantics = [], scalar_prefetch = 0 : i64, scratch_operands = 0 : i64, tpu.core_type = #tpu.core_type<tc>} {
    %c0 = arith.constant 0 : index
    %c0_0 = arith.constant 0 : index
    %0 = vector.load %arg1[%c0, %c0_0] : memref<128x2xf32, #tpu.memory_space<vmem>>, vector<128x2xf32>
    %1 = vector.extract_strided_slice %0 {offsets = [0, 0], sizes = [128, 1], strides = [1, 1]} : vector<128x2xf32> to vector<128x1xf32>
    %2 = vector.extract_strided_slice %0 {offsets = [0, 1], sizes = [128, 1], strides = [1, 1]} : vector<128x2xf32> to vector<128x1xf32>
    %3 = arith.addf %1, %2 : vector<128x1xf32>
    %4 = vector.shape_cast %3 : vector<128x1xf32> to vector<128x1xf32>
    %5 = vector.broadcast %4 : vector<128x1xf32> to vector<128x40xf32>
    %c0_1 = arith.constant 0 : index
    %c0_2 = arith.constant 0 : index
    %c0_3 = arith.constant 0 : index
    %6 = vector.load %arg2[%c0_1, %c0_2, %c0_3] : memref<2x2x128xf32, #tpu.memory_space<vmem>>, vector<1x2x128xf32>
    %7 = vector.shape_cast %6 : vector<1x2x128xf32> to vector<2x128xf32>
    %c1 = arith.constant 1 : index
    %c0_4 = arith.constant 0 : index
    %c0_5 = arith.constant 0 : index
    %8 = vector.load %arg2[%c1, %c0_4, %c0_5] : memref<2x2x128xf32, #tpu.memory_space<vmem>>, vector<1x2x128xf32>
    %9 = vector.shape_cast %8 : vector<1x2x128xf32> to vector<2x128xf32>
    %c0_6 = arith.constant 0 : index
    %c0_7 = arith.constant 0 : index
    %10 = vector.load %arg9[%c0_6, %c0_7] : memref<1x32xf32, #tpu.memory_space<vmem>>, vector<1x32xf32>
    %c0_8 = arith.constant 0 : index
    %c0_9 = arith.constant 0 : index
    %11 = vector.load %arg0[%c0_8, %c0_9] : memref<128x40xf32, #tpu.memory_space<vmem>>, vector<128x40xf32>
    %cst = arith.constant 0.000000e+00 : f32
    %12 = vector.broadcast %cst : f32 to vector<2x32xf32>
    %c0_10 = arith.constant 0 : index
    %c0_11 = arith.constant 0 : index
    %c0_12 = arith.constant 0 : index
    %13 = vector.load %arg3[%c0_10, %c0_11, %c0_12] : memref<5x40x40xf32, #tpu.memory_space<vmem>>, vector<1x40x40xf32>
    %14 = vector.shape_cast %13 : vector<1x40x40xf32> to vector<40x40xf32>
    %c0_13 = arith.constant 0 : index
    %c0_14 = arith.constant 0 : index
    %c0_15 = arith.constant 0 : index
    %15 = vector.load %arg4[%c0_13, %c0_14, %c0_15] : memref<5x40x40xf32, #tpu.memory_space<vmem>>, vector<1x40x40xf32>
    %16 = vector.shape_cast %15 : vector<1x40x40xf32> to vector<40x40xf32>
    %c0_16 = arith.constant 0 : index
    %c0_17 = arith.constant 0 : index
    %c0_18 = arith.constant 0 : index
    %17 = vector.load %arg5[%c0_16, %c0_17, %c0_18] : memref<5x40x40xf32, #tpu.memory_space<vmem>>, vector<1x40x40xf32>
    %18 = vector.shape_cast %17 : vector<1x40x40xf32> to vector<40x40xf32>
    %c0_19 = arith.constant 0 : index
    %c0_20 = arith.constant 0 : index
    %c0_21 = arith.constant 0 : index
    %19 = vector.load %arg6[%c0_19, %c0_20, %c0_21] : memref<5x40x40xf32, #tpu.memory_space<vmem>>, vector<1x40x40xf32>
    %20 = vector.shape_cast %19 : vector<1x40x40xf32> to vector<40x40xf32>
    %cst_22 = arith.constant dense<0.000000e+00> : vector<128x40xf32>
    %21 = tpu.matmul %11, %14, %cst_22 {dimension_numbers = #tpu.dot_dimension_numbers<[1], [0], [0], [1], [0, 0, 1, 1], [], []>} : vector<128x40xf32>, vector<40x40xf32>, vector<128x40xf32> -> vector<128x40xf32>
    %22 = arith.mulf %21, %5 : vector<128x40xf32>
    %cst_23 = arith.constant 0.000000e+00 : f32
    %23 = vector.broadcast %cst_23 : f32 to vector<128x40xf32>
    %24 = arith.maximumf %22, %23 : vector<128x40xf32>
    %cst_24 = arith.constant dense<0.000000e+00> : vector<128x40xf32>
    %25 = tpu.matmul %11, %16, %cst_24 {dimension_numbers = #tpu.dot_dimension_numbers<[1], [0], [0], [1], [0, 0, 1, 1], [], []>} : vector<128x40xf32>, vector<40x40xf32>, vector<128x40xf32> -> vector<128x40xf32>
    %26 = arith.mulf %25, %5 : vector<128x40xf32>
    %cst_25 = arith.constant 0.000000e+00 : f32
    %27 = vector.broadcast %cst_25 : f32 to vector<128x40xf32>
    %28 = arith.maximumf %26, %27 : vector<128x40xf32>
    %29 = vector.shape_cast %24 : vector<128x40xf32> to vector<2x8x8x40xf32>
    %30 = vector.shape_cast %28 : vector<128x40xf32> to vector<2x8x8x40xf32>
    %31 = vector.extract_strided_slice %29 {offsets = [0, 0, 0, 0], sizes = [2, 8, 1, 40], strides = [1, 1, 1, 1]} : vector<2x8x8x40xf32> to vector<2x8x1x40xf32>
    %32 = vector.extract_strided_slice %30 {offsets = [0, 0, 0, 0], sizes = [2, 1, 8, 40], strides = [1, 1, 1, 1]} : vector<2x8x8x40xf32> to vector<2x1x8x40xf32>
    %33 = vector.broadcast %31 : vector<2x8x1x40xf32> to vector<2x8x8x40xf32>
    %34 = vector.broadcast %32 : vector<2x1x8x40xf32> to vector<2x8x8x40xf32>
    %35 = arith.mulf %33, %34 : vector<2x8x8x40xf32>
    %36 = vector.extract_strided_slice %29 {offsets = [0, 0, 1, 0], sizes = [2, 8, 1, 40], strides = [1, 1, 1, 1]} : vector<2x8x8x40xf32> to vector<2x8x1x40xf32>
    %37 = vector.extract_strided_slice %30 {offsets = [0, 1, 0, 0], sizes = [2, 1, 8, 40], strides = [1, 1, 1, 1]} : vector<2x8x8x40xf32> to vector<2x1x8x40xf32>
    %38 = vector.broadcast %36 : vector<2x8x1x40xf32> to vector<2x8x8x40xf32>
    %39 = vector.broadcast %37 : vector<2x1x8x40xf32> to vector<2x8x8x40xf32>
    %40 = arith.mulf %38, %39 : vector<2x8x8x40xf32>
    %41 = arith.addf %35, %40 : vector<2x8x8x40xf32>
    %42 = vector.extract_strided_slice %29 {offsets = [0, 0, 2, 0], sizes = [2, 8, 1, 40], strides = [1, 1, 1, 1]} : vector<2x8x8x40xf32> to vector<2x8x1x40xf32>
    %43 = vector.extract_strided_slice %30 {offsets = [0, 2, 0, 0], sizes = [2, 1, 8, 40], strides = [1, 1, 1, 1]} : vector<2x8x8x40xf32> to vector<2x1x8x40xf32>
    %44 = vector.broadcast %42 : vector<2x8x1x40xf32> to vector<2x8x8x40xf32>
    %45 = vector.broadcast %43 : vector<2x1x8x40xf32> to vector<2x8x8x40xf32>
    %46 = arith.mulf %44, %45 : vector<2x8x8x40xf32>
    %47 = arith.addf %41, %46 : vector<2x8x8x40xf32>
    %48 = vector.extract_strided_slice %29 {offsets = [0, 0, 3, 0], sizes = [2, 8, 1, 40], strides = [1, 1, 1, 1]} : vector<2x8x8x40xf32> to vector<2x8x1x40xf32>
    %49 = vector.extract_strided_slice %30 {offsets = [0, 3, 0, 0], sizes = [2, 1, 8, 40], strides = [1, 1, 1, 1]} : vector<2x8x8x40xf32> to vector<2x1x8x40xf32>
    %50 = vector.broadcast %48 : vector<2x8x1x40xf32> to vector<2x8x8x40xf32>
    %51 = vector.broadcast %49 : vector<2x1x8x40xf32> to vector<2x8x8x40xf32>
    %52 = arith.mulf %50, %51 : vector<2x8x8x40xf32>
    %53 = arith.addf %47, %52 : vector<2x8x8x40xf32>
    %54 = vector.extract_strided_slice %29 {offsets = [0, 0, 4, 0], sizes = [2, 8, 1, 40], strides = [1, 1, 1, 1]} : vector<2x8x8x40xf32> to vector<2x8x1x40xf32>
    %55 = vector.extract_strided_slice %30 {offsets = [0, 4, 0, 0], sizes = [2, 1, 8, 40], strides = [1, 1, 1, 1]} : vector<2x8x8x40xf32> to vector<2x1x8x40xf32>
    %56 = vector.broadcast %54 : vector<2x8x1x40xf32> to vector<2x8x8x40xf32>
    %57 = vector.broadcast %55 : vector<2x1x8x40xf32> to vector<2x8x8x40xf32>
    %58 = arith.mulf %56, %57 : vector<2x8x8x40xf32>
    %59 = arith.addf %53, %58 : vector<2x8x8x40xf32>
    %60 = vector.extract_strided_slice %29 {offsets = [0, 0, 5, 0], sizes = [2, 8, 1, 40], strides = [1, 1, 1, 1]} : vector<2x8x8x40xf32> to vector<2x8x1x40xf32>
    %61 = vector.extract_strided_slice %30 {offsets = [0, 5, 0, 0], sizes = [2, 1, 8, 40], strides = [1, 1, 1, 1]} : vector<2x8x8x40xf32> to vector<2x1x8x40xf32>
    %62 = vector.broadcast %60 : vector<2x8x1x40xf32> to vector<2x8x8x40xf32>
    %63 = vector.broadcast %61 : vector<2x1x8x40xf32> to vector<2x8x8x40xf32>
    %64 = arith.mulf %62, %63 : vector<2x8x8x40xf32>
    %65 = arith.addf %59, %64 : vector<2x8x8x40xf32>
    %66 = vector.extract_strided_slice %29 {offsets = [0, 0, 6, 0], sizes = [2, 8, 1, 40], strides = [1, 1, 1, 1]} : vector<2x8x8x40xf32> to vector<2x8x1x40xf32>
    %67 = vector.extract_strided_slice %30 {offsets = [0, 6, 0, 0], sizes = [2, 1, 8, 40], strides = [1, 1, 1, 1]} : vector<2x8x8x40xf32> to vector<2x1x8x40xf32>
    %68 = vector.broadcast %66 : vector<2x8x1x40xf32> to vector<2x8x8x40xf32>
    %69 = vector.broadcast %67 : vector<2x1x8x40xf32> to vector<2x8x8x40xf32>
    %70 = arith.mulf %68, %69 : vector<2x8x8x40xf32>
    %71 = arith.addf %65, %70 : vector<2x8x8x40xf32>
    %72 = vector.extract_strided_slice %29 {offsets = [0, 0, 7, 0], sizes = [2, 8, 1, 40], strides = [1, 1, 1, 1]} : vector<2x8x8x40xf32> to vector<2x8x1x40xf32>
    %73 = vector.extract_strided_slice %30 {offsets = [0, 7, 0, 0], sizes = [2, 1, 8, 40], strides = [1, 1, 1, 1]} : vector<2x8x8x40xf32> to vector<2x1x8x40xf32>
    %74 = vector.broadcast %72 : vector<2x8x1x40xf32> to vector<2x8x8x40xf32>
    %75 = vector.broadcast %73 : vector<2x1x8x40xf32> to vector<2x8x8x40xf32>
    %76 = arith.mulf %74, %75 : vector<2x8x8x40xf32>
    %77 = arith.addf %71, %76 : vector<2x8x8x40xf32>
    %78 = vector.shape_cast %77 : vector<2x8x8x40xf32> to vector<128x40xf32>
    %79 = arith.mulf %78, %5 : vector<128x40xf32>
    %cst_26 = arith.constant dense<0.000000e+00> : vector<128x40xf32>
    %80 = tpu.matmul %79, %18, %cst_26 {dimension_numbers = #tpu.dot_dimension_numbers<[1], [0], [0], [1], [0, 0, 1, 1], [], []>} : vector<128x40xf32>, vector<40x40xf32>, vector<128x40xf32> -> vector<128x40xf32>
    %cst_27 = arith.constant dense<0.000000e+00> : vector<128x40xf32>
    %81 = tpu.matmul %11, %20, %cst_27 {dimension_numbers = #tpu.dot_dimension_numbers<[1], [0], [0], [1], [0, 0, 1, 1], [], []>} : vector<128x40xf32>, vector<40x40xf32>, vector<128x40xf32> -> vector<128x40xf32>
    %82 = arith.addf %80, %81 : vector<128x40xf32>
    %83 = arith.mulf %82, %5 : vector<128x40xf32>
    %cst_28 = arith.constant 0.000000e+00 : f32
    %84 = vector.broadcast %cst_28 : f32 to vector<128x40xf32>
    %85 = arith.maximumf %83, %84 : vector<128x40xf32>
    %cst_29 = arith.constant dense<0.000000e+00> : vector<2x40xf32>
    %86 = tpu.matmul %7, %85, %cst_29 {dimension_numbers = #tpu.dot_dimension_numbers<[1], [0], [0], [1], [0, 0, 1, 1], [], []>} : vector<2x128xf32>, vector<128x40xf32>, vector<2x40xf32> -> vector<2x40xf32>
    %cst_30 = arith.constant dense<0.000000e+00> : vector<2x40xf32>
    %87 = tpu.matmul %9, %85, %cst_30 {dimension_numbers = #tpu.dot_dimension_numbers<[1], [0], [0], [1], [0, 0, 1, 1], [], []>} : vector<2x128xf32>, vector<128x40xf32>, vector<2x40xf32> -> vector<2x40xf32>
    %c0_31 = arith.constant 0 : index
    %c0_32 = arith.constant 0 : index
    %c0_33 = arith.constant 0 : index
    %88 = vector.load %arg7[%c0_31, %c0_32, %c0_33] : memref<5x40x32xf32, #tpu.memory_space<vmem>>, vector<1x40x32xf32>
    %89 = vector.shape_cast %88 : vector<1x40x32xf32> to vector<40x32xf32>
    %cst_34 = arith.constant dense<0.000000e+00> : vector<2x32xf32>
    %90 = tpu.matmul %86, %89, %cst_34 {dimension_numbers = #tpu.dot_dimension_numbers<[1], [0], [0], [1], [0, 0, 1, 1], [], []>} : vector<2x40xf32>, vector<40x32xf32>, vector<2x32xf32> -> vector<2x32xf32>
    %91 = arith.addf %12, %90 : vector<2x32xf32>
    %c0_35 = arith.constant 0 : index
    %c0_36 = arith.constant 0 : index
    %c0_37 = arith.constant 0 : index
    %92 = vector.load %arg8[%c0_35, %c0_36, %c0_37] : memref<5x40x32xf32, #tpu.memory_space<vmem>>, vector<1x40x32xf32>
    %93 = vector.shape_cast %92 : vector<1x40x32xf32> to vector<40x32xf32>
    %cst_38 = arith.constant dense<0.000000e+00> : vector<2x32xf32>
    %94 = tpu.matmul %87, %93, %cst_38 {dimension_numbers = #tpu.dot_dimension_numbers<[1], [0], [0], [1], [0, 0, 1, 1], [], []>} : vector<2x40xf32>, vector<40x32xf32>, vector<2x32xf32> -> vector<2x32xf32>
    %95 = arith.addf %91, %94 : vector<2x32xf32>
    %c1_39 = arith.constant 1 : index
    %c0_40 = arith.constant 0 : index
    %c0_41 = arith.constant 0 : index
    %96 = vector.load %arg3[%c1_39, %c0_40, %c0_41] : memref<5x40x40xf32, #tpu.memory_space<vmem>>, vector<1x40x40xf32>
    %97 = vector.shape_cast %96 : vector<1x40x40xf32> to vector<40x40xf32>
    %c1_42 = arith.constant 1 : index
    %c0_43 = arith.constant 0 : index
    %c0_44 = arith.constant 0 : index
    %98 = vector.load %arg4[%c1_42, %c0_43, %c0_44] : memref<5x40x40xf32, #tpu.memory_space<vmem>>, vector<1x40x40xf32>
    %99 = vector.shape_cast %98 : vector<1x40x40xf32> to vector<40x40xf32>
    %c1_45 = arith.constant 1 : index
    %c0_46 = arith.constant 0 : index
    %c0_47 = arith.constant 0 : index
    %100 = vector.load %arg5[%c1_45, %c0_46, %c0_47] : memref<5x40x40xf32, #tpu.memory_space<vmem>>, vector<1x40x40xf32>
    %101 = vector.shape_cast %100 : vector<1x40x40xf32> to vector<40x40xf32>
    %c1_48 = arith.constant 1 : index
    %c0_49 = arith.constant 0 : index
    %c0_50 = arith.constant 0 : index
    %102 = vector.load %arg6[%c1_48, %c0_49, %c0_50] : memref<5x40x40xf32, #tpu.memory_space<vmem>>, vector<1x40x40xf32>
    %103 = vector.shape_cast %102 : vector<1x40x40xf32> to vector<40x40xf32>
    %cst_51 = arith.constant dense<0.000000e+00> : vector<128x40xf32>
    %104 = tpu.matmul %85, %97, %cst_51 {dimension_numbers = #tpu.dot_dimension_numbers<[1], [0], [0], [1], [0, 0, 1, 1], [], []>} : vector<128x40xf32>, vector<40x40xf32>, vector<128x40xf32> -> vector<128x40xf32>
    %105 = arith.mulf %104, %5 : vector<128x40xf32>
    %cst_52 = arith.constant 0.000000e+00 : f32
    %106 = vector.broadcast %cst_52 : f32 to vector<128x40xf32>
    %107 = arith.maximumf %105, %106 : vector<128x40xf32>
    %cst_53 = arith.constant dense<0.000000e+00> : vector<128x40xf32>
    %108 = tpu.matmul %85, %99, %cst_53 {dimension_numbers = #tpu.dot_dimension_numbers<[1], [0], [0], [1], [0, 0, 1, 1], [], []>} : vector<128x40xf32>, vector<40x40xf32>, vector<128x40xf32> -> vector<128x40xf32>
    %109 = arith.mulf %108, %5 : vector<128x40xf32>
    %cst_54 = arith.constant 0.000000e+00 : f32
    %110 = vector.broadcast %cst_54 : f32 to vector<128x40xf32>
    %111 = arith.maximumf %109, %110 : vector<128x40xf32>
    %112 = vector.shape_cast %107 : vector<128x40xf32> to vector<2x8x8x40xf32>
    %113 = vector.shape_cast %111 : vector<128x40xf32> to vector<2x8x8x40xf32>
    %114 = vector.extract_strided_slice %112 {offsets = [0, 0, 0, 0], sizes = [2, 8, 1, 40], strides = [1, 1, 1, 1]} : vector<2x8x8x40xf32> to vector<2x8x1x40xf32>
    %115 = vector.extract_strided_slice %113 {offsets = [0, 0, 0, 0], sizes = [2, 1, 8, 40], strides = [1, 1, 1, 1]} : vector<2x8x8x40xf32> to vector<2x1x8x40xf32>
    %116 = vector.broadcast %114 : vector<2x8x1x40xf32> to vector<2x8x8x40xf32>
    %117 = vector.broadcast %115 : vector<2x1x8x40xf32> to vector<2x8x8x40xf32>
    %118 = arith.mulf %116, %117 : vector<2x8x8x40xf32>
    %119 = vector.extract_strided_slice %112 {offsets = [0, 0, 1, 0], sizes = [2, 8, 1, 40], strides = [1, 1, 1, 1]} : vector<2x8x8x40xf32> to vector<2x8x1x40xf32>
    %120 = vector.extract_strided_slice %113 {offsets = [0, 1, 0, 0], sizes = [2, 1, 8, 40], strides = [1, 1, 1, 1]} : vector<2x8x8x40xf32> to vector<2x1x8x40xf32>
    %121 = vector.broadcast %119 : vector<2x8x1x40xf32> to vector<2x8x8x40xf32>
    %122 = vector.broadcast %120 : vector<2x1x8x40xf32> to vector<2x8x8x40xf32>
    %123 = arith.mulf %121, %122 : vector<2x8x8x40xf32>
    %124 = arith.addf %118, %123 : vector<2x8x8x40xf32>
    %125 = vector.extract_strided_slice %112 {offsets = [0, 0, 2, 0], sizes = [2, 8, 1, 40], strides = [1, 1, 1, 1]} : vector<2x8x8x40xf32> to vector<2x8x1x40xf32>
    %126 = vector.extract_strided_slice %113 {offsets = [0, 2, 0, 0], sizes = [2, 1, 8, 40], strides = [1, 1, 1, 1]} : vector<2x8x8x40xf32> to vector<2x1x8x40xf32>
    %127 = vector.broadcast %125 : vector<2x8x1x40xf32> to vector<2x8x8x40xf32>
    %128 = vector.broadcast %126 : vector<2x1x8x40xf32> to vector<2x8x8x40xf32>
    %129 = arith.mulf %127, %128 : vector<2x8x8x40xf32>
    %130 = arith.addf %124, %129 : vector<2x8x8x40xf32>
    %131 = vector.extract_strided_slice %112 {offsets = [0, 0, 3, 0], sizes = [2, 8, 1, 40], strides = [1, 1, 1, 1]} : vector<2x8x8x40xf32> to vector<2x8x1x40xf32>
    %132 = vector.extract_strided_slice %113 {offsets = [0, 3, 0, 0], sizes = [2, 1, 8, 40], strides = [1, 1, 1, 1]} : vector<2x8x8x40xf32> to vector<2x1x8x40xf32>
    %133 = vector.broadcast %131 : vector<2x8x1x40xf32> to vector<2x8x8x40xf32>
    %134 = vector.broadcast %132 : vector<2x1x8x40xf32> to vector<2x8x8x40xf32>
    %135 = arith.mulf %133, %134 : vector<2x8x8x40xf32>
    %136 = arith.addf %130, %135 : vector<2x8x8x40xf32>
    %137 = vector.extract_strided_slice %112 {offsets = [0, 0, 4, 0], sizes = [2, 8, 1, 40], strides = [1, 1, 1, 1]} : vector<2x8x8x40xf32> to vector<2x8x1x40xf32>
    %138 = vector.extract_strided_slice %113 {offsets = [0, 4, 0, 0], sizes = [2, 1, 8, 40], strides = [1, 1, 1, 1]} : vector<2x8x8x40xf32> to vector<2x1x8x40xf32>
    %139 = vector.broadcast %137 : vector<2x8x1x40xf32> to vector<2x8x8x40xf32>
    %140 = vector.broadcast %138 : vector<2x1x8x40xf32> to vector<2x8x8x40xf32>
    %141 = arith.mulf %139, %140 : vector<2x8x8x40xf32>
    %142 = arith.addf %136, %141 : vector<2x8x8x40xf32>
    %143 = vector.extract_strided_slice %112 {offsets = [0, 0, 5, 0], sizes = [2, 8, 1, 40], strides = [1, 1, 1, 1]} : vector<2x8x8x40xf32> to vector<2x8x1x40xf32>
    %144 = vector.extract_strided_slice %113 {offsets = [0, 5, 0, 0], sizes = [2, 1, 8, 40], strides = [1, 1, 1, 1]} : vector<2x8x8x40xf32> to vector<2x1x8x40xf32>
    %145 = vector.broadcast %143 : vector<2x8x1x40xf32> to vector<2x8x8x40xf32>
    %146 = vector.broadcast %144 : vector<2x1x8x40xf32> to vector<2x8x8x40xf32>
    %147 = arith.mulf %145, %146 : vector<2x8x8x40xf32>
    %148 = arith.addf %142, %147 : vector<2x8x8x40xf32>
    %149 = vector.extract_strided_slice %112 {offsets = [0, 0, 6, 0], sizes = [2, 8, 1, 40], strides = [1, 1, 1, 1]} : vector<2x8x8x40xf32> to vector<2x8x1x40xf32>
    %150 = vector.extract_strided_slice %113 {offsets = [0, 6, 0, 0], sizes = [2, 1, 8, 40], strides = [1, 1, 1, 1]} : vector<2x8x8x40xf32> to vector<2x1x8x40xf32>
    %151 = vector.broadcast %149 : vector<2x8x1x40xf32> to vector<2x8x8x40xf32>
    %152 = vector.broadcast %150 : vector<2x1x8x40xf32> to vector<2x8x8x40xf32>
    %153 = arith.mulf %151, %152 : vector<2x8x8x40xf32>
    %154 = arith.addf %148, %153 : vector<2x8x8x40xf32>
    %155 = vector.extract_strided_slice %112 {offsets = [0, 0, 7, 0], sizes = [2, 8, 1, 40], strides = [1, 1, 1, 1]} : vector<2x8x8x40xf32> to vector<2x8x1x40xf32>
    %156 = vector.extract_strided_slice %113 {offsets = [0, 7, 0, 0], sizes = [2, 1, 8, 40], strides = [1, 1, 1, 1]} : vector<2x8x8x40xf32> to vector<2x1x8x40xf32>
    %157 = vector.broadcast %155 : vector<2x8x1x40xf32> to vector<2x8x8x40xf32>
    %158 = vector.broadcast %156 : vector<2x1x8x40xf32> to vector<2x8x8x40xf32>
    %159 = arith.mulf %157, %158 : vector<2x8x8x40xf32>
    %160 = arith.addf %154, %159 : vector<2x8x8x40xf32>
    %161 = vector.shape_cast %160 : vector<2x8x8x40xf32> to vector<128x40xf32>
    %162 = arith.mulf %161, %5 : vector<128x40xf32>
    %cst_55 = arith.constant dense<0.000000e+00> : vector<128x40xf32>
    %163 = tpu.matmul %162, %101, %cst_55 {dimension_numbers = #tpu.dot_dimension_numbers<[1], [0], [0], [1], [0, 0, 1, 1], [], []>} : vector<128x40xf32>, vector<40x40xf32>, vector<128x40xf32> -> vector<128x40xf32>
    %cst_56 = arith.constant dense<0.000000e+00> : vector<128x40xf32>
    %164 = tpu.matmul %85, %103, %cst_56 {dimension_numbers = #tpu.dot_dimension_numbers<[1], [0], [0], [1], [0, 0, 1, 1], [], []>} : vector<128x40xf32>, vector<40x40xf32>, vector<128x40xf32> -> vector<128x40xf32>
    %165 = arith.addf %163, %164 : vector<128x40xf32>
    %166 = arith.mulf %165, %5 : vector<128x40xf32>
    %cst_57 = arith.constant 0.000000e+00 : f32
    %167 = vector.broadcast %cst_57 : f32 to vector<128x40xf32>
    %168 = arith.maximumf %166, %167 : vector<128x40xf32>
    %cst_58 = arith.constant dense<0.000000e+00> : vector<2x40xf32>
    %169 = tpu.matmul %7, %168, %cst_58 {dimension_numbers = #tpu.dot_dimension_numbers<[1], [0], [0], [1], [0, 0, 1, 1], [], []>} : vector<2x128xf32>, vector<128x40xf32>, vector<2x40xf32> -> vector<2x40xf32>
    %cst_59 = arith.constant dense<0.000000e+00> : vector<2x40xf32>
    %170 = tpu.matmul %9, %168, %cst_59 {dimension_numbers = #tpu.dot_dimension_numbers<[1], [0], [0], [1], [0, 0, 1, 1], [], []>} : vector<2x128xf32>, vector<128x40xf32>, vector<2x40xf32> -> vector<2x40xf32>
    %c1_60 = arith.constant 1 : index
    %c0_61 = arith.constant 0 : index
    %c0_62 = arith.constant 0 : index
    %171 = vector.load %arg7[%c1_60, %c0_61, %c0_62] : memref<5x40x32xf32, #tpu.memory_space<vmem>>, vector<1x40x32xf32>
    %172 = vector.shape_cast %171 : vector<1x40x32xf32> to vector<40x32xf32>
    %cst_63 = arith.constant dense<0.000000e+00> : vector<2x32xf32>
    %173 = tpu.matmul %169, %172, %cst_63 {dimension_numbers = #tpu.dot_dimension_numbers<[1], [0], [0], [1], [0, 0, 1, 1], [], []>} : vector<2x40xf32>, vector<40x32xf32>, vector<2x32xf32> -> vector<2x32xf32>
    %174 = arith.addf %95, %173 : vector<2x32xf32>
    %c1_64 = arith.constant 1 : index
    %c0_65 = arith.constant 0 : index
    %c0_66 = arith.constant 0 : index
    %175 = vector.load %arg8[%c1_64, %c0_65, %c0_66] : memref<5x40x32xf32, #tpu.memory_space<vmem>>, vector<1x40x32xf32>
    %176 = vector.shape_cast %175 : vector<1x40x32xf32> to vector<40x32xf32>
    %cst_67 = arith.constant dense<0.000000e+00> : vector<2x32xf32>
    %177 = tpu.matmul %170, %176, %cst_67 {dimension_numbers = #tpu.dot_dimension_numbers<[1], [0], [0], [1], [0, 0, 1, 1], [], []>} : vector<2x40xf32>, vector<40x32xf32>, vector<2x32xf32> -> vector<2x32xf32>
    %178 = arith.addf %174, %177 : vector<2x32xf32>
    %c2 = arith.constant 2 : index
    %c0_68 = arith.constant 0 : index
    %c0_69 = arith.constant 0 : index
    %179 = vector.load %arg3[%c2, %c0_68, %c0_69] : memref<5x40x40xf32, #tpu.memory_space<vmem>>, vector<1x40x40xf32>
    %180 = vector.shape_cast %179 : vector<1x40x40xf32> to vector<40x40xf32>
    %c2_70 = arith.constant 2 : index
    %c0_71 = arith.constant 0 : index
    %c0_72 = arith.constant 0 : index
    %181 = vector.load %arg4[%c2_70, %c0_71, %c0_72] : memref<5x40x40xf32, #tpu.memory_space<vmem>>, vector<1x40x40xf32>
    %182 = vector.shape_cast %181 : vector<1x40x40xf32> to vector<40x40xf32>
    %c2_73 = arith.constant 2 : index
    %c0_74 = arith.constant 0 : index
    %c0_75 = arith.constant 0 : index
    %183 = vector.load %arg5[%c2_73, %c0_74, %c0_75] : memref<5x40x40xf32, #tpu.memory_space<vmem>>, vector<1x40x40xf32>
    %184 = vector.shape_cast %183 : vector<1x40x40xf32> to vector<40x40xf32>
    %c2_76 = arith.constant 2 : index
    %c0_77 = arith.constant 0 : index
    %c0_78 = arith.constant 0 : index
    %185 = vector.load %arg6[%c2_76, %c0_77, %c0_78] : memref<5x40x40xf32, #tpu.memory_space<vmem>>, vector<1x40x40xf32>
    %186 = vector.shape_cast %185 : vector<1x40x40xf32> to vector<40x40xf32>
    %cst_79 = arith.constant dense<0.000000e+00> : vector<128x40xf32>
    %187 = tpu.matmul %168, %180, %cst_79 {dimension_numbers = #tpu.dot_dimension_numbers<[1], [0], [0], [1], [0, 0, 1, 1], [], []>} : vector<128x40xf32>, vector<40x40xf32>, vector<128x40xf32> -> vector<128x40xf32>
    %188 = arith.mulf %187, %5 : vector<128x40xf32>
    %cst_80 = arith.constant 0.000000e+00 : f32
    %189 = vector.broadcast %cst_80 : f32 to vector<128x40xf32>
    %190 = arith.maximumf %188, %189 : vector<128x40xf32>
    %cst_81 = arith.constant dense<0.000000e+00> : vector<128x40xf32>
    %191 = tpu.matmul %168, %182, %cst_81 {dimension_numbers = #tpu.dot_dimension_numbers<[1], [0], [0], [1], [0, 0, 1, 1], [], []>} : vector<128x40xf32>, vector<40x40xf32>, vector<128x40xf32> -> vector<128x40xf32>
    %192 = arith.mulf %191, %5 : vector<128x40xf32>
    %cst_82 = arith.constant 0.000000e+00 : f32
    %193 = vector.broadcast %cst_82 : f32 to vector<128x40xf32>
    %194 = arith.maximumf %192, %193 : vector<128x40xf32>
    %195 = vector.shape_cast %190 : vector<128x40xf32> to vector<2x8x8x40xf32>
    %196 = vector.shape_cast %194 : vector<128x40xf32> to vector<2x8x8x40xf32>
    %197 = vector.extract_strided_slice %195 {offsets = [0, 0, 0, 0], sizes = [2, 8, 1, 40], strides = [1, 1, 1, 1]} : vector<2x8x8x40xf32> to vector<2x8x1x40xf32>
    %198 = vector.extract_strided_slice %196 {offsets = [0, 0, 0, 0], sizes = [2, 1, 8, 40], strides = [1, 1, 1, 1]} : vector<2x8x8x40xf32> to vector<2x1x8x40xf32>
    %199 = vector.broadcast %197 : vector<2x8x1x40xf32> to vector<2x8x8x40xf32>
    %200 = vector.broadcast %198 : vector<2x1x8x40xf32> to vector<2x8x8x40xf32>
    %201 = arith.mulf %199, %200 : vector<2x8x8x40xf32>
    %202 = vector.extract_strided_slice %195 {offsets = [0, 0, 1, 0], sizes = [2, 8, 1, 40], strides = [1, 1, 1, 1]} : vector<2x8x8x40xf32> to vector<2x8x1x40xf32>
    %203 = vector.extract_strided_slice %196 {offsets = [0, 1, 0, 0], sizes = [2, 1, 8, 40], strides = [1, 1, 1, 1]} : vector<2x8x8x40xf32> to vector<2x1x8x40xf32>
    %204 = vector.broadcast %202 : vector<2x8x1x40xf32> to vector<2x8x8x40xf32>
    %205 = vector.broadcast %203 : vector<2x1x8x40xf32> to vector<2x8x8x40xf32>
    %206 = arith.mulf %204, %205 : vector<2x8x8x40xf32>
    %207 = arith.addf %201, %206 : vector<2x8x8x40xf32>
    %208 = vector.extract_strided_slice %195 {offsets = [0, 0, 2, 0], sizes = [2, 8, 1, 40], strides = [1, 1, 1, 1]} : vector<2x8x8x40xf32> to vector<2x8x1x40xf32>
    %209 = vector.extract_strided_slice %196 {offsets = [0, 2, 0, 0], sizes = [2, 1, 8, 40], strides = [1, 1, 1, 1]} : vector<2x8x8x40xf32> to vector<2x1x8x40xf32>
    %210 = vector.broadcast %208 : vector<2x8x1x40xf32> to vector<2x8x8x40xf32>
    %211 = vector.broadcast %209 : vector<2x1x8x40xf32> to vector<2x8x8x40xf32>
    %212 = arith.mulf %210, %211 : vector<2x8x8x40xf32>
    %213 = arith.addf %207, %212 : vector<2x8x8x40xf32>
    %214 = vector.extract_strided_slice %195 {offsets = [0, 0, 3, 0], sizes = [2, 8, 1, 40], strides = [1, 1, 1, 1]} : vector<2x8x8x40xf32> to vector<2x8x1x40xf32>
    %215 = vector.extract_strided_slice %196 {offsets = [0, 3, 0, 0], sizes = [2, 1, 8, 40], strides = [1, 1, 1, 1]} : vector<2x8x8x40xf32> to vector<2x1x8x40xf32>
    %216 = vector.broadcast %214 : vector<2x8x1x40xf32> to vector<2x8x8x40xf32>
    %217 = vector.broadcast %215 : vector<2x1x8x40xf32> to vector<2x8x8x40xf32>
    %218 = arith.mulf %216, %217 : vector<2x8x8x40xf32>
    %219 = arith.addf %213, %218 : vector<2x8x8x40xf32>
    %220 = vector.extract_strided_slice %195 {offsets = [0, 0, 4, 0], sizes = [2, 8, 1, 40], strides = [1, 1, 1, 1]} : vector<2x8x8x40xf32> to vector<2x8x1x40xf32>
    %221 = vector.extract_strided_slice %196 {offsets = [0, 4, 0, 0], sizes = [2, 1, 8, 40], strides = [1, 1, 1, 1]} : vector<2x8x8x40xf32> to vector<2x1x8x40xf32>
    %222 = vector.broadcast %220 : vector<2x8x1x40xf32> to vector<2x8x8x40xf32>
    %223 = vector.broadcast %221 : vector<2x1x8x40xf32> to vector<2x8x8x40xf32>
    %224 = arith.mulf %222, %223 : vector<2x8x8x40xf32>
    %225 = arith.addf %219, %224 : vector<2x8x8x40xf32>
    %226 = vector.extract_strided_slice %195 {offsets = [0, 0, 5, 0], sizes = [2, 8, 1, 40], strides = [1, 1, 1, 1]} : vector<2x8x8x40xf32> to vector<2x8x1x40xf32>
    %227 = vector.extract_strided_slice %196 {offsets = [0, 5, 0, 0], sizes = [2, 1, 8, 40], strides = [1, 1, 1, 1]} : vector<2x8x8x40xf32> to vector<2x1x8x40xf32>
    %228 = vector.broadcast %226 : vector<2x8x1x40xf32> to vector<2x8x8x40xf32>
    %229 = vector.broadcast %227 : vector<2x1x8x40xf32> to vector<2x8x8x40xf32>
    %230 = arith.mulf %228, %229 : vector<2x8x8x40xf32>
    %231 = arith.addf %225, %230 : vector<2x8x8x40xf32>
    %232 = vector.extract_strided_slice %195 {offsets = [0, 0, 6, 0], sizes = [2, 8, 1, 40], strides = [1, 1, 1, 1]} : vector<2x8x8x40xf32> to vector<2x8x1x40xf32>
    %233 = vector.extract_strided_slice %196 {offsets = [0, 6, 0, 0], sizes = [2, 1, 8, 40], strides = [1, 1, 1, 1]} : vector<2x8x8x40xf32> to vector<2x1x8x40xf32>
    %234 = vector.broadcast %232 : vector<2x8x1x40xf32> to vector<2x8x8x40xf32>
    %235 = vector.broadcast %233 : vector<2x1x8x40xf32> to vector<2x8x8x40xf32>
    %236 = arith.mulf %234, %235 : vector<2x8x8x40xf32>
    %237 = arith.addf %231, %236 : vector<2x8x8x40xf32>
    %238 = vector.extract_strided_slice %195 {offsets = [0, 0, 7, 0], sizes = [2, 8, 1, 40], strides = [1, 1, 1, 1]} : vector<2x8x8x40xf32> to vector<2x8x1x40xf32>
    %239 = vector.extract_strided_slice %196 {offsets = [0, 7, 0, 0], sizes = [2, 1, 8, 40], strides = [1, 1, 1, 1]} : vector<2x8x8x40xf32> to vector<2x1x8x40xf32>
    %240 = vector.broadcast %238 : vector<2x8x1x40xf32> to vector<2x8x8x40xf32>
    %241 = vector.broadcast %239 : vector<2x1x8x40xf32> to vector<2x8x8x40xf32>
    %242 = arith.mulf %240, %241 : vector<2x8x8x40xf32>
    %243 = arith.addf %237, %242 : vector<2x8x8x40xf32>
    %244 = vector.shape_cast %243 : vector<2x8x8x40xf32> to vector<128x40xf32>
    %245 = arith.mulf %244, %5 : vector<128x40xf32>
    %cst_83 = arith.constant dense<0.000000e+00> : vector<128x40xf32>
    %246 = tpu.matmul %245, %184, %cst_83 {dimension_numbers = #tpu.dot_dimension_numbers<[1], [0], [0], [1], [0, 0, 1, 1], [], []>} : vector<128x40xf32>, vector<40x40xf32>, vector<128x40xf32> -> vector<128x40xf32>
    %cst_84 = arith.constant dense<0.000000e+00> : vector<128x40xf32>
    %247 = tpu.matmul %168, %186, %cst_84 {dimension_numbers = #tpu.dot_dimension_numbers<[1], [0], [0], [1], [0, 0, 1, 1], [], []>} : vector<128x40xf32>, vector<40x40xf32>, vector<128x40xf32> -> vector<128x40xf32>
    %248 = arith.addf %246, %247 : vector<128x40xf32>
    %249 = arith.mulf %248, %5 : vector<128x40xf32>
    %cst_85 = arith.constant 0.000000e+00 : f32
    %250 = vector.broadcast %cst_85 : f32 to vector<128x40xf32>
    %251 = arith.maximumf %249, %250 : vector<128x40xf32>
    %cst_86 = arith.constant dense<0.000000e+00> : vector<2x40xf32>
    %252 = tpu.matmul %7, %251, %cst_86 {dimension_numbers = #tpu.dot_dimension_numbers<[1], [0], [0], [1], [0, 0, 1, 1], [], []>} : vector<2x128xf32>, vector<128x40xf32>, vector<2x40xf32> -> vector<2x40xf32>
    %cst_87 = arith.constant dense<0.000000e+00> : vector<2x40xf32>
    %253 = tpu.matmul %9, %251, %cst_87 {dimension_numbers = #tpu.dot_dimension_numbers<[1], [0], [0], [1], [0, 0, 1, 1], [], []>} : vector<2x128xf32>, vector<128x40xf32>, vector<2x40xf32> -> vector<2x40xf32>
    %c2_88 = arith.constant 2 : index
    %c0_89 = arith.constant 0 : index
    %c0_90 = arith.constant 0 : index
    %254 = vector.load %arg7[%c2_88, %c0_89, %c0_90] : memref<5x40x32xf32, #tpu.memory_space<vmem>>, vector<1x40x32xf32>
    %255 = vector.shape_cast %254 : vector<1x40x32xf32> to vector<40x32xf32>
    %cst_91 = arith.constant dense<0.000000e+00> : vector<2x32xf32>
    %256 = tpu.matmul %252, %255, %cst_91 {dimension_numbers = #tpu.dot_dimension_numbers<[1], [0], [0], [1], [0, 0, 1, 1], [], []>} : vector<2x40xf32>, vector<40x32xf32>, vector<2x32xf32> -> vector<2x32xf32>
    %257 = arith.addf %178, %256 : vector<2x32xf32>
    %c2_92 = arith.constant 2 : index
    %c0_93 = arith.constant 0 : index
    %c0_94 = arith.constant 0 : index
    %258 = vector.load %arg8[%c2_92, %c0_93, %c0_94] : memref<5x40x32xf32, #tpu.memory_space<vmem>>, vector<1x40x32xf32>
    %259 = vector.shape_cast %258 : vector<1x40x32xf32> to vector<40x32xf32>
    %cst_95 = arith.constant dense<0.000000e+00> : vector<2x32xf32>
    %260 = tpu.matmul %253, %259, %cst_95 {dimension_numbers = #tpu.dot_dimension_numbers<[1], [0], [0], [1], [0, 0, 1, 1], [], []>} : vector<2x40xf32>, vector<40x32xf32>, vector<2x32xf32> -> vector<2x32xf32>
    %261 = arith.addf %257, %260 : vector<2x32xf32>
    %c3 = arith.constant 3 : index
    %c0_96 = arith.constant 0 : index
    %c0_97 = arith.constant 0 : index
    %262 = vector.load %arg3[%c3, %c0_96, %c0_97] : memref<5x40x40xf32, #tpu.memory_space<vmem>>, vector<1x40x40xf32>
    %263 = vector.shape_cast %262 : vector<1x40x40xf32> to vector<40x40xf32>
    %c3_98 = arith.constant 3 : index
    %c0_99 = arith.constant 0 : index
    %c0_100 = arith.constant 0 : index
    %264 = vector.load %arg4[%c3_98, %c0_99, %c0_100] : memref<5x40x40xf32, #tpu.memory_space<vmem>>, vector<1x40x40xf32>
    %265 = vector.shape_cast %264 : vector<1x40x40xf32> to vector<40x40xf32>
    %c3_101 = arith.constant 3 : index
    %c0_102 = arith.constant 0 : index
    %c0_103 = arith.constant 0 : index
    %266 = vector.load %arg5[%c3_101, %c0_102, %c0_103] : memref<5x40x40xf32, #tpu.memory_space<vmem>>, vector<1x40x40xf32>
    %267 = vector.shape_cast %266 : vector<1x40x40xf32> to vector<40x40xf32>
    %c3_104 = arith.constant 3 : index
    %c0_105 = arith.constant 0 : index
    %c0_106 = arith.constant 0 : index
    %268 = vector.load %arg6[%c3_104, %c0_105, %c0_106] : memref<5x40x40xf32, #tpu.memory_space<vmem>>, vector<1x40x40xf32>
    %269 = vector.shape_cast %268 : vector<1x40x40xf32> to vector<40x40xf32>
    %cst_107 = arith.constant dense<0.000000e+00> : vector<128x40xf32>
    %270 = tpu.matmul %251, %263, %cst_107 {dimension_numbers = #tpu.dot_dimension_numbers<[1], [0], [0], [1], [0, 0, 1, 1], [], []>} : vector<128x40xf32>, vector<40x40xf32>, vector<128x40xf32> -> vector<128x40xf32>
    %271 = arith.mulf %270, %5 : vector<128x40xf32>
    %cst_108 = arith.constant 0.000000e+00 : f32
    %272 = vector.broadcast %cst_108 : f32 to vector<128x40xf32>
    %273 = arith.maximumf %271, %272 : vector<128x40xf32>
    %cst_109 = arith.constant dense<0.000000e+00> : vector<128x40xf32>
    %274 = tpu.matmul %251, %265, %cst_109 {dimension_numbers = #tpu.dot_dimension_numbers<[1], [0], [0], [1], [0, 0, 1, 1], [], []>} : vector<128x40xf32>, vector<40x40xf32>, vector<128x40xf32> -> vector<128x40xf32>
    %275 = arith.mulf %274, %5 : vector<128x40xf32>
    %cst_110 = arith.constant 0.000000e+00 : f32
    %276 = vector.broadcast %cst_110 : f32 to vector<128x40xf32>
    %277 = arith.maximumf %275, %276 : vector<128x40xf32>
    %278 = vector.shape_cast %273 : vector<128x40xf32> to vector<2x8x8x40xf32>
    %279 = vector.shape_cast %277 : vector<128x40xf32> to vector<2x8x8x40xf32>
    %280 = vector.extract_strided_slice %278 {offsets = [0, 0, 0, 0], sizes = [2, 8, 1, 40], strides = [1, 1, 1, 1]} : vector<2x8x8x40xf32> to vector<2x8x1x40xf32>
    %281 = vector.extract_strided_slice %279 {offsets = [0, 0, 0, 0], sizes = [2, 1, 8, 40], strides = [1, 1, 1, 1]} : vector<2x8x8x40xf32> to vector<2x1x8x40xf32>
    %282 = vector.broadcast %280 : vector<2x8x1x40xf32> to vector<2x8x8x40xf32>
    %283 = vector.broadcast %281 : vector<2x1x8x40xf32> to vector<2x8x8x40xf32>
    %284 = arith.mulf %282, %283 : vector<2x8x8x40xf32>
    %285 = vector.extract_strided_slice %278 {offsets = [0, 0, 1, 0], sizes = [2, 8, 1, 40], strides = [1, 1, 1, 1]} : vector<2x8x8x40xf32> to vector<2x8x1x40xf32>
    %286 = vector.extract_strided_slice %279 {offsets = [0, 1, 0, 0], sizes = [2, 1, 8, 40], strides = [1, 1, 1, 1]} : vector<2x8x8x40xf32> to vector<2x1x8x40xf32>
    %287 = vector.broadcast %285 : vector<2x8x1x40xf32> to vector<2x8x8x40xf32>
    %288 = vector.broadcast %286 : vector<2x1x8x40xf32> to vector<2x8x8x40xf32>
    %289 = arith.mulf %287, %288 : vector<2x8x8x40xf32>
    %290 = arith.addf %284, %289 : vector<2x8x8x40xf32>
    %291 = vector.extract_strided_slice %278 {offsets = [0, 0, 2, 0], sizes = [2, 8, 1, 40], strides = [1, 1, 1, 1]} : vector<2x8x8x40xf32> to vector<2x8x1x40xf32>
    %292 = vector.extract_strided_slice %279 {offsets = [0, 2, 0, 0], sizes = [2, 1, 8, 40], strides = [1, 1, 1, 1]} : vector<2x8x8x40xf32> to vector<2x1x8x40xf32>
    %293 = vector.broadcast %291 : vector<2x8x1x40xf32> to vector<2x8x8x40xf32>
    %294 = vector.broadcast %292 : vector<2x1x8x40xf32> to vector<2x8x8x40xf32>
    %295 = arith.mulf %293, %294 : vector<2x8x8x40xf32>
    %296 = arith.addf %290, %295 : vector<2x8x8x40xf32>
    %297 = vector.extract_strided_slice %278 {offsets = [0, 0, 3, 0], sizes = [2, 8, 1, 40], strides = [1, 1, 1, 1]} : vector<2x8x8x40xf32> to vector<2x8x1x40xf32>
    %298 = vector.extract_strided_slice %279 {offsets = [0, 3, 0, 0], sizes = [2, 1, 8, 40], strides = [1, 1, 1, 1]} : vector<2x8x8x40xf32> to vector<2x1x8x40xf32>
    %299 = vector.broadcast %297 : vector<2x8x1x40xf32> to vector<2x8x8x40xf32>
    %300 = vector.broadcast %298 : vector<2x1x8x40xf32> to vector<2x8x8x40xf32>
    %301 = arith.mulf %299, %300 : vector<2x8x8x40xf32>
    %302 = arith.addf %296, %301 : vector<2x8x8x40xf32>
    %303 = vector.extract_strided_slice %278 {offsets = [0, 0, 4, 0], sizes = [2, 8, 1, 40], strides = [1, 1, 1, 1]} : vector<2x8x8x40xf32> to vector<2x8x1x40xf32>
    %304 = vector.extract_strided_slice %279 {offsets = [0, 4, 0, 0], sizes = [2, 1, 8, 40], strides = [1, 1, 1, 1]} : vector<2x8x8x40xf32> to vector<2x1x8x40xf32>
    %305 = vector.broadcast %303 : vector<2x8x1x40xf32> to vector<2x8x8x40xf32>
    %306 = vector.broadcast %304 : vector<2x1x8x40xf32> to vector<2x8x8x40xf32>
    %307 = arith.mulf %305, %306 : vector<2x8x8x40xf32>
    %308 = arith.addf %302, %307 : vector<2x8x8x40xf32>
    %309 = vector.extract_strided_slice %278 {offsets = [0, 0, 5, 0], sizes = [2, 8, 1, 40], strides = [1, 1, 1, 1]} : vector<2x8x8x40xf32> to vector<2x8x1x40xf32>
    %310 = vector.extract_strided_slice %279 {offsets = [0, 5, 0, 0], sizes = [2, 1, 8, 40], strides = [1, 1, 1, 1]} : vector<2x8x8x40xf32> to vector<2x1x8x40xf32>
    %311 = vector.broadcast %309 : vector<2x8x1x40xf32> to vector<2x8x8x40xf32>
    %312 = vector.broadcast %310 : vector<2x1x8x40xf32> to vector<2x8x8x40xf32>
    %313 = arith.mulf %311, %312 : vector<2x8x8x40xf32>
    %314 = arith.addf %308, %313 : vector<2x8x8x40xf32>
    %315 = vector.extract_strided_slice %278 {offsets = [0, 0, 6, 0], sizes = [2, 8, 1, 40], strides = [1, 1, 1, 1]} : vector<2x8x8x40xf32> to vector<2x8x1x40xf32>
    %316 = vector.extract_strided_slice %279 {offsets = [0, 6, 0, 0], sizes = [2, 1, 8, 40], strides = [1, 1, 1, 1]} : vector<2x8x8x40xf32> to vector<2x1x8x40xf32>
    %317 = vector.broadcast %315 : vector<2x8x1x40xf32> to vector<2x8x8x40xf32>
    %318 = vector.broadcast %316 : vector<2x1x8x40xf32> to vector<2x8x8x40xf32>
    %319 = arith.mulf %317, %318 : vector<2x8x8x40xf32>
    %320 = arith.addf %314, %319 : vector<2x8x8x40xf32>
    %321 = vector.extract_strided_slice %278 {offsets = [0, 0, 7, 0], sizes = [2, 8, 1, 40], strides = [1, 1, 1, 1]} : vector<2x8x8x40xf32> to vector<2x8x1x40xf32>
    %322 = vector.extract_strided_slice %279 {offsets = [0, 7, 0, 0], sizes = [2, 1, 8, 40], strides = [1, 1, 1, 1]} : vector<2x8x8x40xf32> to vector<2x1x8x40xf32>
    %323 = vector.broadcast %321 : vector<2x8x1x40xf32> to vector<2x8x8x40xf32>
    %324 = vector.broadcast %322 : vector<2x1x8x40xf32> to vector<2x8x8x40xf32>
    %325 = arith.mulf %323, %324 : vector<2x8x8x40xf32>
    %326 = arith.addf %320, %325 : vector<2x8x8x40xf32>
    %327 = vector.shape_cast %326 : vector<2x8x8x40xf32> to vector<128x40xf32>
    %328 = arith.mulf %327, %5 : vector<128x40xf32>
    %cst_111 = arith.constant dense<0.000000e+00> : vector<128x40xf32>
    %329 = tpu.matmul %328, %267, %cst_111 {dimension_numbers = #tpu.dot_dimension_numbers<[1], [0], [0], [1], [0, 0, 1, 1], [], []>} : vector<128x40xf32>, vector<40x40xf32>, vector<128x40xf32> -> vector<128x40xf32>
    %cst_112 = arith.constant dense<0.000000e+00> : vector<128x40xf32>
    %330 = tpu.matmul %251, %269, %cst_112 {dimension_numbers = #tpu.dot_dimension_numbers<[1], [0], [0], [1], [0, 0, 1, 1], [], []>} : vector<128x40xf32>, vector<40x40xf32>, vector<128x40xf32> -> vector<128x40xf32>
    %331 = arith.addf %329, %330 : vector<128x40xf32>
    %332 = arith.mulf %331, %5 : vector<128x40xf32>
    %cst_113 = arith.constant 0.000000e+00 : f32
    %333 = vector.broadcast %cst_113 : f32 to vector<128x40xf32>
    %334 = arith.maximumf %332, %333 : vector<128x40xf32>
    %cst_114 = arith.constant dense<0.000000e+00> : vector<2x40xf32>
    %335 = tpu.matmul %7, %334, %cst_114 {dimension_numbers = #tpu.dot_dimension_numbers<[1], [0], [0], [1], [0, 0, 1, 1], [], []>} : vector<2x128xf32>, vector<128x40xf32>, vector<2x40xf32> -> vector<2x40xf32>
    %cst_115 = arith.constant dense<0.000000e+00> : vector<2x40xf32>
    %336 = tpu.matmul %9, %334, %cst_115 {dimension_numbers = #tpu.dot_dimension_numbers<[1], [0], [0], [1], [0, 0, 1, 1], [], []>} : vector<2x128xf32>, vector<128x40xf32>, vector<2x40xf32> -> vector<2x40xf32>
    %c3_116 = arith.constant 3 : index
    %c0_117 = arith.constant 0 : index
    %c0_118 = arith.constant 0 : index
    %337 = vector.load %arg7[%c3_116, %c0_117, %c0_118] : memref<5x40x32xf32, #tpu.memory_space<vmem>>, vector<1x40x32xf32>
    %338 = vector.shape_cast %337 : vector<1x40x32xf32> to vector<40x32xf32>
    %cst_119 = arith.constant dense<0.000000e+00> : vector<2x32xf32>
    %339 = tpu.matmul %335, %338, %cst_119 {dimension_numbers = #tpu.dot_dimension_numbers<[1], [0], [0], [1], [0, 0, 1, 1], [], []>} : vector<2x40xf32>, vector<40x32xf32>, vector<2x32xf32> -> vector<2x32xf32>
    %340 = arith.addf %261, %339 : vector<2x32xf32>
    %c3_120 = arith.constant 3 : index
    %c0_121 = arith.constant 0 : index
    %c0_122 = arith.constant 0 : index
    %341 = vector.load %arg8[%c3_120, %c0_121, %c0_122] : memref<5x40x32xf32, #tpu.memory_space<vmem>>, vector<1x40x32xf32>
    %342 = vector.shape_cast %341 : vector<1x40x32xf32> to vector<40x32xf32>
    %cst_123 = arith.constant dense<0.000000e+00> : vector<2x32xf32>
    %343 = tpu.matmul %336, %342, %cst_123 {dimension_numbers = #tpu.dot_dimension_numbers<[1], [0], [0], [1], [0, 0, 1, 1], [], []>} : vector<2x40xf32>, vector<40x32xf32>, vector<2x32xf32> -> vector<2x32xf32>
    %344 = arith.addf %340, %343 : vector<2x32xf32>
    %c4 = arith.constant 4 : index
    %c0_124 = arith.constant 0 : index
    %c0_125 = arith.constant 0 : index
    %345 = vector.load %arg3[%c4, %c0_124, %c0_125] : memref<5x40x40xf32, #tpu.memory_space<vmem>>, vector<1x40x40xf32>
    %346 = vector.shape_cast %345 : vector<1x40x40xf32> to vector<40x40xf32>
    %c4_126 = arith.constant 4 : index
    %c0_127 = arith.constant 0 : index
    %c0_128 = arith.constant 0 : index
    %347 = vector.load %arg4[%c4_126, %c0_127, %c0_128] : memref<5x40x40xf32, #tpu.memory_space<vmem>>, vector<1x40x40xf32>
    %348 = vector.shape_cast %347 : vector<1x40x40xf32> to vector<40x40xf32>
    %c4_129 = arith.constant 4 : index
    %c0_130 = arith.constant 0 : index
    %c0_131 = arith.constant 0 : index
    %349 = vector.load %arg5[%c4_129, %c0_130, %c0_131] : memref<5x40x40xf32, #tpu.memory_space<vmem>>, vector<1x40x40xf32>
    %350 = vector.shape_cast %349 : vector<1x40x40xf32> to vector<40x40xf32>
    %c4_132 = arith.constant 4 : index
    %c0_133 = arith.constant 0 : index
    %c0_134 = arith.constant 0 : index
    %351 = vector.load %arg6[%c4_132, %c0_133, %c0_134] : memref<5x40x40xf32, #tpu.memory_space<vmem>>, vector<1x40x40xf32>
    %352 = vector.shape_cast %351 : vector<1x40x40xf32> to vector<40x40xf32>
    %cst_135 = arith.constant dense<0.000000e+00> : vector<128x40xf32>
    %353 = tpu.matmul %334, %346, %cst_135 {dimension_numbers = #tpu.dot_dimension_numbers<[1], [0], [0], [1], [0, 0, 1, 1], [], []>} : vector<128x40xf32>, vector<40x40xf32>, vector<128x40xf32> -> vector<128x40xf32>
    %354 = arith.mulf %353, %5 : vector<128x40xf32>
    %cst_136 = arith.constant 0.000000e+00 : f32
    %355 = vector.broadcast %cst_136 : f32 to vector<128x40xf32>
    %356 = arith.maximumf %354, %355 : vector<128x40xf32>
    %cst_137 = arith.constant dense<0.000000e+00> : vector<128x40xf32>
    %357 = tpu.matmul %334, %348, %cst_137 {dimension_numbers = #tpu.dot_dimension_numbers<[1], [0], [0], [1], [0, 0, 1, 1], [], []>} : vector<128x40xf32>, vector<40x40xf32>, vector<128x40xf32> -> vector<128x40xf32>
    %358 = arith.mulf %357, %5 : vector<128x40xf32>
    %cst_138 = arith.constant 0.000000e+00 : f32
    %359 = vector.broadcast %cst_138 : f32 to vector<128x40xf32>
    %360 = arith.maximumf %358, %359 : vector<128x40xf32>
    %361 = vector.shape_cast %356 : vector<128x40xf32> to vector<2x8x8x40xf32>
    %362 = vector.shape_cast %360 : vector<128x40xf32> to vector<2x8x8x40xf32>
    %363 = vector.extract_strided_slice %361 {offsets = [0, 0, 0, 0], sizes = [2, 8, 1, 40], strides = [1, 1, 1, 1]} : vector<2x8x8x40xf32> to vector<2x8x1x40xf32>
    %364 = vector.extract_strided_slice %362 {offsets = [0, 0, 0, 0], sizes = [2, 1, 8, 40], strides = [1, 1, 1, 1]} : vector<2x8x8x40xf32> to vector<2x1x8x40xf32>
    %365 = vector.broadcast %363 : vector<2x8x1x40xf32> to vector<2x8x8x40xf32>
    %366 = vector.broadcast %364 : vector<2x1x8x40xf32> to vector<2x8x8x40xf32>
    %367 = arith.mulf %365, %366 : vector<2x8x8x40xf32>
    %368 = vector.extract_strided_slice %361 {offsets = [0, 0, 1, 0], sizes = [2, 8, 1, 40], strides = [1, 1, 1, 1]} : vector<2x8x8x40xf32> to vector<2x8x1x40xf32>
    %369 = vector.extract_strided_slice %362 {offsets = [0, 1, 0, 0], sizes = [2, 1, 8, 40], strides = [1, 1, 1, 1]} : vector<2x8x8x40xf32> to vector<2x1x8x40xf32>
    %370 = vector.broadcast %368 : vector<2x8x1x40xf32> to vector<2x8x8x40xf32>
    %371 = vector.broadcast %369 : vector<2x1x8x40xf32> to vector<2x8x8x40xf32>
    %372 = arith.mulf %370, %371 : vector<2x8x8x40xf32>
    %373 = arith.addf %367, %372 : vector<2x8x8x40xf32>
    %374 = vector.extract_strided_slice %361 {offsets = [0, 0, 2, 0], sizes = [2, 8, 1, 40], strides = [1, 1, 1, 1]} : vector<2x8x8x40xf32> to vector<2x8x1x40xf32>
    %375 = vector.extract_strided_slice %362 {offsets = [0, 2, 0, 0], sizes = [2, 1, 8, 40], strides = [1, 1, 1, 1]} : vector<2x8x8x40xf32> to vector<2x1x8x40xf32>
    %376 = vector.broadcast %374 : vector<2x8x1x40xf32> to vector<2x8x8x40xf32>
    %377 = vector.broadcast %375 : vector<2x1x8x40xf32> to vector<2x8x8x40xf32>
    %378 = arith.mulf %376, %377 : vector<2x8x8x40xf32>
    %379 = arith.addf %373, %378 : vector<2x8x8x40xf32>
    %380 = vector.extract_strided_slice %361 {offsets = [0, 0, 3, 0], sizes = [2, 8, 1, 40], strides = [1, 1, 1, 1]} : vector<2x8x8x40xf32> to vector<2x8x1x40xf32>
    %381 = vector.extract_strided_slice %362 {offsets = [0, 3, 0, 0], sizes = [2, 1, 8, 40], strides = [1, 1, 1, 1]} : vector<2x8x8x40xf32> to vector<2x1x8x40xf32>
    %382 = vector.broadcast %380 : vector<2x8x1x40xf32> to vector<2x8x8x40xf32>
    %383 = vector.broadcast %381 : vector<2x1x8x40xf32> to vector<2x8x8x40xf32>
    %384 = arith.mulf %382, %383 : vector<2x8x8x40xf32>
    %385 = arith.addf %379, %384 : vector<2x8x8x40xf32>
    %386 = vector.extract_strided_slice %361 {offsets = [0, 0, 4, 0], sizes = [2, 8, 1, 40], strides = [1, 1, 1, 1]} : vector<2x8x8x40xf32> to vector<2x8x1x40xf32>
    %387 = vector.extract_strided_slice %362 {offsets = [0, 4, 0, 0], sizes = [2, 1, 8, 40], strides = [1, 1, 1, 1]} : vector<2x8x8x40xf32> to vector<2x1x8x40xf32>
    %388 = vector.broadcast %386 : vector<2x8x1x40xf32> to vector<2x8x8x40xf32>
    %389 = vector.broadcast %387 : vector<2x1x8x40xf32> to vector<2x8x8x40xf32>
    %390 = arith.mulf %388, %389 : vector<2x8x8x40xf32>
    %391 = arith.addf %385, %390 : vector<2x8x8x40xf32>
    %392 = vector.extract_strided_slice %361 {offsets = [0, 0, 5, 0], sizes = [2, 8, 1, 40], strides = [1, 1, 1, 1]} : vector<2x8x8x40xf32> to vector<2x8x1x40xf32>
    %393 = vector.extract_strided_slice %362 {offsets = [0, 5, 0, 0], sizes = [2, 1, 8, 40], strides = [1, 1, 1, 1]} : vector<2x8x8x40xf32> to vector<2x1x8x40xf32>
    %394 = vector.broadcast %392 : vector<2x8x1x40xf32> to vector<2x8x8x40xf32>
    %395 = vector.broadcast %393 : vector<2x1x8x40xf32> to vector<2x8x8x40xf32>
    %396 = arith.mulf %394, %395 : vector<2x8x8x40xf32>
    %397 = arith.addf %391, %396 : vector<2x8x8x40xf32>
    %398 = vector.extract_strided_slice %361 {offsets = [0, 0, 6, 0], sizes = [2, 8, 1, 40], strides = [1, 1, 1, 1]} : vector<2x8x8x40xf32> to vector<2x8x1x40xf32>
    %399 = vector.extract_strided_slice %362 {offsets = [0, 6, 0, 0], sizes = [2, 1, 8, 40], strides = [1, 1, 1, 1]} : vector<2x8x8x40xf32> to vector<2x1x8x40xf32>
    %400 = vector.broadcast %398 : vector<2x8x1x40xf32> to vector<2x8x8x40xf32>
    %401 = vector.broadcast %399 : vector<2x1x8x40xf32> to vector<2x8x8x40xf32>
    %402 = arith.mulf %400, %401 : vector<2x8x8x40xf32>
    %403 = arith.addf %397, %402 : vector<2x8x8x40xf32>
    %404 = vector.extract_strided_slice %361 {offsets = [0, 0, 7, 0], sizes = [2, 8, 1, 40], strides = [1, 1, 1, 1]} : vector<2x8x8x40xf32> to vector<2x8x1x40xf32>
    %405 = vector.extract_strided_slice %362 {offsets = [0, 7, 0, 0], sizes = [2, 1, 8, 40], strides = [1, 1, 1, 1]} : vector<2x8x8x40xf32> to vector<2x1x8x40xf32>
    %406 = vector.broadcast %404 : vector<2x8x1x40xf32> to vector<2x8x8x40xf32>
    %407 = vector.broadcast %405 : vector<2x1x8x40xf32> to vector<2x8x8x40xf32>
    %408 = arith.mulf %406, %407 : vector<2x8x8x40xf32>
    %409 = arith.addf %403, %408 : vector<2x8x8x40xf32>
    %410 = vector.shape_cast %409 : vector<2x8x8x40xf32> to vector<128x40xf32>
    %411 = arith.mulf %410, %5 : vector<128x40xf32>
    %cst_139 = arith.constant dense<0.000000e+00> : vector<128x40xf32>
    %412 = tpu.matmul %411, %350, %cst_139 {dimension_numbers = #tpu.dot_dimension_numbers<[1], [0], [0], [1], [0, 0, 1, 1], [], []>} : vector<128x40xf32>, vector<40x40xf32>, vector<128x40xf32> -> vector<128x40xf32>
    %cst_140 = arith.constant dense<0.000000e+00> : vector<128x40xf32>
    %413 = tpu.matmul %334, %352, %cst_140 {dimension_numbers = #tpu.dot_dimension_numbers<[1], [0], [0], [1], [0, 0, 1, 1], [], []>} : vector<128x40xf32>, vector<40x40xf32>, vector<128x40xf32> -> vector<128x40xf32>
    %414 = arith.addf %412, %413 : vector<128x40xf32>
    %415 = arith.mulf %414, %5 : vector<128x40xf32>
    %cst_141 = arith.constant 0.000000e+00 : f32
    %416 = vector.broadcast %cst_141 : f32 to vector<128x40xf32>
    %417 = arith.maximumf %415, %416 : vector<128x40xf32>
    %cst_142 = arith.constant dense<0.000000e+00> : vector<2x40xf32>
    %418 = tpu.matmul %7, %417, %cst_142 {dimension_numbers = #tpu.dot_dimension_numbers<[1], [0], [0], [1], [0, 0, 1, 1], [], []>} : vector<2x128xf32>, vector<128x40xf32>, vector<2x40xf32> -> vector<2x40xf32>
    %cst_143 = arith.constant dense<0.000000e+00> : vector<2x40xf32>
    %419 = tpu.matmul %9, %417, %cst_143 {dimension_numbers = #tpu.dot_dimension_numbers<[1], [0], [0], [1], [0, 0, 1, 1], [], []>} : vector<2x128xf32>, vector<128x40xf32>, vector<2x40xf32> -> vector<2x40xf32>
    %c4_144 = arith.constant 4 : index
    %c0_145 = arith.constant 0 : index
    %c0_146 = arith.constant 0 : index
    %420 = vector.load %arg7[%c4_144, %c0_145, %c0_146] : memref<5x40x32xf32, #tpu.memory_space<vmem>>, vector<1x40x32xf32>
    %421 = vector.shape_cast %420 : vector<1x40x32xf32> to vector<40x32xf32>
    %cst_147 = arith.constant dense<0.000000e+00> : vector<2x32xf32>
    %422 = tpu.matmul %418, %421, %cst_147 {dimension_numbers = #tpu.dot_dimension_numbers<[1], [0], [0], [1], [0, 0, 1, 1], [], []>} : vector<2x40xf32>, vector<40x32xf32>, vector<2x32xf32> -> vector<2x32xf32>
    %423 = arith.addf %344, %422 : vector<2x32xf32>
    %c4_148 = arith.constant 4 : index
    %c0_149 = arith.constant 0 : index
    %c0_150 = arith.constant 0 : index
    %424 = vector.load %arg8[%c4_148, %c0_149, %c0_150] : memref<5x40x32xf32, #tpu.memory_space<vmem>>, vector<1x40x32xf32>
    %425 = vector.shape_cast %424 : vector<1x40x32xf32> to vector<40x32xf32>
    %cst_151 = arith.constant dense<0.000000e+00> : vector<2x32xf32>
    %426 = tpu.matmul %419, %425, %cst_151 {dimension_numbers = #tpu.dot_dimension_numbers<[1], [0], [0], [1], [0, 0, 1, 1], [], []>} : vector<2x40xf32>, vector<40x32xf32>, vector<2x32xf32> -> vector<2x32xf32>
    %427 = arith.addf %423, %426 : vector<2x32xf32>
    %428 = vector.broadcast %10 : vector<1x32xf32> to vector<2x32xf32>
    %429 = arith.addf %427, %428 : vector<2x32xf32>
    %cst_152 = arith.constant 0.000000e+00 : f32
    %430 = vector.broadcast %cst_152 : f32 to vector<2x32xf32>
    %431 = arith.maximumf %429, %430 : vector<2x32xf32>
    %c0_153 = arith.constant 0 : index
    %c0_154 = arith.constant 0 : index
    %432 = vector.load %arg10[%c0_153, %c0_154] : memref<16x10xf32, #tpu.memory_space<vmem>>, vector<16x10xf32>
    %c0_155 = arith.constant 0 : index
    %c0_156 = arith.constant 0 : index
    %433 = vector.load %arg11[%c0_155, %c0_156] : memref<64x16xf32, #tpu.memory_space<vmem>>, vector<64x16xf32>
    %cst_157 = arith.constant dense<0.000000e+00> : vector<64x10xf32>
    %434 = tpu.matmul %433, %432, %cst_157 {dimension_numbers = #tpu.dot_dimension_numbers<[1], [0], [0], [1], [0, 0, 1, 1], [], []>} : vector<64x16xf32>, vector<16x10xf32>, vector<64x10xf32> -> vector<64x10xf32>
    %c0_158 = arith.constant 0 : index
    %c0_159 = arith.constant 0 : index
    %435 = vector.load %arg13[%c0_158, %c0_159] : memref<10x64xf32, #tpu.memory_space<vmem>>, vector<10x64xf32>
    %cst_160 = arith.constant dense<0.000000e+00> : vector<64x64xf32>
    %436 = tpu.matmul %434, %435, %cst_160 {dimension_numbers = #tpu.dot_dimension_numbers<[1], [0], [0], [1], [0, 0, 1, 1], [], []>} : vector<64x10xf32>, vector<10x64xf32>, vector<64x64xf32> -> vector<64x64xf32>
    %cst_161 = arith.constant 0.000000e+00 : f32
    %437 = vector.broadcast %cst_161 : f32 to vector<16x64xf32>
    %438 = vector.extract_strided_slice %436 {offsets = [0, 0], sizes = [16, 64], strides = [1, 1]} : vector<64x64xf32> to vector<16x64xf32>
    %c0_162 = arith.constant 0 : index
    %c0_163 = arith.constant 0 : index
    %439 = vector.load %arg17[%c0_162, %c0_163] : memref<4x64xf32, #tpu.memory_space<vmem>>, vector<1x64xf32>
    %440 = vector.broadcast %439 : vector<1x64xf32> to vector<16x64xf32>
    %441 = arith.mulf %438, %440 : vector<16x64xf32>
    %442 = arith.addf %437, %441 : vector<16x64xf32>
    %443 = vector.extract_strided_slice %436 {offsets = [16, 0], sizes = [16, 64], strides = [1, 1]} : vector<64x64xf32> to vector<16x64xf32>
    %c1_164 = arith.constant 1 : index
    %c0_165 = arith.constant 0 : index
    %444 = vector.load %arg17[%c1_164, %c0_165] : memref<4x64xf32, #tpu.memory_space<vmem>>, vector<1x64xf32>
    %445 = vector.broadcast %444 : vector<1x64xf32> to vector<16x64xf32>
    %446 = arith.mulf %443, %445 : vector<16x64xf32>
    %447 = arith.addf %442, %446 : vector<16x64xf32>
    %448 = vector.extract_strided_slice %436 {offsets = [32, 0], sizes = [16, 64], strides = [1, 1]} : vector<64x64xf32> to vector<16x64xf32>
    %c2_166 = arith.constant 2 : index
    %c0_167 = arith.constant 0 : index
    %449 = vector.load %arg17[%c2_166, %c0_167] : memref<4x64xf32, #tpu.memory_space<vmem>>, vector<1x64xf32>
    %450 = vector.broadcast %449 : vector<1x64xf32> to vector<16x64xf32>
    %451 = arith.mulf %448, %450 : vector<16x64xf32>
    %452 = arith.addf %447, %451 : vector<16x64xf32>
    %453 = vector.extract_strided_slice %436 {offsets = [48, 0], sizes = [16, 64], strides = [1, 1]} : vector<64x64xf32> to vector<16x64xf32>
    %c3_168 = arith.constant 3 : index
    %c0_169 = arith.constant 0 : index
    %454 = vector.load %arg17[%c3_168, %c0_169] : memref<4x64xf32, #tpu.memory_space<vmem>>, vector<1x64xf32>
    %455 = vector.broadcast %454 : vector<1x64xf32> to vector<16x64xf32>
    %456 = arith.mulf %453, %455 : vector<16x64xf32>
    %457 = arith.addf %452, %456 : vector<16x64xf32>
    %c0_170 = arith.constant 0 : index
    %c0_171 = arith.constant 0 : index
    %458 = vector.load %arg14[%c0_170, %c0_171] : memref<1x64xf32, #tpu.memory_space<vmem>>, vector<1x64xf32>
    %459 = vector.broadcast %458 : vector<1x64xf32> to vector<16x64xf32>
    %460 = arith.addf %457, %459 : vector<16x64xf32>
    %cst_172 = arith.constant 0.000000e+00 : f32
    %461 = vector.broadcast %cst_172 : f32 to vector<16x64xf32>
    %462 = arith.maximumf %460, %461 : vector<16x64xf32>
    %c0_173 = arith.constant 0 : index
    %c0_174 = arith.constant 0 : index
    %463 = vector.load %arg15[%c0_173, %c0_174] : memref<64x8xf32, #tpu.memory_space<vmem>>, vector<64x8xf32>
    %cst_175 = arith.constant dense<0.000000e+00> : vector<16x8xf32>
    %464 = tpu.matmul %462, %463, %cst_175 {dimension_numbers = #tpu.dot_dimension_numbers<[1], [0], [0], [1], [0, 0, 1, 1], [], []>} : vector<16x64xf32>, vector<64x8xf32>, vector<16x8xf32> -> vector<16x8xf32>
    %c0_176 = arith.constant 0 : index
    %c0_177 = arith.constant 0 : index
    %465 = vector.load %arg16[%c0_176, %c0_177] : memref<1x8xf32, #tpu.memory_space<vmem>>, vector<1x8xf32>
    %466 = vector.broadcast %465 : vector<1x8xf32> to vector<16x8xf32>
    %467 = arith.addf %464, %466 : vector<16x8xf32>
    %c0_178 = arith.constant 0 : index
    %c0_179 = arith.constant 0 : index
    %468 = vector.load %arg12[%c0_178, %c0_179] : memref<2x16xf32, #tpu.memory_space<vmem>>, vector<2x16xf32>
    %cst_180 = arith.constant dense<0.000000e+00> : vector<2x8xf32>
    %469 = tpu.matmul %468, %467, %cst_180 {dimension_numbers = #tpu.dot_dimension_numbers<[1], [0], [0], [1], [0, 0, 1, 1], [], []>} : vector<2x16xf32>, vector<16x8xf32>, vector<2x8xf32> -> vector<2x8xf32>
    %470 = tpu.concatenate %431, %469 in 1 : vector<2x32xf32>, vector<2x8xf32> -> vector<2x40xf32>
    %c0_181 = arith.constant 0 : index
    %c0_182 = arith.constant 0 : index
    %471 = vector.load %arg18[%c0_181, %c0_182] : memref<2x40xf32, #tpu.memory_space<vmem>>, vector<2x40xf32>
    tpu.vector_store %arg18[%c0_181, %c0_182], %470 {strides = array<i32>} : memref<2x40xf32, #tpu.memory_space<vmem>>, vector<2x40xf32>,
    return
  }
}

</mosaic_0001>

<bundles_post_ra>
// kernel: model_forward.1
= control target key start
LH: loop header
LB: loop body
LE: loop exit
PB: predicated region body
PF: predicated region fallthrough
CT: control target
= control target key end

     0   :  { %s17262_s0 = inlined_call_operand.vmem [shape: f32[128,40], index: 0, kind: input, shape index: {}]   ;;  %s17263_s1 = inlined_call_operand.vmem [shape: f32[128,2], index: 1, kind: input, shape index: {}]   ;;  %s17264_s2 = inlined_call_operand.vmem [shape: f32[2,2,128], index: 2, kind: input, shape index: {}]   ;;  %s17265_s3 = inlined_call_operand.vmem [shape: f32[5,40,40], index: 3, kind: input, shape index: {}]   ;;  %s17266_s4 = inlined_call_operand.vmem [shape: f32[5,40,40], index: 4, kind: input, shape index: {}]   ;;  %s17267_s5 = inlined_call_operand.vmem [shape: f32[5,40,40], index: 5, kind: input, shape index: {}]   ;;  %s17268_s6 = inlined_call_operand.vmem [shape: f32[5,40,40], index: 6, kind: input, shape index: {}]   ;;  %s17269_s7 = inlined_call_operand.vmem [shape: f32[5,40,32], index: 7, kind: input, shape index: {}]   ;;  %s17270_s8 = inlined_call_operand.vmem [shape: f32[5,40,32], index: 8, kind: input, shape index: {}]   ;;  %s17271_s9 = inlined_call_operand.vmem [shape: f32[1,32], index: 9, kind: input, shape index: {}]   ;;  %s17272_s10 = inlined_call_operand.vmem [shape: f32[16,10], index: 10, kind: input, shape index: {}]   ;;  %s17273_s11 = inlined_call_operand.vmem [shape: f32[64,16], index: 11, kind: input, shape index: {}]   ;;  %s17274_s12 = inlined_call_operand.vmem [shape: f32[2,16], index: 12, kind: input, shape index: {}]   ;;  %s17275_s13 = inlined_call_operand.vmem [shape: f32[10,64], index: 13, kind: input, shape index: {}]   ;;  %s17276_s14 = inlined_call_operand.vmem [shape: f32[1,64], index: 14, kind: input, shape index: {}]   ;;  %s17277_s15 = inlined_call_operand.vmem [shape: f32[64,8], index: 15, kind: input, shape index: {}]   ;;  %s17278_s16 = inlined_call_operand.vmem [shape: f32[1,8], index: 16, kind: input, shape index: {}]   ;;  %s17279_s17 = inlined_call_operand.vmem [shape: f32[4,64], index: 17, kind: input, shape index: {}]   ;;  %s17280_s18 = inlined_call_operand.hbm [shape: f32[2,40], index: 18, kind: output, shape index: {}]  }
   0x1   :  { %17365 = sst [smem:[#allocation22_spill]] %s17262_s0 }
   0x2   :  { %17366 = sst [smem:[#allocation23_spill]] %s17263_s1 }
   0x3   :  { %17367 = sst [smem:[#allocation24_spill]] %s17264_s2 }
   0x4   :  { %s17368_s29 = sld [smem:[#allocation23_spill]]  ;;  %s12510_s19 = smov 127   ;;  %v12511_v4 = vmov 0   ;;  %v260_v7 = vld [vmem:[%s17265_s3 + $0x20] sm:$0xff]  ;;  %v259_v9 = vld [vmem:[%s17265_s3 + $0x18] sm:$0xff]  ;;  %v258_v11 = vld [vmem:[%s17265_s3 + $0x10] sm:$0xff] }
   0x5   :  { %12478 = vset.pattern.permute.xlu0 %v12511_v4  ;;  %12479 = vset.pattern.permute.xlu1 %v12511_v4  ;;  %v265_v8 = vld [vmem:[%s17266_s4 + $0x20] sm:$0xff]  ;;  %v264_v10 = vld [vmem:[%s17266_s4 + $0x18] sm:$0xff]  ;;  %v263_v12 = vld [vmem:[%s17266_s4 + $0x10] sm:$0xff] }
   0x6   :  { %11254 = vmatprep.subr.mxu0 %v260_v7  ;;  %11288 = vmatprep.subr.mxu1 %v265_v8  ;;  %v257_v15 = vld [vmem:[%s17265_s3 + $0x8] sm:$0xff]  ;;  %v256_v19 = vld [vmem:[%s17265_s3] sm:$0xff] }
   0x7   :  { %11255 = vmatpush3.msra.mxu0 %v260_v7  ;;  %11289 = vmatpush3.msra.mxu1 %v265_v8  ;;  %v262_v16 = vld [vmem:[%s17266_s4 + $0x8] sm:$0xff]  ;;  %v261_v20 = vld [vmem:[%s17266_s4] sm:$0xff] }
   0x8   :  { %11256 = vmatprep.subr.mxu0 %v259_v9  ;;  %11290 = vmatprep.subr.mxu1 %v264_v10 }
   0x9   :  { %11257 = vmatpush3.msra.mxu0 %v259_v9  ;;  %11291 = vmatpush3.msra.mxu1 %v264_v10 }
   0xa   :  { %v12614_v0 = vld [vmem:[%s17368_s29 + $0x10] sm:$0xff]  ;;  %v12619_v1 = vld [vmem:[%s17368_s29] sm:$0xff]  ;;  %v12628_v2 = vld [vmem:[%s17368_s29 + $0x18] sm:$0xff]  ;;  %11258 = vmatprep.subr.mxu0 %v258_v11  ;;  %11292 = vmatprep.subr.mxu1 %v263_v12 }
   0xb   :  { %96 = vrot.lane.b32.xlu1 %v12614_v0, %s12510_s19  ;;  %92 = vrot.lane.b32.xlu0 %v12619_v1, %s12510_s19  ;;  %v12633_v3 = vld [vmem:[%s17368_s29 + $0x8] sm:$0xff]  ;;  %v12647_v6 = vld [vmem:[%s17368_s29 + $0x20] sm:$0xff] }
   0xc   :  { %v12642_v5 = vld [vmem:[%s17368_s29 + $0x28] sm:$0xff]  ;;  %v12674_v13 = vld [vmem:[%s17368_s29 + $0x38] sm:$0xff]  ;;  %v12679_v14 = vld [vmem:[%s17368_s29 + $0x30] sm:$0xff]  ;;  %11259 = vmatpush3.msra.mxu0 %v258_v11  ;;  %11293 = vmatpush3.msra.mxu1 %v263_v12 }
   0xd   :  { %v12694_v17 = vld [vmem:[%s17368_s29 + $0x48] sm:$0xff]  ;;  %v12699_v18 = vld [vmem:[%s17368_s29 + $0x40] sm:$0xff]  ;;  %11260 = vmatprep.subr.mxu0 %v257_v15  ;;  %11294 = vmatprep.subr.mxu1 %v262_v16 }
   0xf   :  { %98 = vrot.lane.b32.xlu1 %v12628_v2, %s12510_s19  ;;  %94 = vrot.lane.b32.xlu0 %v12633_v3, %s12510_s19 }
  0x13   :  { %102 = vrot.lane.b32.xlu1 %v12642_v5, %s12510_s19  ;;  %100 = vrot.lane.b32.xlu0 %v12647_v6, %s12510_s19 }
  0x17   :  { %106 = vrot.lane.b32.xlu1 %v12674_v13, %s12510_s19  ;;  %104 = vrot.lane.b32.xlu0 %v12679_v14, %s12510_s19 }
  0x18   :  { %23 = vsyncpa [#allocation3], 0  ;;  %11261 = vmatpush3.msra.mxu0 %v257_v15  ;;  %11295 = vmatpush3.msra.mxu1 %v262_v16  ;;  %s17369_s0 = sld [smem:[#allocation22_spill]]  ;;  %vm276_vm0 = vcmask 326656   ;;  %v12719_v22 = vld [vmem:[%s17368_s29 + $0x58] sm:$0xff]  ;;  %v12724_v23 = vld [vmem:[%s17368_s29 + $0x50] sm:$0xff] }
  0x19   :  { %11262 = vmatprep.subr.mxu0 %v256_v19  ;;  %11296 = vmatprep.subr.mxu1 %v261_v20  ;;  %v12747_v26 = vld [vmem:[%s17368_s29 + $0x68] sm:$0xff]  ;;  %v12752_v27 = vld [vmem:[%s17368_s29 + $0x60] sm:$0xff]  ;;  %v12779_v30 = vld [vmem:[%s17368_s29 + $0x78] sm:$0xff]  ;;  %vm12513_vm1 = vmmov 0   ;;  %s17386_s26 = sld [smem:[#allocation24_spill]]  ;;  %vm9587_vm2 = vcmask 130048  }
  0x1a   :  { %11263 = vmatpush3.msra.mxu0 %v256_v19  ;;  %11297 = vmatpush3.msra.mxu1 %v261_v20  ;;  %v12784_v31 = vld [vmem:[%s17368_s29 + $0x70] sm:$0xff]  ;;  %v275_v50 = vld [vmem:[%s17268_s6 + $0x20] sm:$0xff]  ;;  %v274_v60 = vld [vmem:[%s17268_s6 + $0x18] sm:$0xff]  ;;  %vm9744_vm3 = vcmask 1041408   ;;  %vm9719_vm4 = vcmask 80896   ;;  %vm9915_vm5 = vcmask 523264  }
  0x1b   :  { %110 = vrot.lane.b32.xlu1 %v12694_v17, %s12510_s19  ;;  %108 = vrot.lane.b32.xlu0 %v12699_v18, %s12510_s19  ;;  %v270_v51 = vld [vmem:[%s17267_s5 + $0x20] sm:$0xff]  ;;  %v269_v61 = vld [vmem:[%s17267_s5 + $0x18] sm:$0xff]  ;;  %s12515_s1 = smov [#allocation2]   ;;  %vm10075_vm6 = vcmask 261120   ;;  %vm10077_vm7 = vcmask 320512  }
  0x1c   :  { %11322 = vmatprep.subr.mxu0 %v275_v50  ;;  %11356 = vmatprep.subr.mxu1 %v270_v51  ;;  %v271_v9 = vld [vmem:[%s17268_s6] sm:$0xff]  ;;  %v267_v10 = vld [vmem:[%s17267_s5 + $0x8] sm:$0xff] }
  0x1d   :  { %v266_v12 = vld [vmem:[%s17267_s5] sm:$0xff] }
  0x1e   :  { %v12710_v21 = vld [vmem:[%s17369_s0] sm:$0xff]  ;;  %v12731_v24 = vld [vmem:[%s17369_s0 + $0x8] sm:$0xff]  ;;  %v12738_v25 = vld [vmem:[%s17369_s0 + $0x10] sm:$0xff] }
  0x1f   :  { %11264 = vmatprep.mubr.msk.f32.mxu0 %vm276_vm0, %v12710_v21  ;;  %11298 = vmatprep.mubr.msk.f32.mxu1 %vm276_vm0, %v12710_v21  ;;  %v12765_v28 = vld [vmem:[%s17369_s0 + $0x18] sm:$0xff]  ;;  %v12770_v29 = vld [vmem:[%s17369_s0 + $0x20] sm:$0xff]  ;;  %v12797_v32 = vld [vmem:[%s17369_s0 + $0x28] sm:$0xff] }
  0x20   :  { %114 = vrot.lane.b32.xlu1 %v12719_v22, %s12510_s19  ;;  %112 = vrot.lane.b32.xlu0 %v12724_v23, %s12510_s19  ;;  %v12802_v33 = vld [vmem:[%s17369_s0 + $0x30] sm:$0xff]  ;;  %v12819_v34 = vld [vmem:[%s17369_s0 + $0x38] sm:$0xff] }
  0x21   :  { %11265 = vmatmul.mubr.msk.f32.vlgmr.msra.gmra.mxu0 %vm276_vm0, %v12731_v24  ;;  %11299 = vmatmul.mubr.msk.f32.vlgmr.msra.gmra.mxu1 %vm276_vm0, %v12731_v24  ;;  %v12824_v35 = vld [vmem:[%s17369_s0 + $0x40] sm:$0xff]  ;;  %v12837_v36 = vld [vmem:[%s17369_s0 + $0x48] sm:$0xff]  ;;  %v12842_v37 = vld [vmem:[%s17369_s0 + $0x50] sm:$0xff] }
  0x22   :  { %11267 = vmatprep.mubr.msk.f32.mxu0 %vm276_vm0, %v12738_v25  ;;  %11301 = vmatprep.mubr.msk.f32.mxu1 %vm276_vm0, %v12738_v25  ;;  %v12855_v38 = vld [vmem:[%s17369_s0 + $0x58] sm:$0xff]  ;;  %v12860_v39 = vld [vmem:[%s17369_s0 + $0x60] sm:$0xff]  ;;  %v12873_v40 = vld [vmem:[%s17369_s0 + $0x68] sm:$0xff] }
  0x23   :  { %v12878_v41 = vld [vmem:[%s17369_s0 + $0x70] sm:$0xff]  ;;  %v12891_v42 = vld [vmem:[%s17369_s0 + $0x78] sm:$0xff]  ;;  %11323 = vmatpush3.msra.mxu0 %v275_v50  ;;  %11357 = vmatpush3.msra.mxu1 %v270_v51 }
  0x24   :  { %118 = vrot.lane.b32.xlu1 %v12747_v26, %s12510_s19  ;;  %116 = vrot.lane.b32.xlu0 %v12752_v27, %s12510_s19 }
  0x25   :  { %11268 = vmatmul.mubr.msk.f32.gmra.mxu0 %vm276_vm0, %v12765_v28  ;;  %11302 = vmatmul.mubr.msk.f32.gmra.mxu1 %vm276_vm0, %v12765_v28 }
  0x26   :  { %11270 = vmatprep.mubr.msk.f32.mxu0 %vm276_vm0, %v12770_v29  ;;  %11304 = vmatprep.mubr.msk.f32.mxu1 %vm276_vm0, %v12770_v29 }
  0x27   :  { %11324 = vmatprep.subr.mxu0 %v274_v60  ;;  %11358 = vmatprep.subr.mxu1 %v269_v61 }
  0x28   :  { %122 = vrot.lane.b32.xlu1 %v12779_v30, %s12510_s19  ;;  %120 = vrot.lane.b32.xlu0 %v12784_v31, %s12510_s19 }
  0x29   :  { %11271 = vmatmul.mubr.msk.f32.gmra.mxu0 %vm276_vm0, %v12797_v32  ;;  %11305 = vmatmul.mubr.msk.f32.gmra.mxu1 %vm276_vm0, %v12797_v32 }
  0x2a   :  { %11273 = vmatprep.mubr.msk.f32.mxu0 %vm276_vm0, %v12802_v33  ;;  %11307 = vmatprep.mubr.msk.f32.mxu1 %vm276_vm0, %v12802_v33 }
  0x2b   :  { %11325 = vmatpush3.msra.mxu0 %v274_v60  ;;  %11359 = vmatpush3.msra.mxu1 %v269_v61 }
  0x2d   :  { %11274 = vmatmul.mubr.msk.f32.gmra.mxu0 %vm276_vm0, %v12819_v34  ;;  %11308 = vmatmul.mubr.msk.f32.gmra.mxu1 %vm276_vm0, %v12819_v34 }
  0x2e   :  { %11276 = vmatprep.mubr.msk.f32.mxu0 %vm276_vm0, %v12824_v35  ;;  %11310 = vmatprep.mubr.msk.f32.mxu1 %vm276_vm0, %v12824_v35 }
  0x31   :  { %11277 = vmatmul.mubr.msk.f32.gmra.mxu0 %vm276_vm0, %v12837_v36  ;;  %11311 = vmatmul.mubr.msk.f32.gmra.mxu1 %vm276_vm0, %v12837_v36 }
  0x32   :  { %11279 = vmatprep.mubr.msk.f32.mxu0 %vm276_vm0, %v12842_v37  ;;  %11313 = vmatprep.mubr.msk.f32.mxu1 %vm276_vm0, %v12842_v37 }
  0x35   :  { %11280 = vmatmul.mubr.msk.f32.gmra.mxu0 %vm276_vm0, %v12855_v38  ;;  %11314 = vmatmul.mubr.msk.f32.gmra.mxu1 %vm276_vm0, %v12855_v38 }
  0x36   :  { %11282 = vmatprep.mubr.msk.f32.mxu0 %vm276_vm0, %v12860_v39  ;;  %11316 = vmatprep.mubr.msk.f32.mxu1 %vm276_vm0, %v12860_v39 }
  0x39   :  { %11283 = vmatmul.mubr.msk.f32.gmra.mxu0 %vm276_vm0, %v12873_v40  ;;  %11317 = vmatmul.mubr.msk.f32.gmra.mxu1 %vm276_vm0, %v12873_v40 }
  0x3a   :  { %11285 = vmatprep.mubr.msk.f32.mxu0 %vm276_vm0, %v12878_v41  ;;  %11319 = vmatprep.mubr.msk.f32.mxu1 %vm276_vm0, %v12878_v41 }
  0x3d   :  { %11286 = vmatmul.mubr.msk.f32.gmra.mxu0 %vm276_vm0, %v12891_v42  ;;  %11320 = vmatmul.mubr.msk.f32.gmra.mxu1 %vm276_vm0, %v12891_v42 }
  0x3e   :  { %11332 = vmatprep.mubr.msk.f32.mxu0 %vm276_vm0, %v12710_v21 }
  0x7d   :  { %v97_v43 = vpop.permute.xlu1 %96  ;;  %v93_v44 = vpop.permute.xlu0 %92 }
  0x7e   :  { %v140_v45 = vadd.f32 %v93_v44, %v12619_v1  ;;  %v142_v54 = vadd.f32 %v97_v43, %v12614_v0 }
  0x80   :  { %158 = vperm.xlu0 %12478, %v140_v45  }
  0x81   :  { %v99_v46 = vpop.permute.xlu1 %98  ;;  %v95_v47 = vpop.permute.xlu0 %94 }
  0x82   :  { %v143_v48 = vadd.f32 %v99_v46, %v12628_v2  ;;  %v141_v49 = vadd.f32 %v95_v47, %v12633_v3  ;;  %v273_v2 = vld [vmem:[%s17268_s6 + $0x10] sm:$0xff] }
  0x83   :  { %v268_v3 = vld [vmem:[%s17267_s5 + $0x10] sm:$0xff]  ;;  %11326 = vmatprep.subr.mxu0 %v273_v2 }
  0x84   :  { %173 = vperm.xlu0 %12478, %v143_v48   ;;  %163 = vperm.xlu1 %12479, %v141_v49  }
  0x85   :  { %v103_v52 = vpop.permute.xlu1 %102  ;;  %v101_v53 = vpop.permute.xlu0 %100  ;;  %11360 = vmatprep.subr.mxu1 %v268_v3  ;;  %11327 = vmatpush3.msra.mxu0 %v273_v2 }
  0x86   :  { %v145_v55 = vadd.f32 %v103_v52, %v12642_v5  ;;  %v144_v56 = vadd.f32 %v101_v53, %v12647_v6  ;;  %v272_v5 = vld [vmem:[%s17268_s6 + $0x8] sm:$0xff]  ;;  %11361 = vmatpush3.msra.mxu1 %v268_v3 }
  0x87   :  { %11328 = vmatprep.subr.mxu0 %v272_v5  ;;  %11362 = vmatprep.subr.mxu1 %v267_v10 }
  0x88   :  { %183 = vperm.xlu0 %12478, %v145_v55   ;;  %168 = vperm.xlu1 %12479, %v142_v54  }
  0x89   :  { %v107_v57 = vpop.permute.xlu1 %106  ;;  %v105_v58 = vpop.permute.xlu0 %104  ;;  %11329 = vmatpush3.msra.mxu0 %v272_v5  ;;  %11363 = vmatpush3.msra.mxu1 %v267_v10 }
  0x8a   :  { %v147_v59 = vadd.f32 %v107_v57, %v12674_v13  ;;  %v146_v62 = vadd.f32 %v105_v58, %v12679_v14  ;;  %11330 = vmatprep.subr.mxu0 %v271_v9  ;;  %11364 = vmatprep.subr.mxu1 %v266_v12 }
  0x8b   :  { %11331 = vmatpush3.msra.mxu0 %v271_v9  ;;  %11365 = vmatpush3.msra.mxu1 %v266_v12 }
  0x8c   :  { %193 = vperm.xlu0 %12478, %v147_v59   ;;  %178 = vperm.xlu1 %12479, %v144_v56  }
  0x8d   :  { %v111_v63 = vpop.permute.xlu1 %110  ;;  %v109_v0 = vpop.permute.xlu0 %108  ;;  %11333 = vmatmul.mubr.msk.f32.vlgmr.msra.gmra.mxu0 %vm276_vm0, %v12731_v24  ;;  %v679_v24 = vlaneseq }
  0x8e   :  { %v149_v1 = vadd.f32 %v111_v63, %v12694_v17  ;;  %v148_v4 = vadd.f32 %v109_v0, %v12699_v18  ;;  %11335 = vmatprep.mubr.msk.f32.mxu0 %vm276_vm0, %v12738_v25 }
  0x90   :  { %203 = vperm.xlu0 %12478, %v149_v1   ;;  %188 = vperm.xlu1 %12479, %v146_v62  }
  0x91   :  { %11336 = vmatmul.mubr.msk.f32.gmra.mxu0 %vm276_vm0, %v12765_v28 }
  0x92   :  { %v115_v6 = vpop.permute.xlu1 %114  ;;  %v113_v7 = vpop.permute.xlu0 %112  ;;  %11338 = vmatprep.mubr.msk.f32.mxu0 %vm276_vm0, %v12770_v29 }
  0x93   :  { %v151_v8 = vadd.f32 %v115_v6, %v12719_v22  ;;  %v150_v11 = vadd.f32 %v113_v7, %v12724_v23 }
  0x94   :  { %198 = vperm.xlu1 %12479, %v148_v4  }
  0x95   :  { %213 = vperm.xlu0 %12478, %v151_v8   ;;  %11339 = vmatmul.mubr.msk.f32.gmra.mxu0 %vm276_vm0, %v12797_v32 }
  0x96   :  { %v119_v13 = vpop.permute.xlu1 %118  ;;  %v117_v14 = vpop.permute.xlu0 %116  ;;  %11341 = vmatprep.mubr.msk.f32.mxu0 %vm276_vm0, %v12802_v33 }
  0x97   :  { %v153_v15 = vadd.f32 %v119_v13, %v12747_v26  ;;  %v152_v16 = vadd.f32 %v117_v14, %v12752_v27  ;;  %v680_v27 = vshrl.u32 %v679_v24, 7 }
  0x98   :  { %208 = vperm.xlu1 %12479, %v150_v11  }
  0x99   :  { %223 = vperm.xlu0 %12478, %v153_v15   ;;  %11342 = vmatmul.mubr.msk.f32.gmra.mxu0 %vm276_vm0, %v12819_v34  ;;  %v12982_v34 = vsub.s32 1, %v680_v27  ;;  %v12997_v44 = vsub.s32 4, %v680_v27  ;;  %v12999_v45 = vsub.s32 5, %v680_v27  ;;  %v13005_v49 = vsub.s32 6, %v680_v27 }
  0x9a   :  { %v123_v17 = vpop.permute.xlu1 %122  ;;  %v121_v18 = vpop.permute.xlu0 %120  ;;  %11344 = vmatprep.mubr.msk.f32.mxu0 %vm276_vm0, %v12824_v35  ;;  %v13007_v50 = vsub.s32 7, %v680_v27 }
  0x9b   :  { %v155_v19 = vadd.f32 %v123_v17, %v12779_v30  ;;  %v154_v20 = vadd.f32 %v121_v18, %v12784_v31  ;;  %v12978_v31 = vsub.s32 0, %v680_v27  ;;  %17372 = vst [vmem:[#allocation7_spill] sm:$0xff] %v12997_v44  ;;  %17373 = vst [vmem:[#allocation8_spill] sm:$0xff] %v12999_v45 }
  0x9c   :  { %218 = vperm.xlu1 %12479, %v152_v16   ;;  %17374 = vst [vmem:[#allocation9_spill] sm:$0xff] %v13005_v49  ;;  %17375 = vst [vmem:[#allocation10_spill] sm:$0xff] %v13007_v50 }
  0x9d   :  { %233 = vperm.xlu0 %12478, %v155_v19   ;;  %11345 = vmatmul.mubr.msk.f32.gmra.mxu0 %vm276_vm0, %v12837_v36 }
  0x9e   :  { %11347 = vmatprep.mubr.msk.f32.mxu0 %vm276_vm0, %v12842_v37 }
  0xa0   :  { %228 = vperm.xlu1 %12479, %v154_v20  }
  0xa1   :  { %11348 = vmatmul.mubr.msk.f32.gmra.mxu0 %vm276_vm0, %v12855_v38  ;;  %v12989_v38 = vsub.s32 2, %v680_v27 }
  0xa2   :  { %11350 = vmatprep.mubr.msk.f32.mxu0 %vm276_vm0, %v12860_v39 }
  0xa5   :  { %11351 = vmatmul.mubr.msk.f32.gmra.mxu0 %vm276_vm0, %v12873_v40 }
  0xa6   :  { %11353 = vmatprep.mubr.msk.f32.mxu0 %vm276_vm0, %v12878_v41 }
  0xa9   :  { %11354 = vmatmul.mubr.msk.f32.gmra.mxu0 %vm276_vm0, %v12891_v42  ;;  %v12993_v42 = vsub.s32 3, %v680_v27 }
  0xe1   :  { %v11300_v21 = vpop.f32.mrf.mxu1  ;;  %v11266_v23 = vpop.f32.mrf.mxu0 }
  0xe3   :  { %v568_v22 = vpop.f32.mrf.mxu1  ;;  %v391_v26 = vpop.f32.mrf.mxu0 }
  0xe5   :  { %v11303_v25 = vpop.f32.mrf.mxu1  ;;  %v11269_v39 = vpop.f32.mrf.mxu0 }
  0xe7   :  { %v578_v28 = vpop.f32.mrf.mxu1  ;;  %v401_v57 = vpop.f32.mrf.mxu0 }
  0xe9   :  { %v11306_v32 = vpop.f32.mrf.mxu1  ;;  %v11272_v13 = vpop.f32.mrf.mxu0 }
  0xeb   :  { %v588_v46 = vpop.f32.mrf.mxu1 }
  0xed   :  { %v11309_v2 = vpop.f32.mrf.mxu1 }
  0xfb   :  { %v12975_v29 = vpop.permute.xlu0 %158 }
  0xfc   :  { %17370 = vst [vmem:[#allocation5_spill] sm:$0xff] %v12975_v29  ;;  %v470_v30 = vmul.f32 %v391_v26, %v12975_v29  ;;  %v647_v37 = vmul.f32 %v568_v22, %v12975_v29  ;;  %v598_v26 = vpop.f32.mrf.mxu1 }
  0xfe   :  { %v12980_v33 = vmax.f32 %v470_v30, 0.0  ;;  %v13013_v53 = vmax.f32 %v647_v37, 0.0 }
  0xff   :  { %v12984_v35 = vpop.permute.xlu1 %163  ;;  %v12986_v36 = vpop.permute.xlu0 %173 }
 0x100   :  { %17371 = vst [vmem:[#allocation6_spill] sm:$0xff] %v12984_v35  ;;  %v648_v40 = vmul.f32 %v11300_v21, %v12984_v35  ;;  %v650_v41 = vmul.f32 %v11303_v25, %v12986_v36  ;;  %v682_v43 = vrot.slane %v12980_v33, %v12978_v31  ;;  %v762_v48 = vrot.slane %v12980_v33, %v12982_v34 }
 0x101   :  { %v858_v55 = vrot.slane %v12980_v33, %v12989_v38  ;;  %v471_v56 = vmul.f32 %v11266_v23, %v12984_v35  ;;  %v954_v61 = vrot.slane %v12980_v33, %v12993_v42  ;;  %v1050_v63 = vrot.slane %v12980_v33, %v12997_v44 }
 0x102   :  { %v13001_v47 = vmax.f32 %v648_v40, 0.0  ;;  %v13015_v54 = vmax.f32 %v650_v41, 0.0  ;;  %v743_v62 = vmul.f32 %v682_v43, %v13013_v53  ;;  %v1146_v0 = vrot.slane %v12980_v33, %v12999_v45 }
 0x103   :  { %v13009_v51 = vpop.permute.xlu1 %168  ;;  %v13011_v52 = vpop.permute.xlu0 %183  ;;  %v487_v1 = vmax.f32 %v471_v56, 0.0  ;;  %v1242_v4 = vrot.slane %v12980_v33, %v13005_v49  ;;  %v1338_v5 = vrot.slane %v12980_v33, %v13007_v50  ;;  %v473_v6 = vmul.f32 %v11269_v39, %v12986_v36 }
 0x104   :  { %17376 = vst [vmem:[#allocation11_spill] sm:$0xff] %v13009_v51  ;;  %v649_v58 = vmul.f32 %v578_v28, %v13009_v51  ;;  %v652_v59 = vmul.f32 %v11306_v32, %v13011_v52  ;;  %v823_v60 = vmul.f32 %v762_v48, %v13001_v47  ;;  %v1015_v9 = vmul.f32 %v954_v61, %v13015_v54 }
 0x105   :  { %v686_v10 = vrot.slane %v487_v1, %v12978_v31  ;;  %v766_v11 = vrot.slane %v487_v1, %v12982_v34  ;;  %v862_v12 = vrot.slane %v487_v1, %v12989_v38  ;;  %v958_v21 = vrot.slane %v487_v1, %v12993_v42 }
 0x106   :  { %v13030_v3 = vmax.f32 %v649_v58, 0.0  ;;  %v13046_v15 = vmax.f32 %v652_v59, 0.0  ;;  %v839_v16 = vadd.f32 %v823_v60, %v743_v62  ;;  %v472_v25 = vmul.f32 %v401_v57, %v13009_v51 }
 0x107   :  { %v13037_v7 = vpop.permute.xlu1 %178  ;;  %v13039_v8 = vpop.permute.xlu0 %193  ;;  %v744_v18 = vmul.f32 %v686_v10, %v13013_v53  ;;  %v824_v19 = vmul.f32 %v766_v11, %v13001_v47  ;;  %v1054_v30 = vrot.slane %v487_v1, %v12997_v44  ;;  %v13060_v32 = vmax.f32 %v473_v6, 0.0 }
 0x108   :  { %v651_v14 = vmul.f32 %v588_v46, %v13037_v7  ;;  %v919_v17 = vmul.f32 %v858_v55, %v13030_v3  ;;  %v920_v20 = vmul.f32 %v862_v12, %v13030_v3  ;;  %v654_v22 = vmul.f32 %v11309_v2, %v13039_v8 }
 0x109   :  { %v840_v28 = vadd.f32 %v824_v19, %v744_v18  ;;  %v13063_v33 = vmul.f32 %v11272_v13, %v13011_v52  ;;  %v1207_v41 = vmul.f32 %v1146_v0, %v13046_v15  ;;  %v1016_v46 = vmul.f32 %v958_v21, %v13015_v54 }
 0x10a   :  { %v13054_v23 = vmax.f32 %v651_v14, 0.0  ;;  %v935_v24 = vadd.f32 %v919_v17, %v839_v16  ;;  %v1150_v55 = vrot.slane %v487_v1, %v12999_v45  ;;  %v13073_v57 = vmax.f32 %v654_v22, 0.0  ;;  %v411_v14 = vpop.f32.mrf.mxu0 }
 0x10b   :  { %v13057_v27 = vpop.permute.xlu1 %188  ;;  %v936_v43 = vadd.f32 %v920_v20, %v840_v28  ;;  %v488_v59 = vmax.f32 %v472_v25, 0.0  ;;  %v1246_v62 = vrot.slane %v487_v1, %v13005_v49 }
 0x10c   :  { %v653_v37 = vmul.f32 %v598_v26, %v13057_v27  ;;  %v1031_v39 = vadd.f32 %v1015_v9, %v935_v24  ;;  %v1111_v40 = vmul.f32 %v1050_v63, %v13054_v23  ;;  %v1112_v48 = vmul.f32 %v1054_v30, %v13054_v23 }
 0x10d   :  { %v1032_v60 = vadd.f32 %v1016_v46, %v936_v43  ;;  %v1208_v61 = vmul.f32 %v1150_v55, %v13046_v15  ;;  %v1342_v63 = vrot.slane %v487_v1, %v13007_v50  ;;  %v690_v6 = vrot.slane %v488_v59, %v12978_v31 }
 0x10e   :  { %v13071_v56 = vmax.f32 %v653_v37, 0.0  ;;  %v1127_v58 = vadd.f32 %v1111_v40, %v1031_v39  ;;  %v694_v9 = vrot.slane %v13060_v32, %v12978_v31  ;;  %v770_v12 = vrot.slane %v488_v59, %v12982_v34  ;;  %v11275_v39 = vpop.f32.mrf.mxu0 }
 0x10f   :  { %v1128_v10 = vadd.f32 %v1112_v48, %v1032_v60  ;;  %v866_v13 = vrot.slane %v488_v59, %v12989_v38  ;;  %v1399_v17 = vmul.f32 %v1338_v5, %v13073_v57  ;;  %v745_v1 = vmul.f32 %v690_v6, %v13013_v53 }
 0x110   :  { %v1223_v0 = vadd.f32 %v1207_v41, %v1127_v58  ;;  %v1303_v2 = vmul.f32 %v1242_v4, %v13071_v56  ;;  %v1304_v11 = vmul.f32 %v1246_v62, %v13071_v56  ;;  %v774_v4 = vrot.slane %v13060_v32, %v12982_v34 }
 0x111   :  { %v1224_v18 = vadd.f32 %v1208_v61, %v1128_v10  ;;  %v1400_v19 = vmul.f32 %v1342_v63, %v13073_v57  ;;  %v825_v20 = vmul.f32 %v770_v12, %v13001_v47  ;;  %v962_v21 = vrot.slane %v488_v59, %v12993_v42 }
 0x112   :  { %v1319_v16 = vadd.f32 %v1303_v2, %v1223_v0  ;;  %v1058_v24 = vrot.slane %v488_v59, %v12997_v44  ;;  %v1154_v25 = vrot.slane %v488_v59, %v12999_v45  ;;  %v870_v5 = vrot.slane %v13060_v32, %v12989_v38 }
 0x113   :  { %v1320_v26 = vadd.f32 %v1304_v11, %v1224_v18  ;;  %v841_v28 = vadd.f32 %v825_v20, %v745_v1  ;;  %v921_v30 = vmul.f32 %v866_v13, %v13030_v3  ;;  %v746_v37 = vmul.f32 %v694_v9, %v13013_v53  ;;  %v421_v11 = vpop.f32.mrf.mxu0 }
 0x114   :  { %v1415_v22 = vadd.f32 %v1399_v17, %v1319_v16  ;;  %v826_v41 = vmul.f32 %v774_v4, %v13001_v47  ;;  %v922_v43 = vmul.f32 %v870_v5, %v13030_v3  ;;  %v966_v46 = vrot.slane %v13060_v32, %v12993_v42 }
 0x115   :  { %v1416_v48 = vadd.f32 %v1400_v19, %v1320_v26  ;;  %v937_v55 = vadd.f32 %v921_v30, %v841_v28  ;;  %v1017_v58 = vmul.f32 %v962_v21, %v13015_v54  ;;  %v1113_v60 = vmul.f32 %v1058_v24, %v13054_v23  ;;  %v13130_v28 = vpop.f32.mrf.mxu0 }
 0x116   :  { %v1431_v40 = vmul.f32 %v1415_v22, %v12975_v29  ;;  %v1209_v61 = vmul.f32 %v1154_v25, %v13046_v15  ;;  %v1250_v62 = vrot.slane %v488_v59, %v13005_v49  ;;  %v842_v63 = vadd.f32 %v826_v41, %v746_v37 }
 0x117   :  { %v1062_v0 = vrot.slane %v13060_v32, %v12997_v44  ;;  %v1432_v2 = vmul.f32 %v1416_v48, %v12984_v35  ;;  %v1033_v6 = vadd.f32 %v1017_v58, %v937_v55  ;;  %v1346_v9 = vrot.slane %v488_v59, %v13007_v50  ;;  %v13120_v59 = vpop.f32.mrf.mxu1  ;;  %v13142_v58 = vpop.permute.xlu1 %198 }
 0x118   :  { %11366 = vmatprep.mubr.msk.f32.mxu1 %vm276_vm0, %v1431_v40  ;;  %v474_v10 = vmul.f32 %v411_v14, %v13037_v7  ;;  %v938_v12 = vadd.f32 %v922_v43, %v842_v63  ;;  %v1018_v13 = vmul.f32 %v966_v46, %v13015_v54  ;;  %v1158_v17 = vrot.slane %v13060_v32, %v12999_v45 }
 0x119   :  { %v1114_v16 = vmul.f32 %v1062_v0, %v13054_v23  ;;  %11367 = vmatmul.mubr.msk.f32.vlgmr.msra.gmra.mxu1 %vm276_vm0, %v1432_v2  ;;  %v1129_v1 = vadd.f32 %v1113_v60, %v1033_v6  ;;  %v1305_v4 = vmul.f32 %v1250_v62, %v13071_v56  ;;  %v1401_v18 = vmul.f32 %v1346_v9, %v13073_v57  ;;  %v13140_v55 = vpop.f32.mrf.mxu1  ;;  %v431_v9 = vpop.f32.mrf.mxu0 }
 0x11a   :  { %v490_v19 = vmax.f32 %v474_v10, 0.0  ;;  %v1034_v14 = vadd.f32 %v1018_v13, %v938_v12  ;;  %v1210_v20 = vmul.f32 %v1158_v17, %v13046_v15  ;;  %v1254_v21 = vrot.slane %v13060_v32, %v13005_v49  ;;  %17377 = vst [vmem:[#allocation12_spill] sm:$0xff] %v13142_v58 }
 0x11b   :  { %v1350_v22 = vrot.slane %v13060_v32, %v13007_v50  ;;  %v1225_v24 = vadd.f32 %v1209_v61, %v1129_v1  ;;  %v13135_v41 = vmax.f32 %v13063_v33, 0.0  ;;  %v476_v62 = vmul.f32 %v421_v11, %v13057_v27 }
 0x11c   :  { %v698_v25 = vrot.slane %v490_v19, %v12978_v31  ;;  %v778_v5 = vrot.slane %v490_v19, %v12982_v34  ;;  %v874_v26 = vrot.slane %v490_v19, %v12989_v38  ;;  %v1130_v30 = vadd.f32 %v1114_v16, %v1034_v14 }
 0x11d   :  { %v1306_v37 = vmul.f32 %v1254_v21, %v13071_v56  ;;  %v1402_v40 = vmul.f32 %v1350_v22, %v13073_v57  ;;  %v1321_v43 = vadd.f32 %v1305_v4, %v1225_v24  ;;  %v970_v48 = vrot.slane %v490_v19, %v12993_v42  ;;  %v13158_v4 = vpop.f32.mrf.mxu1  ;;  %v13163_v22 = vpop.permute.xlu0 %203 }
 0x11e   :  { %v747_v32 = vmul.f32 %v698_v25, %v13013_v53  ;;  %v827_v46 = vmul.f32 %v778_v5, %v13001_v47  ;;  %v1226_v60 = vadd.f32 %v1210_v20, %v1130_v30  ;;  %v1066_v61 = vrot.slane %v490_v19, %v12997_v44  ;;  %17378 = vst [vmem:[#allocation13_spill] sm:$0xff] %v13163_v22 }
 0x11f   :  { %v477_v63 = vmul.f32 %v11275_v39, %v13039_v8  ;;  %v1417_v33 = vadd.f32 %v1401_v18, %v1321_v43  ;;  %v923_v2 = vmul.f32 %v874_v26, %v13030_v3  ;;  %v1162_v6 = vrot.slane %v490_v19, %v12999_v45 }
 0x120   :  { %v843_v0 = vadd.f32 %v827_v46, %v747_v32  ;;  %v1322_v10 = vadd.f32 %v1306_v37, %v1226_v60  ;;  %v702_v12 = vrot.slane %v13135_v41, %v12978_v31  ;;  %v782_v13 = vrot.slane %v13135_v41, %v12982_v34 }
 0x121   :  { %v878_v16 = vrot.slane %v13135_v41, %v12989_v38  ;;  %v1433_v11 = vmul.f32 %v1417_v33, %v13009_v51  ;;  %v1019_v17 = vmul.f32 %v970_v48, %v13015_v54  ;;  %v478_v1 = vmul.f32 %v431_v9, %v13142_v58 }
 0x122   :  { %v939_v39 = vadd.f32 %v923_v2, %v843_v0  ;;  %v1418_v18 = vadd.f32 %v1402_v40, %v1322_v10  ;;  %v1354_v14 = vrot.slane %v490_v19, %v13007_v50  ;;  %v748_v20 = vmul.f32 %v702_v12, %v13013_v53 }
 0x123   :  { %v828_v21 = vmul.f32 %v782_v13, %v13001_v47  ;;  %11369 = vmatprep.mubr.msk.f32.mxu1 %vm276_vm0, %v1433_v11  ;;  %v1115_v25 = vmul.f32 %v1066_v61, %v13054_v23  ;;  %v1258_v5 = vrot.slane %v490_v19, %v13005_v49  ;;  %v974_v26 = vrot.slane %v13135_v41, %v12993_v42  ;;  %v13178_v19 = vpop.f32.mrf.mxu1  ;;  %v13190_v13 = vpop.permute.xlu1 %208 }
 0x124   :  { %v1035_v24 = vadd.f32 %v1019_v17, %v939_v39  ;;  %v1434_v30 = vmul.f32 %v1418_v18, %v12986_v36  ;;  %v1211_v37 = vmul.f32 %v1162_v6, %v13046_v15  ;;  %v924_v43 = vmul.f32 %v878_v16, %v13030_v3  ;;  %17379 = vst [vmem:[#allocation14_spill] sm:$0xff] %v13190_v13  ;;  %v13198_v17 = vpop.permute.xlu0 %213 }
 0x125   :  { %v844_v40 = vadd.f32 %v828_v21, %v748_v20  ;;  %v1307_v46 = vmul.f32 %v1258_v5, %v13071_v56  ;;  %v1070_v48 = vrot.slane %v13135_v41, %v12997_v44  ;;  %v1166_v60 = vrot.slane %v13135_v41, %v12999_v45  ;;  %17380 = vst [vmem:[#allocation15_spill] sm:$0xff] %v13198_v17  ;;  %v13203_v21 = vpop.f32.mrf.mxu1 }
 0x126   :  { %v1131_v32 = vadd.f32 %v1115_v25, %v1035_v24  ;;  %11370 = vmatmul.mubr.msk.f32.gmra.mxu1 %vm276_vm0, %v1434_v30  ;;  %v1403_v61 = vmul.f32 %v1354_v14, %v13073_v57  ;;  %v1020_v0 = vmul.f32 %v974_v26, %v13015_v54  ;;  %v13183_v2 = vmax.f32 %v476_v62, 0.0 }
 0x127   :  { %v940_v33 = vadd.f32 %v924_v43, %v844_v40  ;;  %v1116_v9 = vmul.f32 %v1070_v48, %v13054_v23  ;;  %v1262_v10 = vrot.slane %v13135_v41, %v13005_v49  ;;  %v1358_v12 = vrot.slane %v13135_v41, %v13007_v50 }
 0x128   :  { %v1227_v6 = vadd.f32 %v1211_v37, %v1131_v32  ;;  %v706_v11 = vrot.slane %v13183_v2, %v12978_v31  ;;  %v786_v39 = vrot.slane %v13183_v2, %v12982_v34  ;;  %v882_v62 = vrot.slane %v13183_v2, %v12989_v38 }
 0x129   :  { %v1036_v16 = vadd.f32 %v1020_v0, %v940_v33  ;;  %v1212_v14 = vmul.f32 %v1166_v60, %v13046_v15  ;;  %v978_v41 = vrot.slane %v13183_v2, %v12993_v42  ;;  %v493_v20 = vmax.f32 %v477_v63, 0.0 }
 0x12a   :  { %v1323_v18 = vadd.f32 %v1307_v46, %v1227_v6  ;;  %v749_v25 = vmul.f32 %v706_v11, %v13013_v53  ;;  %v829_v5 = vmul.f32 %v786_v39, %v13001_v47  ;;  %v1074_v26 = vrot.slane %v13183_v2, %v12997_v44  ;;  %v628_v6 = vpop.f32.mrf.mxu1  ;;  %v13224_v11 = vpop.permute.xlu0 %223 }
 0x12b   :  { %v1132_v24 = vadd.f32 %v1116_v9, %v1036_v16  ;;  %v1308_v37 = vmul.f32 %v1262_v10, %v13071_v56  ;;  %v1404_v40 = vmul.f32 %v1358_v12, %v13073_v57  ;;  %v13211_v43 = vmax.f32 %v478_v1, 0.0  ;;  %v13220_v9 = vpop.permute.xlu1 %218  ;;  %17382 = vst [vmem:[#allocation17_spill] sm:$0xff] %v13224_v11 }
 0x12c   :  { %v1419_v30 = vadd.f32 %v1403_v61, %v1323_v18  ;;  %v845_v46 = vadd.f32 %v829_v5, %v749_v25  ;;  %v925_v63 = vmul.f32 %v882_v62, %v13030_v3  ;;  %v1170_v48 = vrot.slane %v13183_v2, %v12999_v45  ;;  %17381 = vst [vmem:[#allocation16_spill] sm:$0xff] %v13220_v9 }
 0x12d   :  { %v1228_v32 = vadd.f32 %v1212_v14, %v1132_v24  ;;  %v710_v33 = vrot.slane %v493_v20, %v12978_v31  ;;  %v790_v0 = vrot.slane %v493_v20, %v12982_v34  ;;  %v886_v61 = vrot.slane %v493_v20, %v12989_v38 }
 0x12e   :  { %v1435_v60 = vmul.f32 %v1419_v30, %v13037_v7  ;;  %v941_v10 = vadd.f32 %v925_v63, %v845_v46  ;;  %v1021_v12 = vmul.f32 %v978_v41, %v13015_v54  ;;  %v1117_v16 = vmul.f32 %v1074_v26, %v13054_v23 }
 0x12f   :  { %v1324_v1 = vadd.f32 %v1308_v37, %v1228_v32  ;;  %v1266_v39 = vrot.slane %v13183_v2, %v13005_v49  ;;  %v750_v62 = vmul.f32 %v710_v33, %v13013_v53  ;;  %v830_v18 = vmul.f32 %v790_v0, %v13001_v47  ;;  %v11321_v53 = vpop.f32.mrf.mxu1 }
 0x130   :  { %11372 = vmatprep.mubr.msk.f32.mxu1 %vm276_vm0, %v1435_v60  ;;  %v982_v14 = vrot.slane %v493_v20, %v12993_v42  ;;  %v1037_v25 = vadd.f32 %v1021_v12, %v941_v10  ;;  %v1362_v41 = vrot.slane %v13183_v2, %v13007_v50  ;;  %v1078_v5 = vrot.slane %v493_v20, %v12997_v44  ;;  %v11281_v60 = vpop.f32.mrf.mxu0  ;;  %v13252_v12 = vpop.permute.xlu0 %233 }
 0x131   :  { %v1420_v24 = vadd.f32 %v1404_v40, %v1324_v1  ;;  %v846_v26 = vadd.f32 %v830_v18, %v750_v62  ;;  %v926_v30 = vmul.f32 %v886_v61, %v13030_v3  ;;  %v1174_v37 = vrot.slane %v493_v20, %v12999_v45  ;;  %v13245_v61 = vpop.permute.xlu1 %228  ;;  %17384 = vst [vmem:[#allocation19_spill] sm:$0xff] %v13252_v12  ;;  %v638_v62 = vpop.f32.mrf.mxu1 }
 0x132   :  { %v655_v32 = vmul.f32 %v13140_v55, %v13142_v58  ;;  %v1133_v46 = vadd.f32 %v1117_v16, %v1037_v25  ;;  %v1213_v40 = vmul.f32 %v1170_v48, %v13046_v15  ;;  %v1366_v63 = vrot.slane %v493_v20, %v13007_v50  ;;  %17383 = vst [vmem:[#allocation18_spill] sm:$0xff] %v13245_v61 }
 0x133   :  { %v1436_v47 = vmul.f32 %v1420_v24, %v13011_v52  ;;  %v1309_v2 = vmul.f32 %v1266_v39, %v13071_v56  ;;  %v942_v33 = vadd.f32 %v926_v30, %v846_v26  ;;  %v1022_v0 = vmul.f32 %v982_v14, %v13015_v54 }
 0x134   :  { %v1270_v3 = vrot.slane %v493_v20, %v13005_v49  ;;  %v1229_v55 = vadd.f32 %v1213_v40, %v1133_v46  ;;  %v1405_v1 = vmul.f32 %v1362_v41, %v13073_v57  ;;  %v1118_v10 = vmul.f32 %v1078_v5, %v13054_v23 }
 0x135   :  { %11373 = vmatmul.mubr.msk.f32.gmra.mxu1 %vm276_vm0, %v1436_v47  ;;  %v657_v48 = vmul.f32 %v13178_v19, %v13190_v13  ;;  %v1038_v16 = vadd.f32 %v1022_v0, %v942_v33  ;;  %v1214_v39 = vmul.f32 %v1174_v37, %v13046_v15  ;;  %v656_v20 = vmul.f32 %v13120_v59, %v13163_v22  ;;  %v441_v19 = vpop.f32.mrf.mxu0 }
 0x136   :  { %v1310_v54 = vmul.f32 %v1270_v3, %v13071_v56  ;;  %v1325_v18 = vadd.f32 %v1309_v2, %v1229_v55  ;;  %v1406_v14 = vmul.f32 %v1366_v63, %v13073_v57  ;;  %v658_v23 = vmul.f32 %v13158_v4, %v13198_v17 }
 0x137   :  { %v659_v24 = vmul.f32 %v628_v6, %v13220_v9  ;;  %v1134_v25 = vadd.f32 %v1118_v10, %v1038_v16  ;;  %v660_v41 = vmul.f32 %v13203_v21, %v13224_v11  ;;  %v661_v15 = vmul.f32 %v638_v62, %v13245_v61  ;;  %v11284_v46 = vpop.f32.mrf.mxu0 }
 0x138   :  { %v13265_v56 = vmax.f32 %v657_v48, 0.0  ;;  %v1421_v5 = vadd.f32 %v1405_v1, %v1325_v18  ;;  %v662_v59 = vmul.f32 %v11321_v53, %v13252_v12  ;;  %v13268_v26 = vmax.f32 %v655_v32, 0.0 }
 0x139   :  { %v714_v57 = vrot.slane %v13211_v43, %v12978_v31  ;;  %v1230_v4 = vadd.f32 %v1214_v39, %v1134_v25  ;;  %v13272_v30 = vmax.f32 %v656_v20, 0.0  ;;  %v794_v6 = vrot.slane %v13211_v43, %v12982_v34 }
 0x13a   :  { %v890_v21 = vrot.slane %v13211_v43, %v12989_v38  ;;  %v1437_v37 = vmul.f32 %v1421_v5, %v13057_v27  ;;  %v13279_v47 = vmax.f32 %v659_v24, 0.0  ;;  %v986_v32 = vrot.slane %v13211_v43, %v12993_v42 }
 0x13b   :  { %v751_v53 = vmul.f32 %v714_v57, %v13268_v26  ;;  %v1326_v40 = vadd.f32 %v1310_v54, %v1230_v4  ;;  %v13284_v63 = vmax.f32 %v660_v41, 0.0  ;;  %v831_v2 = vmul.f32 %v794_v6, %v13272_v30 }
 0x13c   :  { %v927_v33 = vmul.f32 %v890_v21, %v13265_v56  ;;  %11375 = vmatprep.mubr.msk.f32.mxu1 %vm276_vm0, %v1437_v37  ;;  %v13289_v0 = vmax.f32 %v658_v23, 0.0  ;;  %v13291_v3 = vmax.f32 %v661_v15, 0.0  ;;  %v1082_v55 = vrot.slane %v13211_v43, %v12997_v44  ;;  %v451_v23 = vpop.f32.mrf.mxu0 }
 0x13d   :  { %v1178_v1 = vrot.slane %v13211_v43, %v12999_v45  ;;  %v1422_v10 = vadd.f32 %v1406_v14, %v1326_v40  ;;  %v847_v48 = vadd.f32 %v831_v2, %v751_v53  ;;  %v479_v16 = vmul.f32 %v13130_v28, %v13163_v22 }
 0x13e   :  { %v480_v39 = vmul.f32 %v441_v19, %v13190_v13  ;;  %v13300_v54 = vmax.f32 %v662_v59, 0.0  ;;  %v1023_v20 = vmul.f32 %v986_v32, %v13289_v0  ;;  %v1119_v62 = vmul.f32 %v1082_v55, %v13279_v47 }
 0x13f   :  { %v481_v18 = vmul.f32 %v11281_v60, %v13198_v17  ;;  %v1438_v24 = vmul.f32 %v1422_v10, %v13039_v8  ;;  %v943_v25 = vadd.f32 %v927_v33, %v847_v48  ;;  %v1215_v14 = vmul.f32 %v1178_v1, %v13284_v63 }
 0x140   :  { %v495_v41 = vmax.f32 %v479_v16, 0.0  ;;  %v1274_v28 = vrot.slane %v13211_v43, %v13005_v49  ;;  %v1370_v19 = vrot.slane %v13211_v43, %v13007_v50  ;;  %v13311_v15 = vmax.f32 %v480_v39, 0.0 }
 0x141   :  { %v482_v5 = vmul.f32 %v451_v23, %v13220_v9  ;;  %11376 = vmatmul.mubr.msk.f32.gmra.mxu1 %vm276_vm0, %v1438_v24  ;;  %v1039_v60 = vadd.f32 %v1023_v20, %v943_v25  ;;  %v13321_v43 = vmax.f32 %v481_v18, 0.0 }
 0x142   :  { %v718_v59 = vrot.slane %v495_v41, %v12978_v31  ;;  %v798_v57 = vrot.slane %v495_v41, %v12982_v34  ;;  %v894_v4 = vrot.slane %v495_v41, %v12989_v38  ;;  %v1311_v6 = vmul.f32 %v1274_v28, %v13291_v3 }
 0x143   :  { %v1407_v21 = vmul.f32 %v1370_v19, %v13300_v54  ;;  %v990_v37 = vrot.slane %v495_v41, %v12993_v42  ;;  %v1135_v53 = vadd.f32 %v1119_v62, %v1039_v60  ;;  %v1086_v33 = vrot.slane %v495_v41, %v12997_v44 }
 0x144   :  { %v752_v32 = vmul.f32 %v718_v59, %v13268_v26  ;;  %v832_v40 = vmul.f32 %v798_v57, %v13272_v30  ;;  %v928_v2 = vmul.f32 %v894_v4, %v13265_v56  ;;  %v1182_v55 = vrot.slane %v495_v41, %v12999_v45 }
 0x145   :  { %v1278_v1 = vrot.slane %v495_v41, %v13005_v49  ;;  %v13329_v10 = vmax.f32 %v482_v5, 0.0  ;;  %v1231_v48 = vadd.f32 %v1215_v14, %v1135_v53  ;;  %v1024_v39 = vmul.f32 %v990_v37, %v13289_v0 }
 0x146   :  { %v848_v16 = vadd.f32 %v832_v40, %v752_v32  ;;  %v722_v20 = vrot.slane %v13311_v15, %v12978_v31  ;;  %v1120_v62 = vmul.f32 %v1086_v33, %v13279_v47  ;;  %v1374_v18 = vrot.slane %v495_v41, %v13007_v50 }
 0x147   :  { %v802_v23 = vrot.slane %v13311_v15, %v12982_v34  ;;  %v898_v24 = vrot.slane %v13311_v15, %v12989_v38  ;;  %v1327_v25 = vadd.f32 %v1311_v6, %v1231_v48  ;;  %v994_v19 = vrot.slane %v13311_v15, %v12993_v42 }
 0x148   :  { %v944_v28 = vadd.f32 %v928_v2, %v848_v16  ;;  %v753_v14 = vmul.f32 %v722_v20, %v13268_v26  ;;  %v1216_v5 = vmul.f32 %v1182_v55, %v13284_v63  ;;  %v1312_v60 = vmul.f32 %v1278_v1, %v13291_v3 }
 0x149   :  { %v833_v59 = vmul.f32 %v802_v23, %v13272_v30  ;;  %v483_v41 = vmul.f32 %v11284_v46, %v13224_v11  ;;  %v1423_v57 = vadd.f32 %v1407_v21, %v1327_v25  ;;  %v1408_v37 = vmul.f32 %v1374_v18, %v13300_v54 }
 0x14a   :  { %v1040_v4 = vadd.f32 %v1024_v39, %v944_v28  ;;  %v1090_v6 = vrot.slane %v13311_v15, %v12997_v44  ;;  %v929_v32 = vmul.f32 %v898_v24, %v13265_v56  ;;  %v726_v40 = vrot.slane %v13321_v43, %v12978_v31 }
 0x14b   :  { %v849_v53 = vadd.f32 %v833_v59, %v753_v14  ;;  %v806_v2 = vrot.slane %v13321_v43, %v12982_v34  ;;  %v1439_v33 = vmul.f32 %v1423_v57, %v13142_v58  ;;  %v1025_v46 = vmul.f32 %v994_v19, %v13289_v0 }
 0x14c   :  { %v1136_v55 = vadd.f32 %v1120_v62, %v1040_v4  ;;  %v1186_v21 = vrot.slane %v13311_v15, %v12999_v45  ;;  %v1121_v48 = vmul.f32 %v1090_v6, %v13279_v47  ;;  %v754_v16 = vmul.f32 %v726_v40, %v13268_v26 }
 0x14d   :  { %v945_v1 = vadd.f32 %v929_v32, %v849_v53  ;;  %v834_v39 = vmul.f32 %v806_v2, %v13272_v30  ;;  %11378 = vmatprep.mubr.msk.f32.mxu1 %vm276_vm0, %v1439_v33  ;;  %v1282_v18 = vrot.slane %v13311_v15, %v13005_v49  ;;  %v902_v62 = vrot.slane %v13321_v43, %v12989_v38 }
 0x14e   :  { %v1232_v20 = vadd.f32 %v1216_v5, %v1136_v55  ;;  %v998_v23 = vrot.slane %v13321_v43, %v12993_v42  ;;  %v1378_v25 = vrot.slane %v13311_v15, %v13007_v50  ;;  %v1094_v14 = vrot.slane %v13321_v43, %v12997_v44  ;;  %v13380_v15 = vpop.f32.mrf.mxu0 }
 0x14f   :  { %v1041_v24 = vadd.f32 %v1025_v46, %v945_v1  ;;  %v850_v28 = vadd.f32 %v834_v39, %v754_v16  ;;  %v1217_v5 = vmul.f32 %v1186_v21, %v13284_v63  ;;  %v1313_v59 = vmul.f32 %v1282_v18, %v13291_v3 }
 0x150   :  { %v1328_v19 = vadd.f32 %v1312_v60, %v1232_v20  ;;  %v930_v57 = vmul.f32 %v902_v62, %v13265_v56  ;;  %v1026_v6 = vmul.f32 %v998_v23, %v13289_v0  ;;  %v1122_v53 = vmul.f32 %v1094_v14, %v13279_v47 }
 0x151   :  { %v1137_v4 = vadd.f32 %v1121_v48, %v1041_v24  ;;  %v1190_v32 = vrot.slane %v13321_v43, %v12999_v45  ;;  %v730_v60 = vrot.slane %v13329_v10, %v12978_v31  ;;  %v810_v33 = vrot.slane %v13329_v10, %v12982_v34  ;;  %v461_v24 = vpop.f32.mrf.mxu0 }
 0x152   :  { %v1424_v40 = vadd.f32 %v1408_v37, %v1328_v19  ;;  %v946_v2 = vadd.f32 %v930_v57, %v850_v28  ;;  %v1286_v46 = vrot.slane %v13321_v43, %v13005_v49  ;;  %v906_v21 = vrot.slane %v13329_v10, %v12989_v38 }
 0x153   :  { %v1233_v55 = vadd.f32 %v1217_v5, %v1137_v4  ;;  %v1002_v1 = vrot.slane %v13329_v10, %v12993_v42  ;;  %v755_v16 = vmul.f32 %v730_v60, %v13268_v26  ;;  %v835_v39 = vmul.f32 %v810_v33, %v13272_v30 }
 0x154   :  { %v1440_v48 = vmul.f32 %v1424_v40, %v13163_v22  ;;  %v1042_v37 = vadd.f32 %v1026_v6, %v946_v2  ;;  %v1409_v18 = vmul.f32 %v1378_v25, %v13300_v54  ;;  %v1218_v62 = vmul.f32 %v1190_v32, %v13284_v63 }
 0x155   :  { %v1329_v20 = vadd.f32 %v1313_v59, %v1233_v55  ;;  %v1314_v23 = vmul.f32 %v1286_v46, %v13291_v3  ;;  %v851_v14 = vadd.f32 %v835_v39, %v755_v16  ;;  %v931_v19 = vmul.f32 %v906_v21, %v13265_v56 }
 0x156   :  { %11379 = vmatmul.mubr.msk.f32.gmra.mxu1 %vm276_vm0, %v1440_v48  ;;  %v1138_v28 = vadd.f32 %v1122_v53, %v1042_v37  ;;  %v1098_v5 = vrot.slane %v13329_v10, %v12997_v44  ;;  %v1382_v59 = vrot.slane %v13321_v43, %v13007_v50  ;;  %v13404_v4 = vmax.f32 %v483_v41, 0.0 }
 0x157   :  { %v1425_v57 = vadd.f32 %v1409_v18, %v1329_v20  ;;  %v484_v25 = vmul.f32 %v461_v24, %v13245_v61  ;;  %v947_v32 = vadd.f32 %v931_v19, %v851_v14  ;;  %v1027_v40 = vmul.f32 %v1002_v1, %v13289_v0 }
 0x158   :  { %v1234_v6 = vadd.f32 %v1218_v62, %v1138_v28  ;;  %v1194_v53 = vrot.slane %v13329_v10, %v12999_v45  ;;  %v1410_v60 = vmul.f32 %v1382_v59, %v13300_v54  ;;  %v734_v33 = vrot.slane %v13404_v4, %v12978_v31 }
 0x159   :  { %v1441_v2 = vmul.f32 %v1425_v57, %v13190_v13  ;;  %v814_v43 = vrot.slane %v13404_v4, %v12982_v34  ;;  %v1043_v55 = vadd.f32 %v1027_v40, %v947_v32  ;;  %v1123_v46 = vmul.f32 %v1098_v5, %v13279_v47 }
 0x15a   :  { %v1330_v41 = vadd.f32 %v1314_v23, %v1234_v6  ;;  %v910_v21 = vrot.slane %v13404_v4, %v12989_v38  ;;  %v1290_v1 = vrot.slane %v13329_v10, %v13005_v49  ;;  %v756_v48 = vmul.f32 %v734_v33, %v13268_v26 }
 0x15b   :  { %11381 = vmatprep.mubr.msk.f32.mxu1 %vm276_vm0, %v1441_v2  ;;  %v836_v37 = vmul.f32 %v814_v43, %v13272_v30  ;;  %v1006_v16 = vrot.slane %v13404_v4, %v12993_v42  ;;  %v1139_v20 = vadd.f32 %v1123_v46, %v1043_v55  ;;  %v1219_v18 = vmul.f32 %v1194_v53, %v13284_v63 }
 0x15c   :  { %v1426_v39 = vadd.f32 %v1410_v60, %v1330_v41  ;;  %v1386_v62 = vrot.slane %v13329_v10, %v13007_v50  ;;  %v932_v24 = vmul.f32 %v910_v21, %v13265_v56  ;;  %v1315_v19 = vmul.f32 %v1290_v1, %v13291_v3 }
 0x15d   :  { %v852_v23 = vadd.f32 %v836_v37, %v756_v48  ;;  %v1235_v14 = vadd.f32 %v1219_v18, %v1139_v20  ;;  %v500_v5 = vmax.f32 %v484_v25, 0.0  ;;  %v1028_v59 = vmul.f32 %v1006_v16, %v13289_v0 }
 0x15e   :  { %v1442_v28 = vmul.f32 %v1426_v39, %v13198_v17  ;;  %v1102_v6 = vrot.slane %v13404_v4, %v12997_v44  ;;  %v1198_v32 = vrot.slane %v13404_v4, %v12999_v45  ;;  %v1411_v40 = vmul.f32 %v1386_v62, %v13300_v54 }
 0x15f   :  { %v948_v57 = vadd.f32 %v932_v24, %v852_v23  ;;  %v1331_v10 = vadd.f32 %v1315_v19, %v1235_v14  ;;  %v738_v53 = vrot.slane %v500_v5, %v12978_v31  ;;  %v818_v2 = vrot.slane %v500_v5, %v12982_v34 }
 0x160   :  { %11382 = vmatmul.mubr.msk.f32.gmra.mxu1 %vm276_vm0, %v1442_v28  ;;  %v1124_v25 = vmul.f32 %v1102_v6, %v13279_v47  ;;  %v914_v33 = vrot.slane %v500_v5, %v12989_v38  ;;  %v485_v43 = vmul.f32 %v13380_v15, %v13252_v12  ;;  %v1010_v21 = vrot.slane %v500_v5, %v12993_v42 }
 0x161   :  { %v1044_v60 = vadd.f32 %v1028_v59, %v948_v57  ;;  %v1427_v41 = vadd.f32 %v1411_v40, %v1331_v10  ;;  %v757_v55 = vmul.f32 %v738_v53, %v13268_v26  ;;  %v837_v46 = vmul.f32 %v818_v2, %v13272_v30 }
 0x162   :  { %v1220_v48 = vmul.f32 %v1198_v32, %v13284_v63  ;;  %v1294_v37 = vrot.slane %v13404_v4, %v13005_v49  ;;  %v933_v20 = vmul.f32 %v914_v33, %v13265_v56  ;;  %v1106_v15 = vrot.slane %v500_v5, %v12997_v44 }
 0x163   :  { %v1140_v1 = vadd.f32 %v1124_v25, %v1044_v60  ;;  %v1443_v16 = vmul.f32 %v1427_v41, %v13220_v9  ;;  %v853_v39 = vadd.f32 %v837_v46, %v757_v55  ;;  %v1390_v23 = vrot.slane %v13404_v4, %v13007_v50 }
 0x164   :  { %v1316_v62 = vmul.f32 %v1294_v37, %v13291_v3  ;;  %v501_v24 = vmax.f32 %v485_v43, 0.0  ;;  %v1029_v14 = vmul.f32 %v1010_v21, %v13289_v0  ;;  %v1202_v19 = vrot.slane %v500_v5, %v12999_v45 }
 0x165   :  { %v1236_v18 = vadd.f32 %v1220_v48, %v1140_v1  ;;  %11384 = vmatprep.mubr.msk.f32.mxu1 %vm276_vm0, %v1443_v16  ;;  %v949_v28 = vadd.f32 %v933_v20, %v853_v39  ;;  %v1412_v59 = vmul.f32 %v1390_v23, %v13300_v54  ;;  %v1125_v40 = vmul.f32 %v1106_v15, %v13279_v47 }
 0x166   :  { %v742_v6 = vrot.slane %v501_v24, %v12978_v31  ;;  %v822_v32 = vrot.slane %v501_v24, %v12982_v34  ;;  %v1298_v4 = vrot.slane %v500_v5, %v13005_v49  ;;  %v918_v53 = vrot.slane %v501_v24, %v12989_v38 }
 0x167   :  { %v1332_v57 = vadd.f32 %v1316_v62, %v1236_v18  ;;  %v1045_v10 = vadd.f32 %v1029_v14, %v949_v28  ;;  %v1014_v33 = vrot.slane %v501_v24, %v12993_v42  ;;  %v1221_v41 = vmul.f32 %v1202_v19, %v13284_v63 }
 0x168   :  { %v758_v60 = vmul.f32 %v742_v6, %v13268_v26  ;;  %v838_v25 = vmul.f32 %v822_v32, %v13272_v30  ;;  %v1394_v55 = vrot.slane %v500_v5, %v13007_v50  ;;  %v934_v1 = vmul.f32 %v918_v53, %v13265_v56 }
 0x169   :  { %v1428_v2 = vadd.f32 %v1412_v59, %v1332_v57  ;;  %v1141_v43 = vadd.f32 %v1125_v40, %v1045_v10  ;;  %v1110_v48 = vrot.slane %v501_v24, %v12997_v44  ;;  %v1317_v16 = vmul.f32 %v1298_v4, %v13291_v3 }
 0x16a   :  { %v854_v21 = vadd.f32 %v838_v25, %v758_v60  ;;  %v1030_v30 = vmul.f32 %v1014_v33, %v13289_v0  ;;  %v1206_v39 = vrot.slane %v501_v24, %v12999_v45  ;;  %v1413_v5 = vmul.f32 %v1394_v55, %v13300_v54 }
 0x16b   :  { %v1444_v46 = vmul.f32 %v1428_v2, %v13224_v11  ;;  %v1237_v37 = vadd.f32 %v1221_v41, %v1141_v43  ;;  %v1126_v18 = vmul.f32 %v1110_v48, %v13279_v47  ;;  %v1302_v28 = vrot.slane %v501_v24, %v13005_v49 }
 0x16c   :  { %v950_v26 = vadd.f32 %v934_v1, %v854_v21  ;;  %v1222_v23 = vmul.f32 %v1206_v39, %v13284_v63  ;;  %v1398_v14 = vrot.slane %v501_v24, %v13007_v50  ;;  %v17284_v63 = vmov 0.0  }
 0x16d   :  { %11385 = vmatmul.mubr.msk.f32.gmra.mxu1 %vm276_vm0, %v1444_v46  ;;  %v1333_v20 = vadd.f32 %v1317_v16, %v1237_v37  ;;  %v1318_v0 = vmul.f32 %v1302_v28, %v13291_v3  ;;  %11390 = vmatprep.subr.mxu0 %v17284_v63  ;;  %v13495_v3 = vpop.f32.mrf.mxu0 }
 0x16e   :  { %v1046_v15 = vadd.f32 %v1030_v30, %v950_v26  ;;  %v1414_v6 = vmul.f32 %v1398_v14, %v13300_v54  ;;  %11425 = vmatprep.subr.mxu1 %v17284_v63  ;;  %11422 = vmatprep.mubr.msk.f32.mxu0 %vm12513_vm1, %v17284_v63 }
 0x16f   :  { %v1429_v62 = vadd.f32 %v1413_v5, %v1333_v20  ;;  %v13499_v24 = vpop.f32.mrf.mxu0 }
 0x170   :  { %v1142_v56 = vadd.f32 %v1126_v18, %v1046_v15 }
 0x171   :  { %v1445_v19 = vmul.f32 %v1429_v62, %v13245_v61  ;;  %v13503_v40 = vpop.f32.mrf.mxu0 }
 0x172   :  { %v1238_v57 = vadd.f32 %v1222_v23, %v1142_v56 }
 0x173   :  { %11387 = vmatprep.mubr.msk.f32.mxu1 %vm276_vm0, %v1445_v19  ;;  %v13507_v53 = vpop.f32.mrf.mxu0 }
 0x174   :  { %v1334_v59 = vadd.f32 %v1318_v0, %v1238_v57 }
 0x175   :  { %v13511_v60 = vpop.f32.mrf.mxu0 }
 0x176   :  { %v1430_v32 = vadd.f32 %v1414_v6, %v1334_v59 }
 0x177   :  { %v13515_v33 = vpop.f32.mrf.mxu0 }
 0x178   :  { %v1446_v47 = vmul.f32 %v1430_v32, %v13252_v12 }
 0x179   :  { %v11343_v41 = vpop.f32.mrf.mxu0 }
 0x17a   :  { %11388 = vmatmul.mubr.msk.f32.gmra.mxu1 %vm276_vm0, %v1446_v47 }
 0x17b   :  { %11457 = vmatprep.mubr.msk.f32.mxu1 %vm12513_vm1, %v17284_v63  ;;  %v1543_v46 = vpop.f32.mrf.mxu0 }
 0x17d   :  { %v11346_v1 = vpop.f32.mrf.mxu0 }
 0x17f   :  { %v1553_v37 = vpop.f32.mrf.mxu0 }
 0x181   :  { %v11349_v26 = vpop.f32.mrf.mxu0 }
 0x183   :  { %v1563_v39 = vpop.f32.mrf.mxu0 }
 0x185   :  { %v11352_v5 = vpop.f32.mrf.mxu0 }
 0x187   :  { %v1573_v18 = vpop.f32.mrf.mxu0 }
 0x189   :  { %v11355_v56 = vpop.f32.mrf.mxu0 }
 0x18b   :  { %v1583_v19 = vpop.f32.mrf.mxu0 }
 0x1d9   :  { %v13497_v54 = vpop.f32.mrf.mxu1 }
 0x1db   :  { %v13501_v10 = vpop.f32.mrf.mxu1 }
 0x1e6   :  { %v13505_v4 = vpop.f32.mrf.mxu1 }
 0x1e8   :  { %v13509_v2 = vpop.f32.mrf.mxu1 }
 0x1f5   :  { %v13513_v25 = vpop.f32.mrf.mxu1 }
 0x1f7   :  { %v13517_v43 = vpop.f32.mrf.mxu1 }
 0x201   :  { %v11377_v55 = vpop.f32.mrf.mxu1 }
 0x203   :  { %v1736_v21 = vpop.f32.mrf.mxu1 }
 0x216   :  { %v11380_v48 = vpop.f32.mrf.mxu1 }
 0x218   :  { %v1746_v16 = vpop.f32.mrf.mxu1 }
 0x220   :  { %v11383_v30 = vpop.f32.mrf.mxu1 }
 0x221   :  { %v1762_v32 = vadd.f32 %v11383_v30, %v11349_v26  ;;  %v1752_v26 = vadd.f32 %v11380_v48, %v11346_v1  ;;  %v1742_v1 = vadd.f32 %v11377_v55, %v11343_v41  ;;  %v1732_v41 = vadd.f32 %v13513_v25, %v13511_v60 }
 0x222   :  { %v1756_v20 = vpop.f32.mrf.mxu1  ;;  %v1722_v60 = vadd.f32 %v13505_v4, %v13503_v40  ;;  %v1712_v40 = vadd.f32 %v13497_v54, %v13495_v3 }
 0x223   :  { %v1757_v49 = vadd.f32 %v1756_v20, %v1563_v39  ;;  %v1796_v30 = vmul.f32 %v1762_v32, %v13198_v17  ;;  %v1794_v48 = vmul.f32 %v1752_v26, %v13163_v22  ;;  %v1792_v55 = vmul.f32 %v1742_v1, %v13039_v8  ;;  %v1961_v32 = vld [vmem:[%s17269_s7 + $0x20] sm:$0xff]  ;;  %v1960_v26 = vld [vmem:[%s17269_s7 + $0x18] sm:$0xff]  ;;  %v1958_v1 = vld [vmem:[%s17269_s7 + $0x8] sm:$0xff] }
 0x224   :  { %v1790_v25 = vmul.f32 %v1732_v41, %v13011_v52  ;;  %v1788_v4 = vmul.f32 %v1722_v60, %v12986_v36  ;;  %v1786_v3 = vmul.f32 %v1712_v40, %v12984_v35  ;;  %v10169_v41 = vld [vmem:[%s17266_s4 + $0x48] sm:$0xff]  ;;  %v10168_v60 = vld [vmem:[%s17266_s4 + $0x40] sm:$0xff]  ;;  %v10167_v40 = vld [vmem:[%s17266_s4 + $0x38] sm:$0xff] }
 0x225   :  { %v1795_v39 = vmul.f32 %v1757_v49, %v13190_v13 }
 0x226   :  { %v13614_v54 = vmax.f32 %v1788_v4, 0.0  ;;  %v10161_v4 = vld [vmem:[%s17265_s3 + $0x30] sm:$0xff] }
 0x22d   :  { %v11386_v15 = vpop.f32.mrf.mxu1 }
 0x22e   :  { %v1772_v28 = vadd.f32 %v11386_v15, %v11352_v5  ;;  %v17385_v5 = vmov 0.0  }
 0x22f   :  { %v1766_v62 = vpop.f32.mrf.mxu1 }
 0x230   :  { %v1767_v0 = vadd.f32 %v1766_v62, %v1573_v18  ;;  %v1798_v47 = vmul.f32 %v1772_v28, %v13224_v11  ;;  %v13546_v18 = vmax.f32 %v1796_v30, 0.0  ;;  %v13598_v28 = vmax.f32 %v1790_v25, 0.0  ;;  %v1964_v30 = vld [vmem:[%s17270_s8 + $0x10] sm:$0xff] }
 0x232   :  { %v1797_v44 = vmul.f32 %v1767_v0, %v13220_v9  ;;  %v13532_v15 = vmax.f32 %v1798_v47, 0.0  ;;  %v236_v0 = vld [vmem:[%s17386_s26] sm:$0x3]  ;;  %v1965_v47 = vld [vmem:[%s17270_s8 + $0x18] sm:$0xff] }
 0x234   :  { %v13539_v20 = vmax.f32 %v1797_v44, 0.0  ;;  %v1737_v44 = vadd.f32 %v1736_v21, %v1543_v46  ;;  %v1727_v46 = vadd.f32 %v13517_v43, %v13515_v33  ;;  %v1717_v33 = vadd.f32 %v13509_v2, %v13507_v53 }
 0x235   :  { %v1707_v53 = vadd.f32 %v13501_v10, %v13499_v24 }
 0x236   :  { %v1791_v21 = vmul.f32 %v1737_v44, %v13057_v27  ;;  %v1789_v43 = vmul.f32 %v1727_v46, %v13037_v7  ;;  %v1787_v2 = vmul.f32 %v1717_v33, %v13009_v51  ;;  %v1957_v44 = vld [vmem:[%s17269_s7] sm:$0xff] }
 0x237   :  { %v1785_v24 = vmul.f32 %v1707_v53, %v12975_v29  ;;  %v10166_v53 = vld [vmem:[%s17266_s4 + $0x30] sm:$0xff] }
 0x238   :  { %v13621_v10 = vmax.f32 %v1787_v2, 0.0  ;;  %v10160_v2 = vld [vmem:[%s17265_s3 + $0x28] sm:$0xff] }
 0x23a   :  { %v11389_v23 = vpop.f32.mrf.mxu1 }
 0x23b   :  { %v1782_v14 = vadd.f32 %v11389_v23, %v11355_v56  ;;  %v13580_v56 = vmax.f32 %v1792_v55, 0.0  ;;  %v13589_v23 = vmax.f32 %v1791_v21, 0.0  ;;  %v10163_v21 = vld [vmem:[%s17265_s3 + $0x40] sm:$0xff] }
 0x23c   :  { %v1776_v57 = vpop.f32.mrf.mxu1 }
 0x23d   :  { %v1800_v59 = vmul.f32 %v1782_v14, %v13252_v12  ;;  %v1777_v6 = vadd.f32 %v1776_v57, %v1583_v19  ;;  %v13607_v14 = vmax.f32 %v1789_v43, 0.0  ;;  %v13627_v19 = vmax.f32 %v1786_v3, 0.0  ;;  %v10162_v43 = vld [vmem:[%s17265_s3 + $0x38] sm:$0xff]  ;;  %v10165_v3 = vld [vmem:[%s17266_s4 + $0x28] sm:$0xff] }
 0x23e   :  { %v13633_v57 = vmax.f32 %v1785_v24, 0.0  ;;  %v10179_v24 = vld [vmem:[%s17268_s6 + $0x48] sm:$0xff] }
 0x23f   :  { %v13521_v63 = vmax.f32 %v1800_v59, 0.0  ;;  %v1799_v50 = vmul.f32 %v1777_v6, %v13245_v61  ;;  %v10093_v59 = vld [vmem:[%s17386_s26 + $0x2] sm:$0x3] }
 0x240   :  { %v1966_v6 = vld [vmem:[%s17270_s8 + $0x20] sm:$0xff] }
 0x241   :  { %v13525_v45 = vmax.f32 %v1799_v50, 0.0  ;;  %11391 = vmatpush3.msra.mxu0 %v13521_v63  ;;  %11426 = vmatpush3.msra.mxu1 %v13521_v63  ;;  %v1747_v50 = vadd.f32 %v1746_v16, %v1553_v37  ;;  %v13553_v37 = vmax.f32 %v1795_v39, 0.0  ;;  %v13562_v16 = vmax.f32 %v1794_v48, 0.0  ;;  %v1963_v39 = vld [vmem:[%s17270_s8 + $0x8] sm:$0xff]  ;;  %v1962_v48 = vld [vmem:[%s17270_s8] sm:$0xff] }
 0x242   :  { %11392 = vmatprep.subr.mxu0 %v17385_v5  ;;  %11427 = vmatprep.subr.mxu1 %v17385_v5 }
 0x243   :  { %11393 = vmatpush3.msra.mxu0 %v13525_v45  ;;  %11428 = vmatpush3.msra.mxu1 %v13525_v45  ;;  %v1793_v49 = vmul.f32 %v1747_v50, %v13142_v58  ;;  %v1959_v50 = vld [vmem:[%s17269_s7 + $0x10] sm:$0xff] }
 0x244   :  { %11394 = vmatprep.subr.mxu0 %v17385_v5  ;;  %11429 = vmatprep.subr.mxu1 %v17385_v5 }
 0x245   :  { %11395 = vmatpush3.msra.mxu0 %v13532_v15  ;;  %11430 = vmatpush3.msra.mxu1 %v13532_v15  ;;  %v13571_v62 = vmax.f32 %v1793_v49, 0.0  ;;  %v10164_v49 = vld [vmem:[%s17265_s3 + $0x48] sm:$0xff] }
 0x246   :  { %11396 = vmatprep.subr.mxu0 %v17385_v5  ;;  %11431 = vmatprep.subr.mxu1 %v17385_v5 }
 0x247   :  { %11397 = vmatpush3.msra.mxu0 %v13539_v20  ;;  %11432 = vmatpush3.msra.mxu1 %v13539_v20 }
 0x248   :  { %11398 = vmatprep.subr.mxu0 %v17385_v5  ;;  %11433 = vmatprep.subr.mxu1 %v17385_v5 }
 0x249   :  { %11399 = vmatpush3.msra.mxu0 %v13546_v18  ;;  %11434 = vmatpush3.msra.mxu1 %v13546_v18 }
 0x24a   :  { %11400 = vmatprep.subr.mxu0 %v17385_v5  ;;  %11435 = vmatprep.subr.mxu1 %v17385_v5 }
 0x24b   :  { %11401 = vmatpush3.msra.mxu0 %v13553_v37  ;;  %11436 = vmatpush3.msra.mxu1 %v13553_v37 }
 0x24c   :  { %11402 = vmatprep.subr.mxu0 %v17385_v5  ;;  %11437 = vmatprep.subr.mxu1 %v17385_v5 }
 0x24d   :  { %11403 = vmatpush3.msra.mxu0 %v13562_v16  ;;  %11438 = vmatpush3.msra.mxu1 %v13562_v16 }
 0x24e   :  { %11404 = vmatprep.subr.mxu0 %v17385_v5  ;;  %11439 = vmatprep.subr.mxu1 %v17385_v5 }
 0x24f   :  { %11405 = vmatpush3.msra.mxu0 %v13571_v62  ;;  %11440 = vmatpush3.msra.mxu1 %v13571_v62 }
 0x250   :  { %11406 = vmatprep.subr.mxu0 %v17385_v5  ;;  %11441 = vmatprep.subr.mxu1 %v17385_v5 }
 0x251   :  { %11407 = vmatpush3.msra.mxu0 %v13580_v56  ;;  %11442 = vmatpush3.msra.mxu1 %v13580_v56 }
 0x252   :  { %11408 = vmatprep.subr.mxu0 %v17385_v5  ;;  %11443 = vmatprep.subr.mxu1 %v17385_v5 }
 0x253   :  { %11409 = vmatpush3.msra.mxu0 %v13589_v23  ;;  %11444 = vmatpush3.msra.mxu1 %v13589_v23 }
 0x254   :  { %11410 = vmatprep.subr.mxu0 %v17385_v5  ;;  %11445 = vmatprep.subr.mxu1 %v17385_v5 }
 0x255   :  { %11411 = vmatpush3.msra.mxu0 %v13598_v28  ;;  %11446 = vmatpush3.msra.mxu1 %v13598_v28 }
 0x256   :  { %11412 = vmatprep.subr.mxu0 %v17385_v5  ;;  %11447 = vmatprep.subr.mxu1 %v17385_v5 }
 0x257   :  { %11413 = vmatpush3.msra.mxu0 %v13607_v14  ;;  %11448 = vmatpush3.msra.mxu1 %v13607_v14 }
 0x258   :  { %11414 = vmatprep.subr.mxu0 %v17385_v5  ;;  %11449 = vmatprep.subr.mxu1 %v17385_v5 }
 0x259   :  { %11415 = vmatpush3.msra.mxu0 %v13614_v54  ;;  %11450 = vmatpush3.msra.mxu1 %v13614_v54 }
 0x25a   :  { %11416 = vmatprep.subr.mxu0 %v17385_v5  ;;  %11451 = vmatprep.subr.mxu1 %v17385_v5 }
 0x25b   :  { %11417 = vmatpush3.msra.mxu0 %v13621_v10  ;;  %11452 = vmatpush3.msra.mxu1 %v13621_v10 }
 0x25c   :  { %11418 = vmatprep.subr.mxu0 %v17385_v5  ;;  %11453 = vmatprep.subr.mxu1 %v17385_v5 }
 0x25d   :  { %11419 = vmatpush3.msra.mxu0 %v13627_v19  ;;  %11454 = vmatpush3.msra.mxu1 %v13627_v19 }
 0x25e   :  { %11420 = vmatprep.subr.mxu0 %v17385_v5  ;;  %11455 = vmatprep.subr.mxu1 %v17385_v5 }
 0x25f   :  { %11421 = vmatpush3.msra.mxu0 %v13633_v57  ;;  %11456 = vmatpush3.msra.mxu1 %v13633_v57 }
 0x260   :  { %11423 = vmatmul.mubr.f32.vlgmr.msra.gmra.mxu0 %v236_v0  ;;  %11458 = vmatmul.mubr.f32.vlgmr.msra.gmra.mxu1 %v10093_v59  ;;  %v10178_v0 = vld [vmem:[%s17268_s6 + $0x40] sm:$0xff]  ;;  %v10177_v59 = vld [vmem:[%s17268_s6 + $0x38] sm:$0xff] }
 0x261   :  { %11460 = vmatprep.subr.mxu0 %v17385_v5  ;;  %11473 = vmatprep.subr.mxu1 %v17385_v5 }
 0x262   :  { %11461 = vmatpush3.msra.mxu0 %v1966_v6  ;;  %11474 = vmatpush3.msra.mxu1 %v1961_v32  ;;  %v10176_v6 = vld [vmem:[%s17268_s6 + $0x30] sm:$0xff]  ;;  %v10175_v32 = vld [vmem:[%s17268_s6 + $0x28] sm:$0xff] }
 0x263   :  { %11462 = vmatprep.subr.mxu0 %v17385_v5  ;;  %11475 = vmatprep.subr.mxu1 %v17385_v5 }
 0x264   :  { %11463 = vmatpush3.msra.mxu0 %v1965_v47  ;;  %11476 = vmatpush3.msra.mxu1 %v1960_v26 }
 0x265   :  { %11464 = vmatprep.subr.mxu0 %v17385_v5  ;;  %11477 = vmatprep.subr.mxu1 %v17385_v5 }
 0x266   :  { %11465 = vmatpush3.msra.mxu0 %v1964_v30  ;;  %11478 = vmatpush3.msra.mxu1 %v1959_v50 }
 0x267   :  { %11466 = vmatprep.subr.mxu0 %v17385_v5  ;;  %11479 = vmatprep.subr.mxu1 %v17385_v5 }
 0x268   :  { %11467 = vmatpush3.msra.mxu0 %v1963_v39  ;;  %11480 = vmatpush3.msra.mxu1 %v1958_v1 }
 0x269   :  { %11468 = vmatprep.subr.mxu0 %v17385_v5  ;;  %11481 = vmatprep.subr.mxu1 %v17385_v5 }
 0x26a   :  { %11469 = vmatpush3.msra.mxu0 %v1962_v48  ;;  %11482 = vmatpush3.msra.mxu1 %v1957_v44 }
 0x26b   :  { %11470 = vmatprep.mubr.msk.f32.mxu0 %vm12513_vm1, %v17385_v5  ;;  %11483 = vmatprep.mubr.msk.f32.mxu1 %vm12513_vm1, %v17385_v5 }
 0x26c   :  { %11486 = vmatprep.subr.mxu0 %v10164_v49  ;;  %11520 = vmatprep.subr.mxu1 %v10169_v41 }
 0x320   :  { %v1883_v55 = vpop.f32.mrf.mxu0  ;;  %v1953_v46 = vpop.f32.mrf.mxu1 }
 0x321   :  { %11471 = vmatmul.mubr.msk.f32.vlgmr.msra.gmra.mxu0 %vm276_vm0, %v1953_v46  ;;  %11484 = vmatmul.mubr.msk.f32.vlgmr.msra.gmra.mxu1 %vm276_vm0, %v1883_v55 }
 0x322   :  { %11487 = vmatpush3.msra.mxu0 %v10164_v49  ;;  %11521 = vmatpush3.msra.mxu1 %v10169_v41  ;;  %v11424_v25 = vpop.f32.mrf.mxu0  ;;  %v11459_v33 = vpop.f32.mrf.mxu1 }
 0x323   :  { %11488 = vmatprep.subr.mxu0 %v10163_v21  ;;  %11496 = vmatprep.mubr.msk.f32.mxu0 %vm276_vm0, %v13633_v57 }
 0x324   :  { %11522 = vmatprep.subr.mxu1 %v10168_v60  ;;  %11530 = vmatprep.mubr.msk.f32.mxu1 %vm276_vm0, %v13633_v57 }
 0x325   :  { %11489 = vmatpush3.msra.mxu0 %v10163_v21  ;;  %11523 = vmatpush3.msra.mxu1 %v10168_v60 }
 0x326   :  { %11490 = vmatprep.subr.mxu0 %v10162_v43  ;;  %11524 = vmatprep.subr.mxu1 %v10167_v40 }
 0x327   :  { %11491 = vmatpush3.msra.mxu0 %v10162_v43  ;;  %11525 = vmatpush3.msra.mxu1 %v10167_v40 }
 0x328   :  { %11492 = vmatprep.subr.mxu0 %v10161_v4  ;;  %11526 = vmatprep.subr.mxu1 %v10166_v53 }
 0x329   :  { %11493 = vmatpush3.msra.mxu0 %v10161_v4  ;;  %11527 = vmatpush3.msra.mxu1 %v10166_v53 }
 0x32a   :  { %11494 = vmatprep.subr.mxu0 %v10160_v2  ;;  %11528 = vmatprep.subr.mxu1 %v10165_v3 }
 0x32b   :  { %11495 = vmatpush3.msra.mxu0 %v10160_v2  ;;  %11529 = vmatpush3.msra.mxu1 %v10165_v3 }
 0x32c   :  { %11497 = vmatmul.mubr.msk.f32.vlgmr.msra.gmra.mxu0 %vm276_vm0, %v13627_v19  ;;  %11531 = vmatmul.mubr.msk.f32.vlgmr.msra.gmra.mxu1 %vm276_vm0, %v13627_v19 }
 0x32d   :  { %11499 = vmatprep.mubr.msk.f32.mxu0 %vm276_vm0, %v13621_v10  ;;  %11533 = vmatprep.mubr.msk.f32.mxu1 %vm276_vm0, %v13621_v10 }
 0x32e   :  { %11554 = vmatprep.subr.mxu0 %v10179_v24 }
 0x32f   :  { %11555 = vmatpush3.msra.mxu0 %v10179_v24 }
 0x330   :  { %11500 = vmatmul.mubr.msk.f32.gmra.mxu0 %vm276_vm0, %v13614_v54  ;;  %11534 = vmatmul.mubr.msk.f32.gmra.mxu1 %vm276_vm0, %v13614_v54 }
 0x331   :  { %11502 = vmatprep.mubr.msk.f32.mxu0 %vm276_vm0, %v13607_v14  ;;  %11536 = vmatprep.mubr.msk.f32.mxu1 %vm276_vm0, %v13607_v14 }
 0x332   :  { %11556 = vmatprep.subr.mxu0 %v10178_v0 }
 0x333   :  { %11557 = vmatpush3.msra.mxu0 %v10178_v0 }
 0x334   :  { %11503 = vmatmul.mubr.msk.f32.gmra.mxu0 %vm276_vm0, %v13598_v28  ;;  %11537 = vmatmul.mubr.msk.f32.gmra.mxu1 %vm276_vm0, %v13598_v28 }
 0x335   :  { %11505 = vmatprep.mubr.msk.f32.mxu0 %vm276_vm0, %v13589_v23  ;;  %11539 = vmatprep.mubr.msk.f32.mxu1 %vm276_vm0, %v13589_v23 }
 0x336   :  { %11558 = vmatprep.subr.mxu0 %v10177_v59 }
 0x337   :  { %11559 = vmatpush3.msra.mxu0 %v10177_v59 }
 0x338   :  { %11506 = vmatmul.mubr.msk.f32.gmra.mxu0 %vm276_vm0, %v13580_v56  ;;  %11540 = vmatmul.mubr.msk.f32.gmra.mxu1 %vm276_vm0, %v13580_v56 }
 0x339   :  { %11508 = vmatprep.mubr.msk.f32.mxu0 %vm276_vm0, %v13571_v62  ;;  %11542 = vmatprep.mubr.msk.f32.mxu1 %vm276_vm0, %v13571_v62 }
 0x33a   :  { %11560 = vmatprep.subr.mxu0 %v10176_v6 }
 0x33b   :  { %11561 = vmatpush3.msra.mxu0 %v10176_v6 }
 0x33c   :  { %11509 = vmatmul.mubr.msk.f32.gmra.mxu0 %vm276_vm0, %v13562_v16  ;;  %11543 = vmatmul.mubr.msk.f32.gmra.mxu1 %vm276_vm0, %v13562_v16 }
 0x33d   :  { %11511 = vmatprep.mubr.msk.f32.mxu0 %vm276_vm0, %v13553_v37  ;;  %11545 = vmatprep.mubr.msk.f32.mxu1 %vm276_vm0, %v13553_v37 }
 0x33e   :  { %11562 = vmatprep.subr.mxu0 %v10175_v32 }
 0x33f   :  { %11563 = vmatpush3.msra.mxu0 %v10175_v32 }
 0x340   :  { %11512 = vmatmul.mubr.msk.f32.gmra.mxu0 %vm276_vm0, %v13546_v18  ;;  %11546 = vmatmul.mubr.msk.f32.gmra.mxu1 %vm276_vm0, %v13546_v18 }
 0x341   :  { %11514 = vmatprep.mubr.msk.f32.mxu0 %vm276_vm0, %v13539_v20  ;;  %11548 = vmatprep.mubr.msk.f32.mxu1 %vm276_vm0, %v13539_v20 }
 0x342   :  { %11622 = vmatprep.subr.mxu0 %v17385_v5 }
 0x344   :  { %11515 = vmatmul.mubr.msk.f32.gmra.mxu0 %vm276_vm0, %v13532_v15  ;;  %11549 = vmatmul.mubr.msk.f32.gmra.mxu1 %vm276_vm0, %v13532_v15 }
 0x345   :  { %11517 = vmatprep.mubr.msk.f32.mxu0 %vm276_vm0, %v13525_v45  ;;  %11551 = vmatprep.mubr.msk.f32.mxu1 %vm276_vm0, %v13525_v45 }
 0x348   :  { %11518 = vmatmul.mubr.msk.f32.gmra.mxu0 %vm276_vm0, %v13521_v63  ;;  %11552 = vmatmul.mubr.msk.f32.gmra.mxu1 %vm276_vm0, %v13521_v63 }
 0x349   :  { %11564 = vmatprep.mubr.msk.f32.mxu0 %vm276_vm0, %v13633_v57 }
 0x34c   :  { %11565 = vmatmul.mubr.msk.f32.vlgmr.msra.gmra.mxu0 %vm276_vm0, %v13627_v19 }
 0x34d   :  { %11567 = vmatprep.mubr.msk.f32.mxu0 %vm276_vm0, %v13621_v10 }
 0x350   :  { %11568 = vmatmul.mubr.msk.f32.gmra.mxu0 %vm276_vm0, %v13614_v54 }
 0x351   :  { %11570 = vmatprep.mubr.msk.f32.mxu0 %vm276_vm0, %v13607_v14 }
 0x354   :  { %11571 = vmatmul.mubr.msk.f32.gmra.mxu0 %vm276_vm0, %v13598_v28 }
 0x355   :  { %11573 = vmatprep.mubr.msk.f32.mxu0 %vm276_vm0, %v13589_v23 }
 0x358   :  { %11574 = vmatmul.mubr.msk.f32.gmra.mxu0 %vm276_vm0, %v13580_v56 }
 0x359   :  { %11576 = vmatprep.mubr.msk.f32.mxu0 %vm276_vm0, %v13571_v62 }
 0x35c   :  { %11577 = vmatmul.mubr.msk.f32.gmra.mxu0 %vm276_vm0, %v13562_v16 }
 0x35d   :  { %11579 = vmatprep.mubr.msk.f32.mxu0 %vm276_vm0, %v13553_v37  ;;  %v10174_v37 = vld [vmem:[%s17267_s5 + $0x48] sm:$0xff] }
 0x35e   :  { %11588 = vmatprep.subr.mxu1 %v10174_v37 }
 0x35f   :  { %11589 = vmatpush3.msra.mxu1 %v10174_v37 }
 0x360   :  { %11580 = vmatmul.mubr.msk.f32.gmra.mxu0 %vm276_vm0, %v13546_v18 }
 0x361   :  { %11582 = vmatprep.mubr.msk.f32.mxu0 %vm276_vm0, %v13539_v20  ;;  %v10173_v20 = vld [vmem:[%s17267_s5 + $0x40] sm:$0xff] }
 0x362   :  { %11590 = vmatprep.subr.mxu1 %v10173_v20 }
 0x363   :  { %11591 = vmatpush3.msra.mxu1 %v10173_v20 }
 0x364   :  { %11583 = vmatmul.mubr.msk.f32.gmra.mxu0 %vm276_vm0, %v13532_v15  ;;  %v10170_v15 = vld [vmem:[%s17267_s5 + $0x28] sm:$0xff] }
 0x365   :  { %11585 = vmatprep.mubr.msk.f32.mxu0 %vm276_vm0, %v13525_v45  ;;  %v10172_v45 = vld [vmem:[%s17267_s5 + $0x38] sm:$0xff] }
 0x366   :  { %11592 = vmatprep.subr.mxu1 %v10172_v45 }
 0x367   :  { %11593 = vmatpush3.msra.mxu1 %v10172_v45 }
 0x368   :  { %11586 = vmatmul.mubr.msk.f32.gmra.mxu0 %vm276_vm0, %v13521_v63  ;;  %v10171_v63 = vld [vmem:[%s17267_s5 + $0x30] sm:$0xff] }
 0x369   :  { %11654 = vmatprep.mubr.msk.f32.mxu0 %vm12513_vm1, %v17385_v5  ;;  %11594 = vmatprep.subr.mxu1 %v10171_v63 }
 0x36a   :  { %11595 = vmatpush3.msra.mxu1 %v10171_v63 }
 0x36b   :  { %11596 = vmatprep.subr.mxu1 %v10170_v15 }
 0x36c   :  { %11597 = vmatpush3.msra.mxu1 %v10170_v15 }
 0x36d   :  { %11657 = vmatprep.subr.mxu1 %v17385_v5 }
 0x3e1   :  { %v2036_v18 = vpop.f32.mrf.mxu0  ;;  %v2109_v16 = vpop.f32.mrf.mxu1 }
 0x3e2   :  { %v13853_v62 = vadd.f32 %v2109_v16, %v2036_v18 }
 0x3e3   :  { %v11472_v56 = vpop.f32.mrf.mxu0  ;;  %v11485_v23 = vpop.f32.mrf.mxu1 }
 0x3e4   :  { %17387 = vst [vmem:[#allocation20_spill] sm:$0xff] %v13853_v62 }
 0x3ec   :  { %v11498_v28 = vpop.f32.mrf.mxu0  ;;  %v11532_v14 = vpop.f32.mrf.mxu1 }
 0x3ed   :  { %v2331_v54 = vmul.f32 %v11498_v28, %v12984_v35  ;;  %v2508_v10 = vmul.f32 %v11532_v14, %v12984_v35 }
 0x3ee   :  { %v2251_v19 = vpop.f32.mrf.mxu0  ;;  %v2428_v57 = vpop.f32.mrf.mxu1 }
 0x3ef   :  { %v13857_v47 = vmax.f32 %v2331_v54, 0.0  ;;  %v2330_v26 = vmul.f32 %v2251_v19, %v12975_v29  ;;  %v2507_v30 = vmul.f32 %v2428_v57, %v12975_v29  ;;  %v13865_v44 = vmax.f32 %v2508_v10, 0.0 }
 0x3f0   :  { %v11501_v50 = vpop.f32.mrf.mxu0  ;;  %v11535_v39 = vpop.f32.mrf.mxu1 }
 0x3f1   :  { %v13861_v1 = vmax.f32 %v2330_v26, 0.0  ;;  %v2546_v48 = vrot.slane %v13857_v47, %v12978_v31  ;;  %v2510_v49 = vmul.f32 %v11535_v39, %v12986_v36  ;;  %v2626_v46 = vrot.slane %v13857_v47, %v12982_v34 }
 0x3f2   :  { %v2261_v41 = vpop.f32.mrf.mxu0  ;;  %v2438_v55 = vpop.f32.mrf.mxu1  ;;  %v2722_v21 = vrot.slane %v13857_v47, %v12989_v38  ;;  %v13875_v33 = vmax.f32 %v2507_v30, 0.0  ;;  %v2333_v43 = vmul.f32 %v11501_v50, %v12986_v36  ;;  %v2818_v2 = vrot.slane %v13857_v47, %v12993_v42  ;;  %v17388_v50 = vld [vmem:[#allocation8_spill] sm:$0xff] }
 0x3f3   :  { %v2509_v60 = vmul.f32 %v2438_v55, %v13009_v51  ;;  %v2542_v25 = vrot.slane %v13861_v1, %v12978_v31  ;;  %v2622_v53 = vrot.slane %v13861_v1, %v12982_v34  ;;  %v13882_v3 = vmax.f32 %v2510_v49, 0.0 }
 0x3f4   :  { %v11504_v40 = vpop.f32.mrf.mxu0  ;;  %v11538_v4 = vpop.f32.mrf.mxu1  ;;  %v2332_v24 = vmul.f32 %v2261_v41, %v13009_v51  ;;  %v2718_v45 = vrot.slane %v13861_v1, %v12989_v38  ;;  %v2814_v63 = vrot.slane %v13861_v1, %v12993_v42  ;;  %v2684_v23 = vmul.f32 %v2626_v46, %v13865_v44 }
 0x3f5   :  { %v13885_v0 = vmax.f32 %v2509_v60, 0.0  ;;  %v2512_v59 = vmul.f32 %v11538_v4, %v13011_v52  ;;  %v2603_v37 = vmul.f32 %v2542_v25, %v13875_v33  ;;  %v2683_v20 = vmul.f32 %v2622_v53, %v13865_v44  ;;  %v17389_v25 = vld [vmem:[#allocation7_spill] sm:$0xff] }
 0x3f6   :  { %v2271_v6 = vpop.f32.mrf.mxu0  ;;  %v2448_v32 = vpop.f32.mrf.mxu1  ;;  %v2335_v15 = vmul.f32 %v11504_v40, %v13011_v52  ;;  %v13900_v28 = vmax.f32 %v2333_v43, 0.0  ;;  %v13903_v57 = vmax.f32 %v2332_v24, 0.0  ;;  %v3006_v39 = vrot.slane %v13861_v1, %v17388_v50 }
 0x3f7   :  { %v13895_v18 = vmax.f32 %v2512_v59, 0.0  ;;  %v2334_v16 = vmul.f32 %v2271_v6, %v13037_v7  ;;  %v2511_v56 = vmul.f32 %v2448_v32, %v13037_v7  ;;  %v2699_v10 = vadd.f32 %v2683_v20, %v2603_v37 }
 0x3f8   :  { %v11507_v14 = vpop.f32.mrf.mxu0  ;;  %v11541_v54 = vpop.f32.mrf.mxu1  ;;  %v2779_v19 = vmul.f32 %v2718_v45, %v13885_v0  ;;  %v2875_v60 = vmul.f32 %v2814_v63, %v13882_v3  ;;  %v2910_v43 = vrot.slane %v13861_v1, %v17389_v25  ;;  %v13914_v40 = vmax.f32 %v2335_v15, 0.0 }
 0x3f9   :  { %v13905_v26 = vmax.f32 %v2511_v56, 0.0  ;;  %v2514_v30 = vmul.f32 %v11541_v54, %v13039_v8  ;;  %v2337_v49 = vmul.f32 %v11507_v14, %v13039_v8  ;;  %v13916_v4 = vmax.f32 %v2334_v16, 0.0  ;;  %v17390_v16 = vld [vmem:[#allocation9_spill] sm:$0xff] }
 0x3fa   :  { %v2281_v41 = vpop.f32.mrf.mxu0  ;;  %v2458_v55 = vpop.f32.mrf.mxu1  ;;  %v2795_v46 = vadd.f32 %v2779_v19, %v2699_v10  ;;  %v3067_v24 = vmul.f32 %v3006_v39, %v13895_v18  ;;  %v2604_v20 = vmul.f32 %v2546_v48, %v13875_v33  ;;  %v2780_v45 = vmul.f32 %v2722_v21, %v13885_v0 }
 0x3fb   :  { %v2513_v53 = vmul.f32 %v2458_v55, %v13057_v27  ;;  %v2971_v37 = vmul.f32 %v2910_v43, %v13905_v26  ;;  %v13923_v63 = vmax.f32 %v2514_v30, 0.0  ;;  %v2336_v15 = vmul.f32 %v2281_v41, %v13057_v27  ;;  %v17391_v55 = vld [vmem:[#allocation10_spill] sm:$0xff] }
 0x3fc   :  { %v11510_v59 = vpop.f32.mrf.mxu0  ;;  %v11544_v6 = vpop.f32.mrf.mxu1  ;;  %v2891_v32 = vadd.f32 %v2875_v60, %v2795_v46  ;;  %v3102_v14 = vrot.slane %v13861_v1, %v17390_v16  ;;  %v13930_v54 = vmax.f32 %v2337_v49, 0.0  ;;  %v3198_v46 = vrot.slane %v13861_v1, %v17391_v55 }
 0x3fd   :  { %v13926_v56 = vmax.f32 %v2513_v53, 0.0  ;;  %v2700_v48 = vadd.f32 %v2684_v23, %v2604_v20  ;;  %v2339_v21 = vmul.f32 %v11510_v59, %v13163_v22  ;;  %v2516_v30 = vmul.f32 %v11544_v6, %v13163_v22 }
 0x3fe   :  { %v2291_v10 = vpop.f32.mrf.mxu0  ;;  %v2468_v19 = vpop.f32.mrf.mxu1  ;;  %v2987_v39 = vadd.f32 %v2971_v37, %v2891_v32  ;;  %v2876_v60 = vmul.f32 %v2818_v2, %v13882_v3  ;;  %v2914_v32 = vrot.slane %v13857_v47, %v17389_v25  ;;  %v13941_v37 = vmax.f32 %v2336_v15, 0.0 }
 0x3ff   :  { %v2338_v41 = vmul.f32 %v2291_v10, %v13142_v58  ;;  %v3163_v49 = vmul.f32 %v3102_v14, %v13926_v56  ;;  %v2796_v5 = vadd.f32 %v2780_v45, %v2700_v48  ;;  %v2515_v1 = vmul.f32 %v2468_v19, %v13142_v58 }
 0x400   :  { %v11513_v43 = vpop.f32.mrf.mxu0  ;;  %v11547_v53 = vpop.f32.mrf.mxu1  ;;  %v3083_v62 = vadd.f32 %v3067_v24, %v2987_v39  ;;  %v3259_v59 = vmul.f32 %v3198_v46, %v13923_v63  ;;  %v2972_v24 = vmul.f32 %v2914_v32, %v13905_v26  ;;  %v3010_v45 = vrot.slane %v13857_v47, %v17388_v50 }
 0x401   :  { %v2341_v23 = vmul.f32 %v11513_v43, %v13198_v17  ;;  %v2892_v10 = vadd.f32 %v2876_v60, %v2796_v5  ;;  %v13949_v14 = vmax.f32 %v2339_v21, 0.0  ;;  %v13951_v39 = vmax.f32 %v2516_v30, 0.0 }
 0x402   :  { %v2301_v6 = vpop.f32.mrf.mxu0  ;;  %v2478_v20 = vpop.f32.mrf.mxu1  ;;  %v3179_v2 = vadd.f32 %v3163_v49, %v3083_v62  ;;  %v13953_v15 = vmax.f32 %v2338_v41, 0.0  ;;  %v2518_v19 = vmul.f32 %v11547_v53, %v13198_v17  ;;  %v3068_v62 = vmul.f32 %v3010_v45, %v13895_v18 }
 0x403   :  { %v2988_v22 = vadd.f32 %v2972_v24, %v2892_v10  ;;  %v3106_v5 = vrot.slane %v13857_v47, %v17390_v16  ;;  %v13959_v60 = vmax.f32 %v2515_v1, 0.0  ;;  %v13961_v49 = vmax.f32 %v2341_v23, 0.0 }
 0x404   :  { %v11516_v48 = vpop.f32.mrf.mxu0  ;;  %v11550_v43 = vpop.f32.mrf.mxu1  ;;  %v3275_v46 = vadd.f32 %v3259_v59, %v3179_v2  ;;  %v2340_v21 = vmul.f32 %v2301_v6, %v13190_v13  ;;  %v2517_v30 = vmul.f32 %v2478_v20, %v13190_v13  ;;  %v3202_v2 = vrot.slane %v13857_v47, %v17391_v55 }
 0x405   :  { %v3084_v17 = vadd.f32 %v3068_v62, %v2988_v22  ;;  %v3164_v59 = vmul.f32 %v3106_v5, %v13926_v56  ;;  %v13969_v10 = vmax.f32 %v2518_v19, 0.0  ;;  %v2343_v1 = vmul.f32 %v11516_v48, %v13224_v11 }
 0x406   :  { %v2311_v41 = vpop.f32.mrf.mxu0  ;;  %v2488_v32 = vpop.f32.mrf.mxu1  ;;  %v3291_v53 = vmul.f32 %v3275_v46, %v12975_v29  ;;  %v2520_v23 = vmul.f32 %v11550_v43, %v13224_v11  ;;  %v3260_v22 = vmul.f32 %v3202_v2, %v13923_v63  ;;  %v2550_v46 = vrot.slane %v13903_v57, %v12978_v31 }
 0x407   :  { %v2342_v6 = vmul.f32 %v2311_v41, %v13220_v9  ;;  %v3180_v45 = vadd.f32 %v3164_v59, %v3084_v17  ;;  %v2630_v47 = vrot.slane %v13903_v57, %v12982_v34  ;;  %v13980_v19 = vmax.f32 %v2340_v21, 0.0 }
 0x408   :  { %11598 = vmatprep.mubr.msk.f32.mxu1 %vm276_vm0, %v3291_v53  ;;  %v11519_v20 = vpop.f32.mrf.mxu0  ;;  %v11553_v24 = vpop.f32.mrf.mxu1  ;;  %v13982_v48 = vmax.f32 %v2517_v30, 0.0  ;;  %v2519_v43 = vmul.f32 %v2488_v32, %v13220_v9  ;;  %v2605_v17 = vmul.f32 %v2550_v46, %v13875_v33  ;;  %v2726_v59 = vrot.slane %v13903_v57, %v12989_v38 }
 0x409   :  { %v2522_v62 = vmul.f32 %v11553_v24, %v13252_v12  ;;  %v3276_v5 = vadd.f32 %v3260_v22, %v3180_v45  ;;  %v2685_v53 = vmul.f32 %v2630_v47, %v13865_v44  ;;  %v13990_v2 = vmax.f32 %v2343_v1, 0.0 }
 0x40a   :  { %v2498_v41 = vpop.f32.mrf.mxu1  ;;  %v13992_v29 = vmax.f32 %v2520_v23, 0.0  ;;  %v13994_v21 = vmax.f32 %v2342_v6, 0.0  ;;  %v2321_v30 = vpop.f32.mrf.mxu0  ;;  %v2781_v22 = vmul.f32 %v2726_v59, %v13885_v0  ;;  %v2822_v46 = vrot.slane %v13903_v57, %v12993_v42 }
 0x40b   :  { %17392 = vst [vmem:[#allocation8_spill] sm:$0xff] %v13990_v2  ;;  %v2521_v32 = vmul.f32 %v2498_v41, %v13245_v61  ;;  %v3292_v24 = vmul.f32 %v3276_v5, %v12984_v35  ;;  %v2701_v45 = vadd.f32 %v2685_v53, %v2605_v17  ;;  %v14001_v47 = vmax.f32 %v2519_v43, 0.0 }
 0x40c   :  { %17393 = vst [vmem:[#allocation7_spill] sm:$0xff] %v13994_v21  ;;  %v14004_v1 = vmul.f32 %v11519_v20, %v13252_v12  ;;  %v14006_v23 = vmax.f32 %v2522_v62, 0.0  ;;  %v3014_v6 = vrot.slane %v13903_v57, %v17388_v50  ;;  %v14012_v5 = vmul.f32 %v2321_v30, %v13245_v61 }
 0x40d   :  { %11599 = vmatmul.mubr.msk.f32.vlgmr.msra.gmra.mxu1 %vm276_vm0, %v3292_v24  ;;  %v2797_v41 = vadd.f32 %v2781_v22, %v2701_v45  ;;  %v2877_v17 = vmul.f32 %v2822_v46, %v13882_v3  ;;  %v2918_v43 = vrot.slane %v13903_v57, %v17389_v25  ;;  %v14017_v53 = vmax.f32 %v2521_v32, 0.0 }
 0x40e   :  { %17394 = vst [vmem:[#allocation21_spill] sm:$0xff] %v14012_v5  ;;  %v3110_v20 = vrot.slane %v13903_v57, %v17390_v16  ;;  %v2554_v62 = vrot.slane %v13900_v28, %v12978_v31  ;;  %v2634_v59 = vrot.slane %v13900_v28, %v12982_v34  ;;  %v3206_v45 = vrot.slane %v13903_v57, %v17391_v55 }
 0x40f   :  { %v2893_v24 = vadd.f32 %v2877_v17, %v2797_v41  ;;  %v2973_v30 = vmul.f32 %v2918_v43, %v13905_v26  ;;  %v2730_v22 = vrot.slane %v13900_v28, %v12989_v38  ;;  %v3069_v32 = vmul.f32 %v3014_v6, %v13895_v18 }
 0x410   :  { %v2606_v46 = vmul.f32 %v2554_v62, %v13875_v33  ;;  %v2686_v35 = vmul.f32 %v2634_v59, %v13865_v44  ;;  %v2826_v12 = vrot.slane %v13900_v28, %v12993_v42  ;;  %v3165_v41 = vmul.f32 %v3110_v20, %v13926_v56 }
 0x411   :  { %v2989_v61 = vadd.f32 %v2973_v30, %v2893_v24  ;;  %v3261_v17 = vmul.f32 %v3206_v45, %v13923_v63  ;;  %v2922_v57 = vrot.slane %v13900_v28, %v17389_v25  ;;  %v2782_v11 = vmul.f32 %v2730_v22, %v13885_v0 }
 0x412   :  { %v2702_v43 = vadd.f32 %v2686_v35, %v2606_v46  ;;  %v3018_v6 = vrot.slane %v13900_v28, %v17388_v50  ;;  %v3114_v62 = vrot.slane %v13900_v28, %v17390_v16  ;;  %v2878_v9 = vmul.f32 %v2826_v12, %v13882_v3 }
 0x413   :  { %v3085_v59 = vadd.f32 %v3069_v32, %v2989_v61  ;;  %v2974_v24 = vmul.f32 %v2922_v57, %v13905_v26  ;;  %v2558_v20 = vrot.slane %v13916_v4, %v12978_v31  ;;  %v3210_v35 = vrot.slane %v13900_v28, %v17391_v55 }
 0x414   :  { %v2798_v30 = vadd.f32 %v2782_v11, %v2702_v43  ;;  %v2638_v45 = vrot.slane %v13916_v4, %v12982_v34  ;;  %v2734_v22 = vrot.slane %v13916_v4, %v12989_v38  ;;  %v2830_v12 = vrot.slane %v13916_v4, %v12993_v42 }
 0x415   :  { %v3181_v46 = vadd.f32 %v3165_v41, %v3085_v59  ;;  %v2607_v61 = vmul.f32 %v2558_v20, %v13875_v33  ;;  %v2926_v32 = vrot.slane %v13916_v4, %v17389_v25  ;;  %v3070_v11 = vmul.f32 %v3018_v6, %v13895_v18 }
 0x416   :  { %v2894_v57 = vadd.f32 %v2878_v9, %v2798_v30  ;;  %v3166_v28 = vmul.f32 %v3114_v62, %v13926_v56  ;;  %v2687_v43 = vmul.f32 %v2638_v45, %v13865_v44  ;;  %v3262_v13 = vmul.f32 %v3210_v35, %v13923_v63 }
 0x417   :  { %v3277_v2 = vadd.f32 %v3261_v17, %v3181_v46  ;;  %v2783_v41 = vmul.f32 %v2734_v22, %v13885_v0  ;;  %v3022_v59 = vrot.slane %v13916_v4, %v17388_v50  ;;  %v2879_v5 = vmul.f32 %v2830_v12, %v13882_v3 }
 0x418   :  { %v2990_v20 = vadd.f32 %v2974_v24, %v2894_v57  ;;  %v2703_v21 = vadd.f32 %v2687_v43, %v2607_v61  ;;  %v2975_v9 = vmul.f32 %v2926_v32, %v13905_v26  ;;  %v3214_v62 = vrot.slane %v13916_v4, %v17391_v55 }
 0x419   :  { %v3293_v6 = vmul.f32 %v3277_v2, %v13009_v51  ;;  %v2562_v17 = vrot.slane %v13914_v40, %v12978_v31  ;;  %v2642_v30 = vrot.slane %v13914_v40, %v12982_v34  ;;  %v3118_v24 = vrot.slane %v13916_v4, %v17390_v16 }
 0x41a   :  { %v3086_v35 = vadd.f32 %v3070_v11, %v2990_v20  ;;  %v2799_v45 = vadd.f32 %v2783_v41, %v2703_v21  ;;  %v2738_v22 = vrot.slane %v13914_v40, %v12989_v38  ;;  %v2834_v61 = vrot.slane %v13914_v40, %v12993_v42 }
 0x41b   :  { %11601 = vmatprep.mubr.msk.f32.mxu1 %vm276_vm0, %v3293_v6  ;;  %v2608_v2 = vmul.f32 %v2562_v17, %v13875_v33  ;;  %v2688_v46 = vmul.f32 %v2642_v30, %v13865_v44  ;;  %v2930_v12 = vrot.slane %v13914_v40, %v17389_v25  ;;  %v3071_v57 = vmul.f32 %v3022_v59, %v13895_v18 }
 0x41c   :  { %v3182_v32 = vadd.f32 %v3166_v28, %v3086_v35  ;;  %v2895_v21 = vadd.f32 %v2879_v5, %v2799_v45  ;;  %v3167_v4 = vmul.f32 %v3118_v24, %v13926_v56  ;;  %v3263_v11 = vmul.f32 %v3214_v62, %v13923_v63 }
 0x41d   :  { %v2704_v43 = vadd.f32 %v2688_v46, %v2608_v2  ;;  %v2784_v41 = vmul.f32 %v2738_v22, %v13885_v0  ;;  %v3026_v20 = vrot.slane %v13914_v40, %v17388_v50  ;;  %v2880_v30 = vmul.f32 %v2834_v61, %v13882_v3 }
 0x41e   :  { %v3278_v6 = vadd.f32 %v3262_v13, %v3182_v32  ;;  %v2991_v17 = vadd.f32 %v2975_v9, %v2895_v21  ;;  %v2976_v51 = vmul.f32 %v2930_v12, %v13905_v26  ;;  %v3122_v5 = vrot.slane %v13914_v40, %v17390_v16 }
 0x41f   :  { %v2800_v28 = vadd.f32 %v2784_v41, %v2704_v43  ;;  %v2566_v59 = vrot.slane %v13941_v37, %v12978_v31  ;;  %v2646_v62 = vrot.slane %v13941_v37, %v12982_v34  ;;  %v3218_v13 = vrot.slane %v13914_v40, %v17391_v55 }
 0x420   :  { %v3294_v35 = vmul.f32 %v3278_v6, %v12986_v36  ;;  %v3087_v45 = vadd.f32 %v3071_v57, %v2991_v17  ;;  %v2742_v9 = vrot.slane %v13941_v37, %v12989_v38  ;;  %v2838_v46 = vrot.slane %v13941_v37, %v12993_v42 }
 0x421   :  { %v2896_v24 = vadd.f32 %v2880_v30, %v2800_v28  ;;  %v2609_v22 = vmul.f32 %v2566_v59, %v13875_v33  ;;  %v2689_v2 = vmul.f32 %v2646_v62, %v13865_v44  ;;  %v3072_v12 = vmul.f32 %v3026_v20, %v13895_v18 }
 0x422   :  { %11602 = vmatmul.mubr.msk.f32.gmra.mxu1 %vm276_vm0, %v3294_v35  ;;  %v3183_v61 = vadd.f32 %v3167_v4, %v3087_v45  ;;  %v3168_v32 = vmul.f32 %v3122_v5, %v13926_v56  ;;  %v2934_v40 = vrot.slane %v13941_v37, %v17389_v25  ;;  %v3264_v57 = vmul.f32 %v3218_v13, %v13923_v63 }
 0x423   :  { %v2992_v21 = vadd.f32 %v2976_v51, %v2896_v24  ;;  %v2705_v43 = vadd.f32 %v2689_v2, %v2609_v22  ;;  %v2785_v41 = vmul.f32 %v2742_v9, %v13885_v0  ;;  %v2881_v17 = vmul.f32 %v2838_v46, %v13882_v3 }
 0x424   :  { %v3279_v6 = vadd.f32 %v3263_v11, %v3183_v61  ;;  %v3030_v30 = vrot.slane %v13941_v37, %v17388_v50  ;;  %v3126_v4 = vrot.slane %v13941_v37, %v17390_v16  ;;  %v3222_v5 = vrot.slane %v13941_v37, %v17391_v55 }
 0x425   :  { %v3088_v20 = vadd.f32 %v3072_v12, %v2992_v21  ;;  %v2801_v28 = vadd.f32 %v2785_v41, %v2705_v43  ;;  %v2570_v51 = vrot.slane %v13930_v54, %v12978_v31  ;;  %v2977_v11 = vmul.f32 %v2934_v40, %v13905_v26 }
 0x426   :  { %v3295_v59 = vmul.f32 %v3279_v6, %v13037_v7  ;;  %v2650_v62 = vrot.slane %v13930_v54, %v12982_v34  ;;  %v2746_v35 = vrot.slane %v13930_v54, %v12989_v38  ;;  %v2842_v37 = vrot.slane %v13930_v54, %v12993_v42 }
 0x427   :  { %v3184_v45 = vadd.f32 %v3168_v32, %v3088_v20  ;;  %v2897_v13 = vadd.f32 %v2881_v17, %v2801_v28  ;;  %v2610_v9 = vmul.f32 %v2570_v51, %v13875_v33  ;;  %v3073_v24 = vmul.f32 %v3030_v30, %v13895_v18 }
 0x428   :  { %11604 = vmatprep.mubr.msk.f32.mxu1 %vm276_vm0, %v3295_v59  ;;  %v3169_v22 = vmul.f32 %v3126_v4, %v13926_v56  ;;  %v2690_v2 = vmul.f32 %v2650_v62, %v13865_v44  ;;  %v2938_v46 = vrot.slane %v13930_v54, %v17389_v25  ;;  %v3265_v32 = vmul.f32 %v3222_v5, %v13923_v63 }
 0x429   :  { %v3280_v61 = vadd.f32 %v3264_v57, %v3184_v45  ;;  %v2993_v12 = vadd.f32 %v2977_v11, %v2897_v13  ;;  %v3034_v33 = vrot.slane %v13930_v54, %v17388_v50  ;;  %v2786_v21 = vmul.f32 %v2746_v35, %v13885_v0 }
 0x42a   :  { %v2706_v40 = vadd.f32 %v2690_v2, %v2610_v9  ;;  %v2882_v43 = vmul.f32 %v2842_v37, %v13882_v3  ;;  %v3130_v41 = vrot.slane %v13930_v54, %v17390_v16  ;;  %v3226_v57 = vrot.slane %v13930_v54, %v17391_v55 }
 0x42b   :  { %v3296_v44 = vmul.f32 %v3280_v61, %v13011_v52  ;;  %v3089_v6 = vadd.f32 %v3073_v24, %v2993_v12  ;;  %v2574_v17 = vrot.slane %v13953_v15, %v12978_v31  ;;  %v2978_v4 = vmul.f32 %v2938_v46, %v13905_v26 }
 0x42c   :  { %v2802_v30 = vadd.f32 %v2786_v21, %v2706_v40  ;;  %v2654_v0 = vrot.slane %v13953_v15, %v12982_v34  ;;  %v2750_v3 = vrot.slane %v13953_v15, %v12989_v38  ;;  %v3074_v28 = vmul.f32 %v3034_v33, %v13895_v18 }
 0x42d   :  { %11605 = vmatmul.mubr.msk.f32.gmra.mxu1 %vm276_vm0, %v3296_v44  ;;  %v3185_v20 = vadd.f32 %v3169_v22, %v3089_v6  ;;  %v2611_v5 = vmul.f32 %v2574_v17, %v13959_v60  ;;  %v2846_v54 = vrot.slane %v13953_v15, %v12993_v42  ;;  %v2942_v11 = vrot.slane %v13953_v15, %v17389_v25 }
 0x42e   :  { %v2898_v51 = vadd.f32 %v2882_v43, %v2802_v30  ;;  %v2691_v59 = vmul.f32 %v2654_v0, %v13951_v39  ;;  %v2787_v26 = vmul.f32 %v2750_v3, %v13982_v48  ;;  %v3170_v35 = vmul.f32 %v3130_v41, %v13926_v56 }
 0x42f   :  { %v3281_v62 = vadd.f32 %v3265_v32, %v3185_v20  ;;  %v3266_v45 = vmul.f32 %v3226_v57, %v13923_v63  ;;  %v3038_v18 = vrot.slane %v13953_v15, %v17388_v50  ;;  %v2883_v37 = vmul.f32 %v2846_v54, %v13969_v10 }
 0x430   :  { %v2994_v13 = vadd.f32 %v2978_v4, %v2898_v51  ;;  %v2707_v9 = vadd.f32 %v2691_v59, %v2611_v5  ;;  %v2979_v24 = vmul.f32 %v2942_v11, %v14001_v47  ;;  %v3134_v2 = vrot.slane %v13953_v15, %v17390_v16 }
 0x431   :  { %v3297_v22 = vmul.f32 %v3281_v62, %v13057_v27  ;;  %v2578_v46 = vrot.slane %v13949_v14, %v12978_v31  ;;  %v2658_v63 = vrot.slane %v13949_v14, %v12982_v34  ;;  %v3075_v12 = vmul.f32 %v3038_v18, %v13992_v29 }
 0x432   :  { %v3090_v56 = vadd.f32 %v3074_v28, %v2994_v13  ;;  %v2803_v61 = vadd.f32 %v2787_v26, %v2707_v9  ;;  %v2754_v32 = vrot.slane %v13949_v14, %v12989_v38  ;;  %v3230_v33 = vrot.slane %v13953_v15, %v17391_v55 }
 0x433   :  { %11607 = vmatprep.mubr.msk.f32.mxu1 %vm276_vm0, %v3297_v22  ;;  %v2612_v40 = vmul.f32 %v2578_v46, %v13959_v60  ;;  %v2692_v21 = vmul.f32 %v2658_v63, %v13951_v39  ;;  %v2850_v43 = vrot.slane %v13949_v14, %v12993_v42  ;;  %v2946_v57 = vrot.slane %v13949_v14, %v17389_v25 }
 0x434   :  { %v3186_v41 = vadd.f32 %v3170_v35, %v3090_v56  ;;  %v2899_v44 = vadd.f32 %v2883_v37, %v2803_v61  ;;  %v2788_v6 = vmul.f32 %v2754_v32, %v13982_v48  ;;  %v3171_v17 = vmul.f32 %v3134_v2, %v14017_v53 }
 0x435   :  { %v3267_v30 = vmul.f32 %v3230_v33, %v14006_v23  ;;  %v2708_v4 = vadd.f32 %v2692_v21, %v2612_v40  ;;  %v3042_v15 = vrot.slane %v13949_v14, %v17388_v50  ;;  %v2884_v20 = vmul.f32 %v2850_v43, %v13969_v10 }
 0x436   :  { %v3282_v0 = vadd.f32 %v3266_v45, %v3186_v41  ;;  %v2995_v3 = vadd.f32 %v2979_v24, %v2899_v44  ;;  %v2980_v28 = vmul.f32 %v2946_v57, %v14001_v47  ;;  %v3138_v54 = vrot.slane %v13949_v14, %v17390_v16 }
 0x437   :  { %v2804_v5 = vadd.f32 %v2788_v6, %v2708_v4  ;;  %v2582_v51 = vrot.slane %v13980_v19, %v12978_v31  ;;  %v2662_v59 = vrot.slane %v13980_v19, %v12982_v34  ;;  %v3234_v62 = vrot.slane %v13949_v14, %v17391_v55 }
 0x438   :  { %v3298_v26 = vmul.f32 %v3282_v0, %v13039_v8  ;;  %v3091_v11 = vadd.f32 %v3075_v12, %v2995_v3  ;;  %v2758_v35 = vrot.slane %v13980_v19, %v12989_v38  ;;  %v2854_v9 = vrot.slane %v13980_v19, %v12993_v42 }
 0x439   :  { %v2900_v45 = vadd.f32 %v2884_v20, %v2804_v5  ;;  %v2613_v18 = vmul.f32 %v2582_v51, %v13959_v60  ;;  %v2693_v13 = vmul.f32 %v2662_v59, %v13951_v39  ;;  %v3076_v24 = vmul.f32 %v3042_v15, %v13992_v29  ;;  %v17395_v20 = vld [vmem:[#allocation21_spill] sm:$0xff] }
 0x43a   :  { %11608 = vmatmul.mubr.msk.f32.gmra.mxu1 %vm276_vm0, %v3298_v26  ;;  %v3187_v37 = vadd.f32 %v3171_v17, %v3091_v11  ;;  %v3172_v22 = vmul.f32 %v3138_v54, %v14017_v53  ;;  %v3268_v14 = vmul.f32 %v3234_v62, %v14006_v23  ;;  %v2789_v63 = vmul.f32 %v2758_v35, %v13982_v48 }
 0x43b   :  { %v2996_v2 = vadd.f32 %v2980_v28, %v2900_v45  ;;  %v2709_v46 = vadd.f32 %v2693_v13, %v2613_v18  ;;  %v2950_v56 = vrot.slane %v13980_v19, %v17389_v25  ;;  %v2885_v12 = vmul.f32 %v2854_v9, %v13969_v10  ;;  %v17396_v45 = vld [vmem:[#allocation13_spill] sm:$0xff] }
 0x43c   :  { %v3283_v61 = vadd.f32 %v3267_v30, %v3187_v37  ;;  %v3046_v32 = vrot.slane %v13980_v19, %v17388_v50  ;;  %v3142_v33 = vrot.slane %v13980_v19, %v17390_v16  ;;  %v2586_v41 = vrot.slane %v13961_v49, %v12978_v31  ;;  %v17397_v37 = vld [vmem:[#allocation7_spill] sm:$0xff] }
 0x43d   :  { %v3092_v40 = vadd.f32 %v3076_v24, %v2996_v2  ;;  %v2805_v21 = vadd.f32 %v2789_v63, %v2709_v46  ;;  %v2981_v43 = vmul.f32 %v2950_v56, %v14001_v47  ;;  %v3238_v6 = vrot.slane %v13980_v19, %v17391_v55 }
 0x43e   :  { %v3299_v44 = vmul.f32 %v3283_v61, %v13142_v58  ;;  %v2666_v57 = vrot.slane %v13961_v49, %v12982_v34  ;;  %v2762_v17 = vrot.slane %v13961_v49, %v12989_v38  ;;  %v2614_v15 = vmul.f32 %v2586_v41, %v13959_v60 }
 0x43f   :  { %v3188_v30 = vadd.f32 %v3172_v22, %v3092_v40  ;;  %v2901_v4 = vadd.f32 %v2885_v12, %v2805_v21  ;;  %v2858_v0 = vrot.slane %v13961_v49, %v12993_v42  ;;  %v14239_v3 = vmax.f32 %v14004_v1, 0.0 }
 0x440   :  { %v14242_v28 = vmax.f32 %v17395_v20, 0.0  ;;  %11610 = vmatprep.mubr.msk.f32.mxu1 %vm276_vm0, %v3299_v44  ;;  %v3077_v19 = vmul.f32 %v3046_v32, %v13992_v29  ;;  %v2694_v5 = vmul.f32 %v2666_v57, %v13951_v39  ;;  %v3173_v59 = vmul.f32 %v3142_v33, %v14017_v53  ;;  %v17399_v20 = vld [vmem:[#allocation8_spill] sm:$0xff] }
 0x441   :  { %v3284_v54 = vadd.f32 %v3268_v14, %v3188_v30  ;;  %v2997_v51 = vadd.f32 %v2981_v43, %v2901_v4  ;;  %v3269_v26 = vmul.f32 %v3238_v6, %v14006_v23  ;;  %v2790_v62 = vmul.f32 %v2762_v17, %v13982_v48  ;;  %v17398_v4 = vld [vmem:[#allocation14_spill] sm:$0xff] }
 0x442   :  { %v2710_v11 = vadd.f32 %v2694_v5, %v2614_v15  ;;  %v2954_v1 = vrot.slane %v13961_v49, %v17389_v25  ;;  %v3050_v35 = vrot.slane %v13961_v49, %v17388_v50  ;;  %v2886_v9 = vmul.f32 %v2858_v0, %v13969_v10 }
 0x443   :  { %v3300_v18 = vmul.f32 %v3284_v54, %v17396_v45  ;;  %v3093_v13 = vadd.f32 %v3077_v19, %v2997_v51  ;;  %v2590_v24 = vrot.slane %v17397_v37, %v12978_v31  ;;  %v3146_v14 = vrot.slane %v13961_v49, %v17390_v16 }
 0x444   :  { %v2806_v22 = vadd.f32 %v2790_v62, %v2710_v11  ;;  %v2670_v2 = vrot.slane %v17397_v37, %v12982_v34  ;;  %v2766_v46 = vrot.slane %v17397_v37, %v12989_v38  ;;  %v3242_v56 = vrot.slane %v13961_v49, %v17391_v55 }
 0x445   :  { %11611 = vmatmul.mubr.msk.f32.gmra.mxu1 %vm276_vm0, %v3300_v18  ;;  %v3189_v63 = vadd.f32 %v3173_v59, %v3093_v13  ;;  %v2615_v61 = vmul.f32 %v2590_v24, %v13959_v60  ;;  %v2862_v12 = vrot.slane %v17397_v37, %v12993_v42  ;;  %v2982_v33 = vmul.f32 %v2954_v1, %v14001_v47 }
 0x446   :  { %v2902_v32 = vadd.f32 %v2886_v9, %v2806_v22  ;;  %v3078_v40 = vmul.f32 %v3050_v35, %v13992_v29  ;;  %v2695_v21 = vmul.f32 %v2670_v2, %v13951_v39  ;;  %v3174_v41 = vmul.f32 %v3146_v14, %v14017_v53 }
 0x447   :  { %v3285_v43 = vadd.f32 %v3269_v26, %v3189_v63  ;;  %v3270_v44 = vmul.f32 %v3242_v56, %v14006_v23  ;;  %v2958_v49 = vrot.slane %v17397_v37, %v17389_v25  ;;  %v2791_v17 = vmul.f32 %v2766_v46, %v13982_v48 }
 0x448   :  { %v2998_v6 = vadd.f32 %v2982_v33, %v2902_v32  ;;  %v2711_v57 = vadd.f32 %v2695_v21, %v2615_v61  ;;  %v3054_v30 = vrot.slane %v17397_v37, %v17388_v50  ;;  %v2887_v0 = vmul.f32 %v2862_v12, %v13969_v10  ;;  %v17400_v21 = vld [vmem:[#allocation15_spill] sm:$0xff] }
 0x449   :  { %v3301_v15 = vmul.f32 %v3285_v43, %v17398_v4  ;;  %v2594_v19 = vrot.slane %v17399_v20, %v12978_v31  ;;  %v2674_v5 = vrot.slane %v17399_v20, %v12982_v34  ;;  %v3246_v59 = vrot.slane %v17397_v37, %v17391_v55 }
 0x44a   :  { %v3094_v54 = vadd.f32 %v3078_v40, %v2998_v6  ;;  %v2807_v51 = vadd.f32 %v2791_v17, %v2711_v57  ;;  %v2770_v26 = vrot.slane %v17399_v20, %v12989_v38  ;;  %v3150_v11 = vrot.slane %v17397_v37, %v17390_v16 }
 0x44b   :  { %11613 = vmatprep.mubr.msk.f32.mxu1 %vm276_vm0, %v3301_v15  ;;  %v2616_v62 = vmul.f32 %v2594_v19, %v13959_v60  ;;  %v2696_v1 = vmul.f32 %v2674_v5, %v13951_v39  ;;  %v2866_v35 = vrot.slane %v17399_v20, %v12993_v42  ;;  %v2983_v9 = vmul.f32 %v2958_v49, %v14001_v47 }
 0x44c   :  { %v3190_v18 = vadd.f32 %v3174_v41, %v3094_v54  ;;  %v2903_v13 = vadd.f32 %v2887_v0, %v2807_v51  ;;  %v2962_v24 = vrot.slane %v17399_v20, %v17389_v25  ;;  %v3079_v22 = vmul.f32 %v3054_v30, %v13992_v29 }
 0x44d   :  { %v3175_v14 = vmul.f32 %v3150_v11, %v14017_v53  ;;  %v2712_v2 = vadd.f32 %v2696_v1, %v2616_v62  ;;  %v2792_v37 = vmul.f32 %v2770_v26, %v13982_v48  ;;  %v3271_v56 = vmul.f32 %v3246_v59, %v14006_v23 }
 0x44e   :  { %v3286_v46 = vadd.f32 %v3270_v44, %v3190_v18  ;;  %v2999_v63 = vadd.f32 %v2983_v9, %v2903_v13  ;;  %v3058_v61 = vrot.slane %v17399_v20, %v17388_v50  ;;  %v2888_v32 = vmul.f32 %v2866_v35, %v13969_v10 }
 0x44f   :  { %v2808_v12 = vadd.f32 %v2792_v37, %v2712_v2  ;;  %v2598_v33 = vrot.slane %v14242_v28, %v12978_v31  ;;  %v2678_v40 = vrot.slane %v14242_v28, %v12982_v34  ;;  %v2984_v44 = vmul.f32 %v2962_v24, %v14001_v47  ;;  %v17401_v24 = vld [vmem:[#allocation16_spill] sm:$0xff] }
 0x450   :  { %v3302_v43 = vmul.f32 %v3286_v46, %v17400_v21  ;;  %v3095_v41 = vadd.f32 %v3079_v22, %v2999_v63  ;;  %v2774_v49 = vrot.slane %v14242_v28, %v12989_v38  ;;  %v2870_v30 = vrot.slane %v14242_v28, %v12993_v42 }
 0x451   :  { %v2904_v6 = vadd.f32 %v2888_v32, %v2808_v12  ;;  %v2617_v57 = vmul.f32 %v2598_v33, %v13959_v60  ;;  %v2697_v17 = vmul.f32 %v2678_v40, %v13951_v39  ;;  %v3080_v0 = vmul.f32 %v3058_v61, %v13992_v29 }
 0x452   :  { %11614 = vmatmul.mubr.msk.f32.gmra.mxu1 %vm276_vm0, %v3302_v43  ;;  %v3191_v15 = vadd.f32 %v3175_v14, %v3095_v41  ;;  %v3154_v19 = vrot.slane %v17399_v20, %v17390_v16  ;;  %v3250_v5 = vrot.slane %v17399_v20, %v17391_v55  ;;  %v2793_v59 = vmul.f32 %v2774_v49, %v13982_v48 }
 0x453   :  { %v3000_v54 = vadd.f32 %v2984_v44, %v2904_v6  ;;  %v2713_v51 = vadd.f32 %v2697_v17, %v2617_v57  ;;  %v2966_v26 = vrot.slane %v14242_v28, %v17389_v25  ;;  %v3062_v35 = vrot.slane %v14242_v28, %v17388_v50  ;;  %v17402_v6 = vld [vmem:[#allocation17_spill] sm:$0xff] }
 0x454   :  { %v3287_v11 = vadd.f32 %v3271_v56, %v3191_v15  ;;  %v3176_v62 = vmul.f32 %v3154_v19, %v14017_v53  ;;  %v3272_v1 = vmul.f32 %v3250_v5, %v14006_v23  ;;  %v2889_v9 = vmul.f32 %v2870_v30, %v13969_v10 }
 0x455   :  { %v3096_v18 = vadd.f32 %v3080_v0, %v3000_v54  ;;  %v2809_v13 = vadd.f32 %v2793_v59, %v2713_v51  ;;  %v2602_v20 = vrot.slane %v14239_v3, %v12978_v31  ;;  %v3158_v14 = vrot.slane %v14242_v28, %v17390_v16 }
 0x456   :  { %v3303_v22 = vmul.f32 %v3287_v11, %v17401_v24  ;;  %v2682_v2 = vrot.slane %v14239_v3, %v12982_v34  ;;  %v2778_v37 = vrot.slane %v14239_v3, %v12989_v38  ;;  %v2985_v56 = vmul.f32 %v2966_v26, %v14001_v47  ;;  %v17403_v11 = vld [vmem:[#allocation18_spill] sm:$0xff] }
 0x457   :  { %v3192_v46 = vadd.f32 %v3176_v62, %v3096_v18  ;;  %v2905_v63 = vadd.f32 %v2889_v9, %v2809_v13  ;;  %v2618_v61 = vmul.f32 %v2602_v20, %v13959_v60  ;;  %v2874_v32 = vrot.slane %v14239_v3, %v12993_v42  ;;  %v17404_v9 = vld [vmem:[#allocation19_spill] sm:$0xff] }
 0x458   :  { %11616 = vmatprep.mubr.msk.f32.mxu1 %vm276_vm0, %v3303_v22  ;;  %v2698_v12 = vmul.f32 %v2682_v2, %v13951_v39  ;;  %v3081_v43 = vmul.f32 %v3062_v35, %v13992_v29  ;;  %v3254_v41 = vrot.slane %v14242_v28, %v17391_v55  ;;  %v2794_v49 = vmul.f32 %v2778_v37, %v13982_v48 }
 0x459   :  { %v3288_v33 = vadd.f32 %v3272_v1, %v3192_v46  ;;  %v3001_v40 = vadd.f32 %v2985_v56, %v2905_v63  ;;  %v2970_v60 = vrot.slane %v14239_v3, %v17389_v25  ;;  %v3177_v39 = vmul.f32 %v3158_v14, %v14017_v53 }
 0x45a   :  { %v2714_v44 = vadd.f32 %v2698_v12, %v2618_v61  ;;  %v2890_v15 = vmul.f32 %v2874_v32, %v13969_v10  ;;  %v3066_v0 = vrot.slane %v14239_v3, %v17388_v50  ;;  %v3273_v19 = vmul.f32 %v3254_v41, %v14006_v23 }
 0x45b   :  { %v3304_v57 = vmul.f32 %v3288_v33, %v17402_v6  ;;  %v3097_v17 = vadd.f32 %v3081_v43, %v3001_v40  ;;  %v2986_v5 = vmul.f32 %v2970_v60, %v14001_v47  ;;  %v3162_v54 = vrot.slane %v14239_v3, %v17390_v16 }
 0x45c   :  { %v2810_v30 = vadd.f32 %v2794_v49, %v2714_v44  ;;  %v3082_v26 = vmul.f32 %v3066_v0, %v13992_v29  ;;  %v3258_v10 = vrot.slane %v14239_v3, %v17391_v55  ;;  %v17405_v22 = vmov 0.0   ;;  %v14375_v29 = vpop.f32.mrf.mxu0 }
 0x45d   :  { %11617 = vmatmul.mubr.msk.f32.gmra.mxu1 %vm276_vm0, %v3304_v57  ;;  %v3193_v28 = vadd.f32 %v3177_v39, %v3097_v17  ;;  %v3178_v35 = vmul.f32 %v3162_v54, %v14017_v53 }
 0x45e   :  { %v2906_v48 = vadd.f32 %v2890_v15, %v2810_v30  ;;  %v3274_v47 = vmul.f32 %v3258_v10, %v14006_v23  ;;  %v14379_v14 = vpop.f32.mrf.mxu0 }
 0x45f   :  { %v3289_v51 = vadd.f32 %v3273_v19, %v3193_v28 }
 0x460   :  { %v3002_v59 = vadd.f32 %v2986_v5, %v2906_v48  ;;  %v14383_v2 = vpop.f32.mrf.mxu0 }
 0x461   :  { %v3305_v62 = vmul.f32 %v3289_v51, %v17403_v11 }
 0x462   :  { %v3098_v1 = vadd.f32 %v3082_v26, %v3002_v59  ;;  %v14387_v23 = vpop.f32.mrf.mxu0 }
 0x463   :  { %11619 = vmatprep.mubr.msk.f32.mxu1 %vm276_vm0, %v3305_v62 }
 0x464   :  { %v3194_v18 = vadd.f32 %v3178_v35, %v3098_v1  ;;  %v14391_v63 = vpop.f32.mrf.mxu0 }
 0x466   :  { %v3290_v13 = vadd.f32 %v3274_v47, %v3194_v18  ;;  %v14395_v61 = vpop.f32.mrf.mxu0 }
 0x468   :  { %v3306_v20 = vmul.f32 %v3290_v13, %v17404_v9  ;;  %v11575_v32 = vpop.f32.mrf.mxu0 }
 0x46a   :  { %11620 = vmatmul.mubr.msk.f32.gmra.mxu1 %vm276_vm0, %v3306_v20  ;;  %v3403_v40 = vpop.f32.mrf.mxu0 }
 0x46b   :  { %11689 = vmatprep.mubr.msk.f32.mxu1 %vm12513_vm1, %v17405_v22 }
 0x46c   :  { %v11578_v41 = vpop.f32.mrf.mxu0 }
 0x46e   :  { %v3413_v49 = vpop.f32.mrf.mxu0 }
 0x470   :  { %v11581_v57 = vpop.f32.mrf.mxu0 }
 0x472   :  { %v3423_v39 = vpop.f32.mrf.mxu0 }
 0x474   :  { %v11584_v15 = vpop.f32.mrf.mxu0 }
 0x476   :  { %v3433_v28 = vpop.f32.mrf.mxu0 }
 0x478   :  { %v11587_v48 = vpop.f32.mrf.mxu0 }
 0x47a   :  { %v3443_v59 = vpop.f32.mrf.mxu0 }
 0x4cd   :  { %v14377_v3 = vpop.f32.mrf.mxu1 }
 0x4cf   :  { %v14381_v53 = vpop.f32.mrf.mxu1 }
 0x4e2   :  { %v14385_v37 = vpop.f32.mrf.mxu1 }
 0x4e4   :  { %v14389_v46 = vpop.f32.mrf.mxu1 }
 0x4ed   :  { %v14393_v56 = vpop.f32.mrf.mxu1 }
 0x4ef   :  { %v14397_v12 = vpop.f32.mrf.mxu1 }
 0x4fa   :  { %v11609_v33 = vpop.f32.mrf.mxu1 }
 0x4fc   :  { %v3596_v43 = vpop.f32.mrf.mxu1 }
 0x505   :  { %v11612_v44 = vpop.f32.mrf.mxu1 }
 0x507   :  { %v3606_v60 = vpop.f32.mrf.mxu1 }
 0x512   :  { %v11615_v17 = vpop.f32.mrf.mxu1 }
 0x513   :  { %v3622_v35 = vadd.f32 %v11615_v17, %v11581_v57  ;;  %v3612_v57 = vadd.f32 %v11612_v44, %v11578_v41  ;;  %v3602_v41 = vadd.f32 %v11609_v33, %v11575_v32  ;;  %v3592_v32 = vadd.f32 %v14393_v56, %v14391_v63 }
 0x514   :  { %v3616_v30 = vpop.f32.mrf.mxu1  ;;  %v3582_v63 = vadd.f32 %v14385_v37, %v14383_v2  ;;  %v3572_v2 = vadd.f32 %v14377_v3, %v14375_v29  ;;  %v17407_v29 = vld [vmem:[#allocation6_spill] sm:$0xff] }
 0x515   :  { %v3617_v20 = vadd.f32 %v3616_v30, %v3423_v39  ;;  %v3656_v17 = vmul.f32 %v3622_v35, %v17400_v21  ;;  %v3607_v39 = vadd.f32 %v3606_v60, %v3413_v49  ;;  %v3654_v44 = vmul.f32 %v3612_v57, %v17396_v45  ;;  %v12481_v57 = vld [vmem:[%s17386_s26 + $0x2] sm:$0x3] }
 0x516   :  { %v3652_v33 = vmul.f32 %v3602_v41, %v13039_v8  ;;  %v3650_v56 = vmul.f32 %v3592_v32, %v13011_v52  ;;  %v3648_v37 = vmul.f32 %v3582_v63, %v12986_v36  ;;  %v3646_v3 = vmul.f32 %v3572_v2, %v17407_v29  ;;  %v10252_v41 = vld [vmem:[%s17270_s8 + $0x38] sm:$0xff]  ;;  %v10250_v32 = vld [vmem:[%s17270_s8 + $0x28] sm:$0xff] }
 0x517   :  { %v3655_v30 = vmul.f32 %v3617_v20, %v17398_v4  ;;  %v3653_v49 = vmul.f32 %v3607_v39, %v13142_v58  ;;  %v12480_v20 = vld [vmem:[%s17386_s26] sm:$0x3] }
 0x518   :  { %v10253_v39 = vld [vmem:[%s17270_s8 + $0x40] sm:$0xff] }
 0x519   :  { %v14433_v60 = vmax.f32 %v3655_v30, 0.0  ;;  %v10246_v30 = vld [vmem:[%s17269_s7 + $0x38] sm:$0xff] }
 0x51d   :  { %v11618_v0 = vpop.f32.mrf.mxu1 }
 0x51e   :  { %v3632_v54 = vadd.f32 %v11618_v0, %v11584_v15 }
 0x51f   :  { %v3626_v19 = vpop.f32.mrf.mxu1 }
 0x520   :  { %v3627_v10 = vadd.f32 %v3626_v19, %v3433_v28  ;;  %v3658_v18 = vmul.f32 %v3632_v54, %v17402_v6  ;;  %v14426_v28 = vmax.f32 %v3656_v17, 0.0  ;;  %v14442_v19 = vmax.f32 %v3654_v44, 0.0  ;;  %v10247_v17 = vld [vmem:[%s17269_s7 + $0x40] sm:$0xff]  ;;  %v10245_v44 = vld [vmem:[%s17269_s7 + $0x30] sm:$0xff] }
 0x522   :  { %v3657_v55 = vmul.f32 %v3627_v10, %v17401_v24  ;;  %v14412_v15 = vmax.f32 %v3658_v18, 0.0  ;;  %v14494_v10 = vmax.f32 %v3648_v37, 0.0  ;;  %v10248_v18 = vld [vmem:[%s17269_s7 + $0x48] sm:$0xff]  ;;  %v10258_v37 = vld [vmem:[%s17265_s3 + $0x60] sm:$0xff] }
 0x524   :  { %v14419_v0 = vmax.f32 %v3657_v55, 0.0  ;;  %v3597_v55 = vadd.f32 %v3596_v43, %v3403_v40  ;;  %v3587_v40 = vadd.f32 %v14397_v12, %v14395_v61  ;;  %v3577_v61 = vadd.f32 %v14389_v46, %v14387_v23  ;;  %v17406_v46 = vld [vmem:[#allocation11_spill] sm:$0xff] }
 0x525   :  { %v3567_v23 = vadd.f32 %v14381_v53, %v14379_v14  ;;  %v17408_v14 = vld [vmem:[#allocation5_spill] sm:$0xff] }
 0x526   :  { %v3651_v43 = vmul.f32 %v3597_v55, %v13057_v27  ;;  %v3649_v12 = vmul.f32 %v3587_v40, %v13037_v7  ;;  %v10251_v55 = vld [vmem:[%s17270_s8 + $0x30] sm:$0xff] }
 0x527   :  { %v3645_v53 = vmul.f32 %v3567_v23, %v17408_v14  ;;  %v10265_v40 = vld [vmem:[%s17266_s4 + $0x70] sm:$0xff]  ;;  %v10263_v23 = vld [vmem:[%s17266_s4 + $0x60] sm:$0xff] }
 0x528   :  { %v14469_v54 = vmax.f32 %v3651_v43, 0.0 }
 0x529   :  { %v14513_v35 = vmax.f32 %v3645_v53, 0.0  ;;  %v10256_v53 = vld [vmem:[%s17265_s3 + $0x50] sm:$0xff] }
 0x52a   :  { %v11621_v5 = vpop.f32.mrf.mxu1 }
 0x52b   :  { %v3642_v51 = vadd.f32 %v11621_v5, %v11587_v48  ;;  %v14451_v48 = vmax.f32 %v3653_v49, 0.0  ;;  %v14460_v5 = vmax.f32 %v3652_v33, 0.0  ;;  %v10244_v49 = vld [vmem:[%s17269_s7 + $0x28] sm:$0xff]  ;;  %v10260_v33 = vld [vmem:[%s17265_s3 + $0x70] sm:$0xff] }
 0x52c   :  { %v3636_v26 = vpop.f32.mrf.mxu1 }
 0x52d   :  { %v3660_v62 = vmul.f32 %v3642_v51, %v17404_v9  ;;  %v3637_v1 = vadd.f32 %v3636_v26, %v3443_v59  ;;  %v14478_v51 = vmax.f32 %v3650_v56, 0.0  ;;  %v3647_v59 = vmul.f32 %v3577_v61, %v17406_v46  ;;  %v10259_v56 = vld [vmem:[%s17265_s3 + $0x68] sm:$0xff] }
 0x52e   :  { %v14487_v26 = vmax.f32 %v3649_v12, 0.0  ;;  %v10264_v61 = vld [vmem:[%s17266_s4 + $0x68] sm:$0xff] }
 0x52f   :  { %v14401_v47 = vmax.f32 %v3660_v62, 0.0  ;;  %v3659_v13 = vmul.f32 %v3637_v1, %v17403_v11  ;;  %v14501_v62 = vmax.f32 %v3647_v59, 0.0  ;;  %v14507_v1 = vmax.f32 %v3646_v3, 0.0  ;;  %v10257_v59 = vld [vmem:[%s17265_s3 + $0x58] sm:$0xff] }
 0x530   :  { %v10262_v3 = vld [vmem:[%s17266_s4 + $0x58] sm:$0xff] }
 0x531   :  { %v14405_v16 = vmax.f32 %v3659_v13, 0.0  ;;  %11623 = vmatpush3.msra.mxu0 %v14401_v47  ;;  %11658 = vmatpush3.msra.mxu1 %v14401_v47  ;;  %v10254_v13 = vld [vmem:[%s17270_s8 + $0x48] sm:$0xff] }
 0x532   :  { %11624 = vmatprep.subr.mxu0 %v17405_v22  ;;  %11659 = vmatprep.subr.mxu1 %v17405_v22 }
 0x533   :  { %11625 = vmatpush3.msra.mxu0 %v14405_v16  ;;  %11660 = vmatpush3.msra.mxu1 %v14405_v16 }
 0x534   :  { %11626 = vmatprep.subr.mxu0 %v17405_v22  ;;  %11661 = vmatprep.subr.mxu1 %v17405_v22 }
 0x535   :  { %11627 = vmatpush3.msra.mxu0 %v14412_v15  ;;  %11662 = vmatpush3.msra.mxu1 %v14412_v15 }
 0x536   :  { %11628 = vmatprep.subr.mxu0 %v17405_v22  ;;  %11663 = vmatprep.subr.mxu1 %v17405_v22 }
 0x537   :  { %11629 = vmatpush3.msra.mxu0 %v14419_v0  ;;  %11664 = vmatpush3.msra.mxu1 %v14419_v0 }
 0x538   :  { %11630 = vmatprep.subr.mxu0 %v17405_v22  ;;  %11665 = vmatprep.subr.mxu1 %v17405_v22 }
 0x539   :  { %11631 = vmatpush3.msra.mxu0 %v14426_v28  ;;  %11666 = vmatpush3.msra.mxu1 %v14426_v28 }
 0x53a   :  { %11632 = vmatprep.subr.mxu0 %v17405_v22  ;;  %11667 = vmatprep.subr.mxu1 %v17405_v22 }
 0x53b   :  { %11633 = vmatpush3.msra.mxu0 %v14433_v60  ;;  %11668 = vmatpush3.msra.mxu1 %v14433_v60 }
 0x53c   :  { %11634 = vmatprep.subr.mxu0 %v17405_v22  ;;  %11669 = vmatprep.subr.mxu1 %v17405_v22 }
 0x53d   :  { %11635 = vmatpush3.msra.mxu0 %v14442_v19  ;;  %11670 = vmatpush3.msra.mxu1 %v14442_v19 }
 0x53e   :  { %11636 = vmatprep.subr.mxu0 %v17405_v22  ;;  %11671 = vmatprep.subr.mxu1 %v17405_v22 }
 0x53f   :  { %11637 = vmatpush3.msra.mxu0 %v14451_v48  ;;  %11672 = vmatpush3.msra.mxu1 %v14451_v48 }
 0x540   :  { %11638 = vmatprep.subr.mxu0 %v17405_v22  ;;  %11673 = vmatprep.subr.mxu1 %v17405_v22 }
 0x541   :  { %11639 = vmatpush3.msra.mxu0 %v14460_v5  ;;  %11674 = vmatpush3.msra.mxu1 %v14460_v5 }
 0x542   :  { %11640 = vmatprep.subr.mxu0 %v17405_v22  ;;  %11675 = vmatprep.subr.mxu1 %v17405_v22 }
 0x543   :  { %11641 = vmatpush3.msra.mxu0 %v14469_v54  ;;  %11676 = vmatpush3.msra.mxu1 %v14469_v54 }
 0x544   :  { %11642 = vmatprep.subr.mxu0 %v17405_v22  ;;  %11677 = vmatprep.subr.mxu1 %v17405_v22 }
 0x545   :  { %11643 = vmatpush3.msra.mxu0 %v14478_v51  ;;  %11678 = vmatpush3.msra.mxu1 %v14478_v51 }
 0x546   :  { %11644 = vmatprep.subr.mxu0 %v17405_v22  ;;  %11679 = vmatprep.subr.mxu1 %v17405_v22 }
 0x547   :  { %11645 = vmatpush3.msra.mxu0 %v14487_v26  ;;  %11680 = vmatpush3.msra.mxu1 %v14487_v26 }
 0x548   :  { %11646 = vmatprep.subr.mxu0 %v17405_v22  ;;  %11681 = vmatprep.subr.mxu1 %v17405_v22 }
 0x549   :  { %11647 = vmatpush3.msra.mxu0 %v14494_v10  ;;  %11682 = vmatpush3.msra.mxu1 %v14494_v10 }
 0x54a   :  { %11648 = vmatprep.subr.mxu0 %v17405_v22  ;;  %11683 = vmatprep.subr.mxu1 %v17405_v22 }
 0x54b   :  { %11649 = vmatpush3.msra.mxu0 %v14501_v62  ;;  %11684 = vmatpush3.msra.mxu1 %v14501_v62 }
 0x54c   :  { %11650 = vmatprep.subr.mxu0 %v17405_v22  ;;  %11685 = vmatprep.subr.mxu1 %v17405_v22 }
 0x54d   :  { %11651 = vmatpush3.msra.mxu0 %v14507_v1  ;;  %11686 = vmatpush3.msra.mxu1 %v14507_v1 }
 0x54e   :  { %11652 = vmatprep.subr.mxu0 %v17405_v22  ;;  %11687 = vmatprep.subr.mxu1 %v17405_v22 }
 0x54f   :  { %11653 = vmatpush3.msra.mxu0 %v14513_v35  ;;  %11688 = vmatpush3.msra.mxu1 %v14513_v35 }
 0x550   :  { %11655 = vmatmul.mubr.f32.vlgmr.msra.gmra.mxu0 %v12480_v20  ;;  %11690 = vmatmul.mubr.f32.vlgmr.msra.gmra.mxu1 %v12481_v57  ;;  %v10274_v20 = vld [vmem:[%s17268_s6 + $0x68] sm:$0xff]  ;;  %v10273_v57 = vld [vmem:[%s17268_s6 + $0x60] sm:$0xff] }
 0x551   :  { %11692 = vmatprep.subr.mxu0 %v17405_v22  ;;  %11705 = vmatprep.subr.mxu1 %v17405_v22 }
 0x552   :  { %11693 = vmatpush3.msra.mxu0 %v10248_v18  ;;  %11706 = vmatpush3.msra.mxu1 %v10254_v13  ;;  %v10261_v18 = vld [vmem:[%s17266_s4 + $0x50] sm:$0xff] }
 0x553   :  { %11694 = vmatprep.subr.mxu0 %v17405_v22  ;;  %11707 = vmatprep.subr.mxu1 %v17405_v22  ;;  %v10275_v13 = vld [vmem:[%s17268_s6 + $0x70] sm:$0xff] }
 0x554   :  { %11695 = vmatpush3.msra.mxu0 %v10247_v17  ;;  %11708 = vmatpush3.msra.mxu1 %v10253_v39  ;;  %v10272_v17 = vld [vmem:[%s17268_s6 + $0x58] sm:$0xff]  ;;  %v10271_v39 = vld [vmem:[%s17268_s6 + $0x50] sm:$0xff] }
 0x555   :  { %11696 = vmatprep.subr.mxu0 %v17405_v22  ;;  %11709 = vmatprep.subr.mxu1 %v17405_v22 }
 0x556   :  { %11697 = vmatpush3.msra.mxu0 %v10246_v30  ;;  %11710 = vmatpush3.msra.mxu1 %v10252_v41 }
 0x557   :  { %11698 = vmatprep.subr.mxu0 %v17405_v22  ;;  %11711 = vmatprep.subr.mxu1 %v17405_v22 }
 0x558   :  { %11699 = vmatpush3.msra.mxu0 %v10245_v44  ;;  %11712 = vmatpush3.msra.mxu1 %v10251_v55 }
 0x559   :  { %11700 = vmatprep.subr.mxu0 %v17405_v22  ;;  %11713 = vmatprep.subr.mxu1 %v17405_v22 }
 0x55a   :  { %11701 = vmatpush3.msra.mxu0 %v10244_v49  ;;  %11714 = vmatpush3.msra.mxu1 %v10250_v32 }
 0x55b   :  { %11702 = vmatprep.mubr.msk.f32.mxu0 %vm12513_vm1, %v17405_v22  ;;  %11715 = vmatprep.mubr.msk.f32.mxu1 %vm12513_vm1, %v17405_v22 }
 0x55c   :  { %11718 = vmatprep.subr.mxu0 %v10260_v33  ;;  %11752 = vmatprep.subr.mxu1 %v10265_v40 }
 0x610   :  { %v3743_v43 = vpop.f32.mrf.mxu0  ;;  %v3813_v63 = vpop.f32.mrf.mxu1 }
 0x611   :  { %11703 = vmatmul.mubr.msk.f32.vlgmr.msra.gmra.mxu0 %vm276_vm0, %v3743_v43  ;;  %11716 = vmatmul.mubr.msk.f32.vlgmr.msra.gmra.mxu1 %vm276_vm0, %v3813_v63 }
 0x612   :  { %11719 = vmatpush3.msra.mxu0 %v10260_v33  ;;  %11753 = vmatpush3.msra.mxu1 %v10265_v40  ;;  %v11656_v12 = vpop.f32.mrf.mxu0  ;;  %v11691_v2 = vpop.f32.mrf.mxu1 }
 0x613   :  { %11720 = vmatprep.subr.mxu0 %v10259_v56  ;;  %11728 = vmatprep.mubr.msk.f32.mxu0 %vm276_vm0, %v14513_v35 }
 0x614   :  { %11754 = vmatprep.subr.mxu1 %v10264_v61  ;;  %11762 = vmatprep.mubr.msk.f32.mxu1 %vm276_vm0, %v14513_v35 }
 0x615   :  { %11721 = vmatpush3.msra.mxu0 %v10259_v56  ;;  %11755 = vmatpush3.msra.mxu1 %v10264_v61 }
 0x616   :  { %11722 = vmatprep.subr.mxu0 %v10258_v37  ;;  %11756 = vmatprep.subr.mxu1 %v10263_v23 }
 0x617   :  { %11723 = vmatpush3.msra.mxu0 %v10258_v37  ;;  %11757 = vmatpush3.msra.mxu1 %v10263_v23 }
 0x618   :  { %11724 = vmatprep.subr.mxu0 %v10257_v59  ;;  %11758 = vmatprep.subr.mxu1 %v10262_v3 }
 0x619   :  { %11725 = vmatpush3.msra.mxu0 %v10257_v59  ;;  %11759 = vmatpush3.msra.mxu1 %v10262_v3 }
 0x61a   :  { %11726 = vmatprep.subr.mxu0 %v10256_v53  ;;  %11760 = vmatprep.subr.mxu1 %v10261_v18 }
 0x61b   :  { %11727 = vmatpush3.msra.mxu0 %v10256_v53  ;;  %11761 = vmatpush3.msra.mxu1 %v10261_v18 }
 0x61c   :  { %11729 = vmatmul.mubr.msk.f32.vlgmr.msra.gmra.mxu0 %vm276_vm0, %v14507_v1  ;;  %11763 = vmatmul.mubr.msk.f32.vlgmr.msra.gmra.mxu1 %vm276_vm0, %v14507_v1 }
 0x61d   :  { %11731 = vmatprep.mubr.msk.f32.mxu0 %vm276_vm0, %v14501_v62  ;;  %11765 = vmatprep.mubr.msk.f32.mxu1 %vm276_vm0, %v14501_v62 }
 0x61e   :  { %11786 = vmatprep.subr.mxu0 %v10275_v13 }
 0x61f   :  { %11787 = vmatpush3.msra.mxu0 %v10275_v13 }
 0x620   :  { %11732 = vmatmul.mubr.msk.f32.gmra.mxu0 %vm276_vm0, %v14494_v10  ;;  %11766 = vmatmul.mubr.msk.f32.gmra.mxu1 %vm276_vm0, %v14494_v10 }
 0x621   :  { %11734 = vmatprep.mubr.msk.f32.mxu0 %vm276_vm0, %v14487_v26  ;;  %11768 = vmatprep.mubr.msk.f32.mxu1 %vm276_vm0, %v14487_v26 }
 0x622   :  { %11788 = vmatprep.subr.mxu0 %v10274_v20 }
 0x623   :  { %11789 = vmatpush3.msra.mxu0 %v10274_v20 }
 0x624   :  { %11735 = vmatmul.mubr.msk.f32.gmra.mxu0 %vm276_vm0, %v14478_v51  ;;  %11769 = vmatmul.mubr.msk.f32.gmra.mxu1 %vm276_vm0, %v14478_v51 }
 0x625   :  { %11737 = vmatprep.mubr.msk.f32.mxu0 %vm276_vm0, %v14469_v54  ;;  %11771 = vmatprep.mubr.msk.f32.mxu1 %vm276_vm0, %v14469_v54 }
 0x626   :  { %11790 = vmatprep.subr.mxu0 %v10273_v57 }
 0x627   :  { %11791 = vmatpush3.msra.mxu0 %v10273_v57 }
 0x628   :  { %11738 = vmatmul.mubr.msk.f32.gmra.mxu0 %vm276_vm0, %v14460_v5  ;;  %11772 = vmatmul.mubr.msk.f32.gmra.mxu1 %vm276_vm0, %v14460_v5 }
 0x629   :  { %11740 = vmatprep.mubr.msk.f32.mxu0 %vm276_vm0, %v14451_v48  ;;  %11774 = vmatprep.mubr.msk.f32.mxu1 %vm276_vm0, %v14451_v48 }
 0x62a   :  { %11792 = vmatprep.subr.mxu0 %v10272_v17 }
 0x62b   :  { %11793 = vmatpush3.msra.mxu0 %v10272_v17 }
 0x62c   :  { %11741 = vmatmul.mubr.msk.f32.gmra.mxu0 %vm276_vm0, %v14442_v19  ;;  %11775 = vmatmul.mubr.msk.f32.gmra.mxu1 %vm276_vm0, %v14442_v19 }
 0x62d   :  { %11743 = vmatprep.mubr.msk.f32.mxu0 %vm276_vm0, %v14433_v60  ;;  %11777 = vmatprep.mubr.msk.f32.mxu1 %vm276_vm0, %v14433_v60 }
 0x62e   :  { %11794 = vmatprep.subr.mxu0 %v10271_v39 }
 0x62f   :  { %11795 = vmatpush3.msra.mxu0 %v10271_v39 }
 0x630   :  { %11744 = vmatmul.mubr.msk.f32.gmra.mxu0 %vm276_vm0, %v14426_v28  ;;  %11778 = vmatmul.mubr.msk.f32.gmra.mxu1 %vm276_vm0, %v14426_v28 }
 0x631   :  { %11746 = vmatprep.mubr.msk.f32.mxu0 %vm276_vm0, %v14419_v0  ;;  %11780 = vmatprep.mubr.msk.f32.mxu1 %vm276_vm0, %v14419_v0 }
 0x632   :  { %11854 = vmatprep.subr.mxu0 %v17405_v22 }
 0x634   :  { %11747 = vmatmul.mubr.msk.f32.gmra.mxu0 %vm276_vm0, %v14412_v15  ;;  %11781 = vmatmul.mubr.msk.f32.gmra.mxu1 %vm276_vm0, %v14412_v15 }
 0x635   :  { %11749 = vmatprep.mubr.msk.f32.mxu0 %vm276_vm0, %v14405_v16  ;;  %11783 = vmatprep.mubr.msk.f32.mxu1 %vm276_vm0, %v14405_v16 }
 0x638   :  { %11750 = vmatmul.mubr.msk.f32.gmra.mxu0 %vm276_vm0, %v14401_v47  ;;  %11784 = vmatmul.mubr.msk.f32.gmra.mxu1 %vm276_vm0, %v14401_v47 }
 0x639   :  { %11796 = vmatprep.mubr.msk.f32.mxu0 %vm276_vm0, %v14513_v35 }
 0x63c   :  { %11797 = vmatmul.mubr.msk.f32.vlgmr.msra.gmra.mxu0 %vm276_vm0, %v14507_v1 }
 0x63d   :  { %11799 = vmatprep.mubr.msk.f32.mxu0 %vm276_vm0, %v14501_v62 }
 0x640   :  { %11800 = vmatmul.mubr.msk.f32.gmra.mxu0 %vm276_vm0, %v14494_v10 }
 0x641   :  { %11802 = vmatprep.mubr.msk.f32.mxu0 %vm276_vm0, %v14487_v26 }
 0x644   :  { %11803 = vmatmul.mubr.msk.f32.gmra.mxu0 %vm276_vm0, %v14478_v51 }
 0x645   :  { %11805 = vmatprep.mubr.msk.f32.mxu0 %vm276_vm0, %v14469_v54 }
 0x648   :  { %11806 = vmatmul.mubr.msk.f32.gmra.mxu0 %vm276_vm0, %v14460_v5 }
 0x649   :  { %11808 = vmatprep.mubr.msk.f32.mxu0 %vm276_vm0, %v14451_v48  ;;  %v17409_v48 = vld [vmem:[#allocation20_spill] sm:$0xff] }
 0x64c   :  { %11809 = vmatmul.mubr.msk.f32.gmra.mxu0 %vm276_vm0, %v14442_v19 }
 0x64d   :  { %11811 = vmatprep.mubr.msk.f32.mxu0 %vm276_vm0, %v14433_v60  ;;  %v10270_v60 = vld [vmem:[%s17267_s5 + $0x70] sm:$0xff] }
 0x64e   :  { %11820 = vmatprep.subr.mxu1 %v10270_v60 }
 0x64f   :  { %11821 = vmatpush3.msra.mxu1 %v10270_v60 }
 0x650   :  { %11812 = vmatmul.mubr.msk.f32.gmra.mxu0 %vm276_vm0, %v14426_v28 }
 0x651   :  { %11814 = vmatprep.mubr.msk.f32.mxu0 %vm276_vm0, %v14419_v0  ;;  %v10269_v0 = vld [vmem:[%s17267_s5 + $0x68] sm:$0xff] }
 0x652   :  { %11822 = vmatprep.subr.mxu1 %v10269_v0 }
 0x653   :  { %11823 = vmatpush3.msra.mxu1 %v10269_v0 }
 0x654   :  { %11815 = vmatmul.mubr.msk.f32.gmra.mxu0 %vm276_vm0, %v14412_v15  ;;  %v10266_v15 = vld [vmem:[%s17267_s5 + $0x50] sm:$0xff] }
 0x655   :  { %11817 = vmatprep.mubr.msk.f32.mxu0 %vm276_vm0, %v14405_v16  ;;  %v10268_v16 = vld [vmem:[%s17267_s5 + $0x60] sm:$0xff] }
 0x656   :  { %11824 = vmatprep.subr.mxu1 %v10268_v16 }
 0x657   :  { %11825 = vmatpush3.msra.mxu1 %v10268_v16 }
 0x658   :  { %11818 = vmatmul.mubr.msk.f32.gmra.mxu0 %vm276_vm0, %v14401_v47  ;;  %v10267_v47 = vld [vmem:[%s17267_s5 + $0x58] sm:$0xff] }
 0x659   :  { %11886 = vmatprep.mubr.msk.f32.mxu0 %vm12513_vm1, %v17405_v22  ;;  %11826 = vmatprep.subr.mxu1 %v10267_v47 }
 0x65a   :  { %11827 = vmatpush3.msra.mxu1 %v10267_v47 }
 0x65b   :  { %11828 = vmatprep.subr.mxu1 %v10266_v15 }
 0x65c   :  { %11829 = vmatpush3.msra.mxu1 %v10266_v15 }
 0x65d   :  { %11889 = vmatprep.subr.mxu1 %v17405_v22 }
 0x6d1   :  { %v3892_v28 = vpop.f32.mrf.mxu0  ;;  %v3972_v19 = vpop.f32.mrf.mxu1 }
 0x6d2   :  { %v3896_v5 = vadd.f32 %v3892_v28, %v17409_v48 }
 0x6d3   :  { %v11704_v54 = vpop.f32.mrf.mxu0  ;;  %v11717_v51 = vpop.f32.mrf.mxu1 }
 0x6d4   :  { %v14734_v26 = vadd.f32 %v3972_v19, %v3896_v5 }
 0x6d6   :  { %17410 = vst [vmem:[#allocation21_spill] sm:$0xff] %v14734_v26 }
 0x6dc   :  { %v11730_v10 = vpop.f32.mrf.mxu0  ;;  %v11764_v62 = vpop.f32.mrf.mxu1 }
 0x6dd   :  { %v4195_v1 = vmul.f32 %v11730_v10, %v17407_v29  ;;  %v4372_v35 = vmul.f32 %v11764_v62, %v17407_v29 }
 0x6de   :  { %v4115_v30 = vpop.f32.mrf.mxu0  ;;  %v4292_v41 = vpop.f32.mrf.mxu1 }
 0x6df   :  { %v14738_v44 = vmax.f32 %v4195_v1, 0.0  ;;  %v4194_v55 = vmul.f32 %v4115_v30, %v17408_v14  ;;  %v4371_v49 = vmul.f32 %v4292_v41, %v17408_v14  ;;  %v14746_v63 = vmax.f32 %v4372_v35, 0.0 }
 0x6e0   :  { %v11733_v32 = vpop.f32.mrf.mxu0  ;;  %v11767_v33 = vpop.f32.mrf.mxu1 }
 0x6e1   :  { %v14742_v40 = vmax.f32 %v4194_v55, 0.0  ;;  %v4410_v43 = vrot.slane %v14738_v44, %v12978_v31  ;;  %v4374_v56 = vmul.f32 %v11767_v33, %v12986_v36  ;;  %v4490_v2 = vrot.slane %v14738_v44, %v12982_v34 }
 0x6e2   :  { %v4125_v61 = vpop.f32.mrf.mxu0  ;;  %v4302_v12 = vpop.f32.mrf.mxu1  ;;  %v4586_v37 = vrot.slane %v14738_v44, %v12989_v38  ;;  %v14756_v3 = vmax.f32 %v4371_v49, 0.0  ;;  %v4197_v53 = vmul.f32 %v11733_v32, %v12986_v36  ;;  %v4682_v57 = vrot.slane %v14738_v44, %v12993_v42 }
 0x6e3   :  { %v4373_v23 = vmul.f32 %v4302_v12, %v17406_v46  ;;  %v4406_v59 = vrot.slane %v14742_v40, %v12978_v31  ;;  %v4486_v20 = vrot.slane %v14742_v40, %v12982_v34  ;;  %v14763_v17 = vmax.f32 %v4374_v56, 0.0 }
 0x6e4   :  { %v11736_v18 = vpop.f32.mrf.mxu0  ;;  %v11770_v13 = vpop.f32.mrf.mxu1  ;;  %v4196_v39 = vmul.f32 %v4125_v61, %v17406_v46  ;;  %v4582_v19 = vrot.slane %v14742_v40, %v12989_v38  ;;  %v4678_v48 = vrot.slane %v14742_v40, %v12993_v42  ;;  %v4548_v62 = vmul.f32 %v4490_v2, %v14746_v63 }
 0x6e5   :  { %v14766_v60 = vmax.f32 %v4373_v23, 0.0  ;;  %v4376_v0 = vmul.f32 %v11770_v13, %v13011_v52  ;;  %v4467_v15 = vmul.f32 %v4406_v59, %v14756_v3  ;;  %v4547_v28 = vmul.f32 %v4486_v20, %v14746_v63 }
 0x6e6   :  { %v4135_v16 = vpop.f32.mrf.mxu0  ;;  %v4312_v47 = vpop.f32.mrf.mxu1  ;;  %v4199_v5 = vmul.f32 %v11736_v18, %v13011_v52  ;;  %v14781_v1 = vmax.f32 %v4197_v53, 0.0  ;;  %v14784_v49 = vmax.f32 %v4196_v39, 0.0  ;;  %v4870_v56 = vrot.slane %v14742_v40, %v17388_v50 }
 0x6e7   :  { %v14776_v54 = vmax.f32 %v4376_v0, 0.0  ;;  %v4198_v51 = vmul.f32 %v4135_v16, %v13037_v7  ;;  %v4375_v10 = vmul.f32 %v4312_v47, %v13037_v7  ;;  %v4563_v41 = vadd.f32 %v4547_v28, %v4467_v15 }
 0x6e8   :  { %v11739_v35 = vpop.f32.mrf.mxu0  ;;  %v11773_v30 = vpop.f32.mrf.mxu1  ;;  %v4643_v55 = vmul.f32 %v4582_v19, %v14766_v60  ;;  %v4739_v59 = vmul.f32 %v4678_v48, %v14763_v17  ;;  %v4774_v53 = vrot.slane %v14742_v40, %v17389_v25  ;;  %v14795_v18 = vmax.f32 %v4199_v5, 0.0 }
 0x6e9   :  { %v14786_v32 = vmax.f32 %v4375_v10, 0.0  ;;  %v4378_v33 = vmul.f32 %v11773_v30, %v13039_v8  ;;  %v4201_v61 = vmul.f32 %v11739_v35, %v13039_v8  ;;  %v14797_v13 = vmax.f32 %v4198_v51, 0.0  ;;  %v17411_v51 = vld [vmem:[#allocation9_spill] sm:$0xff] }
 0x6ea   :  { %v4145_v12 = vpop.f32.mrf.mxu0  ;;  %v4322_v2 = vpop.f32.mrf.mxu1  ;;  %v4659_v23 = vadd.f32 %v4643_v55, %v4563_v41  ;;  %v4931_v39 = vmul.f32 %v4870_v56, %v14776_v54  ;;  %v4468_v28 = vmul.f32 %v4410_v43, %v14756_v3  ;;  %v4644_v19 = vmul.f32 %v4586_v37, %v14766_v60 }
 0x6eb   :  { %v4377_v20 = vmul.f32 %v4322_v2, %v13057_v27  ;;  %v4835_v15 = vmul.f32 %v4774_v53, %v14786_v32  ;;  %v14804_v48 = vmax.f32 %v4378_v33, 0.0  ;;  %v4200_v5 = vmul.f32 %v4145_v12, %v13057_v27  ;;  %v17412_v2 = vld [vmem:[#allocation10_spill] sm:$0xff] }
 0x6ec   :  { %v11742_v0 = vpop.f32.mrf.mxu0  ;;  %v11776_v16 = vpop.f32.mrf.mxu1  ;;  %v4755_v47 = vadd.f32 %v4739_v59, %v4659_v23  ;;  %v4966_v35 = vrot.slane %v14742_v40, %v17411_v51  ;;  %v14811_v30 = vmax.f32 %v4201_v61, 0.0  ;;  %v5062_v23 = vrot.slane %v14742_v40, %v17412_v2 }
 0x6ed   :  { %v14807_v10 = vmax.f32 %v4377_v20, 0.0  ;;  %v4564_v43 = vadd.f32 %v4548_v62, %v4468_v28  ;;  %v4203_v37 = vmul.f32 %v11742_v0, %v17396_v45  ;;  %v4380_v33 = vmul.f32 %v11776_v16, %v17396_v45 }
 0x6ee   :  { %v4155_v41 = vpop.f32.mrf.mxu0  ;;  %v4332_v55 = vpop.f32.mrf.mxu1  ;;  %v4851_v56 = vadd.f32 %v4835_v15, %v4755_v47  ;;  %v4740_v59 = vmul.f32 %v4682_v57, %v14763_v17  ;;  %v4778_v47 = vrot.slane %v14738_v44, %v17389_v25  ;;  %v14822_v15 = vmax.f32 %v4200_v5, 0.0 }
 0x6ef   :  { %v4202_v12 = vmul.f32 %v4155_v41, %v13142_v58  ;;  %v5027_v61 = vmul.f32 %v4966_v35, %v14807_v10  ;;  %v4660_v22 = vadd.f32 %v4644_v19, %v4564_v43  ;;  %v4379_v40 = vmul.f32 %v4332_v55, %v13142_v58 }
 0x6f0   :  { %v11745_v53 = vpop.f32.mrf.mxu0  ;;  %v11779_v20 = vpop.f32.mrf.mxu1  ;;  %v4947_v26 = vadd.f32 %v4931_v39, %v4851_v56  ;;  %v5123_v0 = vmul.f32 %v5062_v23, %v14804_v48  ;;  %v4836_v39 = vmul.f32 %v4778_v47, %v14786_v32  ;;  %v4874_v19 = vrot.slane %v14738_v44, %v17388_v50 }
 0x6f1   :  { %v4205_v62 = vmul.f32 %v11745_v53, %v17400_v21  ;;  %v4756_v41 = vadd.f32 %v4740_v59, %v4660_v22  ;;  %v14830_v35 = vmax.f32 %v4203_v37, 0.0  ;;  %v14832_v56 = vmax.f32 %v4380_v33, 0.0 }
 0x6f2   :  { %v4165_v16 = vpop.f32.mrf.mxu0  ;;  %v4342_v28 = vpop.f32.mrf.mxu1  ;;  %v5043_v57 = vadd.f32 %v5027_v61, %v4947_v26  ;;  %v14834_v5 = vmax.f32 %v4202_v12, 0.0  ;;  %v4382_v55 = vmul.f32 %v11779_v20, %v17400_v21  ;;  %v4932_v26 = vmul.f32 %v4874_v19, %v14776_v54 }
 0x6f3   :  { %v4852_v45 = vadd.f32 %v4836_v39, %v4756_v41  ;;  %v4970_v22 = vrot.slane %v14738_v44, %v17411_v51  ;;  %v14840_v59 = vmax.f32 %v4379_v40, 0.0  ;;  %v14842_v61 = vmax.f32 %v4205_v62, 0.0 }
 0x6f4   :  { %v11748_v43 = vpop.f32.mrf.mxu0  ;;  %v11782_v53 = vpop.f32.mrf.mxu1  ;;  %v5139_v23 = vadd.f32 %v5123_v0, %v5043_v57  ;;  %v4204_v37 = vmul.f32 %v4165_v16, %v17398_v4  ;;  %v4381_v33 = vmul.f32 %v4342_v28, %v17398_v4  ;;  %v5066_v57 = vrot.slane %v14738_v44, %v17412_v2 }
 0x6f5   :  { %v4948_v21 = vadd.f32 %v4932_v26, %v4852_v45  ;;  %v5028_v0 = vmul.f32 %v4970_v22, %v14807_v10  ;;  %v14850_v41 = vmax.f32 %v4382_v55, 0.0  ;;  %v4207_v40 = vmul.f32 %v11748_v43, %v17402_v6 }
 0x6f6   :  { %v4175_v12 = vpop.f32.mrf.mxu0  ;;  %v4352_v47 = vpop.f32.mrf.mxu1  ;;  %v5155_v20 = vmul.f32 %v5139_v23, %v17408_v14  ;;  %v4384_v62 = vmul.f32 %v11782_v53, %v17402_v6  ;;  %v5124_v45 = vmul.f32 %v5066_v57, %v14804_v48  ;;  %v4414_v23 = vrot.slane %v14784_v49, %v12978_v31 }
 0x6f7   :  { %v4206_v16 = vmul.f32 %v4175_v12, %v17401_v24  ;;  %v5044_v19 = vadd.f32 %v5028_v0, %v4948_v21  ;;  %v4494_v44 = vrot.slane %v14784_v49, %v12982_v34  ;;  %v14861_v55 = vmax.f32 %v4204_v37, 0.0 }
 0x6f8   :  { %11830 = vmatprep.mubr.msk.f32.mxu1 %vm276_vm0, %v5155_v20  ;;  %v11751_v28 = vpop.f32.mrf.mxu0  ;;  %v11785_v39 = vpop.f32.mrf.mxu1  ;;  %v14863_v43 = vmax.f32 %v4381_v33, 0.0  ;;  %v4383_v53 = vmul.f32 %v4352_v47, %v17401_v24  ;;  %v4469_v21 = vmul.f32 %v4414_v23, %v14756_v3  ;;  %v4590_v0 = vrot.slane %v14784_v49, %v12989_v38 }
 0x6f9   :  { %v4386_v26 = vmul.f32 %v11785_v39, %v17404_v9  ;;  %v5140_v22 = vadd.f32 %v5124_v45, %v5044_v19  ;;  %v4549_v20 = vmul.f32 %v4494_v44, %v14746_v63  ;;  %v14871_v57 = vmax.f32 %v4207_v40, 0.0 }
 0x6fa   :  { %v4362_v12 = vpop.f32.mrf.mxu1  ;;  %v14873_v14 = vmax.f32 %v4384_v62, 0.0  ;;  %v14875_v37 = vmax.f32 %v4206_v16, 0.0  ;;  %v4185_v33 = vpop.f32.mrf.mxu0  ;;  %v4645_v45 = vmul.f32 %v4590_v0, %v14766_v60  ;;  %v4686_v23 = vrot.slane %v14784_v49, %v12993_v42 }
 0x6fb   :  { %17413 = vst [vmem:[#allocation7_spill] sm:$0xff] %v14871_v57  ;;  %v4385_v47 = vmul.f32 %v4362_v12, %v17403_v11  ;;  %v5156_v39 = vmul.f32 %v5140_v22, %v17407_v29  ;;  %v4565_v19 = vadd.f32 %v4549_v20, %v4469_v21  ;;  %v14882_v44 = vmax.f32 %v4383_v53, 0.0 }
 0x6fc   :  { %17414 = vst [vmem:[#allocation8_spill] sm:$0xff] %v14875_v37  ;;  %v14885_v40 = vmul.f32 %v11751_v28, %v17404_v9  ;;  %v14887_v62 = vmax.f32 %v4386_v26, 0.0  ;;  %v4878_v16 = vrot.slane %v14784_v49, %v17388_v50  ;;  %v14893_v22 = vmul.f32 %v4185_v33, %v17403_v11 }
 0x6fd   :  { %11831 = vmatmul.mubr.msk.f32.vlgmr.msra.gmra.mxu1 %vm276_vm0, %v5156_v39  ;;  %v4661_v12 = vadd.f32 %v4645_v45, %v4565_v19  ;;  %v4741_v21 = vmul.f32 %v4686_v23, %v14763_v17  ;;  %v4782_v53 = vrot.slane %v14784_v49, %v17389_v25  ;;  %v14898_v20 = vmax.f32 %v4385_v47, 0.0 }
 0x6fe   :  { %17415 = vst [vmem:[#allocation20_spill] sm:$0xff] %v14893_v22  ;;  %v4974_v28 = vrot.slane %v14784_v49, %v17411_v51  ;;  %v4418_v26 = vrot.slane %v14781_v1, %v12978_v31  ;;  %v4498_v0 = vrot.slane %v14781_v1, %v12982_v34  ;;  %v5070_v19 = vrot.slane %v14784_v49, %v17412_v2 }
 0x6ff   :  { %v4757_v39 = vadd.f32 %v4741_v21, %v4661_v12  ;;  %v4837_v33 = vmul.f32 %v4782_v53, %v14786_v32  ;;  %v4594_v45 = vrot.slane %v14781_v1, %v12989_v38  ;;  %v4933_v47 = vmul.f32 %v4878_v16, %v14776_v54 }
 0x700   :  { %v4470_v23 = vmul.f32 %v4418_v26, %v14756_v3  ;;  %v4550_v29 = vmul.f32 %v4498_v0, %v14746_v63  ;;  %v4690_v9 = vrot.slane %v14781_v1, %v12993_v42  ;;  %v5029_v12 = vmul.f32 %v4974_v28, %v14807_v10 }
 0x701   :  { %v4853_v11 = vadd.f32 %v4837_v33, %v4757_v39  ;;  %v5125_v21 = vmul.f32 %v5070_v19, %v14804_v48  ;;  %v4786_v49 = vrot.slane %v14781_v1, %v17389_v25  ;;  %v4646_v6 = vmul.f32 %v4594_v45, %v14766_v60 }
 0x702   :  { %v4566_v53 = vadd.f32 %v4550_v29, %v4470_v23  ;;  %v4882_v16 = vrot.slane %v14781_v1, %v17388_v50  ;;  %v4978_v26 = vrot.slane %v14781_v1, %v17411_v51  ;;  %v4742_v24 = vmul.f32 %v4690_v9, %v14763_v17 }
 0x703   :  { %v4949_v0 = vadd.f32 %v4933_v47, %v4853_v11  ;;  %v4838_v39 = vmul.f32 %v4786_v49, %v14786_v32  ;;  %v4422_v28 = vrot.slane %v14797_v13, %v12978_v31  ;;  %v5074_v29 = vrot.slane %v14781_v1, %v17412_v2 }
 0x704   :  { %v4662_v33 = vadd.f32 %v4646_v6, %v4566_v53  ;;  %v4502_v19 = vrot.slane %v14797_v13, %v12982_v34  ;;  %v4598_v45 = vrot.slane %v14797_v13, %v12989_v38  ;;  %v4694_v9 = vrot.slane %v14797_v13, %v12993_v42 }
 0x705   :  { %v5045_v23 = vadd.f32 %v5029_v12, %v4949_v0  ;;  %v4471_v11 = vmul.f32 %v4422_v28, %v14756_v3  ;;  %v4790_v47 = vrot.slane %v14797_v13, %v17389_v25  ;;  %v4934_v6 = vmul.f32 %v4882_v16, %v14776_v54 }
 0x706   :  { %v4758_v49 = vadd.f32 %v4742_v24, %v4662_v33  ;;  %v5030_v1 = vmul.f32 %v4978_v26, %v14807_v10  ;;  %v4551_v53 = vmul.f32 %v4502_v19, %v14746_v63  ;;  %v5126_v4 = vmul.f32 %v5074_v29, %v14804_v48 }
 0x707   :  { %v5141_v57 = vadd.f32 %v5125_v21, %v5045_v23  ;;  %v4647_v12 = vmul.f32 %v4598_v45, %v14766_v60  ;;  %v4886_v0 = vrot.slane %v14797_v13, %v17388_v50  ;;  %v4743_v22 = vmul.f32 %v4694_v9, %v14763_v17 }
 0x708   :  { %v4854_v28 = vadd.f32 %v4838_v39, %v4758_v49  ;;  %v4567_v37 = vadd.f32 %v4551_v53, %v4471_v11  ;;  %v4839_v24 = vmul.f32 %v4790_v47, %v14786_v32  ;;  %v5078_v26 = vrot.slane %v14797_v13, %v17412_v2 }
 0x709   :  { %v5157_v16 = vmul.f32 %v5141_v57, %v17406_v46  ;;  %v4426_v21 = vrot.slane %v14795_v18, %v12978_v31  ;;  %v4506_v33 = vrot.slane %v14795_v18, %v12982_v34  ;;  %v4982_v39 = vrot.slane %v14797_v13, %v17411_v51 }
 0x70a   :  { %v4950_v29 = vadd.f32 %v4934_v6, %v4854_v28  ;;  %v4663_v19 = vadd.f32 %v4647_v12, %v4567_v37  ;;  %v4602_v45 = vrot.slane %v14795_v18, %v12989_v38  ;;  %v4698_v11 = vrot.slane %v14795_v18, %v12993_v42 }
 0x70b   :  { %11833 = vmatprep.mubr.msk.f32.mxu1 %vm276_vm0, %v5157_v16  ;;  %v4472_v57 = vmul.f32 %v4426_v21, %v14756_v3  ;;  %v4552_v23 = vmul.f32 %v4506_v33, %v14746_v63  ;;  %v4794_v9 = vrot.slane %v14795_v18, %v17389_v25  ;;  %v4935_v49 = vmul.f32 %v4886_v0, %v14776_v54 }
 0x70c   :  { %v5046_v47 = vadd.f32 %v5030_v1, %v4950_v29  ;;  %v4759_v37 = vadd.f32 %v4743_v22, %v4663_v19  ;;  %v5031_v13 = vmul.f32 %v4982_v39, %v14807_v10  ;;  %v5127_v6 = vmul.f32 %v5078_v26, %v14804_v48 }
 0x70d   :  { %v4568_v53 = vadd.f32 %v4552_v23, %v4472_v57  ;;  %v4648_v12 = vmul.f32 %v4602_v45, %v14766_v60  ;;  %v4890_v28 = vrot.slane %v14795_v18, %v17388_v50  ;;  %v4744_v33 = vmul.f32 %v4698_v11, %v14763_v17 }
 0x70e   :  { %v5142_v16 = vadd.f32 %v5126_v4, %v5046_v47  ;;  %v4855_v21 = vadd.f32 %v4839_v24, %v4759_v37  ;;  %v4840_v46 = vmul.f32 %v4794_v9, %v14786_v32  ;;  %v4986_v22 = vrot.slane %v14795_v18, %v17411_v51 }
 0x70f   :  { %v4664_v1 = vadd.f32 %v4648_v12, %v4568_v53  ;;  %v4430_v0 = vrot.slane %v14822_v15, %v12978_v31  ;;  %v4510_v26 = vrot.slane %v14822_v15, %v12982_v34  ;;  %v5082_v4 = vrot.slane %v14795_v18, %v17412_v2 }
 0x710   :  { %v5158_v29 = vmul.f32 %v5142_v16, %v12986_v36  ;;  %v4951_v19 = vadd.f32 %v4935_v49, %v4855_v21  ;;  %v4606_v24 = vrot.slane %v14822_v15, %v12989_v38  ;;  %v4702_v23 = vrot.slane %v14822_v15, %v12993_v42 }
 0x711   :  { %v4760_v39 = vadd.f32 %v4744_v33, %v4664_v1  ;;  %v4473_v45 = vmul.f32 %v4430_v0, %v14756_v3  ;;  %v4553_v57 = vmul.f32 %v4510_v26, %v14746_v63  ;;  %v4936_v9 = vmul.f32 %v4890_v28, %v14776_v54 }
 0x712   :  { %11834 = vmatmul.mubr.msk.f32.gmra.mxu1 %vm276_vm0, %v5158_v29  ;;  %v5047_v11 = vadd.f32 %v5031_v13, %v4951_v19  ;;  %v5032_v47 = vmul.f32 %v4986_v22, %v14807_v10  ;;  %v4798_v18 = vrot.slane %v14822_v15, %v17389_v25  ;;  %v5128_v49 = vmul.f32 %v5082_v4, %v14804_v48 }
 0x713   :  { %v4856_v37 = vadd.f32 %v4840_v46, %v4760_v39  ;;  %v4569_v53 = vadd.f32 %v4553_v57, %v4473_v45  ;;  %v4649_v12 = vmul.f32 %v4606_v24, %v14766_v60  ;;  %v4745_v21 = vmul.f32 %v4702_v23, %v14763_v17 }
 0x714   :  { %v5143_v16 = vadd.f32 %v5127_v6, %v5047_v11  ;;  %v4894_v33 = vrot.slane %v14822_v15, %v17388_v50  ;;  %v4990_v13 = vrot.slane %v14822_v15, %v17411_v51  ;;  %v5086_v22 = vrot.slane %v14822_v15, %v17412_v2 }
 0x715   :  { %v4952_v28 = vadd.f32 %v4936_v9, %v4856_v37  ;;  %v4665_v1 = vadd.f32 %v4649_v12, %v4569_v53  ;;  %v4434_v46 = vrot.slane %v14811_v30, %v12978_v31  ;;  %v4841_v6 = vmul.f32 %v4798_v18, %v14786_v32 }
 0x716   :  { %v5159_v0 = vmul.f32 %v5143_v16, %v13037_v7  ;;  %v4514_v26 = vrot.slane %v14811_v30, %v12982_v34  ;;  %v4610_v29 = vrot.slane %v14811_v30, %v12989_v38  ;;  %v4706_v15 = vrot.slane %v14811_v30, %v12993_v42 }
 0x717   :  { %v5048_v19 = vadd.f32 %v5032_v47, %v4952_v28  ;;  %v4761_v4 = vadd.f32 %v4745_v21, %v4665_v1  ;;  %v4474_v24 = vmul.f32 %v4434_v46, %v14756_v3  ;;  %v4937_v39 = vmul.f32 %v4894_v33, %v14776_v54 }
 0x718   :  { %11836 = vmatprep.mubr.msk.f32.mxu1 %vm276_vm0, %v5159_v0  ;;  %v5033_v45 = vmul.f32 %v4990_v13, %v14807_v10  ;;  %v4554_v57 = vmul.f32 %v4514_v26, %v14746_v63  ;;  %v4802_v23 = vrot.slane %v14811_v30, %v17389_v25  ;;  %v5129_v47 = vmul.f32 %v5086_v22, %v14804_v48 }
 0x719   :  { %v5144_v11 = vadd.f32 %v5128_v49, %v5048_v19  ;;  %v4857_v9 = vadd.f32 %v4841_v6, %v4761_v4  ;;  %v4898_v3 = vrot.slane %v14811_v30, %v17388_v50  ;;  %v4650_v37 = vmul.f32 %v4610_v29, %v14766_v60 }
 0x71a   :  { %v4570_v18 = vadd.f32 %v4554_v57, %v4474_v24  ;;  %v4746_v53 = vmul.f32 %v4706_v15, %v14763_v17  ;;  %v4994_v12 = vrot.slane %v14811_v30, %v17411_v51  ;;  %v5090_v49 = vrot.slane %v14811_v30, %v17412_v2 }
 0x71b   :  { %v5160_v63 = vmul.f32 %v5144_v11, %v13011_v52  ;;  %v4953_v16 = vadd.f32 %v4937_v39, %v4857_v9  ;;  %v4438_v21 = vrot.slane %v14834_v5, %v12978_v31  ;;  %v4842_v13 = vmul.f32 %v4802_v23, %v14786_v32 }
 0x71c   :  { %v4666_v33 = vadd.f32 %v4650_v37, %v4570_v18  ;;  %v4518_v60 = vrot.slane %v14834_v5, %v12982_v34  ;;  %v4614_v17 = vrot.slane %v14834_v5, %v12989_v38  ;;  %v4938_v1 = vmul.f32 %v4898_v3, %v14776_v54 }
 0x71d   :  { %11837 = vmatmul.mubr.msk.f32.gmra.mxu1 %vm276_vm0, %v5160_v63  ;;  %v5049_v28 = vadd.f32 %v5033_v45, %v4953_v16  ;;  %v4475_v22 = vmul.f32 %v4438_v21, %v14840_v59  ;;  %v4710_v30 = vrot.slane %v14834_v5, %v12993_v42  ;;  %v4806_v6 = vrot.slane %v14834_v5, %v17389_v25 }
 0x71e   :  { %v4762_v46 = vadd.f32 %v4746_v53, %v4666_v33  ;;  %v4555_v0 = vmul.f32 %v4518_v60, %v14832_v56  ;;  %v4651_v32 = vmul.f32 %v4614_v17, %v14863_v43  ;;  %v5034_v29 = vmul.f32 %v4994_v12, %v14807_v10 }
 0x71f   :  { %v5145_v26 = vadd.f32 %v5129_v47, %v5049_v28  ;;  %v5130_v19 = vmul.f32 %v5090_v49, %v14804_v48  ;;  %v4902_v54 = vrot.slane %v14834_v5, %v17388_v50  ;;  %v4747_v15 = vmul.f32 %v4710_v30, %v14850_v41 }
 0x720   :  { %v4858_v4 = vadd.f32 %v4842_v13, %v4762_v46  ;;  %v4571_v24 = vadd.f32 %v4555_v0, %v4475_v22  ;;  %v4843_v39 = vmul.f32 %v4806_v6, %v14882_v44  ;;  %v4998_v57 = vrot.slane %v14834_v5, %v17411_v51 }
 0x721   :  { %v5161_v45 = vmul.f32 %v5145_v26, %v13057_v27  ;;  %v4442_v23 = vrot.slane %v14830_v35, %v12978_v31  ;;  %v4522_v48 = vrot.slane %v14830_v35, %v12982_v34  ;;  %v4939_v9 = vmul.f32 %v4902_v54, %v14873_v14 }
 0x722   :  { %v4954_v10 = vadd.f32 %v4938_v1, %v4858_v4  ;;  %v4667_v11 = vadd.f32 %v4651_v32, %v4571_v24  ;;  %v4618_v47 = vrot.slane %v14830_v35, %v12989_v38  ;;  %v5094_v3 = vrot.slane %v14834_v5, %v17412_v2 }
 0x723   :  { %11839 = vmatprep.mubr.msk.f32.mxu1 %vm276_vm0, %v5161_v45  ;;  %v4476_v18 = vmul.f32 %v4442_v23, %v14840_v59  ;;  %v4556_v37 = vmul.f32 %v4522_v48, %v14832_v56  ;;  %v4714_v53 = vrot.slane %v14830_v35, %v12993_v42  ;;  %v4810_v49 = vrot.slane %v14830_v35, %v17389_v25 }
 0x724   :  { %v5050_v12 = vadd.f32 %v5034_v29, %v4954_v10  ;;  %v4763_v63 = vadd.f32 %v4747_v15, %v4667_v11  ;;  %v4652_v16 = vmul.f32 %v4618_v47, %v14863_v43  ;;  %v5035_v21 = vmul.f32 %v4998_v57, %v14898_v20 }
 0x725   :  { %v5131_v33 = vmul.f32 %v5094_v3, %v14887_v62  ;;  %v4572_v13 = vadd.f32 %v4556_v37, %v4476_v18  ;;  %v4906_v5 = vrot.slane %v14830_v35, %v17388_v50  ;;  %v4748_v28 = vmul.f32 %v4714_v53, %v14850_v41 }
 0x726   :  { %v5146_v60 = vadd.f32 %v5130_v19, %v5050_v12  ;;  %v4859_v17 = vadd.f32 %v4843_v39, %v4763_v63  ;;  %v4844_v1 = vmul.f32 %v4810_v49, %v14882_v44  ;;  %v5002_v30 = vrot.slane %v14830_v35, %v17411_v51 }
 0x727   :  { %v4668_v22 = vadd.f32 %v4652_v16, %v4572_v13  ;;  %v4446_v46 = vrot.slane %v14861_v55, %v12978_v31  ;;  %v4526_v0 = vrot.slane %v14861_v55, %v12982_v34  ;;  %v5098_v26 = vrot.slane %v14830_v35, %v17412_v2 }
 0x728   :  { %v5162_v32 = vmul.f32 %v5146_v60, %v13039_v8  ;;  %v4955_v6 = vadd.f32 %v4939_v9, %v4859_v17  ;;  %v4622_v29 = vrot.slane %v14861_v55, %v12989_v38  ;;  %v4718_v24 = vrot.slane %v14861_v55, %v12993_v42 }
 0x729   :  { %v4764_v19 = vadd.f32 %v4748_v28, %v4668_v22  ;;  %v4477_v54 = vmul.f32 %v4446_v46, %v14840_v59  ;;  %v4557_v4 = vmul.f32 %v4526_v0, %v14832_v56  ;;  %v4940_v39 = vmul.f32 %v4906_v5, %v14873_v14  ;;  %v17416_v28 = vld [vmem:[#allocation20_spill] sm:$0xff] }
 0x72a   :  { %11840 = vmatmul.mubr.msk.f32.gmra.mxu1 %vm276_vm0, %v5162_v32  ;;  %v5051_v15 = vadd.f32 %v5035_v21, %v4955_v6  ;;  %v5036_v45 = vmul.f32 %v5002_v30, %v14898_v20  ;;  %v5132_v35 = vmul.f32 %v5098_v26, %v14887_v62  ;;  %v4653_v48 = vmul.f32 %v4622_v29, %v14863_v43 }
 0x72b   :  { %v4860_v57 = vadd.f32 %v4844_v1, %v4764_v19  ;;  %v4573_v23 = vadd.f32 %v4557_v4, %v4477_v54  ;;  %v4814_v10 = vrot.slane %v14861_v55, %v17389_v25  ;;  %v4749_v9 = vmul.f32 %v4718_v24, %v14850_v41  ;;  %v17417_v19 = vld [vmem:[#allocation13_spill] sm:$0xff] }
 0x72c   :  { %v5147_v11 = vadd.f32 %v5131_v33, %v5051_v15  ;;  %v4910_v47 = vrot.slane %v14861_v55, %v17388_v50  ;;  %v5006_v3 = vrot.slane %v14861_v55, %v17411_v51  ;;  %v4450_v12 = vrot.slane %v14842_v61, %v12978_v31  ;;  %v17418_v15 = vld [vmem:[#allocation8_spill] sm:$0xff] }
 0x72d   :  { %v4956_v18 = vadd.f32 %v4940_v39, %v4860_v57  ;;  %v4669_v37 = vadd.f32 %v4653_v48, %v4573_v23  ;;  %v4845_v53 = vmul.f32 %v4814_v10, %v14882_v44  ;;  %v5102_v16 = vrot.slane %v14861_v55, %v17412_v2 }
 0x72e   :  { %v5163_v63 = vmul.f32 %v5147_v11, %v13142_v58  ;;  %v4530_v49 = vrot.slane %v14842_v61, %v12982_v34  ;;  %v4626_v21 = vrot.slane %v14842_v61, %v12989_v38  ;;  %v4478_v5 = vmul.f32 %v4450_v12, %v14840_v59 }
 0x72f   :  { %v5052_v33 = vadd.f32 %v5036_v45, %v4956_v18  ;;  %v4765_v13 = vadd.f32 %v4749_v9, %v4669_v37  ;;  %v4722_v60 = vrot.slane %v14842_v61, %v12993_v42  ;;  %v15120_v17 = vmax.f32 %v14885_v40, 0.0 }
 0x730   :  { %v15123_v1 = vmax.f32 %v17416_v28, 0.0  ;;  %11842 = vmatprep.mubr.msk.f32.mxu1 %vm276_vm0, %v5163_v63  ;;  %v4941_v55 = vmul.f32 %v4910_v47, %v14873_v14  ;;  %v4558_v22 = vmul.f32 %v4530_v49, %v14832_v56  ;;  %v5037_v0 = vmul.f32 %v5006_v3, %v14898_v20  ;;  %v17420_v28 = vld [vmem:[#allocation7_spill] sm:$0xff] }
 0x731   :  { %v5148_v30 = vadd.f32 %v5132_v35, %v5052_v33  ;;  %v4861_v46 = vadd.f32 %v4845_v53, %v4765_v13  ;;  %v5133_v32 = vmul.f32 %v5102_v16, %v14887_v62  ;;  %v4654_v26 = vmul.f32 %v4626_v21, %v14863_v43  ;;  %v17419_v13 = vld [vmem:[#allocation14_spill] sm:$0xff] }
 0x732   :  { %v4574_v6 = vadd.f32 %v4558_v22, %v4478_v5  ;;  %v4818_v40 = vrot.slane %v14842_v61, %v17389_v25  ;;  %v4914_v29 = vrot.slane %v14842_v61, %v17388_v50  ;;  %v4750_v24 = vmul.f32 %v4722_v60, %v14850_v41 }
 0x733   :  { %v5164_v54 = vmul.f32 %v5148_v30, %v17417_v19  ;;  %v4957_v4 = vadd.f32 %v4941_v55, %v4861_v46  ;;  %v4454_v39 = vrot.slane %v17418_v15, %v12978_v31  ;;  %v5010_v35 = vrot.slane %v14842_v61, %v17411_v51 }
 0x734   :  { %v4670_v45 = vadd.f32 %v4654_v26, %v4574_v6  ;;  %v4534_v57 = vrot.slane %v17418_v15, %v12982_v34  ;;  %v4630_v23 = vrot.slane %v17418_v15, %v12989_v38  ;;  %v5106_v10 = vrot.slane %v14842_v61, %v17412_v2 }
 0x735   :  { %11843 = vmatmul.mubr.msk.f32.gmra.mxu1 %vm276_vm0, %v5164_v54  ;;  %v5053_v48 = vadd.f32 %v5037_v0, %v4957_v4  ;;  %v4479_v11 = vmul.f32 %v4454_v39, %v14840_v59  ;;  %v4726_v9 = vrot.slane %v17418_v15, %v12993_v42  ;;  %v4846_v3 = vmul.f32 %v4818_v40, %v14882_v44 }
 0x736   :  { %v4766_v47 = vadd.f32 %v4750_v24, %v4670_v45  ;;  %v4942_v18 = vmul.f32 %v4914_v29, %v14873_v14  ;;  %v4559_v37 = vmul.f32 %v4534_v57, %v14832_v56  ;;  %v5038_v12 = vmul.f32 %v5010_v35, %v14898_v20 }
 0x737   :  { %v5149_v53 = vadd.f32 %v5133_v32, %v5053_v48  ;;  %v5134_v63 = vmul.f32 %v5106_v10, %v14887_v62  ;;  %v4822_v61 = vrot.slane %v17418_v15, %v17389_v25  ;;  %v4655_v21 = vmul.f32 %v4630_v23, %v14863_v43 }
 0x738   :  { %v4862_v16 = vadd.f32 %v4846_v3, %v4766_v47  ;;  %v4575_v49 = vadd.f32 %v4559_v37, %v4479_v11  ;;  %v4918_v33 = vrot.slane %v17418_v15, %v17388_v50  ;;  %v4751_v60 = vmul.f32 %v4726_v9, %v14850_v41  ;;  %v17421_v37 = vld [vmem:[#allocation15_spill] sm:$0xff] }
 0x739   :  { %v5165_v5 = vmul.f32 %v5149_v53, %v17419_v13  ;;  %v4458_v55 = vrot.slane %v17420_v28, %v12978_v31  ;;  %v4538_v22 = vrot.slane %v17420_v28, %v12982_v34  ;;  %v5110_v0 = vrot.slane %v17418_v15, %v17412_v2 }
 0x73a   :  { %v4958_v30 = vadd.f32 %v4942_v18, %v4862_v16  ;;  %v4671_v46 = vadd.f32 %v4655_v21, %v4575_v49  ;;  %v4634_v32 = vrot.slane %v17420_v28, %v12989_v38  ;;  %v5014_v6 = vrot.slane %v17418_v15, %v17411_v51 }
 0x73b   :  { %11845 = vmatprep.mubr.msk.f32.mxu1 %vm276_vm0, %v5165_v5  ;;  %v4480_v26 = vmul.f32 %v4458_v55, %v14840_v59  ;;  %v4560_v40 = vmul.f32 %v4538_v22, %v14832_v56  ;;  %v4730_v29 = vrot.slane %v17420_v28, %v12993_v42  ;;  %v4847_v24 = vmul.f32 %v4822_v61, %v14882_v44 }
 0x73c   :  { %v5054_v54 = vadd.f32 %v5038_v12, %v4958_v30  ;;  %v4767_v4 = vadd.f32 %v4751_v60, %v4671_v46  ;;  %v4826_v39 = vrot.slane %v17420_v28, %v17389_v25  ;;  %v4943_v45 = vmul.f32 %v4918_v33, %v14873_v14 }
 0x73d   :  { %v5039_v35 = vmul.f32 %v5014_v6, %v14898_v20  ;;  %v4576_v57 = vadd.f32 %v4560_v40, %v4480_v26  ;;  %v4656_v15 = vmul.f32 %v4634_v32, %v14863_v43  ;;  %v5135_v10 = vmul.f32 %v5110_v0, %v14887_v62 }
 0x73e   :  { %v5150_v23 = vadd.f32 %v5134_v63, %v5054_v54  ;;  %v4863_v48 = vadd.f32 %v4847_v24, %v4767_v4  ;;  %v4922_v11 = vrot.slane %v17420_v28, %v17388_v50  ;;  %v4752_v47 = vmul.f32 %v4730_v29, %v14850_v41 }
 0x73f   :  { %v4672_v9 = vadd.f32 %v4656_v15, %v4576_v57  ;;  %v4462_v3 = vrot.slane %v15123_v1, %v12978_v31  ;;  %v4542_v18 = vrot.slane %v15123_v1, %v12982_v34  ;;  %v4848_v63 = vmul.f32 %v4826_v39, %v14882_v44  ;;  %v17422_v39 = vld [vmem:[#allocation16_spill] sm:$0xff] }
 0x740   :  { %v5166_v53 = vmul.f32 %v5150_v23, %v17421_v37  ;;  %v4959_v12 = vadd.f32 %v4943_v45, %v4863_v48  ;;  %v4638_v61 = vrot.slane %v15123_v1, %v12989_v38  ;;  %v4734_v33 = vrot.slane %v15123_v1, %v12993_v42 }
 0x741   :  { %v4768_v16 = vadd.f32 %v4752_v47, %v4672_v9  ;;  %v4481_v49 = vmul.f32 %v4462_v3, %v14840_v59  ;;  %v4561_v21 = vmul.f32 %v4542_v18, %v14832_v56  ;;  %v4944_v60 = vmul.f32 %v4922_v11, %v14873_v14 }
 0x742   :  { %11846 = vmatmul.mubr.msk.f32.gmra.mxu1 %vm276_vm0, %v5166_v53  ;;  %v5055_v5 = vadd.f32 %v5039_v35, %v4959_v12  ;;  %v5018_v55 = vrot.slane %v17420_v28, %v17411_v51  ;;  %v5114_v22 = vrot.slane %v17420_v28, %v17412_v2  ;;  %v4657_v0 = vmul.f32 %v4638_v61, %v14863_v43 }
 0x743   :  { %v4864_v30 = vadd.f32 %v4848_v63, %v4768_v16  ;;  %v4577_v46 = vadd.f32 %v4561_v21, %v4481_v49  ;;  %v4830_v32 = vrot.slane %v15123_v1, %v17389_v25  ;;  %v4926_v29 = vrot.slane %v15123_v1, %v17388_v50  ;;  %v17423_v16 = vld [vmem:[#allocation17_spill] sm:$0xff] }
 0x744   :  { %v5151_v6 = vadd.f32 %v5135_v10, %v5055_v5  ;;  %v5040_v26 = vmul.f32 %v5018_v55, %v14898_v20  ;;  %v5136_v40 = vmul.f32 %v5114_v22, %v14887_v62  ;;  %v4753_v24 = vmul.f32 %v4734_v33, %v14850_v41 }
 0x745   :  { %v4960_v54 = vadd.f32 %v4944_v60, %v4864_v30  ;;  %v4673_v4 = vadd.f32 %v4657_v0, %v4577_v46  ;;  %v4466_v28 = vrot.slane %v15120_v17, %v12978_v31  ;;  %v5022_v35 = vrot.slane %v15123_v1, %v17411_v51 }
 0x746   :  { %v5167_v45 = vmul.f32 %v5151_v6, %v17422_v39  ;;  %v4546_v57 = vrot.slane %v15120_v17, %v12982_v34  ;;  %v4642_v15 = vrot.slane %v15120_v17, %v12989_v38  ;;  %v4849_v10 = vmul.f32 %v4830_v32, %v14882_v44  ;;  %v17424_v6 = vld [vmem:[#allocation18_spill] sm:$0xff] }
 0x747   :  { %v5056_v23 = vadd.f32 %v5040_v26, %v4960_v54  ;;  %v4769_v48 = vadd.f32 %v4753_v24, %v4673_v4  ;;  %v4482_v11 = vmul.f32 %v4466_v28, %v14840_v59  ;;  %v4738_v47 = vrot.slane %v15120_v17, %v12993_v42  ;;  %v17425_v24 = vld [vmem:[#allocation19_spill] sm:$0xff] }
 0x748   :  { %11848 = vmatprep.mubr.msk.f32.mxu1 %vm276_vm0, %v5167_v45  ;;  %v4562_v9 = vmul.f32 %v4546_v57, %v14832_v56  ;;  %v4945_v53 = vmul.f32 %v4926_v29, %v14873_v14  ;;  %v5118_v12 = vrot.slane %v15123_v1, %v17412_v2  ;;  %v4658_v61 = vmul.f32 %v4642_v15, %v14863_v43 }
 0x749   :  { %v5152_v3 = vadd.f32 %v5136_v40, %v5056_v23  ;;  %v4865_v18 = vadd.f32 %v4849_v10, %v4769_v48  ;;  %v4834_v59 = vrot.slane %v15120_v17, %v17389_v25  ;;  %v5041_v56 = vmul.f32 %v5022_v35, %v14898_v20 }
 0x74a   :  { %v4578_v63 = vadd.f32 %v4562_v9, %v4482_v11  ;;  %v4754_v5 = vmul.f32 %v4738_v47, %v14850_v41  ;;  %v4930_v60 = vrot.slane %v15120_v17, %v17388_v50  ;;  %v5137_v55 = vmul.f32 %v5118_v12, %v14887_v62 }
 0x74b   :  { %v5168_v49 = vmul.f32 %v5152_v3, %v17423_v16  ;;  %v4961_v21 = vadd.f32 %v4945_v53, %v4865_v18  ;;  %v4850_v22 = vmul.f32 %v4834_v59, %v14882_v44  ;;  %v5026_v30 = vrot.slane %v15120_v17, %v17411_v51 }
 0x74c   :  { %v4674_v33 = vadd.f32 %v4658_v61, %v4578_v63  ;;  %v4946_v32 = vmul.f32 %v4930_v60, %v14873_v14  ;;  %v5122_v41 = vrot.slane %v15120_v17, %v17412_v2  ;;  %v17426_v45 = vmov 0.0   ;;  %v15256_v14 = vpop.f32.mrf.mxu0 }
 0x74d   :  { %11849 = vmatmul.mubr.msk.f32.gmra.mxu1 %vm276_vm0, %v5168_v49  ;;  %v5057_v1 = vadd.f32 %v5041_v56, %v4961_v21  ;;  %v5042_v29 = vmul.f32 %v5026_v30, %v14898_v20 }
 0x74e   :  { %v4770_v43 = vadd.f32 %v4754_v5, %v4674_v33  ;;  %v5138_v44 = vmul.f32 %v5122_v41, %v14887_v62  ;;  %v15260_v35 = vpop.f32.mrf.mxu0 }
 0x74f   :  { %v5153_v46 = vadd.f32 %v5137_v55, %v5057_v1 }
 0x750   :  { %v4866_v0 = vadd.f32 %v4850_v22, %v4770_v43  ;;  %v15264_v57 = vpop.f32.mrf.mxu0 }
 0x751   :  { %v5169_v26 = vmul.f32 %v5153_v46, %v17424_v6 }
 0x752   :  { %v4962_v40 = vadd.f32 %v4946_v32, %v4866_v0  ;;  %v15268_v62 = vpop.f32.mrf.mxu0 }
 0x753   :  { %11851 = vmatprep.mubr.msk.f32.mxu1 %vm276_vm0, %v5169_v26 }
 0x754   :  { %v5058_v54 = vadd.f32 %v5042_v29, %v4962_v40  ;;  %v15272_v48 = vpop.f32.mrf.mxu0 }
 0x756   :  { %v5154_v4 = vadd.f32 %v5138_v44, %v5058_v54  ;;  %v15276_v11 = vpop.f32.mrf.mxu0 }
 0x758   :  { %v5170_v28 = vmul.f32 %v5154_v4, %v17425_v24  ;;  %v11807_v47 = vpop.f32.mrf.mxu0 }
 0x75a   :  { %11852 = vmatmul.mubr.msk.f32.gmra.mxu1 %vm276_vm0, %v5170_v28  ;;  %v5267_v18 = vpop.f32.mrf.mxu0 }
 0x75b   :  { %11921 = vmatprep.mubr.msk.f32.mxu1 %vm12513_vm1, %v17426_v45 }
 0x75c   :  { %v11810_v12 = vpop.f32.mrf.mxu0 }
 0x75e   :  { %v5277_v61 = vpop.f32.mrf.mxu0 }
 0x760   :  { %v11813_v49 = vpop.f32.mrf.mxu0 }
 0x762   :  { %v5287_v56 = vpop.f32.mrf.mxu0 }
 0x764   :  { %v11816_v5 = vpop.f32.mrf.mxu0 }
 0x766   :  { %v5297_v1 = vpop.f32.mrf.mxu0 }
 0x768   :  { %v11819_v43 = vpop.f32.mrf.mxu0 }
 0x76a   :  { %v5307_v0 = vpop.f32.mrf.mxu0 }
 0x7bd   :  { %v15258_v17 = vpop.f32.mrf.mxu1 }
 0x7bf   :  { %v15262_v20 = vpop.f32.mrf.mxu1 }
 0x7d2   :  { %v15266_v15 = vpop.f32.mrf.mxu1 }
 0x7d4   :  { %v15270_v23 = vpop.f32.mrf.mxu1 }
 0x7dd   :  { %v15274_v10 = vpop.f32.mrf.mxu1 }
 0x7df   :  { %v15278_v9 = vpop.f32.mrf.mxu1 }
 0x7ea   :  { %v11841_v3 = vpop.f32.mrf.mxu1 }
 0x7ec   :  { %v5460_v53 = vpop.f32.mrf.mxu1 }
 0x7f5   :  { %v11844_v63 = vpop.f32.mrf.mxu1 }
 0x7f7   :  { %v5470_v59 = vpop.f32.mrf.mxu1 }
 0x802   :  { %v11847_v21 = vpop.f32.mrf.mxu1 }
 0x803   :  { %v5486_v29 = vadd.f32 %v11847_v21, %v11813_v49  ;;  %v5476_v49 = vadd.f32 %v11844_v63, %v11810_v12  ;;  %v5466_v12 = vadd.f32 %v11841_v3, %v11807_v47  ;;  %v5456_v47 = vadd.f32 %v15274_v10, %v15272_v48 }
 0x804   :  { %v5480_v33 = vpop.f32.mrf.mxu1  ;;  %v5446_v48 = vadd.f32 %v15266_v15, %v15264_v57  ;;  %v5436_v57 = vadd.f32 %v15258_v17, %v15256_v14  ;;  %v17428_v14 = vld [vmem:[#allocation6_spill] sm:$0xff] }
 0x805   :  { %v5481_v28 = vadd.f32 %v5480_v33, %v5287_v56  ;;  %v5520_v21 = vmul.f32 %v5486_v29, %v17421_v37  ;;  %v5471_v56 = vadd.f32 %v5470_v59, %v5277_v61  ;;  %v5518_v63 = vmul.f32 %v5476_v49, %v17417_v19  ;;  %v12483_v49 = vld [vmem:[%s17386_s26 + $0x2] sm:$0x3] }
 0x806   :  { %v5516_v3 = vmul.f32 %v5466_v12, %v13039_v8  ;;  %v5514_v10 = vmul.f32 %v5456_v47, %v13011_v52  ;;  %v5512_v15 = vmul.f32 %v5446_v48, %v12986_v36  ;;  %v5510_v17 = vmul.f32 %v5436_v57, %v17428_v14  ;;  %v10348_v12 = vld [vmem:[%s17270_s8 + $0x60] sm:$0xff]  ;;  %v10346_v47 = vld [vmem:[%s17270_s8 + $0x50] sm:$0xff] }
 0x807   :  { %v5519_v33 = vmul.f32 %v5481_v28, %v17419_v13  ;;  %v5517_v61 = vmul.f32 %v5471_v56, %v13142_v58  ;;  %v12482_v28 = vld [vmem:[%s17386_s26] sm:$0x3]  ;;  %v10349_v56 = vld [vmem:[%s17270_s8 + $0x68] sm:$0xff] }
 0x809   :  { %v15314_v59 = vmax.f32 %v5519_v33, 0.0  ;;  %v10342_v33 = vld [vmem:[%s17269_s7 + $0x60] sm:$0xff] }
 0x80d   :  { %v11850_v60 = vpop.f32.mrf.mxu1 }
 0x80e   :  { %v5496_v30 = vadd.f32 %v11850_v60, %v11816_v5 }
 0x80f   :  { %v5490_v55 = vpop.f32.mrf.mxu1 }
 0x810   :  { %v5491_v41 = vadd.f32 %v5490_v55, %v5297_v1  ;;  %v5522_v54 = vmul.f32 %v5496_v30, %v17423_v16  ;;  %v15307_v1 = vmax.f32 %v5520_v21, 0.0  ;;  %v15323_v55 = vmax.f32 %v5518_v63, 0.0  ;;  %v10343_v21 = vld [vmem:[%s17269_s7 + $0x68] sm:$0xff]  ;;  %v10341_v63 = vld [vmem:[%s17269_s7 + $0x58] sm:$0xff] }
 0x812   :  { %v5521_v2 = vmul.f32 %v5491_v41, %v17422_v39  ;;  %v15293_v5 = vmax.f32 %v5522_v54, 0.0  ;;  %v15375_v41 = vmax.f32 %v5512_v15, 0.0  ;;  %v10344_v54 = vld [vmem:[%s17269_s7 + $0x70] sm:$0xff]  ;;  %v10354_v15 = vld [vmem:[%s17265_s3 + $0x88] sm:$0xff] }
 0x814   :  { %v15300_v60 = vmax.f32 %v5521_v2, 0.0  ;;  %v5461_v2 = vadd.f32 %v5460_v53, %v5267_v18  ;;  %v5451_v18 = vadd.f32 %v15278_v9, %v15276_v11  ;;  %v5441_v11 = vadd.f32 %v15270_v23, %v15268_v62  ;;  %v17427_v23 = vld [vmem:[#allocation11_spill] sm:$0xff] }
 0x815   :  { %v5431_v62 = vadd.f32 %v15262_v20, %v15260_v35  ;;  %v17429_v35 = vld [vmem:[#allocation5_spill] sm:$0xff] }
 0x816   :  { %v5515_v53 = vmul.f32 %v5461_v2, %v13057_v27  ;;  %v5513_v9 = vmul.f32 %v5451_v18, %v13037_v7  ;;  %v10347_v2 = vld [vmem:[%s17270_s8 + $0x58] sm:$0xff] }
 0x817   :  { %v5509_v20 = vmul.f32 %v5431_v62, %v17429_v35  ;;  %v10361_v18 = vld [vmem:[%s17266_s4 + $0x98] sm:$0xff]  ;;  %v10359_v62 = vld [vmem:[%s17266_s4 + $0x88] sm:$0xff] }
 0x818   :  { %v15350_v30 = vmax.f32 %v5515_v53, 0.0 }
 0x819   :  { %v15394_v29 = vmax.f32 %v5509_v20, 0.0  ;;  %v10352_v20 = vld [vmem:[%s17265_s3 + $0x78] sm:$0xff] }
 0x81a   :  { %v11853_v22 = vpop.f32.mrf.mxu1 }
 0x81b   :  { %v5506_v46 = vadd.f32 %v11853_v22, %v11819_v43  ;;  %v15332_v43 = vmax.f32 %v5517_v61, 0.0  ;;  %v15341_v22 = vmax.f32 %v5516_v3, 0.0  ;;  %v10340_v61 = vld [vmem:[%s17269_s7 + $0x50] sm:$0xff]  ;;  %v10356_v3 = vld [vmem:[%s17265_s3 + $0x98] sm:$0xff] }
 0x81c   :  { %v5500_v32 = vpop.f32.mrf.mxu1 }
 0x81d   :  { %v5524_v26 = vmul.f32 %v5506_v46, %v17425_v24  ;;  %v5501_v40 = vadd.f32 %v5500_v32, %v5307_v0  ;;  %v15359_v46 = vmax.f32 %v5514_v10, 0.0  ;;  %v5511_v0 = vmul.f32 %v5441_v11, %v17427_v23  ;;  %v10355_v10 = vld [vmem:[%s17265_s3 + $0x90] sm:$0xff] }
 0x81e   :  { %v15368_v32 = vmax.f32 %v5513_v9, 0.0  ;;  %v10360_v11 = vld [vmem:[%s17266_s4 + $0x90] sm:$0xff] }
 0x81f   :  { %v15282_v44 = vmax.f32 %v5524_v26, 0.0  ;;  %v5523_v4 = vmul.f32 %v5501_v40, %v17424_v6  ;;  %v15382_v26 = vmax.f32 %v5511_v0, 0.0  ;;  %v15388_v40 = vmax.f32 %v5510_v17, 0.0  ;;  %v10353_v0 = vld [vmem:[%s17265_s3 + $0x80] sm:$0xff] }
 0x820   :  { %v10358_v17 = vld [vmem:[%s17266_s4 + $0x80] sm:$0xff] }
 0x821   :  { %v15286_v51 = vmax.f32 %v5523_v4, 0.0  ;;  %11855 = vmatpush3.msra.mxu0 %v15282_v44  ;;  %11890 = vmatpush3.msra.mxu1 %v15282_v44  ;;  %v10350_v4 = vld [vmem:[%s17270_s8 + $0x70] sm:$0xff] }
 0x822   :  { %11856 = vmatprep.subr.mxu0 %v17426_v45  ;;  %11891 = vmatprep.subr.mxu1 %v17426_v45 }
 0x823   :  { %11857 = vmatpush3.msra.mxu0 %v15286_v51  ;;  %11892 = vmatpush3.msra.mxu1 %v15286_v51 }
 0x824   :  { %11858 = vmatprep.subr.mxu0 %v17426_v45  ;;  %11893 = vmatprep.subr.mxu1 %v17426_v45 }
 0x825   :  { %11859 = vmatpush3.msra.mxu0 %v15293_v5  ;;  %11894 = vmatpush3.msra.mxu1 %v15293_v5 }
 0x826   :  { %11860 = vmatprep.subr.mxu0 %v17426_v45  ;;  %11895 = vmatprep.subr.mxu1 %v17426_v45 }
 0x827   :  { %11861 = vmatpush3.msra.mxu0 %v15300_v60  ;;  %11896 = vmatpush3.msra.mxu1 %v15300_v60 }
 0x828   :  { %11862 = vmatprep.subr.mxu0 %v17426_v45  ;;  %11897 = vmatprep.subr.mxu1 %v17426_v45 }
 0x829   :  { %11863 = vmatpush3.msra.mxu0 %v15307_v1  ;;  %11898 = vmatpush3.msra.mxu1 %v15307_v1 }
 0x82a   :  { %11864 = vmatprep.subr.mxu0 %v17426_v45  ;;  %11899 = vmatprep.subr.mxu1 %v17426_v45 }
 0x82b   :  { %11865 = vmatpush3.msra.mxu0 %v15314_v59  ;;  %11900 = vmatpush3.msra.mxu1 %v15314_v59 }
 0x82c   :  { %11866 = vmatprep.subr.mxu0 %v17426_v45  ;;  %11901 = vmatprep.subr.mxu1 %v17426_v45 }
 0x82d   :  { %11867 = vmatpush3.msra.mxu0 %v15323_v55  ;;  %11902 = vmatpush3.msra.mxu1 %v15323_v55 }
 0x82e   :  { %11868 = vmatprep.subr.mxu0 %v17426_v45  ;;  %11903 = vmatprep.subr.mxu1 %v17426_v45 }
 0x82f   :  { %11869 = vmatpush3.msra.mxu0 %v15332_v43  ;;  %11904 = vmatpush3.msra.mxu1 %v15332_v43 }
 0x830   :  { %11870 = vmatprep.subr.mxu0 %v17426_v45  ;;  %11905 = vmatprep.subr.mxu1 %v17426_v45 }
 0x831   :  { %11871 = vmatpush3.msra.mxu0 %v15341_v22  ;;  %11906 = vmatpush3.msra.mxu1 %v15341_v22 }
 0x832   :  { %11872 = vmatprep.subr.mxu0 %v17426_v45  ;;  %11907 = vmatprep.subr.mxu1 %v17426_v45 }
 0x833   :  { %11873 = vmatpush3.msra.mxu0 %v15350_v30  ;;  %11908 = vmatpush3.msra.mxu1 %v15350_v30 }
 0x834   :  { %11874 = vmatprep.subr.mxu0 %v17426_v45  ;;  %11909 = vmatprep.subr.mxu1 %v17426_v45 }
 0x835   :  { %11875 = vmatpush3.msra.mxu0 %v15359_v46  ;;  %11910 = vmatpush3.msra.mxu1 %v15359_v46 }
 0x836   :  { %11876 = vmatprep.subr.mxu0 %v17426_v45  ;;  %11911 = vmatprep.subr.mxu1 %v17426_v45 }
 0x837   :  { %11877 = vmatpush3.msra.mxu0 %v15368_v32  ;;  %11912 = vmatpush3.msra.mxu1 %v15368_v32 }
 0x838   :  { %11878 = vmatprep.subr.mxu0 %v17426_v45  ;;  %11913 = vmatprep.subr.mxu1 %v17426_v45 }
 0x839   :  { %11879 = vmatpush3.msra.mxu0 %v15375_v41  ;;  %11914 = vmatpush3.msra.mxu1 %v15375_v41 }
 0x83a   :  { %11880 = vmatprep.subr.mxu0 %v17426_v45  ;;  %11915 = vmatprep.subr.mxu1 %v17426_v45 }
 0x83b   :  { %11881 = vmatpush3.msra.mxu0 %v15382_v26  ;;  %11916 = vmatpush3.msra.mxu1 %v15382_v26 }
 0x83c   :  { %11882 = vmatprep.subr.mxu0 %v17426_v45  ;;  %11917 = vmatprep.subr.mxu1 %v17426_v45 }
 0x83d   :  { %11883 = vmatpush3.msra.mxu0 %v15388_v40  ;;  %11918 = vmatpush3.msra.mxu1 %v15388_v40 }
 0x83e   :  { %11884 = vmatprep.subr.mxu0 %v17426_v45  ;;  %11919 = vmatprep.subr.mxu1 %v17426_v45 }
 0x83f   :  { %11885 = vmatpush3.msra.mxu0 %v15394_v29  ;;  %11920 = vmatpush3.msra.mxu1 %v15394_v29 }
 0x840   :  { %11887 = vmatmul.mubr.f32.vlgmr.msra.gmra.mxu0 %v12482_v28  ;;  %11922 = vmatmul.mubr.f32.vlgmr.msra.gmra.mxu1 %v12483_v49  ;;  %v10370_v28 = vld [vmem:[%s17268_s6 + $0x90] sm:$0xff]  ;;  %v10369_v49 = vld [vmem:[%s17268_s6 + $0x88] sm:$0xff] }
 0x841   :  { %11924 = vmatprep.subr.mxu0 %v17426_v45  ;;  %11937 = vmatprep.subr.mxu1 %v17426_v45 }
 0x842   :  { %11925 = vmatpush3.msra.mxu0 %v10344_v54  ;;  %11938 = vmatpush3.msra.mxu1 %v10350_v4  ;;  %v10357_v54 = vld [vmem:[%s17266_s4 + $0x78] sm:$0xff] }
 0x843   :  { %11926 = vmatprep.subr.mxu0 %v17426_v45  ;;  %11939 = vmatprep.subr.mxu1 %v17426_v45  ;;  %v10371_v4 = vld [vmem:[%s17268_s6 + $0x98] sm:$0xff] }
 0x844   :  { %11927 = vmatpush3.msra.mxu0 %v10343_v21  ;;  %11940 = vmatpush3.msra.mxu1 %v10349_v56  ;;  %v10368_v21 = vld [vmem:[%s17268_s6 + $0x80] sm:$0xff]  ;;  %v10367_v56 = vld [vmem:[%s17268_s6 + $0x78] sm:$0xff] }
 0x845   :  { %11928 = vmatprep.subr.mxu0 %v17426_v45  ;;  %11941 = vmatprep.subr.mxu1 %v17426_v45 }
 0x846   :  { %11929 = vmatpush3.msra.mxu0 %v10342_v33  ;;  %11942 = vmatpush3.msra.mxu1 %v10348_v12 }
 0x847   :  { %11930 = vmatprep.subr.mxu0 %v17426_v45  ;;  %11943 = vmatprep.subr.mxu1 %v17426_v45 }
 0x848   :  { %11931 = vmatpush3.msra.mxu0 %v10341_v63  ;;  %11944 = vmatpush3.msra.mxu1 %v10347_v2 }
 0x849   :  { %11932 = vmatprep.subr.mxu0 %v17426_v45  ;;  %11945 = vmatprep.subr.mxu1 %v17426_v45 }
 0x84a   :  { %11933 = vmatpush3.msra.mxu0 %v10340_v61  ;;  %11946 = vmatpush3.msra.mxu1 %v10346_v47 }
 0x84b   :  { %11934 = vmatprep.mubr.msk.f32.mxu0 %vm12513_vm1, %v17426_v45  ;;  %11947 = vmatprep.mubr.msk.f32.mxu1 %vm12513_vm1, %v17426_v45 }
 0x84c   :  { %11950 = vmatprep.subr.mxu0 %v10356_v3  ;;  %11984 = vmatprep.subr.mxu1 %v10361_v18 }
 0x900   :  { %v5607_v53 = vpop.f32.mrf.mxu0  ;;  %v5677_v48 = vpop.f32.mrf.mxu1 }
 0x901   :  { %11935 = vmatmul.mubr.msk.f32.vlgmr.msra.gmra.mxu0 %vm276_vm0, %v5607_v53  ;;  %11948 = vmatmul.mubr.msk.f32.vlgmr.msra.gmra.mxu1 %vm276_vm0, %v5677_v48 }
 0x902   :  { %11951 = vmatpush3.msra.mxu0 %v10356_v3  ;;  %11985 = vmatpush3.msra.mxu1 %v10361_v18  ;;  %v11888_v9 = vpop.f32.mrf.mxu0  ;;  %v11923_v57 = vpop.f32.mrf.mxu1 }
 0x903   :  { %11952 = vmatprep.subr.mxu0 %v10355_v10  ;;  %11960 = vmatprep.mubr.msk.f32.mxu0 %vm276_vm0, %v15394_v29 }
 0x904   :  { %11986 = vmatprep.subr.mxu1 %v10360_v11  ;;  %11994 = vmatprep.mubr.msk.f32.mxu1 %vm276_vm0, %v15394_v29 }
 0x905   :  { %11953 = vmatpush3.msra.mxu0 %v10355_v10  ;;  %11987 = vmatpush3.msra.mxu1 %v10360_v11 }
 0x906   :  { %11954 = vmatprep.subr.mxu0 %v10354_v15  ;;  %11988 = vmatprep.subr.mxu1 %v10359_v62 }
 0x907   :  { %11955 = vmatpush3.msra.mxu0 %v10354_v15  ;;  %11989 = vmatpush3.msra.mxu1 %v10359_v62 }
 0x908   :  { %11956 = vmatprep.subr.mxu0 %v10353_v0  ;;  %11990 = vmatprep.subr.mxu1 %v10358_v17 }
 0x909   :  { %11957 = vmatpush3.msra.mxu0 %v10353_v0  ;;  %11991 = vmatpush3.msra.mxu1 %v10358_v17 }
 0x90a   :  { %11958 = vmatprep.subr.mxu0 %v10352_v20  ;;  %11992 = vmatprep.subr.mxu1 %v10357_v54 }
 0x90b   :  { %11959 = vmatpush3.msra.mxu0 %v10352_v20  ;;  %11993 = vmatpush3.msra.mxu1 %v10357_v54 }
 0x90c   :  { %11961 = vmatmul.mubr.msk.f32.vlgmr.msra.gmra.mxu0 %vm276_vm0, %v15388_v40  ;;  %11995 = vmatmul.mubr.msk.f32.vlgmr.msra.gmra.mxu1 %vm276_vm0, %v15388_v40 }
 0x90d   :  { %11963 = vmatprep.mubr.msk.f32.mxu0 %vm276_vm0, %v15382_v26  ;;  %11997 = vmatprep.mubr.msk.f32.mxu1 %vm276_vm0, %v15382_v26 }
 0x90e   :  { %12018 = vmatprep.subr.mxu0 %v10371_v4 }
 0x90f   :  { %12019 = vmatpush3.msra.mxu0 %v10371_v4 }
 0x910   :  { %11964 = vmatmul.mubr.msk.f32.gmra.mxu0 %vm276_vm0, %v15375_v41  ;;  %11998 = vmatmul.mubr.msk.f32.gmra.mxu1 %vm276_vm0, %v15375_v41 }
 0x911   :  { %11966 = vmatprep.mubr.msk.f32.mxu0 %vm276_vm0, %v15368_v32  ;;  %12000 = vmatprep.mubr.msk.f32.mxu1 %vm276_vm0, %v15368_v32 }
 0x912   :  { %12020 = vmatprep.subr.mxu0 %v10370_v28 }
 0x913   :  { %12021 = vmatpush3.msra.mxu0 %v10370_v28 }
 0x914   :  { %11967 = vmatmul.mubr.msk.f32.gmra.mxu0 %vm276_vm0, %v15359_v46  ;;  %12001 = vmatmul.mubr.msk.f32.gmra.mxu1 %vm276_vm0, %v15359_v46 }
 0x915   :  { %11969 = vmatprep.mubr.msk.f32.mxu0 %vm276_vm0, %v15350_v30  ;;  %12003 = vmatprep.mubr.msk.f32.mxu1 %vm276_vm0, %v15350_v30 }
 0x916   :  { %12022 = vmatprep.subr.mxu0 %v10369_v49 }
 0x917   :  { %12023 = vmatpush3.msra.mxu0 %v10369_v49 }
 0x918   :  { %11970 = vmatmul.mubr.msk.f32.gmra.mxu0 %vm276_vm0, %v15341_v22  ;;  %12004 = vmatmul.mubr.msk.f32.gmra.mxu1 %vm276_vm0, %v15341_v22 }
 0x919   :  { %11972 = vmatprep.mubr.msk.f32.mxu0 %vm276_vm0, %v15332_v43  ;;  %12006 = vmatprep.mubr.msk.f32.mxu1 %vm276_vm0, %v15332_v43 }
 0x91a   :  { %12024 = vmatprep.subr.mxu0 %v10368_v21 }
 0x91b   :  { %12025 = vmatpush3.msra.mxu0 %v10368_v21 }
 0x91c   :  { %11973 = vmatmul.mubr.msk.f32.gmra.mxu0 %vm276_vm0, %v15323_v55  ;;  %12007 = vmatmul.mubr.msk.f32.gmra.mxu1 %vm276_vm0, %v15323_v55 }
 0x91d   :  { %11975 = vmatprep.mubr.msk.f32.mxu0 %vm276_vm0, %v15314_v59  ;;  %12009 = vmatprep.mubr.msk.f32.mxu1 %vm276_vm0, %v15314_v59 }
 0x91e   :  { %12026 = vmatprep.subr.mxu0 %v10367_v56 }
 0x91f   :  { %12027 = vmatpush3.msra.mxu0 %v10367_v56 }
 0x920   :  { %11976 = vmatmul.mubr.msk.f32.gmra.mxu0 %vm276_vm0, %v15307_v1  ;;  %12010 = vmatmul.mubr.msk.f32.gmra.mxu1 %vm276_vm0, %v15307_v1 }
 0x921   :  { %11978 = vmatprep.mubr.msk.f32.mxu0 %vm276_vm0, %v15300_v60  ;;  %12012 = vmatprep.mubr.msk.f32.mxu1 %vm276_vm0, %v15300_v60 }
 0x922   :  { %12086 = vmatprep.subr.mxu0 %v17426_v45 }
 0x924   :  { %11979 = vmatmul.mubr.msk.f32.gmra.mxu0 %vm276_vm0, %v15293_v5  ;;  %12013 = vmatmul.mubr.msk.f32.gmra.mxu1 %vm276_vm0, %v15293_v5 }
 0x925   :  { %11981 = vmatprep.mubr.msk.f32.mxu0 %vm276_vm0, %v15286_v51  ;;  %12015 = vmatprep.mubr.msk.f32.mxu1 %vm276_vm0, %v15286_v51 }
 0x928   :  { %11982 = vmatmul.mubr.msk.f32.gmra.mxu0 %vm276_vm0, %v15282_v44  ;;  %12016 = vmatmul.mubr.msk.f32.gmra.mxu1 %vm276_vm0, %v15282_v44 }
 0x929   :  { %12028 = vmatprep.mubr.msk.f32.mxu0 %vm276_vm0, %v15394_v29 }
 0x92c   :  { %12029 = vmatmul.mubr.msk.f32.vlgmr.msra.gmra.mxu0 %vm276_vm0, %v15388_v40 }
 0x92d   :  { %12031 = vmatprep.mubr.msk.f32.mxu0 %vm276_vm0, %v15382_v26 }
 0x930   :  { %12032 = vmatmul.mubr.msk.f32.gmra.mxu0 %vm276_vm0, %v15375_v41 }
 0x931   :  { %12034 = vmatprep.mubr.msk.f32.mxu0 %vm276_vm0, %v15368_v32 }
 0x934   :  { %12035 = vmatmul.mubr.msk.f32.gmra.mxu0 %vm276_vm0, %v15359_v46 }
 0x935   :  { %12037 = vmatprep.mubr.msk.f32.mxu0 %vm276_vm0, %v15350_v30 }
 0x938   :  { %12038 = vmatmul.mubr.msk.f32.gmra.mxu0 %vm276_vm0, %v15341_v22 }
 0x939   :  { %12040 = vmatprep.mubr.msk.f32.mxu0 %vm276_vm0, %v15332_v43  ;;  %v17430_v43 = vld [vmem:[#allocation21_spill] sm:$0xff] }
 0x93c   :  { %12041 = vmatmul.mubr.msk.f32.gmra.mxu0 %vm276_vm0, %v15323_v55 }
 0x93d   :  { %12043 = vmatprep.mubr.msk.f32.mxu0 %vm276_vm0, %v15314_v59  ;;  %v10366_v59 = vld [vmem:[%s17267_s5 + $0x98] sm:$0xff] }
 0x93e   :  { %12052 = vmatprep.subr.mxu1 %v10366_v59 }
 0x93f   :  { %12053 = vmatpush3.msra.mxu1 %v10366_v59 }
 0x940   :  { %12044 = vmatmul.mubr.msk.f32.gmra.mxu0 %vm276_vm0, %v15307_v1 }
 0x941   :  { %12046 = vmatprep.mubr.msk.f32.mxu0 %vm276_vm0, %v15300_v60  ;;  %v10365_v60 = vld [vmem:[%s17267_s5 + $0x90] sm:$0xff] }
 0x942   :  { %12054 = vmatprep.subr.mxu1 %v10365_v60 }
 0x943   :  { %12055 = vmatpush3.msra.mxu1 %v10365_v60 }
 0x944   :  { %12047 = vmatmul.mubr.msk.f32.gmra.mxu0 %vm276_vm0, %v15293_v5  ;;  %v10362_v5 = vld [vmem:[%s17267_s5 + $0x78] sm:$0xff] }
 0x945   :  { %12049 = vmatprep.mubr.msk.f32.mxu0 %vm276_vm0, %v15286_v51  ;;  %v10364_v51 = vld [vmem:[%s17267_s5 + $0x88] sm:$0xff] }
 0x946   :  { %12056 = vmatprep.subr.mxu1 %v10364_v51 }
 0x947   :  { %12057 = vmatpush3.msra.mxu1 %v10364_v51 }
 0x948   :  { %12050 = vmatmul.mubr.msk.f32.gmra.mxu0 %vm276_vm0, %v15282_v44  ;;  %v10363_v44 = vld [vmem:[%s17267_s5 + $0x80] sm:$0xff] }
 0x949   :  { %12118 = vmatprep.mubr.msk.f32.mxu0 %vm12513_vm1, %v17426_v45  ;;  %12058 = vmatprep.subr.mxu1 %v10363_v44 }
 0x94a   :  { %12059 = vmatpush3.msra.mxu1 %v10363_v44 }
 0x94b   :  { %12060 = vmatprep.subr.mxu1 %v10362_v5 }
 0x94c   :  { %12061 = vmatpush3.msra.mxu1 %v10362_v5 }
 0x94d   :  { %12121 = vmatprep.subr.mxu1 %v17426_v45 }
 0x9c1   :  { %v5756_v1 = vpop.f32.mrf.mxu0  ;;  %v5836_v55 = vpop.f32.mrf.mxu1 }
 0x9c2   :  { %v5760_v22 = vadd.f32 %v5756_v1, %v17430_v43 }
 0x9c3   :  { %v11936_v30 = vpop.f32.mrf.mxu0  ;;  %v11949_v46 = vpop.f32.mrf.mxu1 }
 0x9c4   :  { %v15615_v32 = vadd.f32 %v5836_v55, %v5760_v22 }
 0x9c6   :  { %17431 = vst [vmem:[#allocation20_spill] sm:$0xff] %v15615_v32 }
 0x9cc   :  { %v11962_v41 = vpop.f32.mrf.mxu0  ;;  %v11996_v26 = vpop.f32.mrf.mxu1 }
 0x9cd   :  { %v6059_v40 = vmul.f32 %v11962_v41, %v17428_v14  ;;  %v6236_v63 = vmul.f32 %v11996_v26, %v17428_v14 }
 0x9ce   :  { %v5979_v29 = vpop.f32.mrf.mxu0  ;;  %v6156_v33 = vpop.f32.mrf.mxu1 }
 0x9cf   :  { %v15618_v12 = vmax.f32 %v6059_v40, 0.0  ;;  %v6058_v2 = vmul.f32 %v5979_v29, %v17429_v35  ;;  %v6235_v61 = vmul.f32 %v6156_v33, %v17429_v35  ;;  %v15633_v15 = vmax.f32 %v6236_v63, 0.0 }
 0x9d0   :  { %v11965_v47 = vpop.f32.mrf.mxu0  ;;  %v11999_v3 = vpop.f32.mrf.mxu1 }
 0x9d1   :  { %v6274_v18 = vrot.slane %v15618_v12, %v12978_v31  ;;  %v6354_v53 = vrot.slane %v15618_v12, %v12982_v34  ;;  %v15627_v48 = vmax.f32 %v6058_v2, 0.0  ;;  %v15629_v10 = vmax.f32 %v6235_v61, 0.0 }
 0x9d2   :  { %v5989_v11 = vpop.f32.mrf.mxu0  ;;  %v6166_v9 = vpop.f32.mrf.mxu1  ;;  %v6450_v57 = vrot.slane %v15618_v12, %v12989_v38  ;;  %v6061_v62 = vmul.f32 %v11965_v47, %v12986_v36  ;;  %v6238_v0 = vmul.f32 %v11999_v3, %v12986_v36  ;;  %v6546_v51 = vrot.slane %v15618_v12, %v12993_v42 }
 0x9d3   :  { %v6060_v17 = vmul.f32 %v5989_v11, %v17427_v23  ;;  %v6237_v20 = vmul.f32 %v6166_v9, %v17427_v23  ;;  %v6270_v28 = vrot.slane %v15627_v48, %v12978_v31  ;;  %v6350_v49 = vrot.slane %v15627_v48, %v12982_v34 }
 0x9d4   :  { %v11968_v54 = vpop.f32.mrf.mxu0  ;;  %v12002_v4 = vpop.f32.mrf.mxu1  ;;  %v6412_v21 = vmul.f32 %v6354_v53, %v15633_v15  ;;  %v6332_v56 = vmul.f32 %v6274_v18, %v15629_v10  ;;  %v15645_v59 = vmax.f32 %v6238_v0, 0.0  ;;  %v6642_v44 = vrot.slane %v15618_v12, %v17389_v25 }
 0x9d5   :  { %v6063_v60 = vmul.f32 %v11968_v54, %v13011_v52  ;;  %v15652_v5 = vmax.f32 %v6237_v20, 0.0  ;;  %v6331_v43 = vmul.f32 %v6270_v28, %v15629_v10  ;;  %v6240_v30 = vmul.f32 %v12002_v4, %v13011_v52 }
 0x9d6   :  { %v5999_v1 = vpop.f32.mrf.mxu0  ;;  %v6176_v55 = vpop.f32.mrf.mxu1  ;;  %v15660_v26 = vmax.f32 %v6061_v62, 0.0  ;;  %v15662_v40 = vmax.f32 %v6060_v17, 0.0  ;;  %v6411_v63 = vmul.f32 %v6350_v49, %v15633_v15  ;;  %v6446_v2 = vrot.slane %v15627_v48, %v12989_v38 }
 0x9d7   :  { %v6062_v46 = vmul.f32 %v5999_v1, %v13037_v7  ;;  %v6239_v41 = vmul.f32 %v6176_v55, %v13037_v7  ;;  %v6428_v61 = vadd.f32 %v6412_v21, %v6332_v56  ;;  %v6604_v47 = vmul.f32 %v6546_v51, %v15645_v59 }
 0x9d8   :  { %v11971_v29 = vpop.f32.mrf.mxu0  ;;  %v12005_v33 = vpop.f32.mrf.mxu1  ;;  %v6508_v3 = vmul.f32 %v6450_v57, %v15652_v5  ;;  %v15669_v18 = vmax.f32 %v6063_v60, 0.0  ;;  %v6427_v62 = vadd.f32 %v6411_v63, %v6331_v43  ;;  %v6507_v0 = vmul.f32 %v6446_v2, %v15652_v5  ;;  %v17432_v2 = vld [vmem:[#allocation9_spill] sm:$0xff] }
 0x9d9   :  { %v15671_v53 = vmax.f32 %v6239_v41, 0.0  ;;  %v6542_v17 = vrot.slane %v15627_v48, %v12993_v42  ;;  %v15676_v20 = vmax.f32 %v6240_v30, 0.0  ;;  %v15678_v54 = vmax.f32 %v6062_v46, 0.0 }
 0x9da   :  { %v6009_v11 = vpop.f32.mrf.mxu0  ;;  %v6186_v9 = vpop.f32.mrf.mxu1  ;;  %v6065_v4 = vmul.f32 %v11971_v29, %v13039_v8  ;;  %v6242_v57 = vmul.f32 %v12005_v33, %v13039_v8  ;;  %v6523_v56 = vadd.f32 %v6507_v0, %v6427_v62  ;;  %v6638_v51 = vrot.slane %v15627_v48, %v17389_v25 }
 0x9db   :  { %v6241_v28 = vmul.f32 %v6186_v9, %v13057_v27  ;;  %v6603_v60 = vmul.f32 %v6542_v17, %v15645_v59  ;;  %v6524_v1 = vadd.f32 %v6508_v3, %v6428_v61  ;;  %v6064_v55 = vmul.f32 %v6009_v11, %v13057_v27 }
 0x9dc   :  { %v11974_v49 = vpop.f32.mrf.mxu0  ;;  %v12008_v21 = vpop.f32.mrf.mxu1  ;;  %v6734_v30 = vrot.slane %v15627_v48, %v17388_v50  ;;  %v6699_v63 = vmul.f32 %v6638_v51, %v15671_v53  ;;  %v6830_v9 = vrot.slane %v15627_v48, %v17432_v2  ;;  %v15695_v62 = vmax.f32 %v6242_v57, 0.0 }
 0x9dd   :  { %v6067_v43 = vmul.f32 %v11974_v49, %v17417_v19  ;;  %v15690_v46 = vmax.f32 %v6241_v28, 0.0  ;;  %v6619_v33 = vadd.f32 %v6603_v60, %v6523_v56  ;;  %v6244_v61 = vmul.f32 %v12008_v21, %v17417_v19  ;;  %v17433_v21 = vld [vmem:[#allocation10_spill] sm:$0xff] }
 0x9de   :  { %v6019_v41 = vpop.f32.mrf.mxu0  ;;  %v6196_v29 = vpop.f32.mrf.mxu1  ;;  %v6700_v0 = vmul.f32 %v6642_v44, %v15671_v53  ;;  %v6795_v56 = vmul.f32 %v6734_v30, %v15676_v20  ;;  %v15703_v51 = vmax.f32 %v6065_v4, 0.0  ;;  %v15705_v22 = vmax.f32 %v6064_v55, 0.0 }
 0x9df   :  { %v6066_v3 = vmul.f32 %v6019_v41, %v13142_v58  ;;  %v6243_v11 = vmul.f32 %v6196_v29, %v13142_v58  ;;  %v6715_v49 = vadd.f32 %v6699_v63, %v6619_v33  ;;  %v6891_v60 = vmul.f32 %v6830_v9, %v15690_v46 }
 0x9e0   :  { %v11977_v17 = vpop.f32.mrf.mxu0  ;;  %v12011_v28 = vpop.f32.mrf.mxu1  ;;  %v6926_v41 = vrot.slane %v15627_v48, %v17433_v21  ;;  %v15710_v32 = vmax.f32 %v6067_v43, 0.0  ;;  %v6620_v63 = vadd.f32 %v6604_v47, %v6524_v1  ;;  %v15713_v30 = vmax.f32 %v6244_v61, 0.0 }
 0x9e1   :  { %v6069_v57 = vmul.f32 %v11977_v17, %v17421_v37  ;;  %v6246_v44 = vmul.f32 %v12011_v28, %v17421_v37  ;;  %v6811_v33 = vadd.f32 %v6795_v56, %v6715_v49  ;;  %v15715_v9 = vmax.f32 %v6066_v3, 0.0 }
 0x9e2   :  { %v6029_v29 = vpop.f32.mrf.mxu0  ;;  %v6206_v45 = vpop.f32.mrf.mxu1  ;;  %v15717_v4 = vmax.f32 %v6243_v11, 0.0  ;;  %v6987_v55 = vmul.f32 %v6926_v41, %v15695_v62  ;;  %v6716_v48 = vadd.f32 %v6700_v0, %v6620_v63  ;;  %v17434_v43 = vrot.slane %v15618_v12, %v17388_v50 }
 0x9e3   :  { %v6907_v58 = vadd.f32 %v6891_v60, %v6811_v33  ;;  %v6834_v47 = vrot.slane %v15618_v12, %v17432_v2  ;;  %v15726_v1 = vmax.f32 %v6069_v57, 0.0  ;;  %v6068_v61 = vmul.f32 %v6029_v29, %v17419_v13 }
 0x9e4   :  { %v11980_v17 = vpop.f32.mrf.mxu0  ;;  %v12014_v19 = vpop.f32.mrf.mxu1  ;;  %v6796_v28 = vmul.f32 %v17434_v43, %v15676_v20  ;;  %v6245_v3 = vmul.f32 %v6206_v45, %v17419_v13  ;;  %v6930_v11 = vrot.slane %v15618_v12, %v17433_v21  ;;  %v15732_v49 = vmax.f32 %v6246_v44, 0.0 }
 0x9e5   :  { %v7003_v60 = vadd.f32 %v6987_v55, %v6907_v58  ;;  %v6892_v33 = vmul.f32 %v6834_v47, %v15690_v46  ;;  %v6071_v63 = vmul.f32 %v11980_v17, %v17423_v16  ;;  %v6248_v57 = vmul.f32 %v12014_v19, %v17423_v16 }
 0x9e6   :  { %v6039_v0 = vpop.f32.mrf.mxu0  ;;  %v6216_v56 = vpop.f32.mrf.mxu1  ;;  %v6812_v41 = vadd.f32 %v6796_v28, %v6716_v48  ;;  %v6988_v29 = vmul.f32 %v6930_v11, %v15695_v62  ;;  %v6278_v13 = vrot.slane %v15662_v40, %v12978_v31  ;;  %v6358_v58 = vrot.slane %v15662_v40, %v12982_v34 }
 0x9e7   :  { %v6070_v43 = vmul.f32 %v6039_v0, %v17422_v39  ;;  %v7019_v45 = vmul.f32 %v7003_v60, %v17429_v35  ;;  %v15744_v55 = vmax.f32 %v6068_v61, 0.0  ;;  %v15746_v17 = vmax.f32 %v6245_v3, 0.0 }
 0x9e8   :  { %v11983_v37 = vpop.f32.mrf.mxu0  ;;  %v12017_v12 = vpop.f32.mrf.mxu1  ;;  %v6908_v44 = vadd.f32 %v6892_v33, %v6812_v41  ;;  %v6247_v19 = vmul.f32 %v6216_v56, %v17422_v39  ;;  %v6333_v11 = vmul.f32 %v6278_v13, %v15629_v10  ;;  %v6413_v0 = vmul.f32 %v6358_v58, %v15633_v15 }
 0x9e9   :  { %v6250_v48 = vmul.f32 %v12017_v12, %v17425_v24  ;;  %12062 = vmatprep.mubr.msk.f32.mxu1 %vm276_vm0, %v7019_v45  ;;  %v6454_v60 = vrot.slane %v15662_v40, %v12989_v38  ;;  %v15755_v41 = vmax.f32 %v6071_v63, 0.0  ;;  %v15757_v61 = vmax.f32 %v6248_v57, 0.0 }
 0x9ea   :  { %v7004_v28 = vadd.f32 %v6988_v29, %v6908_v44  ;;  %v6226_v47 = vpop.f32.mrf.mxu1  ;;  %v15759_v3 = vmax.f32 %v6070_v43, 0.0  ;;  %v6049_v56 = vpop.f32.mrf.mxu0  ;;  %v6429_v29 = vadd.f32 %v6413_v0, %v6333_v11  ;;  %v6550_v13 = vrot.slane %v15662_v40, %v12993_v42 }
 0x9eb   :  { %17435 = vst [vmem:[#allocation8_spill] sm:$0xff] %v15755_v41  ;;  %v6249_v33 = vmul.f32 %v6226_v47, %v17424_v6  ;;  %v6509_v12 = vmul.f32 %v6454_v60, %v15652_v5  ;;  %v15766_v44 = vmax.f32 %v6247_v19, 0.0  ;;  %v15769_v63 = vmul.f32 %v11983_v37, %v17425_v24 }
 0x9ec   :  { %17436 = vst [vmem:[#allocation7_spill] sm:$0xff] %v15759_v3  ;;  %v7020_v45 = vmul.f32 %v7004_v28, %v17428_v14  ;;  %v15771_v57 = vmax.f32 %v6250_v48, 0.0  ;;  %v6742_v43 = vrot.slane %v15662_v40, %v17388_v50  ;;  %v15777_v58 = vmul.f32 %v6049_v56, %v17424_v6 }
 0x9ed   :  { %v6525_v28 = vadd.f32 %v6509_v12, %v6429_v29  ;;  %v6605_v47 = vmul.f32 %v6550_v13, %v15645_v59  ;;  %v6646_v19 = vrot.slane %v15662_v40, %v17389_v25  ;;  %v15782_v11 = vmax.f32 %v6249_v33, 0.0 }
 0x9ee   :  { %12063 = vmatmul.mubr.msk.f32.vlgmr.msra.gmra.mxu1 %vm276_vm0, %v7020_v45  ;;  %v6838_v37 = vrot.slane %v15662_v40, %v17432_v2  ;;  %v6282_v48 = vrot.slane %v15660_v26, %v12978_v31  ;;  %v6362_v0 = vrot.slane %v15660_v26, %v12982_v34  ;;  %v6934_v45 = vrot.slane %v15662_v40, %v17433_v21 }
 0x9ef   :  { %v6621_v60 = vadd.f32 %v6605_v47, %v6525_v28  ;;  %v6701_v56 = vmul.f32 %v6646_v19, %v15671_v53  ;;  %v6458_v29 = vrot.slane %v15660_v26, %v12989_v38  ;;  %v6797_v33 = vmul.f32 %v6742_v43, %v15676_v20 }
 0x9f0   :  { %v6334_v12 = vmul.f32 %v6282_v48, %v15629_v10  ;;  %v6414_v13 = vmul.f32 %v6362_v0, %v15633_v15  ;;  %v6554_v35 = vrot.slane %v15660_v26, %v12993_v42  ;;  %v6893_v28 = vmul.f32 %v6838_v37, %v15690_v46 }
 0x9f1   :  { %v6717_v14 = vadd.f32 %v6701_v56, %v6621_v60  ;;  %v6989_v47 = vmul.f32 %v6934_v45, %v15695_v62  ;;  %v6650_v40 = vrot.slane %v15660_v26, %v17389_v25  ;;  %v6510_v24 = vmul.f32 %v6458_v29, %v15652_v5 }
 0x9f2   :  { %v6430_v19 = vadd.f32 %v6414_v13, %v6334_v12  ;;  %v6746_v43 = vrot.slane %v15660_v26, %v17388_v50  ;;  %v6842_v48 = vrot.slane %v15660_v26, %v17432_v2  ;;  %v6606_v6 = vmul.f32 %v6554_v35, %v15645_v59 }
 0x9f3   :  { %v6813_v0 = vadd.f32 %v6797_v33, %v6717_v14  ;;  %v6702_v60 = vmul.f32 %v6650_v40, %v15671_v53  ;;  %v6286_v37 = vrot.slane %v15678_v54, %v12978_v31  ;;  %v6938_v45 = vrot.slane %v15660_v26, %v17433_v21 }
 0x9f4   :  { %v6526_v56 = vadd.f32 %v6510_v24, %v6430_v19  ;;  %v6366_v29 = vrot.slane %v15678_v54, %v12982_v34  ;;  %v6462_v12 = vrot.slane %v15678_v54, %v12989_v38  ;;  %v6558_v35 = vrot.slane %v15678_v54, %v12993_v42 }
 0x9f5   :  { %v6909_v13 = vadd.f32 %v6893_v28, %v6813_v0  ;;  %v6335_v14 = vmul.f32 %v6286_v37, %v15629_v10  ;;  %v6654_v33 = vrot.slane %v15678_v54, %v17389_v25  ;;  %v6798_v24 = vmul.f32 %v6746_v43, %v15676_v20 }
 0x9f6   :  { %v6622_v40 = vadd.f32 %v6606_v6, %v6526_v56  ;;  %v6894_v26 = vmul.f32 %v6842_v48, %v15690_v46  ;;  %v6415_v19 = vmul.f32 %v6366_v29, %v15633_v15  ;;  %v6990_v39 = vmul.f32 %v6938_v45, %v15695_v62 }
 0x9f7   :  { %v7005_v16 = vadd.f32 %v6989_v47, %v6909_v13  ;;  %v6511_v28 = vmul.f32 %v6462_v12, %v15652_v5  ;;  %v6750_v0 = vrot.slane %v15678_v54, %v17388_v50  ;;  %v6607_v3 = vmul.f32 %v6558_v35, %v15645_v59 }
 0x9f8   :  { %v6718_v37 = vadd.f32 %v6702_v60, %v6622_v40  ;;  %v6431_v41 = vadd.f32 %v6415_v19, %v6335_v14  ;;  %v6703_v6 = vmul.f32 %v6654_v33, %v15671_v53  ;;  %v6942_v48 = vrot.slane %v15678_v54, %v17433_v21 }
 0x9f9   :  { %v7021_v43 = vmul.f32 %v7005_v16, %v17427_v23  ;;  %v6290_v47 = vrot.slane %v15669_v18, %v12978_v31  ;;  %v6370_v56 = vrot.slane %v15669_v18, %v12982_v34  ;;  %v6846_v60 = vrot.slane %v15678_v54, %v17432_v2 }
 0x9fa   :  { %v6814_v45 = vadd.f32 %v6798_v24, %v6718_v37  ;;  %v6527_v29 = vadd.f32 %v6511_v28, %v6431_v41  ;;  %v6466_v12 = vrot.slane %v15669_v18, %v12989_v38  ;;  %v6562_v14 = vrot.slane %v15669_v18, %v12993_v42 }
 0x9fb   :  { %12065 = vmatprep.mubr.msk.f32.mxu1 %vm276_vm0, %v7021_v43  ;;  %v6336_v16 = vmul.f32 %v6290_v47, %v15629_v10  ;;  %v6416_v13 = vmul.f32 %v6370_v56, %v15633_v15  ;;  %v6658_v35 = vrot.slane %v15669_v18, %v17389_v25  ;;  %v6799_v40 = vmul.f32 %v6750_v0, %v15676_v20 }
 0x9fc   :  { %v6910_v33 = vadd.f32 %v6894_v26, %v6814_v45  ;;  %v6623_v41 = vadd.f32 %v6607_v3, %v6527_v29  ;;  %v6895_v54 = vmul.f32 %v6846_v60, %v15690_v46  ;;  %v6991_v24 = vmul.f32 %v6942_v48, %v15695_v62 }
 0x9fd   :  { %v6432_v19 = vadd.f32 %v6416_v13, %v6336_v16  ;;  %v6512_v28 = vmul.f32 %v6466_v12, %v15652_v5  ;;  %v6754_v37 = vrot.slane %v15669_v18, %v17388_v50  ;;  %v6608_v56 = vmul.f32 %v6562_v14, %v15645_v59 }
 0x9fe   :  { %v7006_v43 = vadd.f32 %v6990_v39, %v6910_v33  ;;  %v6719_v47 = vadd.f32 %v6703_v6, %v6623_v41  ;;  %v6704_v23 = vmul.f32 %v6658_v35, %v15671_v53  ;;  %v6850_v3 = vrot.slane %v15669_v18, %v17432_v2 }
 0x9ff   :  { %v6528_v26 = vadd.f32 %v6512_v28, %v6432_v19  ;;  %v6294_v0 = vrot.slane %v15705_v22, %v12978_v31  ;;  %v6374_v48 = vrot.slane %v15705_v22, %v12982_v34  ;;  %v6946_v39 = vrot.slane %v15669_v18, %v17433_v21 }
 0xa00   :  { %v7022_v45 = vmul.f32 %v7006_v43, %v12986_v36  ;;  %v6815_v29 = vadd.f32 %v6799_v40, %v6719_v47  ;;  %v6470_v6 = vrot.slane %v15705_v22, %v12989_v38  ;;  %v6566_v13 = vrot.slane %v15705_v22, %v12993_v42 }
 0xa01   :  { %v6624_v60 = vadd.f32 %v6608_v56, %v6528_v26  ;;  %v6337_v12 = vmul.f32 %v6294_v0, %v15629_v10  ;;  %v6417_v16 = vmul.f32 %v6374_v48, %v15633_v15  ;;  %v6800_v35 = vmul.f32 %v6754_v37, %v15676_v20 }
 0xa02   :  { %12066 = vmatmul.mubr.msk.f32.gmra.mxu1 %vm276_vm0, %v7022_v45  ;;  %v6911_v14 = vadd.f32 %v6895_v54, %v6815_v29  ;;  %v6896_v33 = vmul.f32 %v6850_v3, %v15690_v46  ;;  %v6662_v18 = vrot.slane %v15705_v22, %v17389_v25  ;;  %v6992_v40 = vmul.f32 %v6946_v39, %v15695_v62 }
 0xa03   :  { %v6720_v41 = vadd.f32 %v6704_v23, %v6624_v60  ;;  %v6433_v19 = vadd.f32 %v6417_v16, %v6337_v12  ;;  %v6513_v28 = vmul.f32 %v6470_v6, %v15652_v5  ;;  %v6609_v47 = vmul.f32 %v6566_v13, %v15645_v59 }
 0xa04   :  { %v7007_v43 = vadd.f32 %v6991_v24, %v6911_v14  ;;  %v6758_v56 = vrot.slane %v15705_v22, %v17388_v50  ;;  %v6854_v54 = vrot.slane %v15705_v22, %v17432_v2  ;;  %v6950_v3 = vrot.slane %v15705_v22, %v17433_v21 }
 0xa05   :  { %v6816_v37 = vadd.f32 %v6800_v35, %v6720_v41  ;;  %v6529_v26 = vadd.f32 %v6513_v28, %v6433_v19  ;;  %v6298_v23 = vrot.slane %v15703_v51, %v12978_v31  ;;  %v6705_v24 = vmul.f32 %v6662_v18, %v15671_v53 }
 0xa06   :  { %v7023_v0 = vmul.f32 %v7007_v43, %v13037_v7  ;;  %v6378_v48 = vrot.slane %v15703_v51, %v12982_v34  ;;  %v6474_v45 = vrot.slane %v15703_v51, %v12989_v38  ;;  %v6570_v22 = vrot.slane %v15703_v51, %v12993_v42 }
 0xa07   :  { %v6912_v29 = vadd.f32 %v6896_v33, %v6816_v37  ;;  %v6625_v39 = vadd.f32 %v6609_v47, %v6529_v26  ;;  %v6338_v6 = vmul.f32 %v6298_v23, %v15629_v10  ;;  %v6801_v60 = vmul.f32 %v6758_v56, %v15676_v20 }
 0xa08   :  { %12068 = vmatprep.mubr.msk.f32.mxu1 %vm276_vm0, %v7023_v0  ;;  %v6897_v12 = vmul.f32 %v6854_v54, %v15690_v46  ;;  %v6418_v16 = vmul.f32 %v6378_v48, %v15633_v15  ;;  %v6666_v13 = vrot.slane %v15703_v51, %v17389_v25  ;;  %v6993_v33 = vmul.f32 %v6950_v3, %v15695_v62 }
 0xa09   :  { %v7008_v14 = vadd.f32 %v6992_v40, %v6912_v29  ;;  %v6721_v35 = vadd.f32 %v6705_v24, %v6625_v39  ;;  %v6762_v10 = vrot.slane %v15703_v51, %v17388_v50  ;;  %v6514_v41 = vmul.f32 %v6474_v45, %v15652_v5 }
 0xa0a   :  { %v6434_v18 = vadd.f32 %v6418_v16, %v6338_v6  ;;  %v6610_v19 = vmul.f32 %v6570_v22, %v15645_v59  ;;  %v6858_v28 = vrot.slane %v15703_v51, %v17432_v2  ;;  %v6954_v40 = vrot.slane %v15703_v51, %v17433_v21 }
 0xa0b   :  { %v7024_v15 = vmul.f32 %v7008_v14, %v13011_v52  ;;  %v6817_v43 = vadd.f32 %v6801_v60, %v6721_v35  ;;  %v6302_v47 = vrot.slane %v15715_v9, %v12978_v31  ;;  %v6706_v54 = vmul.f32 %v6666_v13, %v15671_v53 }
 0xa0c   :  { %v6530_v56 = vadd.f32 %v6514_v41, %v6434_v18  ;;  %v6382_v5 = vrot.slane %v15715_v9, %v12982_v34  ;;  %v6478_v59 = vrot.slane %v15715_v9, %v12989_v38  ;;  %v6802_v26 = vmul.f32 %v6762_v10, %v15676_v20 }
 0xa0d   :  { %12069 = vmatmul.mubr.msk.f32.gmra.mxu1 %vm276_vm0, %v7024_v15  ;;  %v6913_v37 = vadd.f32 %v6897_v12, %v6817_v43  ;;  %v6339_v3 = vmul.f32 %v6302_v47, %v15717_v4  ;;  %v6574_v51 = vrot.slane %v15715_v9, %v12993_v42  ;;  %v6670_v24 = vrot.slane %v15715_v9, %v17389_v25 }
 0xa0e   :  { %v6626_v23 = vadd.f32 %v6610_v19, %v6530_v56  ;;  %v6419_v0 = vmul.f32 %v6382_v5, %v15713_v30  ;;  %v6515_v53 = vmul.f32 %v6478_v59, %v15746_v17  ;;  %v6898_v45 = vmul.f32 %v6858_v28, %v15690_v46 }
 0xa0f   :  { %v7009_v48 = vadd.f32 %v6993_v33, %v6913_v37  ;;  %v6994_v29 = vmul.f32 %v6954_v40, %v15695_v62  ;;  %v6766_v20 = vrot.slane %v15715_v9, %v17388_v50  ;;  %v6611_v22 = vmul.f32 %v6574_v51, %v15732_v49 }
 0xa10   :  { %v6722_v39 = vadd.f32 %v6706_v54, %v6626_v23  ;;  %v6435_v6 = vadd.f32 %v6419_v0, %v6339_v3  ;;  %v6707_v60 = vmul.f32 %v6670_v24, %v15766_v44  ;;  %v6862_v16 = vrot.slane %v15715_v9, %v17432_v2 }
 0xa11   :  { %v7025_v12 = vmul.f32 %v7009_v48, %v13057_v27  ;;  %v6306_v13 = vrot.slane %v15710_v32, %v12978_v31  ;;  %v6386_v46 = vrot.slane %v15710_v32, %v12982_v34  ;;  %v6803_v35 = vmul.f32 %v6766_v20, %v15757_v61 }
 0xa12   :  { %v6818_v62 = vadd.f32 %v6802_v26, %v6722_v39  ;;  %v6531_v14 = vadd.f32 %v6515_v53, %v6435_v6  ;;  %v6482_v33 = vrot.slane %v15710_v32, %v12989_v38  ;;  %v6958_v10 = vrot.slane %v15715_v9, %v17433_v21 }
 0xa13   :  { %12071 = vmatprep.mubr.msk.f32.mxu1 %vm276_vm0, %v7025_v12  ;;  %v6340_v18 = vmul.f32 %v6306_v13, %v15717_v4  ;;  %v6420_v41 = vmul.f32 %v6386_v46, %v15713_v30  ;;  %v6578_v19 = vrot.slane %v15710_v32, %v12993_v42  ;;  %v6674_v40 = vrot.slane %v15710_v32, %v17389_v25 }
 0xa14   :  { %v6914_v28 = vadd.f32 %v6898_v45, %v6818_v62  ;;  %v6627_v15 = vadd.f32 %v6611_v22, %v6531_v14  ;;  %v6516_v43 = vmul.f32 %v6482_v33, %v15746_v17  ;;  %v6899_v47 = vmul.f32 %v6862_v16, %v15782_v11 }
 0xa15   :  { %v6995_v56 = vmul.f32 %v6958_v10, %v15771_v57  ;;  %v6436_v54 = vadd.f32 %v6420_v41, %v6340_v18  ;;  %v6770_v9 = vrot.slane %v15710_v32, %v17388_v50  ;;  %v6612_v37 = vmul.f32 %v6578_v19, %v15732_v49 }
 0xa16   :  { %v7010_v5 = vadd.f32 %v6994_v29, %v6914_v28  ;;  %v6723_v59 = vadd.f32 %v6707_v60, %v6627_v15  ;;  %v6708_v26 = vmul.f32 %v6674_v40, %v15766_v44  ;;  %v6866_v51 = vrot.slane %v15710_v32, %v17432_v2  ;;  %v17437_v15 = vld [vmem:[#allocation12_spill] sm:$0xff] }
 0xa17   :  { %v6532_v3 = vadd.f32 %v6516_v43, %v6436_v54  ;;  %v6310_v23 = vrot.slane %v15744_v55, %v12978_v31  ;;  %v6390_v0 = vrot.slane %v15744_v55, %v12982_v34  ;;  %v6962_v48 = vrot.slane %v15710_v32, %v17433_v21 }
 0xa18   :  { %v7026_v53 = vmul.f32 %v7010_v5, %v13039_v8  ;;  %v6819_v24 = vadd.f32 %v6803_v35, %v6723_v59  ;;  %v6486_v45 = vrot.slane %v15744_v55, %v12989_v38  ;;  %v6582_v6 = vrot.slane %v15744_v55, %v12993_v42 }
 0xa19   :  { %v6628_v29 = vadd.f32 %v6612_v37, %v6532_v3  ;;  %v6341_v20 = vmul.f32 %v6310_v23, %v15717_v4  ;;  %v6421_v39 = vmul.f32 %v6390_v0, %v15713_v30  ;;  %v6804_v60 = vmul.f32 %v6770_v9, %v15757_v61 }
 0xa1a   :  { %12072 = vmatmul.mubr.msk.f32.gmra.mxu1 %vm276_vm0, %v7026_v53  ;;  %v6915_v22 = vadd.f32 %v6899_v47, %v6819_v24  ;;  %v6900_v12 = vmul.f32 %v6866_v51, %v15782_v11  ;;  %v6996_v32 = vmul.f32 %v6962_v48, %v15771_v57  ;;  %v6517_v46 = vmul.f32 %v6486_v45, %v15746_v17  ;;  %v17438_v45 = vld [vmem:[#allocation13_spill] sm:$0xff] }
 0xa1b   :  { %v6724_v16 = vadd.f32 %v6708_v26, %v6628_v29  ;;  %v6437_v13 = vadd.f32 %v6421_v39, %v6341_v20  ;;  %v6678_v62 = vrot.slane %v15744_v55, %v17389_v25  ;;  %v6613_v35 = vmul.f32 %v6582_v6, %v15732_v49  ;;  %v17439_v6 = vld [vmem:[#allocation7_spill] sm:$0xff] }
 0xa1c   :  { %v7011_v14 = vadd.f32 %v6995_v56, %v6915_v22  ;;  %v6774_v33 = vrot.slane %v15744_v55, %v17388_v50  ;;  %v6870_v10 = vrot.slane %v15744_v55, %v17432_v2  ;;  %v6314_v28 = vrot.slane %v15726_v1, %v12978_v31 }
 0xa1d   :  { %v6820_v18 = vadd.f32 %v6804_v60, %v6724_v16  ;;  %v6533_v41 = vadd.f32 %v6517_v46, %v6437_v13  ;;  %v6709_v19 = vmul.f32 %v6678_v62, %v15766_v44  ;;  %v6966_v40 = vrot.slane %v15744_v55, %v17433_v21 }
 0xa1e   :  { %v7027_v43 = vmul.f32 %v7011_v14, %v17437_v15  ;;  %v6394_v47 = vrot.slane %v15726_v1, %v12982_v34  ;;  %v6490_v56 = vrot.slane %v15726_v1, %v12989_v38  ;;  %v6342_v5 = vmul.f32 %v6314_v28, %v15717_v4 }
 0xa1f   :  { %v6916_v54 = vadd.f32 %v6900_v12, %v6820_v18  ;;  %v6629_v9 = vadd.f32 %v6613_v35, %v6533_v41  ;;  %v6586_v59 = vrot.slane %v15726_v1, %v12993_v42  ;;  %v16004_v37 = vmax.f32 %v15769_v63, 0.0 }
 0xa20   :  { %v16007_v26 = vmax.f32 %v15777_v58, 0.0  ;;  %12074 = vmatprep.mubr.msk.f32.mxu1 %vm276_vm0, %v7027_v43  ;;  %v6805_v55 = vmul.f32 %v6774_v33, %v15757_v61  ;;  %v6422_v3 = vmul.f32 %v6394_v47, %v15713_v30  ;;  %v6901_v0 = vmul.f32 %v6870_v10, %v15782_v11 }
 0xa21   :  { %v7012_v51 = vadd.f32 %v6996_v32, %v6916_v54  ;;  %v6725_v23 = vadd.f32 %v6709_v19, %v6629_v9  ;;  %v6997_v53 = vmul.f32 %v6966_v40, %v15771_v57  ;;  %v6518_v48 = vmul.f32 %v6490_v56, %v15746_v17  ;;  %v17440_v54 = vld [vmem:[#allocation14_spill] sm:$0xff] }
 0xa22   :  { %v6438_v24 = vadd.f32 %v6422_v3, %v6342_v5  ;;  %v6682_v63 = vrot.slane %v15726_v1, %v17389_v25  ;;  %v6778_v58 = vrot.slane %v15726_v1, %v17388_v50  ;;  %v6614_v39 = vmul.f32 %v6586_v59, %v15732_v49  ;;  %v17441_v59 = vld [vmem:[#allocation8_spill] sm:$0xff] }
 0xa23   :  { %v7028_v29 = vmul.f32 %v7012_v51, %v17438_v45  ;;  %v6821_v20 = vadd.f32 %v6805_v55, %v6725_v23  ;;  %v6318_v22 = vrot.slane %v17439_v6, %v12978_v31  ;;  %v6874_v12 = vrot.slane %v15726_v1, %v17432_v2 }
 0xa24   :  { %v6534_v60 = vadd.f32 %v6518_v48, %v6438_v24  ;;  %v6398_v32 = vrot.slane %v17439_v6, %v12982_v34  ;;  %v6494_v16 = vrot.slane %v17439_v6, %v12989_v38  ;;  %v6970_v46 = vrot.slane %v15726_v1, %v17433_v21 }
 0xa25   :  { %12075 = vmatmul.mubr.msk.f32.gmra.mxu1 %vm276_vm0, %v7028_v29  ;;  %v6917_v13 = vadd.f32 %v6901_v0, %v6821_v20  ;;  %v6343_v62 = vmul.f32 %v6318_v22, %v15717_v4  ;;  %v6590_v14 = vrot.slane %v17439_v6, %v12993_v42  ;;  %v6710_v33 = vmul.f32 %v6682_v63, %v15766_v44 }
 0xa26   :  { %v6630_v35 = vadd.f32 %v6614_v39, %v6534_v60  ;;  %v6806_v10 = vmul.f32 %v6778_v58, %v15757_v61  ;;  %v6423_v18 = vmul.f32 %v6398_v32, %v15713_v30  ;;  %v6902_v19 = vmul.f32 %v6874_v12, %v15782_v11 }
 0xa27   :  { %v7013_v41 = vadd.f32 %v6997_v53, %v6917_v13  ;;  %v6998_v28 = vmul.f32 %v6970_v46, %v15771_v57  ;;  %v6686_v1 = vrot.slane %v17439_v6, %v17389_v25  ;;  %v6519_v47 = vmul.f32 %v6494_v16, %v15746_v17 }
 0xa28   :  { %v6726_v43 = vadd.f32 %v6710_v33, %v6630_v35  ;;  %v6439_v40 = vadd.f32 %v6423_v18, %v6343_v62  ;;  %v6782_v56 = vrot.slane %v17439_v6, %v17388_v50  ;;  %v6615_v5 = vmul.f32 %v6590_v14, %v15732_v49  ;;  %v17442_v18 = vld [vmem:[#allocation15_spill] sm:$0xff] }
 0xa29   :  { %v7029_v9 = vmul.f32 %v7013_v41, %v17440_v54  ;;  %v6322_v55 = vrot.slane %v17441_v59, %v12978_v31  ;;  %v6402_v3 = vrot.slane %v17441_v59, %v12982_v34  ;;  %v6974_v0 = vrot.slane %v17439_v6, %v17433_v21 }
 0xa2a   :  { %v6822_v51 = vadd.f32 %v6806_v10, %v6726_v43  ;;  %v6535_v23 = vadd.f32 %v6519_v47, %v6439_v40  ;;  %v6498_v53 = vrot.slane %v17441_v59, %v12989_v38  ;;  %v6878_v24 = vrot.slane %v17439_v6, %v17432_v2 }
 0xa2b   :  { %12077 = vmatprep.mubr.msk.f32.mxu1 %vm276_vm0, %v7029_v9  ;;  %v6344_v48 = vmul.f32 %v6322_v55, %v15717_v4  ;;  %v6424_v63 = vmul.f32 %v6402_v3, %v15713_v30  ;;  %v6594_v58 = vrot.slane %v17441_v59, %v12993_v42  ;;  %v6711_v39 = vmul.f32 %v6686_v1, %v15766_v44 }
 0xa2c   :  { %v6918_v29 = vadd.f32 %v6902_v19, %v6822_v51  ;;  %v6631_v20 = vadd.f32 %v6615_v5, %v6535_v23  ;;  %v6690_v22 = vrot.slane %v17441_v59, %v17389_v25  ;;  %v6807_v60 = vmul.f32 %v6782_v56, %v15757_v61 }
 0xa2d   :  { %v6903_v12 = vmul.f32 %v6878_v24, %v15782_v11  ;;  %v6440_v32 = vadd.f32 %v6424_v63, %v6344_v48  ;;  %v6520_v6 = vmul.f32 %v6498_v53, %v15746_v17  ;;  %v6999_v46 = vmul.f32 %v6974_v0, %v15771_v57 }
 0xa2e   :  { %v7014_v16 = vadd.f32 %v6998_v28, %v6918_v29  ;;  %v6727_v13 = vadd.f32 %v6711_v39, %v6631_v20  ;;  %v6786_v62 = vrot.slane %v17441_v59, %v17388_v50  ;;  %v6616_v35 = vmul.f32 %v6594_v58, %v15732_v49 }
 0xa2f   :  { %v6536_v14 = vadd.f32 %v6520_v6, %v6440_v32  ;;  %v6326_v33 = vrot.slane %v16007_v26, %v12978_v31  ;;  %v6406_v10 = vrot.slane %v16007_v26, %v12982_v34  ;;  %v6712_v28 = vmul.f32 %v6690_v22, %v15766_v44  ;;  %v17443_v22 = vld [vmem:[#allocation16_spill] sm:$0xff] }
 0xa30   :  { %v7030_v41 = vmul.f32 %v7014_v16, %v17442_v18  ;;  %v6823_v19 = vadd.f32 %v6807_v60, %v6727_v13  ;;  %v6502_v1 = vrot.slane %v16007_v26, %v12989_v38  ;;  %v6598_v56 = vrot.slane %v16007_v26, %v12993_v42 }
 0xa31   :  { %v6632_v43 = vadd.f32 %v6616_v35, %v6536_v14  ;;  %v6345_v40 = vmul.f32 %v6326_v33, %v15717_v4  ;;  %v6425_v47 = vmul.f32 %v6406_v10, %v15713_v30  ;;  %v6808_v5 = vmul.f32 %v6786_v62, %v15757_v61 }
 0xa32   :  { %12078 = vmatmul.mubr.msk.f32.gmra.mxu1 %vm276_vm0, %v7030_v41  ;;  %v6919_v9 = vadd.f32 %v6903_v12, %v6823_v19  ;;  %v6882_v55 = vrot.slane %v17441_v59, %v17432_v2  ;;  %v6978_v3 = vrot.slane %v17441_v59, %v17433_v21  ;;  %v6521_v0 = vmul.f32 %v6502_v1, %v15746_v17 }
 0xa33   :  { %v6728_v51 = vadd.f32 %v6712_v28, %v6632_v43  ;;  %v6441_v23 = vadd.f32 %v6425_v47, %v6345_v40  ;;  %v6694_v53 = vrot.slane %v16007_v26, %v17389_v25  ;;  %v6790_v58 = vrot.slane %v16007_v26, %v17388_v50  ;;  %v17444_v43 = vld [vmem:[#allocation17_spill] sm:$0xff] }
 0xa34   :  { %v7015_v24 = vadd.f32 %v6999_v46, %v6919_v9  ;;  %v6904_v48 = vmul.f32 %v6882_v55, %v15782_v11  ;;  %v7000_v63 = vmul.f32 %v6978_v3, %v15771_v57  ;;  %v6617_v39 = vmul.f32 %v6598_v56, %v15732_v49 }
 0xa35   :  { %v6824_v29 = vadd.f32 %v6808_v5, %v6728_v51  ;;  %v6537_v20 = vadd.f32 %v6521_v0, %v6441_v23  ;;  %v6330_v59 = vrot.slane %v16004_v37, %v12978_v31  ;;  %v6886_v12 = vrot.slane %v16007_v26, %v17432_v2 }
 0xa36   :  { %v7031_v60 = vmul.f32 %v7015_v24, %v17443_v22  ;;  %v6410_v32 = vrot.slane %v16004_v37, %v12982_v34  ;;  %v6506_v6 = vrot.slane %v16004_v37, %v12989_v38  ;;  %v6713_v46 = vmul.f32 %v6694_v53, %v15766_v44  ;;  %v17445_v24 = vld [vmem:[#allocation18_spill] sm:$0xff] }
 0xa37   :  { %v6920_v16 = vadd.f32 %v6904_v48, %v6824_v29  ;;  %v6633_v13 = vadd.f32 %v6617_v39, %v6537_v20  ;;  %v6346_v62 = vmul.f32 %v6330_v59, %v15717_v4  ;;  %v6602_v35 = vrot.slane %v16004_v37, %v12993_v42  ;;  %v17446_v39 = vld [vmem:[#allocation19_spill] sm:$0xff] }
 0xa38   :  { %12080 = vmatprep.mubr.msk.f32.mxu1 %vm276_vm0, %v7031_v60  ;;  %v6426_v14 = vmul.f32 %v6410_v32, %v15713_v30  ;;  %v6809_v41 = vmul.f32 %v6790_v58, %v15757_v61  ;;  %v6982_v19 = vrot.slane %v16007_v26, %v17433_v21  ;;  %v6522_v1 = vmul.f32 %v6506_v6, %v15746_v17 }
 0xa39   :  { %v7016_v33 = vadd.f32 %v7000_v63, %v6920_v16  ;;  %v6729_v10 = vadd.f32 %v6713_v46, %v6633_v13  ;;  %v6698_v4 = vrot.slane %v16004_v37, %v17389_v25  ;;  %v6905_v30 = vmul.f32 %v6886_v12, %v15782_v11 }
 0xa3a   :  { %v6442_v28 = vadd.f32 %v6426_v14, %v6346_v62  ;;  %v6618_v9 = vmul.f32 %v6602_v35, %v15732_v49  ;;  %v6794_v5 = vrot.slane %v16004_v37, %v17388_v50  ;;  %v7001_v55 = vmul.f32 %v6982_v19, %v15771_v57 }
 0xa3b   :  { %v7032_v40 = vmul.f32 %v7016_v33, %v17444_v43  ;;  %v6825_v47 = vadd.f32 %v6809_v41, %v6729_v10  ;;  %v6714_v3 = vmul.f32 %v6698_v4, %v15766_v44  ;;  %v6890_v51 = vrot.slane %v16004_v37, %v17432_v2 }
 0xa3c   :  { %v6538_v56 = vadd.f32 %v6522_v1, %v6442_v28  ;;  %v6810_v53 = vmul.f32 %v6794_v5, %v15757_v61  ;;  %v6986_v49 = vrot.slane %v16004_v37, %v17433_v21  ;;  %v17447_v60 = vmov 0.0   ;;  %v16140_v61 = vpop.f32.mrf.mxu0 }
 0xa3d   :  { %12081 = vmatmul.mubr.msk.f32.gmra.mxu1 %vm276_vm0, %v7032_v40  ;;  %v6921_v26 = vadd.f32 %v6905_v30, %v6825_v47  ;;  %v6906_v58 = vmul.f32 %v6890_v51, %v15782_v11 }
 0xa3e   :  { %v6634_v17 = vadd.f32 %v6618_v9, %v6538_v56  ;;  %v7002_v44 = vmul.f32 %v6986_v49, %v15771_v57  ;;  %v16144_v12 = vpop.f32.mrf.mxu0 }
 0xa3f   :  { %v7017_v23 = vadd.f32 %v7001_v55, %v6921_v26 }
 0xa40   :  { %v6730_v0 = vadd.f32 %v6714_v3, %v6634_v17  ;;  %v16148_v32 = vpop.f32.mrf.mxu0 }
 0xa41   :  { %v7033_v48 = vmul.f32 %v7017_v23, %v17445_v24 }
 0xa42   :  { %v6826_v63 = vadd.f32 %v6810_v53, %v6730_v0  ;;  %v16152_v57 = vpop.f32.mrf.mxu0 }
 0xa43   :  { %12083 = vmatprep.mubr.msk.f32.mxu1 %vm276_vm0, %v7033_v48 }
 0xa44   :  { %v6922_v29 = vadd.f32 %v6906_v58, %v6826_v63  ;;  %v16156_v13 = vpop.f32.mrf.mxu0 }
 0xa46   :  { %v7018_v20 = vadd.f32 %v7002_v44, %v6922_v29  ;;  %v16160_v62 = vpop.f32.mrf.mxu0 }
 0xa48   :  { %v7034_v59 = vmul.f32 %v7018_v20, %v17446_v39  ;;  %v12039_v35 = vpop.f32.mrf.mxu0 }
 0xa4a   :  { %12084 = vmatmul.mubr.msk.f32.gmra.mxu1 %vm276_vm0, %v7034_v59  ;;  %v7131_v10 = vpop.f32.mrf.mxu0 }
 0xa4b   :  { %12153 = vmatprep.mubr.msk.f32.mxu1 %vm12513_vm1, %v17447_v60 }
 0xa4c   :  { %v12042_v19 = vpop.f32.mrf.mxu0 }
 0xa4e   :  { %v7141_v1 = vpop.f32.mrf.mxu0 }
 0xa50   :  { %v12045_v40 = vpop.f32.mrf.mxu0 }
 0xa52   :  { %v7151_v30 = vpop.f32.mrf.mxu0 }
 0xa54   :  { %v12048_v9 = vpop.f32.mrf.mxu0 }
 0xa56   :  { %v7161_v26 = vpop.f32.mrf.mxu0 }
 0xa58   :  { %v12051_v17 = vpop.f32.mrf.mxu0 }
 0xa5a   :  { %v7171_v0 = vpop.f32.mrf.mxu0 }
 0xaae   :  { %v16142_v37 = vpop.f32.mrf.mxu1 }
 0xab0   :  { %v16146_v11 = vpop.f32.mrf.mxu1 }
 0xac2   :  { %v16150_v6 = vpop.f32.mrf.mxu1 }
 0xac4   :  { %v16154_v16 = vpop.f32.mrf.mxu1 }
 0xacd   :  { %v16158_v46 = vpop.f32.mrf.mxu1 }
 0xacf   :  { %v16162_v14 = vpop.f32.mrf.mxu1 }
 0xada   :  { %v12073_v33 = vpop.f32.mrf.mxu1 }
 0xadc   :  { %v7324_v41 = vpop.f32.mrf.mxu1 }
 0xae5   :  { %v12076_v28 = vpop.f32.mrf.mxu1 }
 0xae7   :  { %v7334_v4 = vpop.f32.mrf.mxu1 }
 0xaf2   :  { %v12079_v47 = vpop.f32.mrf.mxu1 }
 0xaf3   :  { %v7350_v58 = vadd.f32 %v12079_v47, %v12045_v40  ;;  %v7340_v40 = vadd.f32 %v12076_v28, %v12042_v19  ;;  %v7330_v19 = vadd.f32 %v12073_v33, %v12039_v35  ;;  %v7320_v35 = vadd.f32 %v16158_v46, %v16156_v13 }
 0xaf4   :  { %v7344_v56 = vpop.f32.mrf.mxu1  ;;  %v7310_v13 = vadd.f32 %v16150_v6, %v16148_v32  ;;  %v7300_v32 = vadd.f32 %v16142_v37, %v16140_v61  ;;  %v17449_v61 = vld [vmem:[#allocation6_spill] sm:$0xff] }
 0xaf5   :  { %v7345_v59 = vadd.f32 %v7344_v56, %v7151_v30  ;;  %v7384_v47 = vmul.f32 %v7350_v58, %v17442_v18  ;;  %v7335_v30 = vadd.f32 %v7334_v4, %v7141_v1  ;;  %v7382_v28 = vmul.f32 %v7340_v40, %v17438_v45  ;;  %v12485_v40 = vld [vmem:[%s17386_s26 + $0x2] sm:$0x3] }
 0xaf6   :  { %v7380_v33 = vmul.f32 %v7330_v19, %v13039_v8  ;;  %v7378_v46 = vmul.f32 %v7320_v35, %v13011_v52  ;;  %v7376_v6 = vmul.f32 %v7310_v13, %v12986_v36  ;;  %v7374_v37 = vmul.f32 %v7300_v32, %v17449_v61  ;;  %v10444_v19 = vld [vmem:[%s17270_s8 + $0x88] sm:$0xff]  ;;  %v10442_v35 = vld [vmem:[%s17270_s8 + $0x78] sm:$0xff] }
 0xaf7   :  { %v7383_v56 = vmul.f32 %v7345_v59, %v17440_v54  ;;  %v7381_v1 = vmul.f32 %v7335_v30, %v17437_v15  ;;  %v12484_v59 = vld [vmem:[%s17386_s26] sm:$0x3]  ;;  %v10445_v30 = vld [vmem:[%s17270_s8 + $0x90] sm:$0xff] }
 0xaf9   :  { %v16198_v4 = vmax.f32 %v7383_v56, 0.0  ;;  %v10438_v56 = vld [vmem:[%s17269_s7 + $0x88] sm:$0xff] }
 0xafd   :  { %v12082_v5 = vpop.f32.mrf.mxu1 }
 0xafe   :  { %v7360_v51 = vadd.f32 %v12082_v5, %v12048_v9 }
 0xaff   :  { %v7354_v55 = vpop.f32.mrf.mxu1 }
 0xb00   :  { %v7355_v49 = vadd.f32 %v7354_v55, %v7161_v26  ;;  %v7386_v29 = vmul.f32 %v7360_v51, %v17444_v43  ;;  %v16191_v26 = vmax.f32 %v7384_v47, 0.0  ;;  %v16207_v55 = vmax.f32 %v7382_v28, 0.0  ;;  %v10439_v47 = vld [vmem:[%s17269_s7 + $0x90] sm:$0xff]  ;;  %v10437_v28 = vld [vmem:[%s17269_s7 + $0x80] sm:$0xff] }
 0xb02   :  { %v7385_v21 = vmul.f32 %v7355_v49, %v17443_v22  ;;  %v16177_v9 = vmax.f32 %v7386_v29, 0.0  ;;  %v16259_v49 = vmax.f32 %v7376_v6, 0.0  ;;  %v10440_v29 = vld [vmem:[%s17269_s7 + $0x98] sm:$0xff]  ;;  %v10450_v6 = vld [vmem:[%s17265_s3 + $0xb0] sm:$0xff] }
 0xb04   :  { %v16184_v5 = vmax.f32 %v7385_v21, 0.0  ;;  %v7325_v21 = vadd.f32 %v7324_v41, %v7131_v10  ;;  %v7315_v10 = vadd.f32 %v16162_v14, %v16160_v62  ;;  %v7305_v62 = vadd.f32 %v16154_v16, %v16152_v57  ;;  %v17448_v16 = vld [vmem:[#allocation11_spill] sm:$0xff] }
 0xb05   :  { %v7295_v57 = vadd.f32 %v16146_v11, %v16144_v12  ;;  %v17450_v12 = vld [vmem:[#allocation5_spill] sm:$0xff] }
 0xb06   :  { %v7379_v41 = vmul.f32 %v7325_v21, %v13057_v27  ;;  %v7377_v14 = vmul.f32 %v7315_v10, %v13037_v7  ;;  %v10443_v21 = vld [vmem:[%s17270_s8 + $0x80] sm:$0xff] }
 0xb07   :  { %v7373_v11 = vmul.f32 %v7295_v57, %v17450_v12  ;;  %v10457_v10 = vld [vmem:[%s17266_s4 + $0xc0] sm:$0xff]  ;;  %v10455_v57 = vld [vmem:[%s17266_s4 + $0xb0] sm:$0xff] }
 0xb08   :  { %v16234_v51 = vmax.f32 %v7379_v41, 0.0 }
 0xb09   :  { %v16278_v58 = vmax.f32 %v7373_v11, 0.0  ;;  %v10448_v11 = vld [vmem:[%s17265_s3 + $0xa0] sm:$0xff] }
 0xb0a   :  { %v12085_v3 = vpop.f32.mrf.mxu1 }
 0xb0b   :  { %v7370_v23 = vadd.f32 %v12085_v3, %v12051_v17  ;;  %v16216_v17 = vmax.f32 %v7381_v1, 0.0  ;;  %v16225_v3 = vmax.f32 %v7380_v33, 0.0  ;;  %v10436_v1 = vld [vmem:[%s17269_s7 + $0x78] sm:$0xff]  ;;  %v10452_v33 = vld [vmem:[%s17265_s3 + $0xc0] sm:$0xff] }
 0xb0c   :  { %v7364_v53 = vpop.f32.mrf.mxu1 }
 0xb0d   :  { %v7388_v48 = vmul.f32 %v7370_v23, %v17446_v39  ;;  %v7365_v63 = vadd.f32 %v7364_v53, %v7171_v0  ;;  %v16243_v23 = vmax.f32 %v7378_v46, 0.0  ;;  %v7375_v0 = vmul.f32 %v7305_v62, %v17448_v16  ;;  %v10451_v46 = vld [vmem:[%s17265_s3 + $0xb8] sm:$0xff] }
 0xb0e   :  { %v16252_v53 = vmax.f32 %v7377_v14, 0.0  ;;  %v10456_v62 = vld [vmem:[%s17266_s4 + $0xb8] sm:$0xff] }
 0xb0f   :  { %v16166_v44 = vmax.f32 %v7388_v48, 0.0  ;;  %v7387_v20 = vmul.f32 %v7365_v63, %v17445_v24  ;;  %v16266_v48 = vmax.f32 %v7375_v0, 0.0  ;;  %v16272_v63 = vmax.f32 %v7374_v37, 0.0  ;;  %v10449_v0 = vld [vmem:[%s17265_s3 + $0xa8] sm:$0xff] }
 0xb10   :  { %v10454_v37 = vld [vmem:[%s17266_s4 + $0xa8] sm:$0xff] }
 0xb11   :  { %v16170_v2 = vmax.f32 %v7387_v20, 0.0  ;;  %12087 = vmatpush3.msra.mxu0 %v16166_v44  ;;  %12122 = vmatpush3.msra.mxu1 %v16166_v44  ;;  %v10446_v20 = vld [vmem:[%s17270_s8 + $0x98] sm:$0xff] }
 0xb12   :  { %12088 = vmatprep.subr.mxu0 %v17447_v60  ;;  %12123 = vmatprep.subr.mxu1 %v17447_v60 }
 0xb13   :  { %12089 = vmatpush3.msra.mxu0 %v16170_v2  ;;  %12124 = vmatpush3.msra.mxu1 %v16170_v2 }
 0xb14   :  { %12090 = vmatprep.subr.mxu0 %v17447_v60  ;;  %12125 = vmatprep.subr.mxu1 %v17447_v60 }
 0xb15   :  { %12091 = vmatpush3.msra.mxu0 %v16177_v9  ;;  %12126 = vmatpush3.msra.mxu1 %v16177_v9 }
 0xb16   :  { %12092 = vmatprep.subr.mxu0 %v17447_v60  ;;  %12127 = vmatprep.subr.mxu1 %v17447_v60 }
 0xb17   :  { %12093 = vmatpush3.msra.mxu0 %v16184_v5  ;;  %12128 = vmatpush3.msra.mxu1 %v16184_v5 }
 0xb18   :  { %12094 = vmatprep.subr.mxu0 %v17447_v60  ;;  %12129 = vmatprep.subr.mxu1 %v17447_v60 }
 0xb19   :  { %12095 = vmatpush3.msra.mxu0 %v16191_v26  ;;  %12130 = vmatpush3.msra.mxu1 %v16191_v26 }
 0xb1a   :  { %12096 = vmatprep.subr.mxu0 %v17447_v60  ;;  %12131 = vmatprep.subr.mxu1 %v17447_v60 }
 0xb1b   :  { %12097 = vmatpush3.msra.mxu0 %v16198_v4  ;;  %12132 = vmatpush3.msra.mxu1 %v16198_v4 }
 0xb1c   :  { %12098 = vmatprep.subr.mxu0 %v17447_v60  ;;  %12133 = vmatprep.subr.mxu1 %v17447_v60 }
 0xb1d   :  { %12099 = vmatpush3.msra.mxu0 %v16207_v55  ;;  %12134 = vmatpush3.msra.mxu1 %v16207_v55 }
 0xb1e   :  { %12100 = vmatprep.subr.mxu0 %v17447_v60  ;;  %12135 = vmatprep.subr.mxu1 %v17447_v60 }
 0xb1f   :  { %12101 = vmatpush3.msra.mxu0 %v16216_v17  ;;  %12136 = vmatpush3.msra.mxu1 %v16216_v17 }
 0xb20   :  { %12102 = vmatprep.subr.mxu0 %v17447_v60  ;;  %12137 = vmatprep.subr.mxu1 %v17447_v60 }
 0xb21   :  { %12103 = vmatpush3.msra.mxu0 %v16225_v3  ;;  %12138 = vmatpush3.msra.mxu1 %v16225_v3 }
 0xb22   :  { %12104 = vmatprep.subr.mxu0 %v17447_v60  ;;  %12139 = vmatprep.subr.mxu1 %v17447_v60 }
 0xb23   :  { %12105 = vmatpush3.msra.mxu0 %v16234_v51  ;;  %12140 = vmatpush3.msra.mxu1 %v16234_v51 }
 0xb24   :  { %12106 = vmatprep.subr.mxu0 %v17447_v60  ;;  %12141 = vmatprep.subr.mxu1 %v17447_v60 }
 0xb25   :  { %12107 = vmatpush3.msra.mxu0 %v16243_v23  ;;  %12142 = vmatpush3.msra.mxu1 %v16243_v23 }
 0xb26   :  { %12108 = vmatprep.subr.mxu0 %v17447_v60  ;;  %12143 = vmatprep.subr.mxu1 %v17447_v60 }
 0xb27   :  { %12109 = vmatpush3.msra.mxu0 %v16252_v53  ;;  %12144 = vmatpush3.msra.mxu1 %v16252_v53 }
 0xb28   :  { %12110 = vmatprep.subr.mxu0 %v17447_v60  ;;  %12145 = vmatprep.subr.mxu1 %v17447_v60 }
 0xb29   :  { %12111 = vmatpush3.msra.mxu0 %v16259_v49  ;;  %12146 = vmatpush3.msra.mxu1 %v16259_v49 }
 0xb2a   :  { %12112 = vmatprep.subr.mxu0 %v17447_v60  ;;  %12147 = vmatprep.subr.mxu1 %v17447_v60 }
 0xb2b   :  { %12113 = vmatpush3.msra.mxu0 %v16266_v48  ;;  %12148 = vmatpush3.msra.mxu1 %v16266_v48 }
 0xb2c   :  { %12114 = vmatprep.subr.mxu0 %v17447_v60  ;;  %12149 = vmatprep.subr.mxu1 %v17447_v60 }
 0xb2d   :  { %12115 = vmatpush3.msra.mxu0 %v16272_v63  ;;  %12150 = vmatpush3.msra.mxu1 %v16272_v63 }
 0xb2e   :  { %12116 = vmatprep.subr.mxu0 %v17447_v60  ;;  %12151 = vmatprep.subr.mxu1 %v17447_v60 }
 0xb2f   :  { %12117 = vmatpush3.msra.mxu0 %v16278_v58  ;;  %12152 = vmatpush3.msra.mxu1 %v16278_v58 }
 0xb30   :  { %12119 = vmatmul.mubr.f32.vlgmr.msra.gmra.mxu0 %v12484_v59  ;;  %12154 = vmatmul.mubr.f32.vlgmr.msra.gmra.mxu1 %v12485_v40  ;;  %v10466_v59 = vld [vmem:[%s17268_s6 + $0xb8] sm:$0xff]  ;;  %v10465_v40 = vld [vmem:[%s17268_s6 + $0xb0] sm:$0xff] }
 0xb31   :  { %12156 = vmatprep.subr.mxu0 %v17447_v60  ;;  %12169 = vmatprep.subr.mxu1 %v17447_v60 }
 0xb32   :  { %12157 = vmatpush3.msra.mxu0 %v10440_v29  ;;  %12170 = vmatpush3.msra.mxu1 %v10446_v20  ;;  %v10453_v29 = vld [vmem:[%s17266_s4 + $0xa0] sm:$0xff] }
 0xb33   :  { %12158 = vmatprep.subr.mxu0 %v17447_v60  ;;  %12171 = vmatprep.subr.mxu1 %v17447_v60  ;;  %v10467_v20 = vld [vmem:[%s17268_s6 + $0xc0] sm:$0xff] }
 0xb34   :  { %12159 = vmatpush3.msra.mxu0 %v10439_v47  ;;  %12172 = vmatpush3.msra.mxu1 %v10445_v30  ;;  %v10464_v47 = vld [vmem:[%s17268_s6 + $0xa8] sm:$0xff]  ;;  %v10463_v30 = vld [vmem:[%s17268_s6 + $0xa0] sm:$0xff] }
 0xb35   :  { %12160 = vmatprep.subr.mxu0 %v17447_v60  ;;  %12173 = vmatprep.subr.mxu1 %v17447_v60 }
 0xb36   :  { %12161 = vmatpush3.msra.mxu0 %v10438_v56  ;;  %12174 = vmatpush3.msra.mxu1 %v10444_v19 }
 0xb37   :  { %12162 = vmatprep.subr.mxu0 %v17447_v60  ;;  %12175 = vmatprep.subr.mxu1 %v17447_v60 }
 0xb38   :  { %12163 = vmatpush3.msra.mxu0 %v10437_v28  ;;  %12176 = vmatpush3.msra.mxu1 %v10443_v21 }
 0xb39   :  { %12164 = vmatprep.subr.mxu0 %v17447_v60  ;;  %12177 = vmatprep.subr.mxu1 %v17447_v60 }
 0xb3a   :  { %12165 = vmatpush3.msra.mxu0 %v10436_v1  ;;  %12178 = vmatpush3.msra.mxu1 %v10442_v35 }
 0xb3b   :  { %12166 = vmatprep.mubr.msk.f32.mxu0 %vm12513_vm1, %v17447_v60  ;;  %12179 = vmatprep.mubr.msk.f32.mxu1 %vm12513_vm1, %v17447_v60 }
 0xb3c   :  { %12182 = vmatprep.subr.mxu0 %v10452_v33  ;;  %12216 = vmatprep.subr.mxu1 %v10457_v10 }
 0xbf0   :  { %v7471_v41 = vpop.f32.mrf.mxu0  ;;  %v7541_v13 = vpop.f32.mrf.mxu1 }
 0xbf1   :  { %12167 = vmatmul.mubr.msk.f32.vlgmr.msra.gmra.mxu0 %vm276_vm0, %v7471_v41  ;;  %12180 = vmatmul.mubr.msk.f32.vlgmr.msra.gmra.mxu1 %vm276_vm0, %v7541_v13 }
 0xbf2   :  { %12183 = vmatpush3.msra.mxu0 %v10452_v33  ;;  %12217 = vmatpush3.msra.mxu1 %v10457_v10  ;;  %v12120_v14 = vpop.f32.mrf.mxu0  ;;  %v12155_v32 = vpop.f32.mrf.mxu1 }
 0xbf3   :  { %12184 = vmatprep.subr.mxu0 %v10451_v46  ;;  %12192 = vmatprep.mubr.msk.f32.mxu0 %vm276_vm0, %v16278_v58 }
 0xbf4   :  { %12218 = vmatprep.subr.mxu1 %v10456_v62  ;;  %12226 = vmatprep.mubr.msk.f32.mxu1 %vm276_vm0, %v16278_v58 }
 0xbf5   :  { %12185 = vmatpush3.msra.mxu0 %v10451_v46  ;;  %12219 = vmatpush3.msra.mxu1 %v10456_v62 }
 0xbf6   :  { %12186 = vmatprep.subr.mxu0 %v10450_v6  ;;  %12220 = vmatprep.subr.mxu1 %v10455_v57 }
 0xbf7   :  { %12187 = vmatpush3.msra.mxu0 %v10450_v6  ;;  %12221 = vmatpush3.msra.mxu1 %v10455_v57 }
 0xbf8   :  { %12188 = vmatprep.subr.mxu0 %v10449_v0  ;;  %12222 = vmatprep.subr.mxu1 %v10454_v37 }
 0xbf9   :  { %12189 = vmatpush3.msra.mxu0 %v10449_v0  ;;  %12223 = vmatpush3.msra.mxu1 %v10454_v37 }
 0xbfa   :  { %12190 = vmatprep.subr.mxu0 %v10448_v11  ;;  %12224 = vmatprep.subr.mxu1 %v10453_v29 }
 0xbfb   :  { %12191 = vmatpush3.msra.mxu0 %v10448_v11  ;;  %12225 = vmatpush3.msra.mxu1 %v10453_v29 }
 0xbfc   :  { %12193 = vmatmul.mubr.msk.f32.vlgmr.msra.gmra.mxu0 %vm276_vm0, %v16272_v63  ;;  %12227 = vmatmul.mubr.msk.f32.vlgmr.msra.gmra.mxu1 %vm276_vm0, %v16272_v63 }
 0xbfd   :  { %12195 = vmatprep.mubr.msk.f32.mxu0 %vm276_vm0, %v16266_v48  ;;  %12229 = vmatprep.mubr.msk.f32.mxu1 %vm276_vm0, %v16266_v48 }
 0xbfe   :  { %12250 = vmatprep.subr.mxu0 %v10467_v20 }
 0xbff   :  { %12251 = vmatpush3.msra.mxu0 %v10467_v20 }
 0xc00   :  { %12196 = vmatmul.mubr.msk.f32.gmra.mxu0 %vm276_vm0, %v16259_v49  ;;  %12230 = vmatmul.mubr.msk.f32.gmra.mxu1 %vm276_vm0, %v16259_v49 }
 0xc01   :  { %12198 = vmatprep.mubr.msk.f32.mxu0 %vm276_vm0, %v16252_v53  ;;  %12232 = vmatprep.mubr.msk.f32.mxu1 %vm276_vm0, %v16252_v53 }
 0xc02   :  { %12252 = vmatprep.subr.mxu0 %v10466_v59 }
 0xc03   :  { %12253 = vmatpush3.msra.mxu0 %v10466_v59 }
 0xc04   :  { %12199 = vmatmul.mubr.msk.f32.gmra.mxu0 %vm276_vm0, %v16243_v23  ;;  %12233 = vmatmul.mubr.msk.f32.gmra.mxu1 %vm276_vm0, %v16243_v23 }
 0xc05   :  { %12201 = vmatprep.mubr.msk.f32.mxu0 %vm276_vm0, %v16234_v51  ;;  %12235 = vmatprep.mubr.msk.f32.mxu1 %vm276_vm0, %v16234_v51 }
 0xc06   :  { %12254 = vmatprep.subr.mxu0 %v10465_v40 }
 0xc07   :  { %12255 = vmatpush3.msra.mxu0 %v10465_v40 }
 0xc08   :  { %12202 = vmatmul.mubr.msk.f32.gmra.mxu0 %vm276_vm0, %v16225_v3  ;;  %12236 = vmatmul.mubr.msk.f32.gmra.mxu1 %vm276_vm0, %v16225_v3 }
 0xc09   :  { %12204 = vmatprep.mubr.msk.f32.mxu0 %vm276_vm0, %v16216_v17  ;;  %12238 = vmatprep.mubr.msk.f32.mxu1 %vm276_vm0, %v16216_v17 }
 0xc0a   :  { %12256 = vmatprep.subr.mxu0 %v10464_v47 }
 0xc0b   :  { %12257 = vmatpush3.msra.mxu0 %v10464_v47 }
 0xc0c   :  { %12205 = vmatmul.mubr.msk.f32.gmra.mxu0 %vm276_vm0, %v16207_v55  ;;  %12239 = vmatmul.mubr.msk.f32.gmra.mxu1 %vm276_vm0, %v16207_v55 }
 0xc0d   :  { %12207 = vmatprep.mubr.msk.f32.mxu0 %vm276_vm0, %v16198_v4  ;;  %12241 = vmatprep.mubr.msk.f32.mxu1 %vm276_vm0, %v16198_v4 }
 0xc0e   :  { %12258 = vmatprep.subr.mxu0 %v10463_v30 }
 0xc0f   :  { %12259 = vmatpush3.msra.mxu0 %v10463_v30 }
 0xc10   :  { %12208 = vmatmul.mubr.msk.f32.gmra.mxu0 %vm276_vm0, %v16191_v26  ;;  %12242 = vmatmul.mubr.msk.f32.gmra.mxu1 %vm276_vm0, %v16191_v26 }
 0xc11   :  { %12210 = vmatprep.mubr.msk.f32.mxu0 %vm276_vm0, %v16184_v5  ;;  %12244 = vmatprep.mubr.msk.f32.mxu1 %vm276_vm0, %v16184_v5 }
 0xc12   :  { %12318 = vmatprep.subr.mxu0 %v17447_v60 }
 0xc14   :  { %12211 = vmatmul.mubr.msk.f32.gmra.mxu0 %vm276_vm0, %v16177_v9  ;;  %12245 = vmatmul.mubr.msk.f32.gmra.mxu1 %vm276_vm0, %v16177_v9 }
 0xc15   :  { %12213 = vmatprep.mubr.msk.f32.mxu0 %vm276_vm0, %v16170_v2  ;;  %12247 = vmatprep.mubr.msk.f32.mxu1 %vm276_vm0, %v16170_v2 }
 0xc18   :  { %12214 = vmatmul.mubr.msk.f32.gmra.mxu0 %vm276_vm0, %v16166_v44  ;;  %12248 = vmatmul.mubr.msk.f32.gmra.mxu1 %vm276_vm0, %v16166_v44 }
 0xc19   :  { %12260 = vmatprep.mubr.msk.f32.mxu0 %vm276_vm0, %v16278_v58 }
 0xc1c   :  { %12261 = vmatmul.mubr.msk.f32.vlgmr.msra.gmra.mxu0 %vm276_vm0, %v16272_v63 }
 0xc1d   :  { %12263 = vmatprep.mubr.msk.f32.mxu0 %vm276_vm0, %v16266_v48 }
 0xc20   :  { %12264 = vmatmul.mubr.msk.f32.gmra.mxu0 %vm276_vm0, %v16259_v49 }
 0xc21   :  { %12266 = vmatprep.mubr.msk.f32.mxu0 %vm276_vm0, %v16252_v53 }
 0xc24   :  { %12267 = vmatmul.mubr.msk.f32.gmra.mxu0 %vm276_vm0, %v16243_v23 }
 0xc25   :  { %12269 = vmatprep.mubr.msk.f32.mxu0 %vm276_vm0, %v16234_v51 }
 0xc28   :  { %12270 = vmatmul.mubr.msk.f32.gmra.mxu0 %vm276_vm0, %v16225_v3 }
 0xc29   :  { %12272 = vmatprep.mubr.msk.f32.mxu0 %vm276_vm0, %v16216_v17  ;;  %v17451_v17 = vld [vmem:[#allocation20_spill] sm:$0xff] }
 0xc2c   :  { %12273 = vmatmul.mubr.msk.f32.gmra.mxu0 %vm276_vm0, %v16207_v55 }
 0xc2d   :  { %12275 = vmatprep.mubr.msk.f32.mxu0 %vm276_vm0, %v16198_v4  ;;  %v10462_v4 = vld [vmem:[%s17267_s5 + $0xc0] sm:$0xff] }
 0xc2e   :  { %12284 = vmatprep.subr.mxu1 %v10462_v4 }
 0xc2f   :  { %12285 = vmatpush3.msra.mxu1 %v10462_v4 }
 0xc30   :  { %12276 = vmatmul.mubr.msk.f32.gmra.mxu0 %vm276_vm0, %v16191_v26 }
 0xc31   :  { %12278 = vmatprep.mubr.msk.f32.mxu0 %vm276_vm0, %v16184_v5  ;;  %v10461_v5 = vld [vmem:[%s17267_s5 + $0xb8] sm:$0xff] }
 0xc32   :  { %12286 = vmatprep.subr.mxu1 %v10461_v5 }
 0xc33   :  { %12287 = vmatpush3.msra.mxu1 %v10461_v5 }
 0xc34   :  { %12279 = vmatmul.mubr.msk.f32.gmra.mxu0 %vm276_vm0, %v16177_v9  ;;  %v10458_v9 = vld [vmem:[%s17267_s5 + $0xa0] sm:$0xff] }
 0xc35   :  { %12281 = vmatprep.mubr.msk.f32.mxu0 %vm276_vm0, %v16170_v2  ;;  %v10460_v2 = vld [vmem:[%s17267_s5 + $0xb0] sm:$0xff] }
 0xc36   :  { %12288 = vmatprep.subr.mxu1 %v10460_v2 }
 0xc37   :  { %12289 = vmatpush3.msra.mxu1 %v10460_v2 }
 0xc38   :  { %12282 = vmatmul.mubr.msk.f32.gmra.mxu0 %vm276_vm0, %v16166_v44  ;;  %v10459_v44 = vld [vmem:[%s17267_s5 + $0xa8] sm:$0xff] }
 0xc39   :  { %12350 = vmatprep.mubr.msk.f32.mxu0 %vm12513_vm1, %v17447_v60  ;;  %12290 = vmatprep.subr.mxu1 %v10459_v44 }
 0xc3a   :  { %12291 = vmatpush3.msra.mxu1 %v10459_v44 }
 0xc3b   :  { %12292 = vmatprep.subr.mxu1 %v10458_v9 }
 0xc3c   :  { %12293 = vmatpush3.msra.mxu1 %v10458_v9 }
 0xc3d   :  { %12353 = vmatprep.subr.mxu1 %v17447_v60 }
 0xcb1   :  { %v7620_v26 = vpop.f32.mrf.mxu0  ;;  %v7700_v55 = vpop.f32.mrf.mxu1 }
 0xcb2   :  { %v7624_v3 = vadd.f32 %v7620_v26, %v17451_v17 }
 0xcb3   :  { %v12168_v51 = vpop.f32.mrf.mxu0  ;;  %v12181_v23 = vpop.f32.mrf.mxu1 }
 0xcb4   :  { %v16499_v53 = vadd.f32 %v7700_v55, %v7624_v3 }
 0xcb6   :  { %17452 = vst [vmem:[#allocation21_spill] sm:$0xff] %v16499_v53 }
 0xcbc   :  { %v12194_v49 = vpop.f32.mrf.mxu0  ;;  %v12228_v48 = vpop.f32.mrf.mxu1 }
 0xcbd   :  { %v7923_v63 = vmul.f32 %v12194_v49, %v17449_v61  ;;  %v8100_v28 = vmul.f32 %v12228_v48, %v17449_v61 }
 0xcbe   :  { %v7843_v58 = vpop.f32.mrf.mxu0  ;;  %v8020_v56 = vpop.f32.mrf.mxu1 }
 0xcbf   :  { %v16502_v19 = vmax.f32 %v7923_v63, 0.0  ;;  %v7922_v21 = vmul.f32 %v7843_v58, %v17450_v12  ;;  %v8099_v1 = vmul.f32 %v8020_v56, %v17450_v12  ;;  %v16517_v6 = vmax.f32 %v8100_v28, 0.0 }
 0xcc0   :  { %v12197_v35 = vpop.f32.mrf.mxu0  ;;  %v12231_v33 = vpop.f32.mrf.mxu1 }
 0xcc1   :  { %v8138_v10 = vrot.slane %v16502_v19, %v12978_v31  ;;  %v8218_v41 = vrot.slane %v16502_v19, %v12982_v34  ;;  %v16511_v13 = vmax.f32 %v7922_v21, 0.0  ;;  %v16513_v46 = vmax.f32 %v8099_v1, 0.0 }
 0xcc2   :  { %v7853_v62 = vpop.f32.mrf.mxu0  ;;  %v8030_v14 = vpop.f32.mrf.mxu1  ;;  %v8314_v32 = vrot.slane %v16502_v19, %v12989_v38  ;;  %v7925_v57 = vmul.f32 %v12197_v35, %v12986_v36  ;;  %v8102_v0 = vmul.f32 %v12231_v33, %v12986_v36  ;;  %v8410_v2 = vrot.slane %v16502_v19, %v12993_v42 }
 0xcc3   :  { %v7924_v37 = vmul.f32 %v7853_v62, %v17448_v16  ;;  %v8101_v11 = vmul.f32 %v8030_v14, %v17448_v16  ;;  %v8134_v59 = vrot.slane %v16511_v13, %v12978_v31  ;;  %v8214_v40 = vrot.slane %v16511_v13, %v12982_v34 }
 0xcc4   :  { %v12200_v29 = vpop.f32.mrf.mxu0  ;;  %v12234_v20 = vpop.f32.mrf.mxu1  ;;  %v8276_v47 = vmul.f32 %v8218_v41, %v16517_v6  ;;  %v8196_v30 = vmul.f32 %v8138_v10, %v16513_v46  ;;  %v16529_v4 = vmax.f32 %v8102_v0, 0.0  ;;  %v8506_v44 = vrot.slane %v16502_v19, %v17389_v25 }
 0xcc5   :  { %v7927_v5 = vmul.f32 %v12200_v29, %v13011_v52  ;;  %v16536_v9 = vmax.f32 %v8101_v11, 0.0  ;;  %v8195_v17 = vmul.f32 %v8134_v59, %v16513_v46  ;;  %v8104_v51 = vmul.f32 %v12234_v20, %v13011_v52 }
 0xcc6   :  { %v7863_v26 = vpop.f32.mrf.mxu0  ;;  %v8040_v55 = vpop.f32.mrf.mxu1  ;;  %v16544_v48 = vmax.f32 %v7925_v57, 0.0  ;;  %v16546_v63 = vmax.f32 %v7924_v37, 0.0  ;;  %v8275_v28 = vmul.f32 %v8214_v40, %v16517_v6  ;;  %v8310_v21 = vrot.slane %v16511_v13, %v12989_v38 }
 0xcc7   :  { %v7926_v23 = vmul.f32 %v7863_v26, %v13037_v7  ;;  %v8103_v49 = vmul.f32 %v8040_v55, %v13037_v7  ;;  %v8292_v1 = vadd.f32 %v8276_v47, %v8196_v30  ;;  %v8468_v35 = vmul.f32 %v8410_v2, %v16529_v4 }
 0xcc8   :  { %v12203_v58 = vpop.f32.mrf.mxu0  ;;  %v12237_v56 = vpop.f32.mrf.mxu1  ;;  %v8372_v33 = vmul.f32 %v8314_v32, %v16536_v9  ;;  %v16553_v10 = vmax.f32 %v7927_v5, 0.0  ;;  %v8291_v57 = vadd.f32 %v8275_v28, %v8195_v17  ;;  %v8371_v0 = vmul.f32 %v8310_v21, %v16536_v9  ;;  %v17453_v21 = vld [vmem:[#allocation9_spill] sm:$0xff] }
 0xcc9   :  { %v16555_v41 = vmax.f32 %v8103_v49, 0.0  ;;  %v8406_v37 = vrot.slane %v16511_v13, %v12993_v42  ;;  %v16560_v11 = vmax.f32 %v8104_v51, 0.0  ;;  %v16562_v29 = vmax.f32 %v7926_v23, 0.0 }
 0xcca   :  { %v7873_v62 = vpop.f32.mrf.mxu0  ;;  %v8050_v14 = vpop.f32.mrf.mxu1  ;;  %v7929_v20 = vmul.f32 %v12203_v58, %v13039_v8  ;;  %v8106_v32 = vmul.f32 %v12237_v56, %v13039_v8  ;;  %v8387_v30 = vadd.f32 %v8371_v0, %v8291_v57  ;;  %v8502_v2 = vrot.slane %v16511_v13, %v17389_v25 }
 0xccb   :  { %v8105_v59 = vmul.f32 %v8050_v14, %v13057_v27  ;;  %v8467_v5 = vmul.f32 %v8406_v37, %v16529_v4  ;;  %v8388_v26 = vadd.f32 %v8372_v33, %v8292_v1  ;;  %v7928_v55 = vmul.f32 %v7873_v62, %v13057_v27 }
 0xccc   :  { %v12206_v40 = vpop.f32.mrf.mxu0  ;;  %v12240_v47 = vpop.f32.mrf.mxu1  ;;  %v8598_v51 = vrot.slane %v16511_v13, %v17388_v50  ;;  %v8563_v28 = vmul.f32 %v8502_v2, %v16555_v41  ;;  %v8694_v14 = vrot.slane %v16511_v13, %v17453_v21  ;;  %v16579_v57 = vmax.f32 %v8106_v32, 0.0 }
 0xccd   :  { %v7931_v17 = vmul.f32 %v12206_v40, %v17438_v45  ;;  %v16574_v23 = vmax.f32 %v8105_v59, 0.0  ;;  %v8483_v56 = vadd.f32 %v8467_v5, %v8387_v30  ;;  %v8108_v1 = vmul.f32 %v12240_v47, %v17438_v45  ;;  %v17454_v47 = vld [vmem:[#allocation10_spill] sm:$0xff] }
 0xcce   :  { %v7883_v49 = vpop.f32.mrf.mxu0  ;;  %v8060_v58 = vpop.f32.mrf.mxu1  ;;  %v8564_v0 = vmul.f32 %v8506_v44, %v16555_v41  ;;  %v8659_v30 = vmul.f32 %v8598_v51, %v16560_v11  ;;  %v16587_v2 = vmax.f32 %v7929_v20, 0.0  ;;  %v16589_v3 = vmax.f32 %v7928_v55, 0.0 }
 0xccf   :  { %v7930_v33 = vmul.f32 %v7883_v49, %v17437_v15  ;;  %v8107_v62 = vmul.f32 %v8060_v58, %v17437_v15  ;;  %v8579_v40 = vadd.f32 %v8563_v28, %v8483_v56  ;;  %v8755_v5 = vmul.f32 %v8694_v14, %v16574_v23 }
 0xcd0   :  { %v12209_v37 = vpop.f32.mrf.mxu0  ;;  %v12243_v59 = vpop.f32.mrf.mxu1  ;;  %v8790_v49 = vrot.slane %v16511_v13, %v17454_v47  ;;  %v16594_v53 = vmax.f32 %v7931_v17, 0.0  ;;  %v8484_v28 = vadd.f32 %v8468_v35, %v8388_v26  ;;  %v16597_v51 = vmax.f32 %v8108_v1, 0.0 }
 0xcd1   :  { %v7933_v32 = vmul.f32 %v12209_v37, %v17442_v18  ;;  %v8110_v44 = vmul.f32 %v12243_v59, %v17442_v18  ;;  %v8675_v56 = vadd.f32 %v8659_v30, %v8579_v40  ;;  %v16599_v14 = vmax.f32 %v7930_v33, 0.0 }
 0xcd2   :  { %v7893_v58 = vpop.f32.mrf.mxu0  ;;  %v8070_v60 = vpop.f32.mrf.mxu1  ;;  %v16601_v20 = vmax.f32 %v8107_v62, 0.0  ;;  %v8851_v55 = vmul.f32 %v8790_v49, %v16579_v57  ;;  %v8580_v13 = vadd.f32 %v8564_v0, %v8484_v28  ;;  %v17455_v17 = vrot.slane %v16502_v19, %v17388_v50 }
 0xcd3   :  { %v8771_v15 = vadd.f32 %v8755_v5, %v8675_v56  ;;  %v8698_v35 = vrot.slane %v16502_v19, %v17453_v21  ;;  %v16610_v26 = vmax.f32 %v7933_v32, 0.0  ;;  %v7932_v1 = vmul.f32 %v7893_v58, %v17440_v54 }
 0xcd4   :  { %v12212_v37 = vpop.f32.mrf.mxu0  ;;  %v12246_v45 = vpop.f32.mrf.mxu1  ;;  %v8660_v59 = vmul.f32 %v17455_v17, %v16560_v11  ;;  %v8109_v33 = vmul.f32 %v8070_v60, %v17440_v54  ;;  %v8794_v62 = vrot.slane %v16502_v19, %v17454_v47  ;;  %v16616_v40 = vmax.f32 %v8110_v44, 0.0 }
 0xcd5   :  { %v8867_v5 = vadd.f32 %v8851_v55, %v8771_v15  ;;  %v8756_v56 = vmul.f32 %v8698_v35, %v16574_v23  ;;  %v7935_v28 = vmul.f32 %v12212_v37, %v17444_v43  ;;  %v8112_v32 = vmul.f32 %v12246_v45, %v17444_v43 }
 0xcd6   :  { %v7903_v0 = vpop.f32.mrf.mxu0  ;;  %v8080_v30 = vpop.f32.mrf.mxu1  ;;  %v8676_v49 = vadd.f32 %v8660_v59, %v8580_v13  ;;  %v8852_v58 = vmul.f32 %v8794_v62, %v16579_v57  ;;  %v8142_v54 = vrot.slane %v16546_v63, %v12978_v31  ;;  %v8222_v15 = vrot.slane %v16546_v63, %v12982_v34 }
 0xcd7   :  { %v7934_v17 = vmul.f32 %v7903_v0, %v17443_v22  ;;  %v8883_v60 = vmul.f32 %v8867_v5, %v17450_v12  ;;  %v16628_v55 = vmax.f32 %v7932_v1, 0.0  ;;  %v16630_v37 = vmax.f32 %v8109_v33, 0.0 }
 0xcd8   :  { %v12215_v18 = vpop.f32.mrf.mxu0  ;;  %v12249_v19 = vpop.f32.mrf.mxu1  ;;  %v8772_v44 = vadd.f32 %v8756_v56, %v8676_v49  ;;  %v8111_v45 = vmul.f32 %v8080_v30, %v17443_v22  ;;  %v8197_v62 = vmul.f32 %v8142_v54, %v16513_v46  ;;  %v8277_v0 = vmul.f32 %v8222_v15, %v16517_v6 }
 0xcd9   :  { %v8114_v13 = vmul.f32 %v12249_v19, %v17446_v39  ;;  %12294 = vmatprep.mubr.msk.f32.mxu1 %vm276_vm0, %v8883_v60  ;;  %v8318_v5 = vrot.slane %v16546_v63, %v12989_v38  ;;  %v16639_v49 = vmax.f32 %v7935_v28, 0.0  ;;  %v16641_v1 = vmax.f32 %v8112_v32, 0.0 }
 0xcda   :  { %v8868_v59 = vadd.f32 %v8852_v58, %v8772_v44  ;;  %v8090_v35 = vpop.f32.mrf.mxu1  ;;  %v16643_v33 = vmax.f32 %v7934_v17, 0.0  ;;  %v7913_v30 = vpop.f32.mrf.mxu0  ;;  %v8293_v58 = vadd.f32 %v8277_v0, %v8197_v62  ;;  %v8414_v54 = vrot.slane %v16546_v63, %v12993_v42 }
 0xcdb   :  { %17456 = vst [vmem:[#allocation7_spill] sm:$0xff] %v16639_v49  ;;  %v8113_v56 = vmul.f32 %v8090_v35, %v17445_v24  ;;  %v8373_v19 = vmul.f32 %v8318_v5, %v16536_v9  ;;  %v16650_v44 = vmax.f32 %v8111_v45, 0.0  ;;  %v16653_v28 = vmul.f32 %v12215_v18, %v17446_v39 }
 0xcdc   :  { %17457 = vst [vmem:[#allocation8_spill] sm:$0xff] %v16643_v33  ;;  %v8884_v60 = vmul.f32 %v8868_v59, %v17449_v61  ;;  %v16655_v32 = vmax.f32 %v8114_v13, 0.0  ;;  %v8606_v17 = vrot.slane %v16546_v63, %v17388_v50  ;;  %v16661_v15 = vmul.f32 %v7913_v30, %v17445_v24 }
 0xcdd   :  { %v8389_v59 = vadd.f32 %v8373_v19, %v8293_v58  ;;  %v8469_v35 = vmul.f32 %v8414_v54, %v16529_v4  ;;  %v8510_v45 = vrot.slane %v16546_v63, %v17389_v25  ;;  %v16666_v62 = vmax.f32 %v8113_v56, 0.0 }
 0xcde   :  { %12295 = vmatmul.mubr.msk.f32.vlgmr.msra.gmra.mxu1 %vm276_vm0, %v8884_v60  ;;  %v8702_v18 = vrot.slane %v16546_v63, %v17453_v21  ;;  %v8146_v13 = vrot.slane %v16544_v48, %v12978_v31  ;;  %v8226_v0 = vrot.slane %v16544_v48, %v12982_v34  ;;  %v8798_v60 = vrot.slane %v16546_v63, %v17454_v47 }
 0xcdf   :  { %v8485_v5 = vadd.f32 %v8469_v35, %v8389_v59  ;;  %v8565_v30 = vmul.f32 %v8510_v45, %v16555_v41  ;;  %v8322_v58 = vrot.slane %v16544_v48, %v12989_v38  ;;  %v8661_v56 = vmul.f32 %v8606_v17, %v16560_v11 }
 0xce0   :  { %v8198_v19 = vmul.f32 %v8146_v13, %v16513_v46  ;;  %v8278_v54 = vmul.f32 %v8226_v0, %v16517_v6  ;;  %v8418_v12 = vrot.slane %v16544_v48, %v12993_v42  ;;  %v8757_v59 = vmul.f32 %v8702_v18, %v16574_v23 }
 0xce1   :  { %v8581_v61 = vadd.f32 %v8565_v30, %v8485_v5  ;;  %v8853_v35 = vmul.f32 %v8798_v60, %v16579_v57  ;;  %v8514_v63 = vrot.slane %v16544_v48, %v17389_v25  ;;  %v8374_v39 = vmul.f32 %v8322_v58, %v16536_v9 }
 0xce2   :  { %v8294_v45 = vadd.f32 %v8278_v54, %v8198_v19  ;;  %v8610_v17 = vrot.slane %v16544_v48, %v17388_v50  ;;  %v8706_v13 = vrot.slane %v16544_v48, %v17453_v21  ;;  %v8470_v24 = vmul.f32 %v8418_v12, %v16529_v4 }
 0xce3   :  { %v8677_v0 = vadd.f32 %v8661_v56, %v8581_v61  ;;  %v8566_v5 = vmul.f32 %v8514_v63, %v16555_v41  ;;  %v8150_v18 = vrot.slane %v16562_v29, %v12978_v31  ;;  %v8802_v60 = vrot.slane %v16544_v48, %v17454_v47 }
 0xce4   :  { %v8390_v30 = vadd.f32 %v8374_v39, %v8294_v45  ;;  %v8230_v58 = vrot.slane %v16562_v29, %v12982_v34  ;;  %v8326_v19 = vrot.slane %v16562_v29, %v12989_v38  ;;  %v8422_v12 = vrot.slane %v16562_v29, %v12993_v42 }
 0xce5   :  { %v8773_v54 = vadd.f32 %v8757_v59, %v8677_v0  ;;  %v8199_v61 = vmul.f32 %v8150_v18, %v16513_v46  ;;  %v8518_v56 = vrot.slane %v16562_v29, %v17389_v25  ;;  %v8662_v39 = vmul.f32 %v8610_v17, %v16560_v11 }
 0xce6   :  { %v8486_v63 = vadd.f32 %v8470_v24, %v8390_v30  ;;  %v8758_v48 = vmul.f32 %v8706_v13, %v16574_v23  ;;  %v8279_v45 = vmul.f32 %v8230_v58, %v16517_v6  ;;  %v8854_v22 = vmul.f32 %v8802_v60, %v16579_v57 }
 0xce7   :  { %v8869_v43 = vadd.f32 %v8853_v35, %v8773_v54  ;;  %v8375_v59 = vmul.f32 %v8326_v19, %v16536_v9  ;;  %v8614_v0 = vrot.slane %v16562_v29, %v17388_v50  ;;  %v8471_v33 = vmul.f32 %v8422_v12, %v16529_v4 }
 0xce8   :  { %v8582_v18 = vadd.f32 %v8566_v5, %v8486_v63  ;;  %v8295_v49 = vadd.f32 %v8279_v45, %v8199_v61  ;;  %v8567_v24 = vmul.f32 %v8518_v56, %v16555_v41  ;;  %v8806_v13 = vrot.slane %v16562_v29, %v17454_v47 }
 0xce9   :  { %v8885_v17 = vmul.f32 %v8869_v43, %v17448_v16  ;;  %v8154_v35 = vrot.slane %v16553_v10, %v12978_v31  ;;  %v8234_v30 = vrot.slane %v16553_v10, %v12982_v34  ;;  %v8710_v5 = vrot.slane %v16562_v29, %v17453_v21 }
 0xcea   :  { %v8678_v60 = vadd.f32 %v8662_v39, %v8582_v18  ;;  %v8391_v58 = vadd.f32 %v8375_v59, %v8295_v49  ;;  %v8330_v19 = vrot.slane %v16553_v10, %v12989_v38  ;;  %v8426_v61 = vrot.slane %v16553_v10, %v12993_v42 }
 0xceb   :  { %12297 = vmatprep.mubr.msk.f32.mxu1 %vm276_vm0, %v8885_v17  ;;  %v8200_v43 = vmul.f32 %v8154_v35, %v16513_v46  ;;  %v8280_v54 = vmul.f32 %v8234_v30, %v16517_v6  ;;  %v8522_v12 = vrot.slane %v16553_v10, %v17389_v25  ;;  %v8663_v63 = vmul.f32 %v8614_v0, %v16560_v11 }
 0xcec   :  { %v8774_v56 = vadd.f32 %v8758_v48, %v8678_v60  ;;  %v8487_v49 = vadd.f32 %v8471_v33, %v8391_v58  ;;  %v8759_v29 = vmul.f32 %v8710_v5, %v16574_v23  ;;  %v8855_v39 = vmul.f32 %v8806_v13, %v16579_v57 }
 0xced   :  { %v8296_v45 = vadd.f32 %v8280_v54, %v8200_v43  ;;  %v8376_v59 = vmul.f32 %v8330_v19, %v16536_v9  ;;  %v8618_v18 = vrot.slane %v16553_v10, %v17388_v50  ;;  %v8472_v30 = vmul.f32 %v8426_v61, %v16529_v4 }
 0xcee   :  { %v8870_v17 = vadd.f32 %v8854_v22, %v8774_v56  ;;  %v8583_v35 = vadd.f32 %v8567_v24, %v8487_v49  ;;  %v8568_v16 = vmul.f32 %v8522_v12, %v16555_v41  ;;  %v8714_v33 = vrot.slane %v16553_v10, %v17453_v21 }
 0xcef   :  { %v8392_v48 = vadd.f32 %v8376_v59, %v8296_v45  ;;  %v8158_v0 = vrot.slane %v16589_v3, %v12978_v31  ;;  %v8238_v13 = vrot.slane %v16589_v3, %v12982_v34  ;;  %v8810_v22 = vrot.slane %v16553_v10, %v17454_v47 }
 0xcf0   :  { %v8886_v60 = vmul.f32 %v8870_v17, %v12986_v36  ;;  %v8679_v58 = vadd.f32 %v8663_v63, %v8583_v35  ;;  %v8334_v24 = vrot.slane %v16589_v3, %v12989_v38  ;;  %v8430_v54 = vrot.slane %v16589_v3, %v12993_v42 }
 0xcf1   :  { %v8488_v5 = vadd.f32 %v8472_v30, %v8392_v48  ;;  %v8201_v19 = vmul.f32 %v8158_v0, %v16513_v46  ;;  %v8281_v43 = vmul.f32 %v8238_v13, %v16517_v6  ;;  %v8664_v12 = vmul.f32 %v8618_v18, %v16560_v11 }
 0xcf2   :  { %12298 = vmatmul.mubr.msk.f32.gmra.mxu1 %vm276_vm0, %v8886_v60  ;;  %v8775_v61 = vadd.f32 %v8759_v29, %v8679_v58  ;;  %v8760_v56 = vmul.f32 %v8714_v33, %v16574_v23  ;;  %v8526_v10 = vrot.slane %v16589_v3, %v17389_v25  ;;  %v8856_v63 = vmul.f32 %v8810_v22, %v16579_v57 }
 0xcf3   :  { %v8584_v49 = vadd.f32 %v8568_v16, %v8488_v5  ;;  %v8297_v45 = vadd.f32 %v8281_v43, %v8201_v19  ;;  %v8377_v59 = vmul.f32 %v8334_v24, %v16536_v9  ;;  %v8473_v35 = vmul.f32 %v8430_v54, %v16529_v4 }
 0xcf4   :  { %v8871_v17 = vadd.f32 %v8855_v39, %v8775_v61  ;;  %v8622_v30 = vrot.slane %v16589_v3, %v17388_v50  ;;  %v8718_v29 = vrot.slane %v16589_v3, %v17453_v21  ;;  %v8814_v33 = vrot.slane %v16589_v3, %v17454_v47 }
 0xcf5   :  { %v8680_v18 = vadd.f32 %v8664_v12, %v8584_v49  ;;  %v8393_v48 = vadd.f32 %v8377_v59, %v8297_v45  ;;  %v8162_v16 = vrot.slane %v16587_v2, %v12978_v31  ;;  %v8569_v39 = vmul.f32 %v8526_v10, %v16555_v41 }
 0xcf6   :  { %v8887_v0 = vmul.f32 %v8871_v17, %v13037_v7  ;;  %v8242_v13 = vrot.slane %v16587_v2, %v12982_v34  ;;  %v8338_v60 = vrot.slane %v16587_v2, %v12989_v38  ;;  %v8434_v3 = vrot.slane %v16587_v2, %v12993_v42 }
 0xcf7   :  { %v8776_v58 = vadd.f32 %v8760_v56, %v8680_v18  ;;  %v8489_v22 = vadd.f32 %v8473_v35, %v8393_v48  ;;  %v8202_v24 = vmul.f32 %v8162_v16, %v16513_v46  ;;  %v8665_v5 = vmul.f32 %v8622_v30, %v16560_v11 }
 0xcf8   :  { %12300 = vmatprep.mubr.msk.f32.mxu1 %vm276_vm0, %v8887_v0  ;;  %v8761_v19 = vmul.f32 %v8718_v29, %v16574_v23  ;;  %v8282_v43 = vmul.f32 %v8242_v13, %v16517_v6  ;;  %v8530_v54 = vrot.slane %v16587_v2, %v17389_v25  ;;  %v8857_v56 = vmul.f32 %v8814_v33, %v16579_v57 }
 0xcf9   :  { %v8872_v61 = vadd.f32 %v8856_v63, %v8776_v58  ;;  %v8585_v12 = vadd.f32 %v8569_v39, %v8489_v22  ;;  %v8626_v46 = vrot.slane %v16587_v2, %v17388_v50  ;;  %v8378_v49 = vmul.f32 %v8338_v60, %v16536_v9 }
 0xcfa   :  { %v8298_v10 = vadd.f32 %v8282_v43, %v8202_v24  ;;  %v8474_v45 = vmul.f32 %v8434_v3, %v16529_v4  ;;  %v8722_v59 = vrot.slane %v16587_v2, %v17453_v21  ;;  %v8818_v63 = vrot.slane %v16587_v2, %v17454_v47 }
 0xcfb   :  { %v8888_v6 = vmul.f32 %v8872_v61, %v13011_v52  ;;  %v8681_v17 = vadd.f32 %v8665_v5, %v8585_v12  ;;  %v8166_v35 = vrot.slane %v16599_v14, %v12978_v31  ;;  %v8570_v29 = vmul.f32 %v8530_v54, %v16555_v41 }
 0xcfc   :  { %v8394_v30 = vadd.f32 %v8378_v49, %v8298_v10  ;;  %v8246_v9 = vrot.slane %v16599_v14, %v12982_v34  ;;  %v8342_v4 = vrot.slane %v16599_v14, %v12989_v38  ;;  %v8666_v48 = vmul.f32 %v8626_v46, %v16560_v11 }
 0xcfd   :  { %12301 = vmatmul.mubr.msk.f32.gmra.mxu1 %vm276_vm0, %v8888_v6  ;;  %v8777_v18 = vadd.f32 %v8761_v19, %v8681_v17  ;;  %v8203_v33 = vmul.f32 %v8166_v35, %v16601_v20  ;;  %v8438_v2 = vrot.slane %v16599_v14, %v12993_v42  ;;  %v8534_v39 = vrot.slane %v16599_v14, %v17389_v25 }
 0xcfe   :  { %v8490_v16 = vadd.f32 %v8474_v45, %v8394_v30  ;;  %v8283_v0 = vmul.f32 %v8246_v9, %v16597_v51  ;;  %v8379_v41 = vmul.f32 %v8342_v4, %v16630_v37  ;;  %v8762_v60 = vmul.f32 %v8722_v59, %v16574_v23 }
 0xcff   :  { %v8873_v13 = vadd.f32 %v8857_v56, %v8777_v18  ;;  %v8858_v58 = vmul.f32 %v8818_v63, %v16579_v57  ;;  %v8630_v11 = vrot.slane %v16599_v14, %v17388_v50  ;;  %v8475_v3 = vmul.f32 %v8438_v2, %v16616_v40 }
 0xd00   :  { %v8586_v22 = vadd.f32 %v8570_v29, %v8490_v16  ;;  %v8299_v24 = vadd.f32 %v8283_v0, %v8203_v33  ;;  %v8571_v5 = vmul.f32 %v8534_v39, %v16650_v44  ;;  %v8726_v43 = vrot.slane %v16599_v14, %v17453_v21 }
 0xd01   :  { %v8889_v19 = vmul.f32 %v8873_v13, %v13057_v27  ;;  %v8170_v54 = vrot.slane %v16594_v53, %v12978_v31  ;;  %v8250_v23 = vrot.slane %v16594_v53, %v12982_v34  ;;  %v8667_v12 = vmul.f32 %v8630_v11, %v16641_v1 }
 0xd02   :  { %v8682_v57 = vadd.f32 %v8666_v48, %v8586_v22  ;;  %v8395_v61 = vadd.f32 %v8379_v41, %v8299_v24  ;;  %v8346_v56 = vrot.slane %v16594_v53, %v12989_v38  ;;  %v8822_v46 = vrot.slane %v16599_v14, %v17454_v47 }
 0xd03   :  { %12303 = vmatprep.mubr.msk.f32.mxu1 %vm276_vm0, %v8889_v19  ;;  %v8204_v10 = vmul.f32 %v8170_v54, %v16601_v20  ;;  %v8284_v49 = vmul.f32 %v8250_v23, %v16597_v51  ;;  %v8442_v45 = vrot.slane %v16594_v53, %v12993_v42  ;;  %v8538_v63 = vrot.slane %v16594_v53, %v17389_v25 }
 0xd04   :  { %v8778_v59 = vadd.f32 %v8762_v60, %v8682_v57  ;;  %v8491_v6 = vadd.f32 %v8475_v3, %v8395_v61  ;;  %v8380_v17 = vmul.f32 %v8346_v56, %v16630_v37  ;;  %v8763_v35 = vmul.f32 %v8726_v43, %v16666_v62 }
 0xd05   :  { %v8859_v30 = vmul.f32 %v8822_v46, %v16655_v32  ;;  %v8300_v29 = vadd.f32 %v8284_v49, %v8204_v10  ;;  %v8634_v14 = vrot.slane %v16594_v53, %v17388_v50  ;;  %v8476_v18 = vmul.f32 %v8442_v45, %v16616_v40 }
 0xd06   :  { %v8874_v9 = vadd.f32 %v8858_v58, %v8778_v59  ;;  %v8587_v4 = vadd.f32 %v8571_v5, %v8491_v6  ;;  %v8572_v48 = vmul.f32 %v8538_v63, %v16650_v44  ;;  %v8730_v2 = vrot.slane %v16594_v53, %v17453_v21  ;;  %v17458_v6 = vld [vmem:[#allocation12_spill] sm:$0xff] }
 0xd07   :  { %v8396_v33 = vadd.f32 %v8380_v17, %v8300_v29  ;;  %v8174_v16 = vrot.slane %v16628_v55, %v12978_v31  ;;  %v8254_v0 = vrot.slane %v16628_v55, %v12982_v34  ;;  %v8826_v13 = vrot.slane %v16594_v53, %v17454_v47 }
 0xd08   :  { %v8890_v41 = vmul.f32 %v8874_v9, %v13039_v8  ;;  %v8683_v39 = vadd.f32 %v8667_v12, %v8587_v4  ;;  %v8350_v60 = vrot.slane %v16628_v55, %v12989_v38  ;;  %v8446_v24 = vrot.slane %v16628_v55, %v12993_v42 }
 0xd09   :  { %v8492_v58 = vadd.f32 %v8476_v18, %v8396_v33  ;;  %v8205_v11 = vmul.f32 %v8174_v16, %v16601_v20  ;;  %v8285_v22 = vmul.f32 %v8254_v0, %v16597_v51  ;;  %v8668_v5 = vmul.f32 %v8634_v14, %v16641_v1 }
 0xd0a   :  { %12304 = vmatmul.mubr.msk.f32.gmra.mxu1 %vm276_vm0, %v8890_v41  ;;  %v8779_v3 = vadd.f32 %v8763_v35, %v8683_v39  ;;  %v8764_v19 = vmul.f32 %v8730_v2, %v16666_v62  ;;  %v8860_v53 = vmul.f32 %v8826_v13, %v16655_v32  ;;  %v8381_v23 = vmul.f32 %v8350_v60, %v16630_v37  ;;  %v17459_v60 = vld [vmem:[#allocation13_spill] sm:$0xff] }
 0xd0b   :  { %v8588_v43 = vadd.f32 %v8572_v48, %v8492_v58  ;;  %v8301_v54 = vadd.f32 %v8285_v22, %v8205_v11  ;;  %v8542_v57 = vrot.slane %v16628_v55, %v17389_v25  ;;  %v8477_v12 = vmul.f32 %v8446_v24, %v16616_v40  ;;  %v17460_v24 = vld [vmem:[#allocation8_spill] sm:$0xff] }
 0xd0c   :  { %v8875_v61 = vadd.f32 %v8859_v30, %v8779_v3  ;;  %v8638_v56 = vrot.slane %v16628_v55, %v17388_v50  ;;  %v8734_v46 = vrot.slane %v16628_v55, %v17453_v21  ;;  %v8178_v59 = vrot.slane %v16610_v26, %v12978_v31 }
 0xd0d   :  { %v8684_v10 = vadd.f32 %v8668_v5, %v8588_v43  ;;  %v8397_v49 = vadd.f32 %v8381_v23, %v8301_v54  ;;  %v8573_v45 = vmul.f32 %v8542_v57, %v16650_v44  ;;  %v8830_v63 = vrot.slane %v16628_v55, %v17454_v47 }
 0xd0e   :  { %v8891_v17 = vmul.f32 %v8875_v61, %v17458_v6  ;;  %v8258_v35 = vrot.slane %v16610_v26, %v12982_v34  ;;  %v8354_v30 = vrot.slane %v16610_v26, %v12989_v38  ;;  %v8206_v9 = vmul.f32 %v8178_v59, %v16601_v20 }
 0xd0f   :  { %v8780_v29 = vadd.f32 %v8764_v19, %v8684_v10  ;;  %v8493_v14 = vadd.f32 %v8477_v12, %v8397_v49  ;;  %v8450_v4 = vrot.slane %v16610_v26, %v12993_v42  ;;  %v16888_v18 = vmax.f32 %v16653_v28, 0.0 }
 0xd10   :  { %v16891_v48 = vmax.f32 %v16661_v15, 0.0  ;;  %12306 = vmatprep.mubr.msk.f32.mxu1 %vm276_vm0, %v8891_v17  ;;  %v8669_v55 = vmul.f32 %v8638_v56, %v16641_v1  ;;  %v8286_v33 = vmul.f32 %v8258_v35, %v16597_v51  ;;  %v8765_v0 = vmul.f32 %v8734_v46, %v16666_v62 }
 0xd11   :  { %v8876_v2 = vadd.f32 %v8860_v53, %v8780_v29  ;;  %v8589_v16 = vadd.f32 %v8573_v45, %v8493_v14  ;;  %v8861_v41 = vmul.f32 %v8830_v63, %v16655_v32  ;;  %v8382_v13 = vmul.f32 %v8354_v30, %v16630_v37  ;;  %v17461_v29 = vld [vmem:[#allocation14_spill] sm:$0xff] }
 0xd12   :  { %v8302_v39 = vadd.f32 %v8286_v33, %v8206_v9  ;;  %v8546_v28 = vrot.slane %v16610_v26, %v17389_v25  ;;  %v8642_v15 = vrot.slane %v16610_v26, %v17388_v50  ;;  %v8478_v22 = vmul.f32 %v8450_v4, %v16616_v40  ;;  %v17462_v4 = vld [vmem:[#allocation7_spill] sm:$0xff] }
 0xd13   :  { %v8892_v58 = vmul.f32 %v8876_v2, %v17459_v60  ;;  %v8685_v11 = vadd.f32 %v8669_v55, %v8589_v16  ;;  %v8182_v3 = vrot.slane %v17460_v24, %v12978_v31  ;;  %v8738_v19 = vrot.slane %v16610_v26, %v17453_v21 }
 0xd14   :  { %v8398_v5 = vadd.f32 %v8382_v13, %v8302_v39  ;;  %v8262_v53 = vrot.slane %v17460_v24, %v12982_v34  ;;  %v8358_v43 = vrot.slane %v17460_v24, %v12989_v38  ;;  %v8834_v23 = vrot.slane %v16610_v26, %v17454_v47 }
 0xd15   :  { %12307 = vmatmul.mubr.msk.f32.gmra.mxu1 %vm276_vm0, %v8892_v58  ;;  %v8781_v54 = vadd.f32 %v8765_v0, %v8685_v11  ;;  %v8207_v57 = vmul.f32 %v8182_v3, %v16601_v20  ;;  %v8454_v61 = vrot.slane %v17460_v24, %v12993_v42  ;;  %v8574_v56 = vmul.f32 %v8546_v28, %v16650_v44 }
 0xd16   :  { %v8494_v12 = vadd.f32 %v8478_v22, %v8398_v5  ;;  %v8670_v46 = vmul.f32 %v8642_v15, %v16641_v1  ;;  %v8287_v10 = vmul.f32 %v8262_v53, %v16597_v51  ;;  %v8766_v45 = vmul.f32 %v8738_v19, %v16666_v62 }
 0xd17   :  { %v8877_v49 = vadd.f32 %v8861_v41, %v8781_v54  ;;  %v8862_v59 = vmul.f32 %v8834_v23, %v16655_v32  ;;  %v8550_v26 = vrot.slane %v17460_v24, %v17389_v25  ;;  %v8383_v35 = vmul.f32 %v8358_v43, %v16630_v37 }
 0xd18   :  { %v8590_v17 = vadd.f32 %v8574_v56, %v8494_v12  ;;  %v8303_v63 = vadd.f32 %v8287_v10, %v8207_v57  ;;  %v8646_v30 = vrot.slane %v17460_v24, %v17388_v50  ;;  %v8479_v9 = vmul.f32 %v8454_v61, %v16616_v40  ;;  %v17463_v10 = vld [vmem:[#allocation15_spill] sm:$0xff] }
 0xd19   :  { %v8893_v14 = vmul.f32 %v8877_v49, %v17461_v29  ;;  %v8186_v55 = vrot.slane %v17462_v4, %v12978_v31  ;;  %v8266_v33 = vrot.slane %v17462_v4, %v12982_v34  ;;  %v8838_v0 = vrot.slane %v17460_v24, %v17454_v47 }
 0xd1a   :  { %v8686_v2 = vadd.f32 %v8670_v46, %v8590_v17  ;;  %v8399_v16 = vadd.f32 %v8383_v35, %v8303_v63  ;;  %v8362_v41 = vrot.slane %v17462_v4, %v12989_v38  ;;  %v8742_v39 = vrot.slane %v17460_v24, %v17453_v21 }
 0xd1b   :  { %12309 = vmatprep.mubr.msk.f32.mxu1 %vm276_vm0, %v8893_v14  ;;  %v8208_v13 = vmul.f32 %v8186_v55, %v16601_v20  ;;  %v8288_v28 = vmul.f32 %v8266_v33, %v16597_v51  ;;  %v8458_v15 = vrot.slane %v17462_v4, %v12993_v42  ;;  %v8575_v22 = vmul.f32 %v8550_v26, %v16650_v44 }
 0xd1c   :  { %v8782_v58 = vadd.f32 %v8766_v45, %v8686_v2  ;;  %v8495_v11 = vadd.f32 %v8479_v9, %v8399_v16  ;;  %v8554_v3 = vrot.slane %v17462_v4, %v17389_v25  ;;  %v8671_v5 = vmul.f32 %v8646_v30, %v16641_v1 }
 0xd1d   :  { %v8767_v19 = vmul.f32 %v8742_v39, %v16666_v62  ;;  %v8304_v53 = vadd.f32 %v8288_v28, %v8208_v13  ;;  %v8384_v24 = vmul.f32 %v8362_v41, %v16630_v37  ;;  %v8863_v23 = vmul.f32 %v8838_v0, %v16655_v32 }
 0xd1e   :  { %v8878_v43 = vadd.f32 %v8862_v59, %v8782_v58  ;;  %v8591_v54 = vadd.f32 %v8575_v22, %v8495_v11  ;;  %v8650_v57 = vrot.slane %v17462_v4, %v17388_v50  ;;  %v8480_v12 = vmul.f32 %v8458_v15, %v16616_v40 }
 0xd1f   :  { %v8400_v61 = vadd.f32 %v8384_v24, %v8304_v53  ;;  %v8190_v56 = vrot.slane %v16891_v48, %v12978_v31  ;;  %v8270_v46 = vrot.slane %v16891_v48, %v12982_v34  ;;  %v8576_v59 = vmul.f32 %v8554_v3, %v16650_v44  ;;  %v17464_v3 = vld [vmem:[#allocation16_spill] sm:$0xff] }
 0xd20   :  { %v8894_v49 = vmul.f32 %v8878_v43, %v17463_v10  ;;  %v8687_v45 = vadd.f32 %v8671_v5, %v8591_v54  ;;  %v8366_v26 = vrot.slane %v16891_v48, %v12989_v38  ;;  %v8462_v30 = vrot.slane %v16891_v48, %v12993_v42 }
 0xd21   :  { %v8496_v17 = vadd.f32 %v8480_v12, %v8400_v61  ;;  %v8209_v63 = vmul.f32 %v8190_v56, %v16601_v20  ;;  %v8289_v35 = vmul.f32 %v8270_v46, %v16597_v51  ;;  %v8672_v9 = vmul.f32 %v8650_v57, %v16641_v1 }
 0xd22   :  { %12310 = vmatmul.mubr.msk.f32.gmra.mxu1 %vm276_vm0, %v8894_v49  ;;  %v8783_v14 = vadd.f32 %v8767_v19, %v8687_v45  ;;  %v8746_v55 = vrot.slane %v17462_v4, %v17453_v21  ;;  %v8842_v33 = vrot.slane %v17462_v4, %v17454_v47  ;;  %v8385_v0 = vmul.f32 %v8366_v26, %v16630_v37  ;;  %v17465_v45 = vld [vmem:[#allocation17_spill] sm:$0xff] }
 0xd23   :  { %v8592_v2 = vadd.f32 %v8576_v59, %v8496_v17  ;;  %v8305_v16 = vadd.f32 %v8289_v35, %v8209_v63  ;;  %v8558_v41 = vrot.slane %v16891_v48, %v17389_v25  ;;  %v8654_v15 = vrot.slane %v16891_v48, %v17388_v50 }
 0xd24   :  { %v8879_v39 = vadd.f32 %v8863_v23, %v8783_v14  ;;  %v8768_v13 = vmul.f32 %v8746_v55, %v16666_v62  ;;  %v8864_v28 = vmul.f32 %v8842_v33, %v16655_v32  ;;  %v8481_v22 = vmul.f32 %v8462_v30, %v16616_v40  ;;  %v17466_v33 = vld [vmem:[#allocation18_spill] sm:$0xff] }
 0xd25   :  { %v8688_v58 = vadd.f32 %v8672_v9, %v8592_v2  ;;  %v8401_v11 = vadd.f32 %v8385_v0, %v8305_v16  ;;  %v8194_v4 = vrot.slane %v16888_v18, %v12978_v31  ;;  %v8750_v19 = vrot.slane %v16891_v48, %v17453_v21 }
 0xd26   :  { %v8895_v5 = vmul.f32 %v8879_v39, %v17464_v3  ;;  %v8274_v53 = vrot.slane %v16888_v18, %v12982_v34  ;;  %v8370_v24 = vrot.slane %v16888_v18, %v12989_v38  ;;  %v8577_v23 = vmul.f32 %v8558_v41, %v16650_v44  ;;  %v17467_v39 = vld [vmem:[#allocation19_spill] sm:$0xff] }
 0xd27   :  { %v8784_v43 = vadd.f32 %v8768_v13, %v8688_v58  ;;  %v8497_v54 = vadd.f32 %v8481_v22, %v8401_v11  ;;  %v8210_v57 = vmul.f32 %v8194_v4, %v16601_v20  ;;  %v8466_v61 = vrot.slane %v16888_v18, %v12993_v42 }
 0xd28   :  { %12312 = vmatprep.mubr.msk.f32.mxu1 %vm276_vm0, %v8895_v5  ;;  %v8290_v31 = vmul.f32 %v8274_v53, %v16597_v51  ;;  %v8673_v34 = vmul.f32 %v8654_v15, %v16641_v1  ;;  %v8846_v38 = vrot.slane %v16891_v48, %v17454_v47  ;;  %v8386_v49 = vmul.f32 %v8370_v24, %v16630_v37 }
 0xd29   :  { %v8880_v12 = vadd.f32 %v8864_v28, %v8784_v43  ;;  %v8593_v56 = vadd.f32 %v8577_v23, %v8497_v54  ;;  %v8562_v20 = vrot.slane %v16888_v18, %v17389_v25  ;;  %v8769_v51 = vmul.f32 %v8750_v19, %v16666_v62 }
 0xd2a   :  { %v8306_v46 = vadd.f32 %v8290_v31, %v8210_v57  ;;  %v8482_v42 = vmul.f32 %v8466_v61, %v16616_v40  ;;  %v8658_v63 = vrot.slane %v16888_v18, %v17388_v50  ;;  %v8865_v35 = vmul.f32 %v8846_v38, %v16655_v32 }
 0xd2b   :  { %v8896_v59 = vmul.f32 %v8880_v12, %v17465_v45  ;;  %v8689_v26 = vadd.f32 %v8673_v34, %v8593_v56  ;;  %v8578_v30 = vmul.f32 %v8562_v20, %v16650_v44  ;;  %v8754_v25 = vrot.slane %v16888_v18, %v17453_v21 }
 0xd2c   :  { %v8402_v17 = vadd.f32 %v8386_v49, %v8306_v46  ;;  %v8674_v55 = vmul.f32 %v8658_v63, %v16641_v1  ;;  %v8850_v40 = vrot.slane %v16888_v18, %v17454_v47  ;;  %v17468_v13 = vmov 0.0   ;;  %v17024_v1 = vpop.f32.mrf.mxu0 }
 0xd2d   :  { %12313 = vmatmul.mubr.msk.f32.gmra.mxu1 %vm276_vm0, %v8896_v59  ;;  %v8785_v48 = vadd.f32 %v8769_v51, %v8689_v26  ;;  %v8770_v16 = vmul.f32 %v8754_v25, %v16666_v62 }
 0xd2e   :  { %v8498_v37 = vadd.f32 %v8482_v42, %v8402_v17  ;;  %v8866_v44 = vmul.f32 %v8850_v40, %v16655_v32  ;;  %v17028_v18 = vpop.f32.mrf.mxu0 }
 0xd2f   :  { %v8881_v14 = vadd.f32 %v8865_v35, %v8785_v48 }
 0xd30   :  { %v8594_v9 = vadd.f32 %v8578_v30, %v8498_v37  ;;  %v17032_v28 = vpop.f32.mrf.mxu0 }
 0xd31   :  { %v8897_v50 = vmul.f32 %v8881_v14, %v17466_v33 }
 0xd32   :  { %v8690_v2 = vadd.f32 %v8674_v55, %v8594_v9  ;;  %v17036_v32 = vpop.f32.mrf.mxu0 }
 0xd33   :  { %12315 = vmatprep.mubr.msk.f32.mxu1 %vm276_vm0, %v8897_v50 }
 0xd34   :  { %v8786_v0 = vadd.f32 %v8770_v16, %v8690_v2  ;;  %v17040_v11 = vpop.f32.mrf.mxu0 }
 0xd36   :  { %v8882_v41 = vadd.f32 %v8866_v44, %v8786_v0  ;;  %v17044_v4 = vpop.f32.mrf.mxu0 }
 0xd38   :  { %v8898_v21 = vmul.f32 %v8882_v41, %v17467_v39  ;;  %v12271_v19 = vpop.f32.mrf.mxu0 }
 0xd3a   :  { %12316 = vmatmul.mubr.msk.f32.gmra.mxu1 %vm276_vm0, %v8898_v21  ;;  %v8995_v24 = vpop.f32.mrf.mxu0 }
 0xd3b   :  { %12385 = vmatprep.mubr.msk.f32.mxu1 %vm12513_vm1, %v17468_v13 }
 0xd3c   :  { %v12274_v54 = vpop.f32.mrf.mxu0 }
 0xd3e   :  { %v9005_v57 = vpop.f32.mrf.mxu0 }
 0xd40   :  { %v12277_v61 = vpop.f32.mrf.mxu0 }
 0xd42   :  { %v9015_v56 = vpop.f32.mrf.mxu0 }
 0xd44   :  { %v12280_v38 = vpop.f32.mrf.mxu0 }
 0xd46   :  { %v9025_v49 = vpop.f32.mrf.mxu0 }
 0xd48   :  { %v12283_v59 = vpop.f32.mrf.mxu0 }
 0xd4a   :  { %v9035_v42 = vpop.f32.mrf.mxu0 }
 0xd9e   :  { %v17026_v47 = vpop.f32.mrf.mxu1 }
 0xda0   :  { %v17030_v62 = vpop.f32.mrf.mxu1 }
 0xdb2   :  { %v17034_v15 = vpop.f32.mrf.mxu1 }
 0xdb4   :  { %v17038_v58 = vpop.f32.mrf.mxu1 }
 0xdbd   :  { %v17042_v22 = vpop.f32.mrf.mxu1 }
 0xdbf   :  { %v17046_v5 = vpop.f32.mrf.mxu1 }
 0xdca   :  { %v12305_v53 = vpop.f32.mrf.mxu1 }
 0xdcb   :  { %v9194_v44 = vadd.f32 %v12305_v53, %v12271_v19 }
 0xdcc   :  { %v9188_v43 = vpop.f32.mrf.mxu1 }
 0xdcd   :  { %v9244_v19 = vmul.f32 %v9194_v44, %v13039_v8  ;;  %v9174_v8 = vadd.f32 %v17034_v15, %v17032_v28  ;;  %v17472_v44 = vld [vmem:[#allocation21_spill] sm:$0xff] }
 0xdcf   :  { %v9240_v28 = vmul.f32 %v9174_v8, %v12986_v36  ;;  %v17470_v36 = vld [vmem:[#allocation6_spill] sm:$0xff] }
 0xdd5   :  { %v12308_v23 = vpop.f32.mrf.mxu1 }
 0xdd6   :  { %v9204_v2 = vadd.f32 %v12308_v23, %v12274_v54  ;;  %v17471_v23 = vld [vmem:[#allocation5_spill] sm:$0xff] }
 0xdd7   :  { %v9198_v31 = vpop.f32.mrf.mxu1 }
 0xde2   :  { %v12311_v12 = vpop.f32.mrf.mxu1 }
 0xde3   :  { %v9214_v30 = vadd.f32 %v12311_v12, %v12277_v61  ;;  %v10536_v61 = vld [vmem:[%s17269_s7 + $0xc0] sm:$0xff] }
 0xde4   :  { %v9208_v34 = vpop.f32.mrf.mxu1  ;;  %v10542_v12 = vld [vmem:[%s17270_s8 + $0xc0] sm:$0xff] }
 0xde5   :  { %v9209_v55 = vadd.f32 %v9208_v34, %v9015_v56  ;;  %v9248_v16 = vmul.f32 %v9214_v30, %v17463_v10  ;;  %v9246_v10 = vmul.f32 %v9204_v2, %v17459_v60  ;;  %v9184_v60 = vadd.f32 %v17042_v22, %v17040_v11  ;;  %v12486_v56 = vld [vmem:[%s17386_s26] sm:$0x3]  ;;  %v12487_v34 = vld [vmem:[%s17386_s26 + $0x2] sm:$0x3]  ;;  %v9585_v2 = vld [vmem:[%s17273_s11 + $0x30] sm:$0xff] }
 0xde6   :  { %v9260_v22 = vmax.f32 %v9244_v19, 0.0 }
 0xde7   :  { %v9264_v41 = vmax.f32 %v9248_v16, 0.0  ;;  %v9262_v53 = vmax.f32 %v9246_v10, 0.0  ;;  %v9242_v11 = vmul.f32 %v9184_v60, %v13011_v52  ;;  %v9164_v52 = vadd.f32 %v17026_v47, %v17024_v1  ;;  %v9586_v16 = vld [vmem:[%s17273_s11 + $0x38] sm:$0xff] }
 0xde8   :  { %v9256_v47 = vmax.f32 %v9240_v28, 0.0  ;;  %v9901_v28 = vld [vmem:[%s17277_s15 + $0x8] sm:$0xff] }
 0xde9   :  { %v9258_v15 = vmax.f32 %v9242_v11, 0.0  ;;  %v9238_v1 = vmul.f32 %v9164_v52, %v17470_v36  ;;  %v9907_v11 = vld [vmem:[%s17277_s15 + $0x38] sm:$0xff]  ;;  %v9902_v52 = vld [vmem:[%s17277_s15 + $0x10] sm:$0xff]  ;;  %v10562_v36 = vld [vmem:[%s17279_s17] ss:$0 sm:$0xff] }
 0xded   :  { %v12314_v46 = vpop.f32.mrf.mxu1 }
 0xdee   :  { %v9224_v51 = vadd.f32 %v12314_v46, %v12280_v38  ;;  %v10535_v38 = vld [vmem:[%s17269_s7 + $0xb8] sm:$0xff] }
 0xdef   :  { %v9218_v20 = vpop.f32.mrf.mxu1  ;;  %v10541_v46 = vld [vmem:[%s17270_s8 + $0xb8] sm:$0xff] }
 0xdf0   :  { %v9219_v48 = vadd.f32 %v9218_v20, %v9025_v49  ;;  %v9250_v25 = vmul.f32 %v9224_v51, %v17465_v45  ;;  %v9199_v45 = vadd.f32 %v9198_v31, %v9005_v57  ;;  %v9254_v57 = vmax.f32 %v9238_v1, 0.0  ;;  %v10534_v49 = vld [vmem:[%s17269_s7 + $0xb0] sm:$0xff]  ;;  %v10539_v51 = vld [vmem:[%s17270_s8 + $0xa8] sm:$0xff] }
 0xdf1   :  { %v10540_v20 = vld [vmem:[%s17270_s8 + $0xb0] sm:$0xff] }
 0xdf2   :  { %v9249_v40 = vmul.f32 %v9219_v48, %v17464_v3  ;;  %v9266_v0 = vmax.f32 %v9250_v25, 0.0  ;;  %v9247_v3 = vmul.f32 %v9209_v55, %v17461_v29  ;;  %v9245_v29 = vmul.f32 %v9199_v45, %v17458_v6  ;;  %v9580_v25 = vld [vmem:[%s17273_s11 + $0x8] sm:$0xff]  ;;  %v9582_v55 = vld [vmem:[%s17273_s11 + $0x18] sm:$0xff]  ;;  %v9717_v45 = vld [vmem:[%s17275_s13] sm:$0xff] }
 0xdf3   :  { %v9179_v6 = vadd.f32 %v17046_v5, %v17044_v4 }
 0xdf4   :  { %v9263_v21 = vmax.f32 %v9247_v3, 0.0 }
 0xdf5   :  { %v9241_v4 = vmul.f32 %v9179_v6, %v13037_v7  ;;  %v9159_v7 = vadd.f32 %v17030_v62, %v17028_v18 }
 0xdf7   :  { %v9257_v54 = vmax.f32 %v9241_v4, 0.0  ;;  %v9237_v18 = vmul.f32 %v9159_v7, %v17471_v23  ;;  %v9904_v4 = vld [vmem:[%s17277_s15 + $0x20] sm:$0xff] }
 0xdf9   :  { %v9253_v31 = vmax.f32 %v9237_v18, 0.0 }
 0xdfa   :  { %v12317_v26 = vpop.f32.mrf.mxu1 }
 0xdfb   :  { %v9234_v17 = vadd.f32 %v12317_v26, %v12283_v59  ;;  %v10533_v59 = vld [vmem:[%s17269_s7 + $0xa8] sm:$0xff]  ;;  %v10532_v26 = vld [vmem:[%s17269_s7 + $0xa0] sm:$0xff]  ;;  %s12514_s7 = smov 32  }
 0xdfc   :  { %v9228_v63 = vpop.f32.mrf.mxu1 }
 0xdfd   :  { %v9252_v35 = vmul.f32 %v9234_v17, %v17467_v39  ;;  %v9229_v37 = vadd.f32 %v9228_v63, %v9035_v42  ;;  %v9189_v39 = vadd.f32 %v9188_v43, %v8995_v24  ;;  %v9261_v43 = vmax.f32 %v9245_v29, 0.0  ;;  %v9578_v17 = vld [vmem:[%s17272_s10 + $0x8] sm:$0xff]  ;;  %v10538_v42 = vld [vmem:[%s17270_s8 + $0xa0] sm:$0xff]  ;;  %s10085_s8 = sshll.u32 %s12515_s1, 4  ;;  %s10086_s8 = int_to_ptr.vmem [resolvable:$true] %s10085_s8 }
 0xdfe   :  { %v9579_v63 = vld [vmem:[%s17273_s11] sm:$0xff]  ;;  %p12493_p1 = scmp.lt.s32.totalorder %s10086_s8, %s10086_s8 }
 0xdff   :  { %v9268_v14 = vmax.f32 %v9252_v35, 0.0  ;;  %v9251_v9 = vmul.f32 %v9229_v37, %v17466_v33  ;;  %v9265_v33 = vmax.f32 %v9249_v40, 0.0  ;;  %v9243_v24 = vmul.f32 %v9189_v39, %v13057_v27  ;;  %v9577_v37 = vld [vmem:[%s17272_s10] sm:$0xff] }
 0xe00   :  { %v9169_v27 = vadd.f32 %v17038_v58, %v17036_v32  ;;  %v17469_v32 = vld [vmem:[#allocation11_spill] sm:$0xff]  ;;  %v9583_v40 = vld [vmem:[%s17273_s11 + $0x20] sm:$0xff] }
 0xe01   :  { %v9267_v50 = vmax.f32 %v9251_v9, 0.0  ;;  %12319 = vmatpush3.msra.mxu0 %v9268_v14  ;;  %12354 = vmatpush3.msra.mxu1 %v9268_v14  ;;  %v9259_v5 = vmax.f32 %v9243_v24, 0.0  ;;  %v9581_v9 = vld [vmem:[%s17273_s11 + $0x10] sm:$0xff] }
 0xe02   :  { %12320 = vmatprep.subr.mxu0 %v17468_v13  ;;  %12355 = vmatprep.subr.mxu1 %v17468_v13  ;;  %v9239_v58 = vmul.f32 %v9169_v27, %v17469_v32  ;;  %v9905_v27 = vld [vmem:[%s17277_s15 + $0x28] sm:$0xff] }
 0xe03   :  { %12321 = vmatpush3.msra.mxu0 %v9267_v50  ;;  %12356 = vmatpush3.msra.mxu1 %v9267_v50  ;;  %v9584_v50 = vld [vmem:[%s17273_s11 + $0x28] sm:$0xff] }
 0xe04   :  { %12322 = vmatprep.subr.mxu0 %v17468_v13  ;;  %12357 = vmatprep.subr.mxu1 %v17468_v13  ;;  %v9255_v62 = vmax.f32 %v9239_v58, 0.0 }
 0xe05   :  { %12323 = vmatpush3.msra.mxu0 %v9266_v0  ;;  %12358 = vmatpush3.msra.mxu1 %v9266_v0  ;;  %v9718_v0 = vld [vmem:[%s17275_s13 + $0x8] sm:$0x3] }
 0xe06   :  { %12324 = vmatprep.subr.mxu0 %v17468_v13  ;;  %12359 = vmatprep.subr.mxu1 %v17468_v13 }
 0xe07   :  { %12325 = vmatpush3.msra.mxu0 %v9265_v33  ;;  %12360 = vmatpush3.msra.mxu1 %v9265_v33 }
 0xe08   :  { %12326 = vmatprep.subr.mxu0 %v17468_v13  ;;  %12361 = vmatprep.subr.mxu1 %v17468_v13 }
 0xe09   :  { %12327 = vmatpush3.msra.mxu0 %v9264_v41  ;;  %12362 = vmatpush3.msra.mxu1 %v9264_v41 }
 0xe0a   :  { %12328 = vmatprep.subr.mxu0 %v17468_v13  ;;  %12363 = vmatprep.subr.mxu1 %v17468_v13 }
 0xe0b   :  { %12329 = vmatpush3.msra.mxu0 %v9263_v21  ;;  %12364 = vmatpush3.msra.mxu1 %v9263_v21 }
 0xe0c   :  { %12330 = vmatprep.subr.mxu0 %v17468_v13  ;;  %12365 = vmatprep.subr.mxu1 %v17468_v13 }
 0xe0d   :  { %12331 = vmatpush3.msra.mxu0 %v9262_v53  ;;  %12366 = vmatpush3.msra.mxu1 %v9262_v53 }
 0xe0e   :  { %12332 = vmatprep.subr.mxu0 %v17468_v13  ;;  %12367 = vmatprep.subr.mxu1 %v17468_v13 }
 0xe0f   :  { %12333 = vmatpush3.msra.mxu0 %v9261_v43  ;;  %12368 = vmatpush3.msra.mxu1 %v9261_v43 }
 0xe10   :  { %12334 = vmatprep.subr.mxu0 %v17468_v13  ;;  %12369 = vmatprep.subr.mxu1 %v17468_v13 }
 0xe11   :  { %12335 = vmatpush3.msra.mxu0 %v9260_v22  ;;  %12370 = vmatpush3.msra.mxu1 %v9260_v22  ;;  %v9906_v22 = vld [vmem:[%s17277_s15 + $0x30] sm:$0xff] }
 0xe12   :  { %12336 = vmatprep.subr.mxu0 %v17468_v13  ;;  %12371 = vmatprep.subr.mxu1 %v17468_v13 }
 0xe13   :  { %12337 = vmatpush3.msra.mxu0 %v9259_v5  ;;  %12372 = vmatpush3.msra.mxu1 %v9259_v5  ;;  %v9903_v5 = vld [vmem:[%s17277_s15 + $0x18] sm:$0xff] }
 0xe14   :  { %12338 = vmatprep.subr.mxu0 %v17468_v13  ;;  %12373 = vmatprep.subr.mxu1 %v17468_v13 }
 0xe15   :  { %12339 = vmatpush3.msra.mxu0 %v9258_v15  ;;  %12374 = vmatpush3.msra.mxu1 %v9258_v15  ;;  %v9900_v15 = vld [vmem:[%s17277_s15] sm:$0xff] }
 0xe16   :  { %12340 = vmatprep.subr.mxu0 %v17468_v13  ;;  %12375 = vmatprep.subr.mxu1 %v17468_v13 }
 0xe17   :  { %12341 = vmatpush3.msra.mxu0 %v9257_v54  ;;  %12376 = vmatpush3.msra.mxu1 %v9257_v54  ;;  %v10563_v54 = vld [vmem:[%s17279_s17 + $0x1] ss:$0 sm:$0xff] }
 0xe18   :  { %12342 = vmatprep.subr.mxu0 %v17468_v13  ;;  %12377 = vmatprep.subr.mxu1 %v17468_v13 }
 0xe19   :  { %12343 = vmatpush3.msra.mxu0 %v9256_v47  ;;  %12378 = vmatpush3.msra.mxu1 %v9256_v47  ;;  %v10564_v47 = vld [vmem:[%s17279_s17 + $0x2] ss:$0 sm:$0xff] }
 0xe1a   :  { %12344 = vmatprep.subr.mxu0 %v17468_v13  ;;  %12379 = vmatprep.subr.mxu1 %v17468_v13 }
 0xe1b   :  { %12345 = vmatpush3.msra.mxu0 %v9255_v62  ;;  %12380 = vmatpush3.msra.mxu1 %v9255_v62 }
 0xe1c   :  { %12346 = vmatprep.subr.mxu0 %v17468_v13  ;;  %12381 = vmatprep.subr.mxu1 %v17468_v13 }
 0xe1d   :  { %12347 = vmatpush3.msra.mxu0 %v9254_v57  ;;  %12382 = vmatpush3.msra.mxu1 %v9254_v57 }
 0xe1e   :  { %12348 = vmatprep.subr.mxu0 %v17468_v13  ;;  %12383 = vmatprep.subr.mxu1 %v17468_v13 }
 0xe1f   :  { %12349 = vmatpush3.msra.mxu0 %v9253_v31  ;;  %12384 = vmatpush3.msra.mxu1 %v9253_v31 }
 0xe20   :  { %12351 = vmatmul.mubr.f32.vlgmr.msra.gmra.mxu0 %v12486_v56  ;;  %12386 = vmatmul.mubr.f32.vlgmr.msra.gmra.mxu1 %v12487_v34 }
 0xe21   :  { %12388 = vmatprep.subr.mxu0 %v17468_v13  ;;  %12401 = vmatprep.subr.mxu1 %v17468_v13 }
 0xe22   :  { %12389 = vmatpush3.msra.mxu0 %v10536_v61  ;;  %12402 = vmatpush3.msra.mxu1 %v10542_v12  ;;  %v10565_v12 = vld [vmem:[%s17279_s17 + $0x3] ss:$0 sm:$0xff] }
 0xe23   :  { %12390 = vmatprep.subr.mxu0 %v17468_v13  ;;  %12403 = vmatprep.subr.mxu1 %v17468_v13 }
 0xe24   :  { %12391 = vmatpush3.msra.mxu0 %v10535_v38  ;;  %12404 = vmatpush3.msra.mxu1 %v10541_v46 }
 0xe25   :  { %12392 = vmatprep.subr.mxu0 %v17468_v13  ;;  %12405 = vmatprep.subr.mxu1 %v17468_v13 }
 0xe26   :  { %12393 = vmatpush3.msra.mxu0 %v10534_v49  ;;  %12406 = vmatpush3.msra.mxu1 %v10540_v20 }
 0xe27   :  { %12394 = vmatprep.subr.mxu0 %v17468_v13  ;;  %12407 = vmatprep.subr.mxu1 %v17468_v13 }
 0xe28   :  { %12395 = vmatpush3.msra.mxu0 %v10533_v59  ;;  %12398 = vmatprep.mubr.msk.f32.mxu0 %vm12513_vm1, %v17468_v13 }
 0xe29   :  { %12396 = vmatprep.subr.mxu0 %v17468_v13  ;;  %12411 = vmatprep.mubr.msk.f32.mxu1 %vm12513_vm1, %v17468_v13 }
 0xe2a   :  { %12397 = vmatpush3.msra.mxu0 %v10532_v26  ;;  %12408 = vmatpush3.msra.mxu1 %v10539_v51 }
 0xe2b   :  { %12409 = vmatprep.subr.mxu1 %v17468_v13  ;;  %12414 = vmatprep.subr.mxu0 %v9578_v17 }
 0xe2c   :  { %12410 = vmatpush3.msra.mxu1 %v10538_v42  ;;  %v10566_v42 = vld [vmem:[%s17276_s14] ss:$0 sm:$0xff] }
 0xe2d   :  { %12430 = vmatprep.subr.msk.mxu1 %vm9744_vm3, %v9718_v0 }
 0xee0   :  { %v9335_v48 = vpop.f32.mrf.mxu0  ;;  %v9405_v35 = vpop.f32.mrf.mxu1 }
 0xee1   :  { %12399 = vmatmul.mubr.msk.f32.vlgmr.msra.gmra.mxu0 %vm276_vm0, %v9335_v48  ;;  %12412 = vmatmul.mubr.msk.f32.vlgmr.msra.gmra.mxu1 %vm276_vm0, %v9405_v35 }
 0xee2   :  { %v12352_v30 = vpop.f32.mrf.mxu0  ;;  %12415 = vmatpush3.msra.mxu0 %v9578_v17  ;;  %12418 = vmatprep.mubr.msk.f32.mxu0 %vm9587_vm2, %v9579_v63  ;;  %v12387_v14 = vpop.f32.mrf.mxu1 }
 0xee3   :  { %12416 = vmatprep.subr.mxu0 %v9577_v37  ;;  %12431 = vmatpush3.msk.msra.mxu1 %vm9744_vm3, %v9718_v0  ;;  %v10567_v14 = vld [vmem:[%s17278_s16] ss:$0 sm:$0xff] }
 0xee4   :  { %12417 = vmatpush3.msra.mxu0 %v9577_v37  ;;  %12432 = vmatprep.subr.mxu1 %v9717_v45 }
 0xee5   :  { %12419 = vmatmul.mubr.msk.f32.vlgmr.msra.gmra.mxu0 %vm9587_vm2, %v9580_v25  ;;  %12433 = vmatpush3.msra.mxu1 %v9717_v45  ;;  %v10544_v45 = vld [vmem:[%s17271_s9] ss:$0 sm:$0xff] }
 0xee6   :  { %12421 = vmatprep.mubr.msk.f32.mxu0 %vm9587_vm2, %v9581_v9  ;;  %12465 = vmatprep.subr.mxu1 %v17468_v13 }
 0xee7   :  { %12446 = vmatprep.subr.mxu0 %v9907_v11 }
 0xee8   :  { %12447 = vmatpush3.msra.mxu0 %v9907_v11 }
 0xee9   :  { %12422 = vmatmul.mubr.msk.f32.gmra.mxu0 %vm9587_vm2, %v9582_v55  ;;  %12448 = vmatprep.subr.mxu0 %v9906_v22 }
 0xeea   :  { %12424 = vmatprep.mubr.msk.f32.mxu0 %vm9587_vm2, %v9583_v40  ;;  %12449 = vmatpush3.msra.mxu0 %v9906_v22 }
 0xeeb   :  { %12450 = vmatprep.subr.mxu0 %v9905_v27 }
 0xeec   :  { %12451 = vmatpush3.msra.mxu0 %v9905_v27 }
 0xeed   :  { %12425 = vmatmul.mubr.msk.f32.gmra.mxu0 %vm9587_vm2, %v9584_v50  ;;  %12452 = vmatprep.subr.mxu0 %v9904_v4 }
 0xeee   :  { %12427 = vmatprep.mubr.msk.f32.mxu0 %vm9587_vm2, %v9585_v2  ;;  %12453 = vmatpush3.msra.mxu0 %v9904_v4  ;;  %v9997_v2 = vld [vmem:[%s17274_s12] sm:$0x3]  ;;  %s12488_s12 = scalar_lea.vmem %s10086_s8, 32 }
 0xeef   :  { %12454 = vmatprep.subr.mxu0 %v9903_v5  ;;  %p12489_p0 = scmp.ne.s32.totalorder %s10086_s8, %s12488_s12  ;;  %p12494_p2 = scmp.lt.s32.totalorder %s12488_s12, %s12488_s12 }
 0xef0   :  { %12455 = vmatpush3.msra.mxu0 %v9903_v5 }
 0xef1   :  { %12428 = vmatmul.mubr.msk.f32.gmra.mxu0 %vm9587_vm2, %v9586_v16  ;;  %12456 = vmatprep.subr.mxu0 %v9902_v52  ;;  %p12495_p3 = por %p12494_p2, %p12493_p1 }
 0xef2   :  { %12457 = vmatpush3.msra.mxu0 %v9902_v52 }
 0xef3   :  { %12458 = vmatprep.subr.mxu0 %v9901_v28  ;;  %p12496_p4 = pnand %p12495_p3, %p12489_p0 }
 0xef4   :  { %12459 = vmatpush3.msra.mxu0 %v9901_v28 }
 0xef5   :  { %12460 = vmatprep.subr.mxu0 %v9900_v15 }
 0xef6   :  { %12461 = vmatpush3.msra.mxu0 %v9900_v15 }
 0xfa1   :  { %v9484_v3 = vpop.f32.mrf.mxu0  ;;  %v9564_v33 = vpop.f32.mrf.mxu1 }
 0xfa2   :  { %v9488_v10 = vadd.f32 %v9484_v3, %v17472_v44 }
 0xfa3   :  { %v12400_v41 = vpop.f32.mrf.mxu0  ;;  %v12413_v39 = vpop.f32.mrf.mxu1 }
 0xfa4   :  { %v17204_v29 = vadd.f32 %v9564_v33, %v9488_v10 }
 0xfa5   :  { %v12420_v21 = vpop.f32.mrf.mxu0 }
 0xfa6   :  { %v9575_v3 = vadd.f32 %v10544_v45, %v17204_v29 }
 0xfa7   :  { %v9678_v60 = vpop.f32.mrf.mxu0 }
 0xfa8   :  { %12434 = vmatprep.mubr.msk.f32.mxu1 %vm9719_vm4, %v9678_v60  ;;  %v9576_v33 = vmax.f32 %v9575_v3, 0.0 }
 0xfa9   :  { %v12423_v19 = vpop.f32.mrf.mxu0  ;;  %12435 = vmatmul.mubr.msk.f32.vlgmr.msra.gmra.mxu1 %vm9719_vm4, %v12420_v21 }
 0xfab   :  { %v9688_v53 = vpop.f32.mrf.mxu0 }
 0xfac   :  { %12437 = vmatprep.mubr.msk.f32.mxu1 %vm9719_vm4, %v9688_v53 }
 0xfad   :  { %v12426_v6 = vpop.f32.mrf.mxu0  ;;  %12438 = vmatmul.mubr.msk.f32.gmra.mxu1 %vm9719_vm4, %v12423_v19 }
 0xfaf   :  { %v9698_v24 = vpop.f32.mrf.mxu0 }
 0xfb0   :  { %12440 = vmatprep.mubr.msk.f32.mxu1 %vm9719_vm4, %v9698_v24 }
 0xfb1   :  { %v12429_v43 = vpop.f32.mrf.mxu0  ;;  %12441 = vmatmul.mubr.msk.f32.gmra.mxu1 %vm9719_vm4, %v12426_v6 }
 0xfb3   :  { %v9708_v8 = vpop.f32.mrf.mxu0 }
 0xfb4   :  { %12443 = vmatprep.mubr.msk.f32.mxu1 %vm9719_vm4, %v9708_v8 }
 0xfb5   :  { %12444 = vmatmul.mubr.msk.f32.gmra.mxu1 %vm9719_vm4, %v12429_v43 }
 0xfb6   :  { %12469 = vmatprep.mubr.msk.f32.mxu1 %vm12513_vm1, %v17468_v13 }
0x1069   :  { %v12436_v7 = vpop.f32.mrf.mxu1 }
0x106a   :  { %v9859_v62 = vmul.f32 %v12436_v7, %v10562_v36 }
0x106b   :  { %v9814_v32 = vpop.f32.mrf.mxu1 }
0x106c   :  { %v9858_v56 = vmul.f32 %v10562_v36, %v9814_v32 }
0x106d   :  { %v12439_v58 = vpop.f32.mrf.mxu1 }
0x106e   :  { %v9868_v23 = vmul.f32 %v12439_v58, %v10563_v54 }
0x106f   :  { %v9824_v1 = vpop.f32.mrf.mxu1 }
0x1070   :  { %v9867_v57 = vmul.f32 %v10563_v54, %v9824_v1  ;;  %v9870_v34 = vadd.f32 %v9868_v23, %v9859_v62 }
0x1071   :  { %v12442_v18 = vpop.f32.mrf.mxu1 }
0x1072   :  { %v9877_v31 = vmul.f32 %v12442_v18, %v10564_v47  ;;  %v9869_v49 = vadd.f32 %v9867_v57, %v9858_v56 }
0x1073   :  { %v9834_v61 = vpop.f32.mrf.mxu1 }
0x1074   :  { %v9876_v38 = vmul.f32 %v10564_v47, %v9834_v61  ;;  %v9879_v20 = vadd.f32 %v9877_v31, %v9870_v34 }
0x1075   :  { %v12445_v46 = vpop.f32.mrf.mxu1 }
0x1076   :  { %v9886_v59 = vmul.f32 %v12445_v46, %v10565_v12  ;;  %v9878_v51 = vadd.f32 %v9876_v38, %v9869_v49 }
0x1077   :  { %v9844_v26 = vpop.f32.mrf.mxu1 }
0x1078   :  { %v9888_v17 = vadd.f32 %v9886_v59, %v9879_v20  ;;  %v9885_v63 = vmul.f32 %v10565_v12, %v9844_v26 }
0x107a   :  { %v9887_v48 = vadd.f32 %v9885_v63, %v9878_v51  ;;  %v9897_v35 = vadd.f32 %v10566_v42, %v9888_v17 }
0x107c   :  { %v9896_v37 = vadd.f32 %v10566_v42, %v9887_v48  ;;  %v9899_v25 = vmax.f32 %v9897_v35, 0.0 }
0x107e   :  { %v9898_v30 = vmax.f32 %v9896_v37, 0.0 }
0x1080   :  { %12462 = vmatprep.mubr.msk.f32.mxu0 %vm9915_vm5, %v9898_v30 }
0x1081   :  { %12463 = vmatmul.mubr.msk.f32.vlgmr.msra.gmra.mxu0 %vm9915_vm5, %v9899_v25 }
0x1141   :  { %v12464_v9 = vpop.f32.mrf.mxu0 }
0x1142   :  { %v9994_v55 = vadd.f32 %v12464_v9, %v10567_v14 }
0x1143   :  { %v9988_v40 = vpop.f32.mrf.mxu0 }
0x1144   :  { %v9989_v50 = vadd.f32 %v10567_v14, %v9988_v40  ;;  %12466 = vmatpush3.msra.mxu1 %v9994_v55 }
0x1145   :  { %12467 = vmatprep.subr.mxu1 %v17468_v13 }
0x1146   :  { %12468 = vmatpush3.msra.mxu1 %v9989_v50 }
0x1147   :  { %12470 = vmatmul.mubr.msk.f32.vlgmr.msra.gmra.mxu1 %vm9587_vm2, %v9997_v2 }
0x1207   :  { %v10067_v16 = vpop.f32.mrf.mxu1 }
0x1208   :  { %10072 = vrot.lane.b32.xlu1 %v10067_v16, %s12514_s7 }
0x1209   :  { %v12471_v0 = vpop.f32.mrf.mxu1 }
0x127a   :  { %v10073_v44 = vpop.permute.xlu1 %10072 }
0x127b   :  { %v10076_v13 = vsel %vm10075_vm6, %v9576_v33, %v10073_v44 }
0x127c   :  { %10078 = vst.msk [vmem:[#allocation2] sm:$0x3] %vm10077_vm7, %v10076_v13 }
0x127d   :  { %12499 = shalt.err (!%p12496_p4)
}
0x127e   :  { %10088 = dma.vmem_to_hbm [thread:$0]  %s10086_s8, 32, %s17280_s18, [#allocation3]  }
0x127f   :  { %12508 = dma.done.wait [#allocation3], 32  }
0x1280   :  { %12509 = vsyncadd [#allocation3], 4294967264 }
0x1281   :  { %10092 = vsyncpa [#allocation3], 1 }

</bundles_post_ra>
